<compile_context>
chip_gen: v6e
topology: v6e:2x2x1
jax: 0.10.0
libtpu: 0.0.40
codegen_flags: <defaults>
</compile_context>

<pallas_src>
import functools

import numpy as np
import jax
import jax.numpy as jnp
from jax.experimental import pallas as pl
from jax.experimental.pallas import tpu as pltpu


# ==========================================================================
# Host-side constant 0/1 matrices.  They let the kernel do padding, K-tap
# unfolding and phase/band interleaving purely with MXU dots.
# ==========================================================================
def _tap_select_matrices(T, K, dilation, pad_l, pad_r, mode):
    """(K, T, Tout) 0/1 matrices S with (h @ S[k])[ci, n] == padded_h[ci, n+k*d].

    `mode` is "reflect" or "zero".  Tout = T + pad_l + pad_r - (K-1)*dilation.
    """
    if mode == "reflect":
        assert pad_l <= T - 1 and pad_r <= T - 1, "reflect pad requires pad < T"
    Tp = T + pad_l + pad_r
    Tout = Tp - (K - 1) * dilation
    src = np.full((Tp,), -1, np.int64)
    for j in range(Tp):
        m = j - pad_l
        if 0 <= m < T:
            src[j] = m
        elif mode == "reflect":
            src[j] = -m if m < 0 else 2 * T - 2 - m
        # zero mode: stays -1 -> all-zero column (implicit zero padding)
    S = np.zeros((K, T, Tout), np.float32)
    for k in range(K):
        for n in range(Tout):
            s = src[n + k * dilation]
            if s >= 0:
                S[k, s, n] = 1.0
    return S


def _interleave_matrices(phases, T):
    """(phases, T, phases*T) matrices Q: sum_a (y_a @ Q[a]) interleaves the
    per-phase signals y_a along time (out[:, phases*n + a] = y_a[:, n])."""
    Q = np.zeros((phases, T, phases * T), np.float32)
    for a in range(phases):
        for n in range(T):
            Q[a, n, phases * n + a] = 1.0
    return Q


# ==========================================================================
# Weight layout precomputation (done once at init)
# ==========================================================================
def fold_conv_w(w):
    """(Cout, Cin, K) -> (Cout, K*Cin); column layout tap-major then channel."""
    cout, cin, k = w.shape
    return jnp.transpose(w, (0, 2, 1)).reshape(cout, k * cin)


def fold_transpose_polyphase(w_t, b, s):
    """ConvTranspose1d(Cin, Cout, K=2s, stride=s, pad=s//2+s%2, out_pad=s%2)
    as a polyphase conv.  w_t: (Cin, Cout, 2s) in PyTorch layout.

    Returns W_poly: (s*Cout, 3*Cin) applied to a 3-tap unfold of the
    (1,1)-zero-padded input; row a*Cout+co is output phase a.
    """
    w = np.asarray(w_t)
    cin, cout, K = w.shape
    assert K == 2 * s
    p = s // 2 + s % 2
    W = np.zeros((s * cout, 3 * cin), np.float32)
    for a in range(s):
        r = (a + p) % s
        dlt = (a + p) // s
        W[a * cout:(a + 1) * cout, dlt * cin:(dlt + 1) * cin] = w[:, :, r + s].T
        W[a * cout:(a + 1) * cout, (dlt + 1) * cin:(dlt + 2) * cin] = w[:, :, r].T
    bf = np.tile(np.asarray(b), s)
    return jnp.asarray(W), jnp.asarray(bf)


def pqmf_synthesis_filter(bands, length, cutoff_ratio, beta):
    """Kaiser-window PQMF synthesis filter bank, (bands, length+1), numpy."""
    taps = length
    n = np.arange(taps + 1, dtype=np.float64)
    omega_c = np.pi * cutoff_ratio
    with np.errstate(invalid="ignore", divide="ignore"):
        h_i = np.sin(omega_c * (n - 0.5 * taps)) / (np.pi * (n - 0.5 * taps))
    if taps % 2 == 0:
        h_i[taps // 2] = cutoff_ratio
    h_proto = h_i * np.kaiser(taps + 1, beta)
    h_syn = np.zeros((bands, taps + 1), dtype=np.float64)
    for k in range(bands):
        h_syn[k] = 2.0 * h_proto * np.cos(
            (2 * k + 1) * (np.pi / (2 * bands)) * (n - taps / 2.0)
            - ((-1) ** k) * np.pi / 4.0)
    return h_syn.astype(np.float32)


def build_pqmf_polyphase(h_syn, bands, length):
    """Polyphase synthesis matrix: wav[bands*n+a] = sum_{o,ci} W[a, o*bands+ci]
    * x[ci, n + o + omin].  Returns (W, ntaps, pad_left, pad_right)."""
    L2 = length // 2
    per_phase, offs = [], []
    for a in range(bands):
        d = {}
        for k in range(length + 1):
            if (a + k - L2) % bands == 0:
                o = (a + k - L2) // bands
                d[o] = k
                offs.append(o)
        per_phase.append(d)
    omin, omax = min(offs), max(offs)
    assert omin <= 0 <= omax
    ntap = omax - omin + 1
    W = np.zeros((bands, ntap * bands), np.float32)
    for a in range(bands):
        for o, k in per_phase[a].items():
            W[a, (o - omin) * bands:(o - omin + 1) * bands] = bands * h_syn[:, k]
    return jnp.asarray(W), ntap, -omin, omax


# ==========================================================================
# Generator parameters
# ==========================================================================
def _normal(key, shape, scale=0.02):
    return scale * jax.random.normal(key, shape, jnp.float32)


def init_generator(key, mels, channels, bands, scales, stacks=3):
    keys = iter(jax.random.split(key, 128))

    def conv_p(cout, cin, k):
        return {"w": _normal(next(keys), (cout, cin, k)),
                "b": 0.01 * jax.random.normal(next(keys), (cout,), jnp.float32)}

    params = {"pre": conv_p(channels, mels, 7), "ups": []}
    c = channels
    for s in scales:
        tw = _normal(next(keys), (c, c // 2, 2 * s))
        tb = 0.01 * jax.random.normal(next(keys), (c // 2,), jnp.float32)
        up = {"t": {"w": tw, "b": tb}, "res": []}
        c = c // 2
        for _ in range(stacks):
            up["res"].append({"c1": conv_p(c, c, 3),    # dilated 3x1 conv
                              "c2": conv_p(c, c, 1),    # pointwise
                              "sc": conv_p(c, c, 1)})   # shortcut
        params["ups"].append(up)
    params["post"] = conv_p(bands, c, 7)
    return params


def prepare_weights(raw, scales, bands, pqmf_W):
    """Precompute folded / polyphase / merged weight layouts (jit-safe arrays)."""
    pre = {"W": fold_conv_w(raw["pre"]["w"]), "b": raw["pre"]["b"].reshape(-1, 1)}
    stages = []
    for s, up in zip(scales, raw["ups"]):
        Wt, bt = fold_transpose_polyphase(up["t"]["w"], up["t"]["b"], s)
        st = {"Wt": Wt, "bt": bt.reshape(-1, 1), "res": []}
        for rs in up["res"]:
            w1f = fold_conv_w(rs["c1"]["w"])            # (C, 3C)
            wsc = rs["sc"]["w"][:, :, 0]                # (C, C)
            C = w1f.shape[0]
            # merged block-diagonal [dilated conv | 1x1 shortcut] weight
            Wrb = jnp.concatenate(
                [jnp.concatenate([w1f, jnp.zeros((C, C), jnp.float32)], axis=1),
                 jnp.concatenate([jnp.zeros((C, 3 * C), jnp.float32), wsc],
                                 axis=1)], axis=0)      # (2C, 4C)
            brb = jnp.concatenate([rs["c1"]["b"], rs["sc"]["b"]]).reshape(-1, 1)
            st["res"].append({"Wrb": Wrb, "brb": brb,
                              "W2": rs["c2"]["w"][:, :, 0],
                              "b2": rs["c2"]["b"].reshape(-1, 1)})
        stages.append(st)
    post = {"W": fold_conv_w(raw["post"]["w"]), "b": raw["post"]["b"].reshape(-1, 1)}
    pq = None
    if pqmf_W is not None:
        # rows pre-split per band so the kernel never needs an unaligned
        # sublane slice: W3[a] is the (1, ntap*bands) polyphase row of band a.
        pq = {"W3": pqmf_W.reshape(bands, 1, -1)}
    return {"pre": pre, "stages": stages, "post": post, "pqmf": pq}


# ==========================================================================
# The single fused Pallas kernel
# ==========================================================================
def _melgan_kernel(*refs, B, channels, bands, scales, stacks, pqmf_K):
    x_ref, o_ref = refs[0], refs[-1]
    wi = iter(refs[1:-1])
    nxt = lambda: next(wi)

    # -- unpack weight refs in the exact order _melgan_forward builds them --
    Wpre, bpre, Spre = nxt(), nxt(), nxt()
    stage_refs = []
    c = channels
    for s in scales:
        Wt, bt, St, Q = nxt(), nxt(), nxt(), nxt()
        c //= 2
        res = [(nxt(), nxt(), nxt(), nxt(), nxt()) for _ in range(stacks)]
        stage_refs.append((s, c, Wt, bt, St, Q, res))
    Wpost, bpost, Spost = nxt(), nxt(), nxt()
    if bands > 1:
        Wpq3, Spq, Eband = nxt(), nxt(), nxt()

    def leaky(v):
        return jnp.where(v > 0, v, 0.2 * v)

    def unfold(h, S_ref, K):
        # (Cin, T) -> (K*Cin, Tout).  Padding + tap shift are encoded in the
        # constant 0/1 matrices S[k] (MXU dots), stacked along sublanes.
        taps = [jnp.dot(h, S_ref[k], preferred_element_type=jnp.float32)
                for k in range(K)]
        return jnp.concatenate(taps, axis=0) if K > 1 else taps[0]

    def conv(h, W_ref, b_ref, S_ref, K):
        xu = unfold(h, S_ref, K)
        return jnp.dot(W_ref[...], xu,
                       preferred_element_type=jnp.float32) + b_ref[...]

    for bb in range(B):                              # compile-time batch loop
        h = x_ref[bb]                                # (mels, T0)
        h = conv(h, Wpre, bpre, Spre, 7)             # (channels, T0)

        for (s, cs, Wt, bt, St, Q, res) in stage_refs:
            # Polyphase (sub-pixel) ConvTranspose1d: one K=3 conv producing
            # s phase blocks, interleaved into time via permutation matmuls.
            y = conv(leaky(h), Wt, bt, St, 3)        # (s*cs, T)
            h = jnp.dot(y[0:cs, :], Q[0], preferred_element_type=jnp.float32)
            for a in range(1, s):
                h = h + jnp.dot(y[a * cs:(a + 1) * cs, :], Q[a],
                                preferred_element_type=jnp.float32)

            # Fused residual blocks: merged [dilated 3x1 conv | 1x1 shortcut]
            # block-diagonal matmul, 1x1 conv, residual add (all in VMEM).
            for (Wrb, brb, W2, b2, Srb) in res:
                xu = unfold(leaky(h), Srb, 3)                    # (3C, T)
                big = jnp.concatenate([xu, h], axis=0)           # (4C, T)
                ys = jnp.dot(Wrb[...], big,
                             preferred_element_type=jnp.float32) + brb[...]
                y1, sc = ys[:cs, :], ys[cs:, :]
                y2 = jnp.dot(W2[...], leaky(y1),
                             preferred_element_type=jnp.float32) + b2[...]
                h = y2 + sc

        h = jnp.tanh(conv(leaky(h), Wpost, bpost, Spost, 7))     # (bands, Tf)

        if bands > 1:
            # PQMF synthesis: polyphase filter-bank matmuls + band interleave.
            xu = unfold(h, Spq, pqmf_K)                          # (K*bands, Tf)
            ya = jnp.dot(Wpq3[0], xu, preferred_element_type=jnp.float32)
            wav = jnp.dot(ya, Eband[0], preferred_element_type=jnp.float32)
            for a in range(1, bands):
                ya = jnp.dot(Wpq3[a], xu, preferred_element_type=jnp.float32)
                wav = wav + jnp.dot(ya, Eband[a],
                                    preferred_element_type=jnp.float32)
        else:
            wav = h                                              # (1, Tf)

        o_ref[pl.ds(bb, 1), :] = wav                             # lane-dense row


# ==========================================================================
# Forward pass (one pallas_call for the whole vocoder)
# ==========================================================================
def _rough_flops(B, T0, mels, channels, bands, scales, stacks, pqmf_K):
    f = 2 * channels * 7 * mels * T0
    T, c = T0, channels
    for s in scales:
        f += 2 * (s * (c // 2)) * 3 * c * T
        c //= 2
        T *= s
        f += stacks * (2 * (2 * c) * (4 * c) * T + 2 * c * c * T)
    f += 2 * bands * 7 * c * T
    f += 2 * bands * pqmf_K * bands * T
    return int(f) * B


def _melgan_forward(mel, weights, *, channels, bands, scales, stacks,
                    pqmf_K, pqmf_pad):
    B, mels, T0 = mel.shape
    up = 1
    for s in scales:
        up *= s
    Twav = bands * T0 * up

    cst = lambda a: jnp.asarray(a)
    ops = [mel,
           weights["pre"]["W"], weights["pre"]["b"],
           cst(_tap_select_matrices(T0, 7, 1, 3, 3, "reflect"))]
    T = T0
    for s, st in zip(scales, weights["stages"]):
        ops += [st["Wt"], st["bt"],
                cst(_tap_select_matrices(T, 3, 1, 1, 1, "zero")),
                cst(_interleave_matrices(s, T))]
        T *= s
        for j, rb in enumerate(st["res"]):
            d = 3 ** j
            ops += [rb["Wrb"], rb["brb"], rb["W2"], rb["b2"],
                    cst(_tap_select_matrices(T, 3, d, d, d, "reflect"))]
    ops += [weights["post"]["W"], weights["post"]["b"],
            cst(_tap_select_matrices(T, 7, 1, 3, 3, "reflect"))]
    if bands > 1:
        ops += [weights["pqmf"]["W3"],
                cst(_tap_select_matrices(T, pqmf_K, 1, pqmf_pad[0],
                                         pqmf_pad[1], "zero")),
                cst(_interleave_matrices(bands, T))]

    kern = functools.partial(_melgan_kernel, B=B, channels=channels,
                             bands=bands, scales=tuple(scales), stacks=stacks,
                             pqmf_K=pqmf_K)
    flops = _rough_flops(B, T0, mels, channels, bands, scales, stacks, pqmf_K)
    bytes_acc = int(sum(int(np.prod(o.shape)) for o in ops) * 4 + B * Twav * 4)

    return pl.pallas_call(
        kern,
        out_shape=jax.ShapeDtypeStruct((B, Twav), jnp.float32),
        compiler_params=pltpu.CompilerParams(
            vmem_limit_bytes=32 * 1024 * 1024),
        cost_estimate=pl.CostEstimate(flops=flops,
                                      transcendentals=int(B * bands * T0 * up),
                                      bytes_accessed=bytes_acc),
    )(*ops)


# ==========================================================================
# MelGAN top level (forward == decode)
# ==========================================================================
class MelGANPallas:
    def __init__(self, key, *, mels=16, channels=32, bands=4, scales=(2, 2),
                 cutoff_ratio=0.148, beta=9.0, length=63, stacks=3):
        self.bands = bands
        raw = init_generator(key, mels, channels, bands, scales, stacks)
        if bands > 1:
            h_syn = pqmf_synthesis_filter(bands, length, cutoff_ratio, beta)
            Wpq, K, pad_l, pad_r = build_pqmf_polyphase(h_syn, bands, length)
        else:
            Wpq, K, pad_l, pad_r = None, 1, 0, 0
        self.weights = prepare_weights(raw, scales, bands, Wpq)
        self._fwd = jax.jit(functools.partial(
            _melgan_forward, channels=channels, bands=bands,
            scales=tuple(scales), stacks=stacks, pqmf_K=K,
            pqmf_pad=(pad_l, pad_r)))

    def __call__(self, melspec):
        """melspec: (B, mels, T) or (mels, T) -> waveform (B, Twav) / (Twav,)."""
        squeeze = melspec.ndim == 2
        x = melspec[None] if squeeze else melspec
        wav = self._fwd(x.astype(jnp.float32), self.weights)
        return wav[0] if squeeze else wav


if __name__ == "__main__":
    key = jax.random.PRNGKey(0)
    kp, kx = jax.random.split(key)

    B, MELS, T = 2, 16, 8
    model = MelGANPallas(kp, mels=MELS, channels=32, bands=4, scales=(2, 2))

    melspec = jax.random.normal(kx, (B, MELS, T), jnp.float32)
    wav = model(melspec)                    # (B, T * 2 * 2 * bands) = (2, 128)
    jax.block_until_ready(wav)

    assert wav.shape == (B, T * 2 * 2 * 4), wav.shape
    assert bool(jnp.all(jnp.isfinite(wav)))
    print("KERNEL_OK")
</pallas_src>

<mosaic_0001>
module attributes {stable_mosaic.version = 11 : i64} {
  func.func @_melgan_kernel(%arg0: memref<2x16x8xf32, #tpu.memory_space<vmem>>, %arg1: memref<32x112xf32, #tpu.memory_space<vmem>>, %arg2: memref<32x1xf32, #tpu.memory_space<vmem>>, %arg3: memref<7x8x8xf32, #tpu.memory_space<vmem>>, %arg4: memref<32x96xf32, #tpu.memory_space<vmem>>, %arg5: memref<32x1xf32, #tpu.memory_space<vmem>>, %arg6: memref<3x8x8xf32, #tpu.memory_space<vmem>>, %arg7: memref<2x8x16xf32, #tpu.memory_space<vmem>>, %arg8: memref<32x64xf32, #tpu.memory_space<vmem>>, %arg9: memref<32x1xf32, #tpu.memory_space<vmem>>, %arg10: memref<16x16xf32, #tpu.memory_space<vmem>>, %arg11: memref<16x1xf32, #tpu.memory_space<vmem>>, %arg12: memref<3x16x16xf32, #tpu.memory_space<vmem>>, %arg13: memref<32x64xf32, #tpu.memory_space<vmem>>, %arg14: memref<32x1xf32, #tpu.memory_space<vmem>>, %arg15: memref<16x16xf32, #tpu.memory_space<vmem>>, %arg16: memref<16x1xf32, #tpu.memory_space<vmem>>, %arg17: memref<3x16x16xf32, #tpu.memory_space<vmem>>, %arg18: memref<32x64xf32, #tpu.memory_space<vmem>>, %arg19: memref<32x1xf32, #tpu.memory_space<vmem>>, %arg20: memref<16x16xf32, #tpu.memory_space<vmem>>, %arg21: memref<16x1xf32, #tpu.memory_space<vmem>>, %arg22: memref<3x16x16xf32, #tpu.memory_space<vmem>>, %arg23: memref<16x48xf32, #tpu.memory_space<vmem>>, %arg24: memref<16x1xf32, #tpu.memory_space<vmem>>, %arg25: memref<3x16x16xf32, #tpu.memory_space<vmem>>, %arg26: memref<2x16x32xf32, #tpu.memory_space<vmem>>, %arg27: memref<16x32xf32, #tpu.memory_space<vmem>>, %arg28: memref<16x1xf32, #tpu.memory_space<vmem>>, %arg29: memref<8x8xf32, #tpu.memory_space<vmem>>, %arg30: memref<8x1xf32, #tpu.memory_space<vmem>>, %arg31: memref<3x32x32xf32, #tpu.memory_space<vmem>>, %arg32: memref<16x32xf32, #tpu.memory_space<vmem>>, %arg33: memref<16x1xf32, #tpu.memory_space<vmem>>, %arg34: memref<8x8xf32, #tpu.memory_space<vmem>>, %arg35: memref<8x1xf32, #tpu.memory_space<vmem>>, %arg36: memref<3x32x32xf32, #tpu.memory_space<vmem>>, %arg37: memref<16x32xf32, #tpu.memory_space<vmem>>, %arg38: memref<16x1xf32, #tpu.memory_space<vmem>>, %arg39: memref<8x8xf32, #tpu.memory_space<vmem>>, %arg40: memref<8x1xf32, #tpu.memory_space<vmem>>, %arg41: memref<3x32x32xf32, #tpu.memory_space<vmem>>, %arg42: memref<4x56xf32, #tpu.memory_space<vmem>>, %arg43: memref<4x1xf32, #tpu.memory_space<vmem>>, %arg44: memref<7x32x32xf32, #tpu.memory_space<vmem>>, %arg45: memref<4x1x64xf32, #tpu.memory_space<vmem>>, %arg46: memref<16x32x32xf32, #tpu.memory_space<vmem>>, %arg47: memref<4x32x128xf32, #tpu.memory_space<vmem>>, %arg48: memref<2x128xf32, #tpu.memory_space<vmem>>) attributes {dimension_semantics = [], scalar_prefetch = 0 : i64, scratch_operands = 0 : i64, tpu.core_type = #tpu.core_type<tc>} {
    %c0 = arith.constant 0 : index
    %c0_0 = arith.constant 0 : index
    %c0_1 = arith.constant 0 : index
    %0 = vector.load %arg0[%c0, %c0_0, %c0_1] : memref<2x16x8xf32, #tpu.memory_space<vmem>>, vector<1x16x8xf32>
    %1 = vector.shape_cast %0 : vector<1x16x8xf32> to vector<16x8xf32>
    %c0_2 = arith.constant 0 : index
    %c0_3 = arith.constant 0 : index
    %c0_4 = arith.constant 0 : index
    %2 = vector.load %arg3[%c0_2, %c0_3, %c0_4] : memref<7x8x8xf32, #tpu.memory_space<vmem>>, vector<1x8x8xf32>
    %3 = vector.shape_cast %2 : vector<1x8x8xf32> to vector<8x8xf32>
    %cst = arith.constant dense<0.000000e+00> : vector<16x8xf32>
    %4 = tpu.matmul %1, %3, %cst {dimension_numbers = #tpu.dot_dimension_numbers<[1], [0], [0], [1], [0, 0, 1, 1], [], []>} : vector<16x8xf32>, vector<8x8xf32>, vector<16x8xf32> -> vector<16x8xf32>
    %c1 = arith.constant 1 : index
    %c0_5 = arith.constant 0 : index
    %c0_6 = arith.constant 0 : index
    %5 = vector.load %arg3[%c1, %c0_5, %c0_6] : memref<7x8x8xf32, #tpu.memory_space<vmem>>, vector<1x8x8xf32>
    %6 = vector.shape_cast %5 : vector<1x8x8xf32> to vector<8x8xf32>
    %cst_7 = arith.constant dense<0.000000e+00> : vector<16x8xf32>
    %7 = tpu.matmul %1, %6, %cst_7 {dimension_numbers = #tpu.dot_dimension_numbers<[1], [0], [0], [1], [0, 0, 1, 1], [], []>} : vector<16x8xf32>, vector<8x8xf32>, vector<16x8xf32> -> vector<16x8xf32>
    %c2 = arith.constant 2 : index
    %c0_8 = arith.constant 0 : index
    %c0_9 = arith.constant 0 : index
    %8 = vector.load %arg3[%c2, %c0_8, %c0_9] : memref<7x8x8xf32, #tpu.memory_space<vmem>>, vector<1x8x8xf32>
    %9 = vector.shape_cast %8 : vector<1x8x8xf32> to vector<8x8xf32>
    %cst_10 = arith.constant dense<0.000000e+00> : vector<16x8xf32>
    %10 = tpu.matmul %1, %9, %cst_10 {dimension_numbers = #tpu.dot_dimension_numbers<[1], [0], [0], [1], [0, 0, 1, 1], [], []>} : vector<16x8xf32>, vector<8x8xf32>, vector<16x8xf32> -> vector<16x8xf32>
    %c3 = arith.constant 3 : index
    %c0_11 = arith.constant 0 : index
    %c0_12 = arith.constant 0 : index
    %11 = vector.load %arg3[%c3, %c0_11, %c0_12] : memref<7x8x8xf32, #tpu.memory_space<vmem>>, vector<1x8x8xf32>
    %12 = vector.shape_cast %11 : vector<1x8x8xf32> to vector<8x8xf32>
    %cst_13 = arith.constant dense<0.000000e+00> : vector<16x8xf32>
    %13 = tpu.matmul %1, %12, %cst_13 {dimension_numbers = #tpu.dot_dimension_numbers<[1], [0], [0], [1], [0, 0, 1, 1], [], []>} : vector<16x8xf32>, vector<8x8xf32>, vector<16x8xf32> -> vector<16x8xf32>
    %c4 = arith.constant 4 : index
    %c0_14 = arith.constant 0 : index
    %c0_15 = arith.constant 0 : index
    %14 = vector.load %arg3[%c4, %c0_14, %c0_15] : memref<7x8x8xf32, #tpu.memory_space<vmem>>, vector<1x8x8xf32>
    %15 = vector.shape_cast %14 : vector<1x8x8xf32> to vector<8x8xf32>
    %cst_16 = arith.constant dense<0.000000e+00> : vector<16x8xf32>
    %16 = tpu.matmul %1, %15, %cst_16 {dimension_numbers = #tpu.dot_dimension_numbers<[1], [0], [0], [1], [0, 0, 1, 1], [], []>} : vector<16x8xf32>, vector<8x8xf32>, vector<16x8xf32> -> vector<16x8xf32>
    %c5 = arith.constant 5 : index
    %c0_17 = arith.constant 0 : index
    %c0_18 = arith.constant 0 : index
    %17 = vector.load %arg3[%c5, %c0_17, %c0_18] : memref<7x8x8xf32, #tpu.memory_space<vmem>>, vector<1x8x8xf32>
    %18 = vector.shape_cast %17 : vector<1x8x8xf32> to vector<8x8xf32>
    %cst_19 = arith.constant dense<0.000000e+00> : vector<16x8xf32>
    %19 = tpu.matmul %1, %18, %cst_19 {dimension_numbers = #tpu.dot_dimension_numbers<[1], [0], [0], [1], [0, 0, 1, 1], [], []>} : vector<16x8xf32>, vector<8x8xf32>, vector<16x8xf32> -> vector<16x8xf32>
    %c6 = arith.constant 6 : index
    %c0_20 = arith.constant 0 : index
    %c0_21 = arith.constant 0 : index
    %20 = vector.load %arg3[%c6, %c0_20, %c0_21] : memref<7x8x8xf32, #tpu.memory_space<vmem>>, vector<1x8x8xf32>
    %21 = vector.shape_cast %20 : vector<1x8x8xf32> to vector<8x8xf32>
    %cst_22 = arith.constant dense<0.000000e+00> : vector<16x8xf32>
    %22 = tpu.matmul %1, %21, %cst_22 {dimension_numbers = #tpu.dot_dimension_numbers<[1], [0], [0], [1], [0, 0, 1, 1], [], []>} : vector<16x8xf32>, vector<8x8xf32>, vector<16x8xf32> -> vector<16x8xf32>
    %23 = tpu.concatenate %4, %7, %10, %13, %16, %19, %22 in 0 : vector<16x8xf32>, vector<16x8xf32>, vector<16x8xf32>, vector<16x8xf32>, vector<16x8xf32>, vector<16x8xf32>, vector<16x8xf32> -> vector<112x8xf32>
    %c0_23 = arith.constant 0 : index
    %c0_24 = arith.constant 0 : index
    %24 = vector.load %arg1[%c0_23, %c0_24] : memref<32x112xf32, #tpu.memory_space<vmem>>, vector<32x112xf32>
    %cst_25 = arith.constant dense<0.000000e+00> : vector<32x8xf32>
    %25 = tpu.matmul %24, %23, %cst_25 {dimension_numbers = #tpu.dot_dimension_numbers<[1], [0], [0], [1], [0, 0, 1, 1], [], []>} : vector<32x112xf32>, vector<112x8xf32>, vector<32x8xf32> -> vector<32x8xf32>
    %c0_26 = arith.constant 0 : index
    %c0_27 = arith.constant 0 : index
    %26 = vector.load %arg2[%c0_26, %c0_27] : memref<32x1xf32, #tpu.memory_space<vmem>>, vector<32x1xf32>
    %27 = vector.broadcast %26 : vector<32x1xf32> to vector<32x8xf32>
    %28 = arith.addf %25, %27 : vector<32x8xf32>
    %cst_28 = arith.constant 0.000000e+00 : f32
    %29 = vector.broadcast %cst_28 : f32 to vector<32x8xf32>
    %30 = arith.cmpf ogt, %28, %29 : vector<32x8xf32>
    %cst_29 = arith.constant 2.000000e-01 : f32
    %31 = vector.broadcast %cst_29 : f32 to vector<32x8xf32>
    %32 = arith.mulf %31, %28 : vector<32x8xf32>
    %33 = arith.select %30, %28, %32 : vector<32x8xi1>, vector<32x8xf32>
    %c0_30 = arith.constant 0 : index
    %c0_31 = arith.constant 0 : index
    %c0_32 = arith.constant 0 : index
    %34 = vector.load %arg6[%c0_30, %c0_31, %c0_32] : memref<3x8x8xf32, #tpu.memory_space<vmem>>, vector<1x8x8xf32>
    %35 = vector.shape_cast %34 : vector<1x8x8xf32> to vector<8x8xf32>
    %cst_33 = arith.constant dense<0.000000e+00> : vector<32x8xf32>
    %36 = tpu.matmul %33, %35, %cst_33 {dimension_numbers = #tpu.dot_dimension_numbers<[1], [0], [0], [1], [0, 0, 1, 1], [], []>} : vector<32x8xf32>, vector<8x8xf32>, vector<32x8xf32> -> vector<32x8xf32>
    %c1_34 = arith.constant 1 : index
    %c0_35 = arith.constant 0 : index
    %c0_36 = arith.constant 0 : index
    %37 = vector.load %arg6[%c1_34, %c0_35, %c0_36] : memref<3x8x8xf32, #tpu.memory_space<vmem>>, vector<1x8x8xf32>
    %38 = vector.shape_cast %37 : vector<1x8x8xf32> to vector<8x8xf32>
    %cst_37 = arith.constant dense<0.000000e+00> : vector<32x8xf32>
    %39 = tpu.matmul %33, %38, %cst_37 {dimension_numbers = #tpu.dot_dimension_numbers<[1], [0], [0], [1], [0, 0, 1, 1], [], []>} : vector<32x8xf32>, vector<8x8xf32>, vector<32x8xf32> -> vector<32x8xf32>
    %c2_38 = arith.constant 2 : index
    %c0_39 = arith.constant 0 : index
    %c0_40 = arith.constant 0 : index
    %40 = vector.load %arg6[%c2_38, %c0_39, %c0_40] : memref<3x8x8xf32, #tpu.memory_space<vmem>>, vector<1x8x8xf32>
    %41 = vector.shape_cast %40 : vector<1x8x8xf32> to vector<8x8xf32>
    %cst_41 = arith.constant dense<0.000000e+00> : vector<32x8xf32>
    %42 = tpu.matmul %33, %41, %cst_41 {dimension_numbers = #tpu.dot_dimension_numbers<[1], [0], [0], [1], [0, 0, 1, 1], [], []>} : vector<32x8xf32>, vector<8x8xf32>, vector<32x8xf32> -> vector<32x8xf32>
    %43 = tpu.concatenate %36, %39, %42 in 0 : vector<32x8xf32>, vector<32x8xf32>, vector<32x8xf32> -> vector<96x8xf32>
    %c0_42 = arith.constant 0 : index
    %c0_43 = arith.constant 0 : index
    %44 = vector.load %arg4[%c0_42, %c0_43] : memref<32x96xf32, #tpu.memory_space<vmem>>, vector<32x96xf32>
    %cst_44 = arith.constant dense<0.000000e+00> : vector<32x8xf32>
    %45 = tpu.matmul %44, %43, %cst_44 {dimension_numbers = #tpu.dot_dimension_numbers<[1], [0], [0], [1], [0, 0, 1, 1], [], []>} : vector<32x96xf32>, vector<96x8xf32>, vector<32x8xf32> -> vector<32x8xf32>
    %c0_45 = arith.constant 0 : index
    %c0_46 = arith.constant 0 : index
    %46 = vector.load %arg5[%c0_45, %c0_46] : memref<32x1xf32, #tpu.memory_space<vmem>>, vector<32x1xf32>
    %47 = vector.broadcast %46 : vector<32x1xf32> to vector<32x8xf32>
    %48 = arith.addf %45, %47 : vector<32x8xf32>
    %49 = vector.extract_strided_slice %48 {offsets = [0, 0], sizes = [16, 8], strides = [1, 1]} : vector<32x8xf32> to vector<16x8xf32>
    %c0_47 = arith.constant 0 : index
    %c0_48 = arith.constant 0 : index
    %c0_49 = arith.constant 0 : index
    %50 = vector.load %arg7[%c0_47, %c0_48, %c0_49] : memref<2x8x16xf32, #tpu.memory_space<vmem>>, vector<1x8x16xf32>
    %51 = vector.shape_cast %50 : vector<1x8x16xf32> to vector<8x16xf32>
    %cst_50 = arith.constant dense<0.000000e+00> : vector<16x16xf32>
    %52 = tpu.matmul %49, %51, %cst_50 {dimension_numbers = #tpu.dot_dimension_numbers<[1], [0], [0], [1], [0, 0, 1, 1], [], []>} : vector<16x8xf32>, vector<8x16xf32>, vector<16x16xf32> -> vector<16x16xf32>
    %53 = vector.extract_strided_slice %48 {offsets = [16, 0], sizes = [16, 8], strides = [1, 1]} : vector<32x8xf32> to vector<16x8xf32>
    %c1_51 = arith.constant 1 : index
    %c0_52 = arith.constant 0 : index
    %c0_53 = arith.constant 0 : index
    %54 = vector.load %arg7[%c1_51, %c0_52, %c0_53] : memref<2x8x16xf32, #tpu.memory_space<vmem>>, vector<1x8x16xf32>
    %55 = vector.shape_cast %54 : vector<1x8x16xf32> to vector<8x16xf32>
    %cst_54 = arith.constant dense<0.000000e+00> : vector<16x16xf32>
    %56 = tpu.matmul %53, %55, %cst_54 {dimension_numbers = #tpu.dot_dimension_numbers<[1], [0], [0], [1], [0, 0, 1, 1], [], []>} : vector<16x8xf32>, vector<8x16xf32>, vector<16x16xf32> -> vector<16x16xf32>
    %57 = arith.addf %52, %56 : vector<16x16xf32>
    %cst_55 = arith.constant 0.000000e+00 : f32
    %58 = vector.broadcast %cst_55 : f32 to vector<16x16xf32>
    %59 = arith.cmpf ogt, %57, %58 : vector<16x16xf32>
    %cst_56 = arith.constant 2.000000e-01 : f32
    %60 = vector.broadcast %cst_56 : f32 to vector<16x16xf32>
    %61 = arith.mulf %60, %57 : vector<16x16xf32>
    %62 = arith.select %59, %57, %61 : vector<16x16xi1>, vector<16x16xf32>
    %c0_57 = arith.constant 0 : index
    %c0_58 = arith.constant 0 : index
    %c0_59 = arith.constant 0 : index
    %63 = vector.load %arg12[%c0_57, %c0_58, %c0_59] : memref<3x16x16xf32, #tpu.memory_space<vmem>>, vector<1x16x16xf32>
    %64 = vector.shape_cast %63 : vector<1x16x16xf32> to vector<16x16xf32>
    %cst_60 = arith.constant dense<0.000000e+00> : vector<16x16xf32>
    %65 = tpu.matmul %62, %64, %cst_60 {dimension_numbers = #tpu.dot_dimension_numbers<[1], [0], [0], [1], [0, 0, 1, 1], [], []>} : vector<16x16xf32>, vector<16x16xf32>, vector<16x16xf32> -> vector<16x16xf32>
    %c1_61 = arith.constant 1 : index
    %c0_62 = arith.constant 0 : index
    %c0_63 = arith.constant 0 : index
    %66 = vector.load %arg12[%c1_61, %c0_62, %c0_63] : memref<3x16x16xf32, #tpu.memory_space<vmem>>, vector<1x16x16xf32>
    %67 = vector.shape_cast %66 : vector<1x16x16xf32> to vector<16x16xf32>
    %cst_64 = arith.constant dense<0.000000e+00> : vector<16x16xf32>
    %68 = tpu.matmul %62, %67, %cst_64 {dimension_numbers = #tpu.dot_dimension_numbers<[1], [0], [0], [1], [0, 0, 1, 1], [], []>} : vector<16x16xf32>, vector<16x16xf32>, vector<16x16xf32> -> vector<16x16xf32>
    %c2_65 = arith.constant 2 : index
    %c0_66 = arith.constant 0 : index
    %c0_67 = arith.constant 0 : index
    %69 = vector.load %arg12[%c2_65, %c0_66, %c0_67] : memref<3x16x16xf32, #tpu.memory_space<vmem>>, vector<1x16x16xf32>
    %70 = vector.shape_cast %69 : vector<1x16x16xf32> to vector<16x16xf32>
    %cst_68 = arith.constant dense<0.000000e+00> : vector<16x16xf32>
    %71 = tpu.matmul %62, %70, %cst_68 {dimension_numbers = #tpu.dot_dimension_numbers<[1], [0], [0], [1], [0, 0, 1, 1], [], []>} : vector<16x16xf32>, vector<16x16xf32>, vector<16x16xf32> -> vector<16x16xf32>
    %72 = tpu.concatenate %65, %68, %71 in 0 : vector<16x16xf32>, vector<16x16xf32>, vector<16x16xf32> -> vector<48x16xf32>
    %73 = tpu.concatenate %72, %57 in 0 : vector<48x16xf32>, vector<16x16xf32> -> vector<64x16xf32>
    %c0_69 = arith.constant 0 : index
    %c0_70 = arith.constant 0 : index
    %74 = vector.load %arg8[%c0_69, %c0_70] : memref<32x64xf32, #tpu.memory_space<vmem>>, vector<32x64xf32>
    %cst_71 = arith.constant dense<0.000000e+00> : vector<32x16xf32>
    %75 = tpu.matmul %74, %73, %cst_71 {dimension_numbers = #tpu.dot_dimension_numbers<[1], [0], [0], [1], [0, 0, 1, 1], [], []>} : vector<32x64xf32>, vector<64x16xf32>, vector<32x16xf32> -> vector<32x16xf32>
    %c0_72 = arith.constant 0 : index
    %c0_73 = arith.constant 0 : index
    %76 = vector.load %arg9[%c0_72, %c0_73] : memref<32x1xf32, #tpu.memory_space<vmem>>, vector<32x1xf32>
    %77 = vector.broadcast %76 : vector<32x1xf32> to vector<32x16xf32>
    %78 = arith.addf %75, %77 : vector<32x16xf32>
    %79 = vector.extract_strided_slice %78 {offsets = [0, 0], sizes = [16, 16], strides = [1, 1]} : vector<32x16xf32> to vector<16x16xf32>
    %80 = vector.extract_strided_slice %78 {offsets = [16, 0], sizes = [16, 16], strides = [1, 1]} : vector<32x16xf32> to vector<16x16xf32>
    %c0_74 = arith.constant 0 : index
    %c0_75 = arith.constant 0 : index
    %81 = vector.load %arg10[%c0_74, %c0_75] : memref<16x16xf32, #tpu.memory_space<vmem>>, vector<16x16xf32>
    %cst_76 = arith.constant 0.000000e+00 : f32
    %82 = vector.broadcast %cst_76 : f32 to vector<16x16xf32>
    %83 = arith.cmpf ogt, %79, %82 : vector<16x16xf32>
    %cst_77 = arith.constant 2.000000e-01 : f32
    %84 = vector.broadcast %cst_77 : f32 to vector<16x16xf32>
    %85 = arith.mulf %84, %79 : vector<16x16xf32>
    %86 = arith.select %83, %79, %85 : vector<16x16xi1>, vector<16x16xf32>
    %cst_78 = arith.constant dense<0.000000e+00> : vector<16x16xf32>
    %87 = tpu.matmul %81, %86, %cst_78 {dimension_numbers = #tpu.dot_dimension_numbers<[1], [0], [0], [1], [0, 0, 1, 1], [], []>} : vector<16x16xf32>, vector<16x16xf32>, vector<16x16xf32> -> vector<16x16xf32>
    %c0_79 = arith.constant 0 : index
    %c0_80 = arith.constant 0 : index
    %88 = vector.load %arg11[%c0_79, %c0_80] : memref<16x1xf32, #tpu.memory_space<vmem>>, vector<16x1xf32>
    %89 = vector.broadcast %88 : vector<16x1xf32> to vector<16x16xf32>
    %90 = arith.addf %87, %89 : vector<16x16xf32>
    %91 = arith.addf %90, %80 : vector<16x16xf32>
    %cst_81 = arith.constant 0.000000e+00 : f32
    %92 = vector.broadcast %cst_81 : f32 to vector<16x16xf32>
    %93 = arith.cmpf ogt, %91, %92 : vector<16x16xf32>
    %cst_82 = arith.constant 2.000000e-01 : f32
    %94 = vector.broadcast %cst_82 : f32 to vector<16x16xf32>
    %95 = arith.mulf %94, %91 : vector<16x16xf32>
    %96 = arith.select %93, %91, %95 : vector<16x16xi1>, vector<16x16xf32>
    %c0_83 = arith.constant 0 : index
    %c0_84 = arith.constant 0 : index
    %c0_85 = arith.constant 0 : index
    %97 = vector.load %arg17[%c0_83, %c0_84, %c0_85] : memref<3x16x16xf32, #tpu.memory_space<vmem>>, vector<1x16x16xf32>
    %98 = vector.shape_cast %97 : vector<1x16x16xf32> to vector<16x16xf32>
    %cst_86 = arith.constant dense<0.000000e+00> : vector<16x16xf32>
    %99 = tpu.matmul %96, %98, %cst_86 {dimension_numbers = #tpu.dot_dimension_numbers<[1], [0], [0], [1], [0, 0, 1, 1], [], []>} : vector<16x16xf32>, vector<16x16xf32>, vector<16x16xf32> -> vector<16x16xf32>
    %c1_87 = arith.constant 1 : index
    %c0_88 = arith.constant 0 : index
    %c0_89 = arith.constant 0 : index
    %100 = vector.load %arg17[%c1_87, %c0_88, %c0_89] : memref<3x16x16xf32, #tpu.memory_space<vmem>>, vector<1x16x16xf32>
    %101 = vector.shape_cast %100 : vector<1x16x16xf32> to vector<16x16xf32>
    %cst_90 = arith.constant dense<0.000000e+00> : vector<16x16xf32>
    %102 = tpu.matmul %96, %101, %cst_90 {dimension_numbers = #tpu.dot_dimension_numbers<[1], [0], [0], [1], [0, 0, 1, 1], [], []>} : vector<16x16xf32>, vector<16x16xf32>, vector<16x16xf32> -> vector<16x16xf32>
    %c2_91 = arith.constant 2 : index
    %c0_92 = arith.constant 0 : index
    %c0_93 = arith.constant 0 : index
    %103 = vector.load %arg17[%c2_91, %c0_92, %c0_93] : memref<3x16x16xf32, #tpu.memory_space<vmem>>, vector<1x16x16xf32>
    %104 = vector.shape_cast %103 : vector<1x16x16xf32> to vector<16x16xf32>
    %cst_94 = arith.constant dense<0.000000e+00> : vector<16x16xf32>
    %105 = tpu.matmul %96, %104, %cst_94 {dimension_numbers = #tpu.dot_dimension_numbers<[1], [0], [0], [1], [0, 0, 1, 1], [], []>} : vector<16x16xf32>, vector<16x16xf32>, vector<16x16xf32> -> vector<16x16xf32>
    %106 = tpu.concatenate %99, %102, %105 in 0 : vector<16x16xf32>, vector<16x16xf32>, vector<16x16xf32> -> vector<48x16xf32>
    %107 = tpu.concatenate %106, %91 in 0 : vector<48x16xf32>, vector<16x16xf32> -> vector<64x16xf32>
    %c0_95 = arith.constant 0 : index
    %c0_96 = arith.constant 0 : index
    %108 = vector.load %arg13[%c0_95, %c0_96] : memref<32x64xf32, #tpu.memory_space<vmem>>, vector<32x64xf32>
    %cst_97 = arith.constant dense<0.000000e+00> : vector<32x16xf32>
    %109 = tpu.matmul %108, %107, %cst_97 {dimension_numbers = #tpu.dot_dimension_numbers<[1], [0], [0], [1], [0, 0, 1, 1], [], []>} : vector<32x64xf32>, vector<64x16xf32>, vector<32x16xf32> -> vector<32x16xf32>
    %c0_98 = arith.constant 0 : index
    %c0_99 = arith.constant 0 : index
    %110 = vector.load %arg14[%c0_98, %c0_99] : memref<32x1xf32, #tpu.memory_space<vmem>>, vector<32x1xf32>
    %111 = vector.broadcast %110 : vector<32x1xf32> to vector<32x16xf32>
    %112 = arith.addf %109, %111 : vector<32x16xf32>
    %113 = vector.extract_strided_slice %112 {offsets = [0, 0], sizes = [16, 16], strides = [1, 1]} : vector<32x16xf32> to vector<16x16xf32>
    %114 = vector.extract_strided_slice %112 {offsets = [16, 0], sizes = [16, 16], strides = [1, 1]} : vector<32x16xf32> to vector<16x16xf32>
    %c0_100 = arith.constant 0 : index
    %c0_101 = arith.constant 0 : index
    %115 = vector.load %arg15[%c0_100, %c0_101] : memref<16x16xf32, #tpu.memory_space<vmem>>, vector<16x16xf32>
    %cst_102 = arith.constant 0.000000e+00 : f32
    %116 = vector.broadcast %cst_102 : f32 to vector<16x16xf32>
    %117 = arith.cmpf ogt, %113, %116 : vector<16x16xf32>
    %cst_103 = arith.constant 2.000000e-01 : f32
    %118 = vector.broadcast %cst_103 : f32 to vector<16x16xf32>
    %119 = arith.mulf %118, %113 : vector<16x16xf32>
    %120 = arith.select %117, %113, %119 : vector<16x16xi1>, vector<16x16xf32>
    %cst_104 = arith.constant dense<0.000000e+00> : vector<16x16xf32>
    %121 = tpu.matmul %115, %120, %cst_104 {dimension_numbers = #tpu.dot_dimension_numbers<[1], [0], [0], [1], [0, 0, 1, 1], [], []>} : vector<16x16xf32>, vector<16x16xf32>, vector<16x16xf32> -> vector<16x16xf32>
    %c0_105 = arith.constant 0 : index
    %c0_106 = arith.constant 0 : index
    %122 = vector.load %arg16[%c0_105, %c0_106] : memref<16x1xf32, #tpu.memory_space<vmem>>, vector<16x1xf32>
    %123 = vector.broadcast %122 : vector<16x1xf32> to vector<16x16xf32>
    %124 = arith.addf %121, %123 : vector<16x16xf32>
    %125 = arith.addf %124, %114 : vector<16x16xf32>
    %cst_107 = arith.constant 0.000000e+00 : f32
    %126 = vector.broadcast %cst_107 : f32 to vector<16x16xf32>
    %127 = arith.cmpf ogt, %125, %126 : vector<16x16xf32>
    %cst_108 = arith.constant 2.000000e-01 : f32
    %128 = vector.broadcast %cst_108 : f32 to vector<16x16xf32>
    %129 = arith.mulf %128, %125 : vector<16x16xf32>
    %130 = arith.select %127, %125, %129 : vector<16x16xi1>, vector<16x16xf32>
    %c0_109 = arith.constant 0 : index
    %c0_110 = arith.constant 0 : index
    %c0_111 = arith.constant 0 : index
    %131 = vector.load %arg22[%c0_109, %c0_110, %c0_111] : memref<3x16x16xf32, #tpu.memory_space<vmem>>, vector<1x16x16xf32>
    %132 = vector.shape_cast %131 : vector<1x16x16xf32> to vector<16x16xf32>
    %cst_112 = arith.constant dense<0.000000e+00> : vector<16x16xf32>
    %133 = tpu.matmul %130, %132, %cst_112 {dimension_numbers = #tpu.dot_dimension_numbers<[1], [0], [0], [1], [0, 0, 1, 1], [], []>} : vector<16x16xf32>, vector<16x16xf32>, vector<16x16xf32> -> vector<16x16xf32>
    %c1_113 = arith.constant 1 : index
    %c0_114 = arith.constant 0 : index
    %c0_115 = arith.constant 0 : index
    %134 = vector.load %arg22[%c1_113, %c0_114, %c0_115] : memref<3x16x16xf32, #tpu.memory_space<vmem>>, vector<1x16x16xf32>
    %135 = vector.shape_cast %134 : vector<1x16x16xf32> to vector<16x16xf32>
    %cst_116 = arith.constant dense<0.000000e+00> : vector<16x16xf32>
    %136 = tpu.matmul %130, %135, %cst_116 {dimension_numbers = #tpu.dot_dimension_numbers<[1], [0], [0], [1], [0, 0, 1, 1], [], []>} : vector<16x16xf32>, vector<16x16xf32>, vector<16x16xf32> -> vector<16x16xf32>
    %c2_117 = arith.constant 2 : index
    %c0_118 = arith.constant 0 : index
    %c0_119 = arith.constant 0 : index
    %137 = vector.load %arg22[%c2_117, %c0_118, %c0_119] : memref<3x16x16xf32, #tpu.memory_space<vmem>>, vector<1x16x16xf32>
    %138 = vector.shape_cast %137 : vector<1x16x16xf32> to vector<16x16xf32>
    %cst_120 = arith.constant dense<0.000000e+00> : vector<16x16xf32>
    %139 = tpu.matmul %130, %138, %cst_120 {dimension_numbers = #tpu.dot_dimension_numbers<[1], [0], [0], [1], [0, 0, 1, 1], [], []>} : vector<16x16xf32>, vector<16x16xf32>, vector<16x16xf32> -> vector<16x16xf32>
    %140 = tpu.concatenate %133, %136, %139 in 0 : vector<16x16xf32>, vector<16x16xf32>, vector<16x16xf32> -> vector<48x16xf32>
    %141 = tpu.concatenate %140, %125 in 0 : vector<48x16xf32>, vector<16x16xf32> -> vector<64x16xf32>
    %c0_121 = arith.constant 0 : index
    %c0_122 = arith.constant 0 : index
    %142 = vector.load %arg18[%c0_121, %c0_122] : memref<32x64xf32, #tpu.memory_space<vmem>>, vector<32x64xf32>
    %cst_123 = arith.constant dense<0.000000e+00> : vector<32x16xf32>
    %143 = tpu.matmul %142, %141, %cst_123 {dimension_numbers = #tpu.dot_dimension_numbers<[1], [0], [0], [1], [0, 0, 1, 1], [], []>} : vector<32x64xf32>, vector<64x16xf32>, vector<32x16xf32> -> vector<32x16xf32>
    %c0_124 = arith.constant 0 : index
    %c0_125 = arith.constant 0 : index
    %144 = vector.load %arg19[%c0_124, %c0_125] : memref<32x1xf32, #tpu.memory_space<vmem>>, vector<32x1xf32>
    %145 = vector.broadcast %144 : vector<32x1xf32> to vector<32x16xf32>
    %146 = arith.addf %143, %145 : vector<32x16xf32>
    %147 = vector.extract_strided_slice %146 {offsets = [0, 0], sizes = [16, 16], strides = [1, 1]} : vector<32x16xf32> to vector<16x16xf32>
    %148 = vector.extract_strided_slice %146 {offsets = [16, 0], sizes = [16, 16], strides = [1, 1]} : vector<32x16xf32> to vector<16x16xf32>
    %c0_126 = arith.constant 0 : index
    %c0_127 = arith.constant 0 : index
    %149 = vector.load %arg20[%c0_126, %c0_127] : memref<16x16xf32, #tpu.memory_space<vmem>>, vector<16x16xf32>
    %cst_128 = arith.constant 0.000000e+00 : f32
    %150 = vector.broadcast %cst_128 : f32 to vector<16x16xf32>
    %151 = arith.cmpf ogt, %147, %150 : vector<16x16xf32>
    %cst_129 = arith.constant 2.000000e-01 : f32
    %152 = vector.broadcast %cst_129 : f32 to vector<16x16xf32>
    %153 = arith.mulf %152, %147 : vector<16x16xf32>
    %154 = arith.select %151, %147, %153 : vector<16x16xi1>, vector<16x16xf32>
    %cst_130 = arith.constant dense<0.000000e+00> : vector<16x16xf32>
    %155 = tpu.matmul %149, %154, %cst_130 {dimension_numbers = #tpu.dot_dimension_numbers<[1], [0], [0], [1], [0, 0, 1, 1], [], []>} : vector<16x16xf32>, vector<16x16xf32>, vector<16x16xf32> -> vector<16x16xf32>
    %c0_131 = arith.constant 0 : index
    %c0_132 = arith.constant 0 : index
    %156 = vector.load %arg21[%c0_131, %c0_132] : memref<16x1xf32, #tpu.memory_space<vmem>>, vector<16x1xf32>
    %157 = vector.broadcast %156 : vector<16x1xf32> to vector<16x16xf32>
    %158 = arith.addf %155, %157 : vector<16x16xf32>
    %159 = arith.addf %158, %148 : vector<16x16xf32>
    %cst_133 = arith.constant 0.000000e+00 : f32
    %160 = vector.broadcast %cst_133 : f32 to vector<16x16xf32>
    %161 = arith.cmpf ogt, %159, %160 : vector<16x16xf32>
    %cst_134 = arith.constant 2.000000e-01 : f32
    %162 = vector.broadcast %cst_134 : f32 to vector<16x16xf32>
    %163 = arith.mulf %162, %159 : vector<16x16xf32>
    %164 = arith.select %161, %159, %163 : vector<16x16xi1>, vector<16x16xf32>
    %c0_135 = arith.constant 0 : index
    %c0_136 = arith.constant 0 : index
    %c0_137 = arith.constant 0 : index
    %165 = vector.load %arg25[%c0_135, %c0_136, %c0_137] : memref<3x16x16xf32, #tpu.memory_space<vmem>>, vector<1x16x16xf32>
    %166 = vector.shape_cast %165 : vector<1x16x16xf32> to vector<16x16xf32>
    %cst_138 = arith.constant dense<0.000000e+00> : vector<16x16xf32>
    %167 = tpu.matmul %164, %166, %cst_138 {dimension_numbers = #tpu.dot_dimension_numbers<[1], [0], [0], [1], [0, 0, 1, 1], [], []>} : vector<16x16xf32>, vector<16x16xf32>, vector<16x16xf32> -> vector<16x16xf32>
    %c1_139 = arith.constant 1 : index
    %c0_140 = arith.constant 0 : index
    %c0_141 = arith.constant 0 : index
    %168 = vector.load %arg25[%c1_139, %c0_140, %c0_141] : memref<3x16x16xf32, #tpu.memory_space<vmem>>, vector<1x16x16xf32>
    %169 = vector.shape_cast %168 : vector<1x16x16xf32> to vector<16x16xf32>
    %cst_142 = arith.constant dense<0.000000e+00> : vector<16x16xf32>
    %170 = tpu.matmul %164, %169, %cst_142 {dimension_numbers = #tpu.dot_dimension_numbers<[1], [0], [0], [1], [0, 0, 1, 1], [], []>} : vector<16x16xf32>, vector<16x16xf32>, vector<16x16xf32> -> vector<16x16xf32>
    %c2_143 = arith.constant 2 : index
    %c0_144 = arith.constant 0 : index
    %c0_145 = arith.constant 0 : index
    %171 = vector.load %arg25[%c2_143, %c0_144, %c0_145] : memref<3x16x16xf32, #tpu.memory_space<vmem>>, vector<1x16x16xf32>
    %172 = vector.shape_cast %171 : vector<1x16x16xf32> to vector<16x16xf32>
    %cst_146 = arith.constant dense<0.000000e+00> : vector<16x16xf32>
    %173 = tpu.matmul %164, %172, %cst_146 {dimension_numbers = #tpu.dot_dimension_numbers<[1], [0], [0], [1], [0, 0, 1, 1], [], []>} : vector<16x16xf32>, vector<16x16xf32>, vector<16x16xf32> -> vector<16x16xf32>
    %174 = tpu.concatenate %167, %170, %173 in 0 : vector<16x16xf32>, vector<16x16xf32>, vector<16x16xf32> -> vector<48x16xf32>
    %c0_147 = arith.constant 0 : index
    %c0_148 = arith.constant 0 : index
    %175 = vector.load %arg23[%c0_147, %c0_148] : memref<16x48xf32, #tpu.memory_space<vmem>>, vector<16x48xf32>
    %cst_149 = arith.constant dense<0.000000e+00> : vector<16x16xf32>
    %176 = tpu.matmul %175, %174, %cst_149 {dimension_numbers = #tpu.dot_dimension_numbers<[1], [0], [0], [1], [0, 0, 1, 1], [], []>} : vector<16x48xf32>, vector<48x16xf32>, vector<16x16xf32> -> vector<16x16xf32>
    %c0_150 = arith.constant 0 : index
    %c0_151 = arith.constant 0 : index
    %177 = vector.load %arg24[%c0_150, %c0_151] : memref<16x1xf32, #tpu.memory_space<vmem>>, vector<16x1xf32>
    %178 = vector.broadcast %177 : vector<16x1xf32> to vector<16x16xf32>
    %179 = arith.addf %176, %178 : vector<16x16xf32>
    %180 = vector.extract_strided_slice %179 {offsets = [0, 0], sizes = [8, 16], strides = [1, 1]} : vector<16x16xf32> to vector<8x16xf32>
    %c0_152 = arith.constant 0 : index
    %c0_153 = arith.constant 0 : index
    %c0_154 = arith.constant 0 : index
    %181 = vector.load %arg26[%c0_152, %c0_153, %c0_154] : memref<2x16x32xf32, #tpu.memory_space<vmem>>, vector<1x16x32xf32>
    %182 = vector.shape_cast %181 : vector<1x16x32xf32> to vector<16x32xf32>
    %cst_155 = arith.constant dense<0.000000e+00> : vector<8x32xf32>
    %183 = tpu.matmul %180, %182, %cst_155 {dimension_numbers = #tpu.dot_dimension_numbers<[1], [0], [0], [1], [0, 0, 1, 1], [], []>} : vector<8x16xf32>, vector<16x32xf32>, vector<8x32xf32> -> vector<8x32xf32>
    %184 = vector.extract_strided_slice %179 {offsets = [8, 0], sizes = [8, 16], strides = [1, 1]} : vector<16x16xf32> to vector<8x16xf32>
    %c1_156 = arith.constant 1 : index
    %c0_157 = arith.constant 0 : index
    %c0_158 = arith.constant 0 : index
    %185 = vector.load %arg26[%c1_156, %c0_157, %c0_158] : memref<2x16x32xf32, #tpu.memory_space<vmem>>, vector<1x16x32xf32>
    %186 = vector.shape_cast %185 : vector<1x16x32xf32> to vector<16x32xf32>
    %cst_159 = arith.constant dense<0.000000e+00> : vector<8x32xf32>
    %187 = tpu.matmul %184, %186, %cst_159 {dimension_numbers = #tpu.dot_dimension_numbers<[1], [0], [0], [1], [0, 0, 1, 1], [], []>} : vector<8x16xf32>, vector<16x32xf32>, vector<8x32xf32> -> vector<8x32xf32>
    %188 = arith.addf %183, %187 : vector<8x32xf32>
    %cst_160 = arith.constant 0.000000e+00 : f32
    %189 = vector.broadcast %cst_160 : f32 to vector<8x32xf32>
    %190 = arith.cmpf ogt, %188, %189 : vector<8x32xf32>
    %cst_161 = arith.constant 2.000000e-01 : f32
    %191 = vector.broadcast %cst_161 : f32 to vector<8x32xf32>
    %192 = arith.mulf %191, %188 : vector<8x32xf32>
    %193 = arith.select %190, %188, %192 : vector<8x32xi1>, vector<8x32xf32>
    %c0_162 = arith.constant 0 : index
    %c0_163 = arith.constant 0 : index
    %c0_164 = arith.constant 0 : index
    %194 = vector.load %arg31[%c0_162, %c0_163, %c0_164] : memref<3x32x32xf32, #tpu.memory_space<vmem>>, vector<1x32x32xf32>
    %195 = vector.shape_cast %194 : vector<1x32x32xf32> to vector<32x32xf32>
    %cst_165 = arith.constant dense<0.000000e+00> : vector<8x32xf32>
    %196 = tpu.matmul %193, %195, %cst_165 {dimension_numbers = #tpu.dot_dimension_numbers<[1], [0], [0], [1], [0, 0, 1, 1], [], []>} : vector<8x32xf32>, vector<32x32xf32>, vector<8x32xf32> -> vector<8x32xf32>
    %c1_166 = arith.constant 1 : index
    %c0_167 = arith.constant 0 : index
    %c0_168 = arith.constant 0 : index
    %197 = vector.load %arg31[%c1_166, %c0_167, %c0_168] : memref<3x32x32xf32, #tpu.memory_space<vmem>>, vector<1x32x32xf32>
    %198 = vector.shape_cast %197 : vector<1x32x32xf32> to vector<32x32xf32>
    %cst_169 = arith.constant dense<0.000000e+00> : vector<8x32xf32>
    %199 = tpu.matmul %193, %198, %cst_169 {dimension_numbers = #tpu.dot_dimension_numbers<[1], [0], [0], [1], [0, 0, 1, 1], [], []>} : vector<8x32xf32>, vector<32x32xf32>, vector<8x32xf32> -> vector<8x32xf32>
    %c2_170 = arith.constant 2 : index
    %c0_171 = arith.constant 0 : index
    %c0_172 = arith.constant 0 : index
    %200 = vector.load %arg31[%c2_170, %c0_171, %c0_172] : memref<3x32x32xf32, #tpu.memory_space<vmem>>, vector<1x32x32xf32>
    %201 = vector.shape_cast %200 : vector<1x32x32xf32> to vector<32x32xf32>
    %cst_173 = arith.constant dense<0.000000e+00> : vector<8x32xf32>
    %202 = tpu.matmul %193, %201, %cst_173 {dimension_numbers = #tpu.dot_dimension_numbers<[1], [0], [0], [1], [0, 0, 1, 1], [], []>} : vector<8x32xf32>, vector<32x32xf32>, vector<8x32xf32> -> vector<8x32xf32>
    %203 = tpu.concatenate %196, %199, %202 in 0 : vector<8x32xf32>, vector<8x32xf32>, vector<8x32xf32> -> vector<24x32xf32>
    %204 = tpu.concatenate %203, %188 in 0 : vector<24x32xf32>, vector<8x32xf32> -> vector<32x32xf32>
    %c0_174 = arith.constant 0 : index
    %c0_175 = arith.constant 0 : index
    %205 = vector.load %arg27[%c0_174, %c0_175] : memref<16x32xf32, #tpu.memory_space<vmem>>, vector<16x32xf32>
    %cst_176 = arith.constant dense<0.000000e+00> : vector<16x32xf32>
    %206 = tpu.matmul %205, %204, %cst_176 {dimension_numbers = #tpu.dot_dimension_numbers<[1], [0], [0], [1], [0, 0, 1, 1], [], []>} : vector<16x32xf32>, vector<32x32xf32>, vector<16x32xf32> -> vector<16x32xf32>
    %c0_177 = arith.constant 0 : index
    %c0_178 = arith.constant 0 : index
    %207 = vector.load %arg28[%c0_177, %c0_178] : memref<16x1xf32, #tpu.memory_space<vmem>>, vector<16x1xf32>
    %208 = vector.broadcast %207 : vector<16x1xf32> to vector<16x32xf32>
    %209 = arith.addf %206, %208 : vector<16x32xf32>
    %210 = vector.extract_strided_slice %209 {offsets = [0, 0], sizes = [8, 32], strides = [1, 1]} : vector<16x32xf32> to vector<8x32xf32>
    %211 = vector.extract_strided_slice %209 {offsets = [8, 0], sizes = [8, 32], strides = [1, 1]} : vector<16x32xf32> to vector<8x32xf32>
    %c0_179 = arith.constant 0 : index
    %c0_180 = arith.constant 0 : index
    %212 = vector.load %arg29[%c0_179, %c0_180] : memref<8x8xf32, #tpu.memory_space<vmem>>, vector<8x8xf32>
    %cst_181 = arith.constant 0.000000e+00 : f32
    %213 = vector.broadcast %cst_181 : f32 to vector<8x32xf32>
    %214 = arith.cmpf ogt, %210, %213 : vector<8x32xf32>
    %cst_182 = arith.constant 2.000000e-01 : f32
    %215 = vector.broadcast %cst_182 : f32 to vector<8x32xf32>
    %216 = arith.mulf %215, %210 : vector<8x32xf32>
    %217 = arith.select %214, %210, %216 : vector<8x32xi1>, vector<8x32xf32>
    %cst_183 = arith.constant dense<0.000000e+00> : vector<8x32xf32>
    %218 = tpu.matmul %212, %217, %cst_183 {dimension_numbers = #tpu.dot_dimension_numbers<[1], [0], [0], [1], [0, 0, 1, 1], [], []>} : vector<8x8xf32>, vector<8x32xf32>, vector<8x32xf32> -> vector<8x32xf32>
    %c0_184 = arith.constant 0 : index
    %c0_185 = arith.constant 0 : index
    %219 = vector.load %arg30[%c0_184, %c0_185] : memref<8x1xf32, #tpu.memory_space<vmem>>, vector<8x1xf32>
    %220 = vector.broadcast %219 : vector<8x1xf32> to vector<8x32xf32>
    %221 = arith.addf %218, %220 : vector<8x32xf32>
    %222 = arith.addf %221, %211 : vector<8x32xf32>
    %cst_186 = arith.constant 0.000000e+00 : f32
    %223 = vector.broadcast %cst_186 : f32 to vector<8x32xf32>
    %224 = arith.cmpf ogt, %222, %223 : vector<8x32xf32>
    %cst_187 = arith.constant 2.000000e-01 : f32
    %225 = vector.broadcast %cst_187 : f32 to vector<8x32xf32>
    %226 = arith.mulf %225, %222 : vector<8x32xf32>
    %227 = arith.select %224, %222, %226 : vector<8x32xi1>, vector<8x32xf32>
    %c0_188 = arith.constant 0 : index
    %c0_189 = arith.constant 0 : index
    %c0_190 = arith.constant 0 : index
    %228 = vector.load %arg36[%c0_188, %c0_189, %c0_190] : memref<3x32x32xf32, #tpu.memory_space<vmem>>, vector<1x32x32xf32>
    %229 = vector.shape_cast %228 : vector<1x32x32xf32> to vector<32x32xf32>
    %cst_191 = arith.constant dense<0.000000e+00> : vector<8x32xf32>
    %230 = tpu.matmul %227, %229, %cst_191 {dimension_numbers = #tpu.dot_dimension_numbers<[1], [0], [0], [1], [0, 0, 1, 1], [], []>} : vector<8x32xf32>, vector<32x32xf32>, vector<8x32xf32> -> vector<8x32xf32>
    %c1_192 = arith.constant 1 : index
    %c0_193 = arith.constant 0 : index
    %c0_194 = arith.constant 0 : index
    %231 = vector.load %arg36[%c1_192, %c0_193, %c0_194] : memref<3x32x32xf32, #tpu.memory_space<vmem>>, vector<1x32x32xf32>
    %232 = vector.shape_cast %231 : vector<1x32x32xf32> to vector<32x32xf32>
    %cst_195 = arith.constant dense<0.000000e+00> : vector<8x32xf32>
    %233 = tpu.matmul %227, %232, %cst_195 {dimension_numbers = #tpu.dot_dimension_numbers<[1], [0], [0], [1], [0, 0, 1, 1], [], []>} : vector<8x32xf32>, vector<32x32xf32>, vector<8x32xf32> -> vector<8x32xf32>
    %c2_196 = arith.constant 2 : index
    %c0_197 = arith.constant 0 : index
    %c0_198 = arith.constant 0 : index
    %234 = vector.load %arg36[%c2_196, %c0_197, %c0_198] : memref<3x32x32xf32, #tpu.memory_space<vmem>>, vector<1x32x32xf32>
    %235 = vector.shape_cast %234 : vector<1x32x32xf32> to vector<32x32xf32>
    %cst_199 = arith.constant dense<0.000000e+00> : vector<8x32xf32>
    %236 = tpu.matmul %227, %235, %cst_199 {dimension_numbers = #tpu.dot_dimension_numbers<[1], [0], [0], [1], [0, 0, 1, 1], [], []>} : vector<8x32xf32>, vector<32x32xf32>, vector<8x32xf32> -> vector<8x32xf32>
    %237 = tpu.concatenate %230, %233, %236 in 0 : vector<8x32xf32>, vector<8x32xf32>, vector<8x32xf32> -> vector<24x32xf32>
    %238 = tpu.concatenate %237, %222 in 0 : vector<24x32xf32>, vector<8x32xf32> -> vector<32x32xf32>
    %c0_200 = arith.constant 0 : index
    %c0_201 = arith.constant 0 : index
    %239 = vector.load %arg32[%c0_200, %c0_201] : memref<16x32xf32, #tpu.memory_space<vmem>>, vector<16x32xf32>
    %cst_202 = arith.constant dense<0.000000e+00> : vector<16x32xf32>
    %240 = tpu.matmul %239, %238, %cst_202 {dimension_numbers = #tpu.dot_dimension_numbers<[1], [0], [0], [1], [0, 0, 1, 1], [], []>} : vector<16x32xf32>, vector<32x32xf32>, vector<16x32xf32> -> vector<16x32xf32>
    %c0_203 = arith.constant 0 : index
    %c0_204 = arith.constant 0 : index
    %241 = vector.load %arg33[%c0_203, %c0_204] : memref<16x1xf32, #tpu.memory_space<vmem>>, vector<16x1xf32>
    %242 = vector.broadcast %241 : vector<16x1xf32> to vector<16x32xf32>
    %243 = arith.addf %240, %242 : vector<16x32xf32>
    %244 = vector.extract_strided_slice %243 {offsets = [0, 0], sizes = [8, 32], strides = [1, 1]} : vector<16x32xf32> to vector<8x32xf32>
    %245 = vector.extract_strided_slice %243 {offsets = [8, 0], sizes = [8, 32], strides = [1, 1]} : vector<16x32xf32> to vector<8x32xf32>
    %c0_205 = arith.constant 0 : index
    %c0_206 = arith.constant 0 : index
    %246 = vector.load %arg34[%c0_205, %c0_206] : memref<8x8xf32, #tpu.memory_space<vmem>>, vector<8x8xf32>
    %cst_207 = arith.constant 0.000000e+00 : f32
    %247 = vector.broadcast %cst_207 : f32 to vector<8x32xf32>
    %248 = arith.cmpf ogt, %244, %247 : vector<8x32xf32>
    %cst_208 = arith.constant 2.000000e-01 : f32
    %249 = vector.broadcast %cst_208 : f32 to vector<8x32xf32>
    %250 = arith.mulf %249, %244 : vector<8x32xf32>
    %251 = arith.select %248, %244, %250 : vector<8x32xi1>, vector<8x32xf32>
    %cst_209 = arith.constant dense<0.000000e+00> : vector<8x32xf32>
    %252 = tpu.matmul %246, %251, %cst_209 {dimension_numbers = #tpu.dot_dimension_numbers<[1], [0], [0], [1], [0, 0, 1, 1], [], []>} : vector<8x8xf32>, vector<8x32xf32>, vector<8x32xf32> -> vector<8x32xf32>
    %c0_210 = arith.constant 0 : index
    %c0_211 = arith.constant 0 : index
    %253 = vector.load %arg35[%c0_210, %c0_211] : memref<8x1xf32, #tpu.memory_space<vmem>>, vector<8x1xf32>
    %254 = vector.broadcast %253 : vector<8x1xf32> to vector<8x32xf32>
    %255 = arith.addf %252, %254 : vector<8x32xf32>
    %256 = arith.addf %255, %245 : vector<8x32xf32>
    %cst_212 = arith.constant 0.000000e+00 : f32
    %257 = vector.broadcast %cst_212 : f32 to vector<8x32xf32>
    %258 = arith.cmpf ogt, %256, %257 : vector<8x32xf32>
    %cst_213 = arith.constant 2.000000e-01 : f32
    %259 = vector.broadcast %cst_213 : f32 to vector<8x32xf32>
    %260 = arith.mulf %259, %256 : vector<8x32xf32>
    %261 = arith.select %258, %256, %260 : vector<8x32xi1>, vector<8x32xf32>
    %c0_214 = arith.constant 0 : index
    %c0_215 = arith.constant 0 : index
    %c0_216 = arith.constant 0 : index
    %262 = vector.load %arg41[%c0_214, %c0_215, %c0_216] : memref<3x32x32xf32, #tpu.memory_space<vmem>>, vector<1x32x32xf32>
    %263 = vector.shape_cast %262 : vector<1x32x32xf32> to vector<32x32xf32>
    %cst_217 = arith.constant dense<0.000000e+00> : vector<8x32xf32>
    %264 = tpu.matmul %261, %263, %cst_217 {dimension_numbers = #tpu.dot_dimension_numbers<[1], [0], [0], [1], [0, 0, 1, 1], [], []>} : vector<8x32xf32>, vector<32x32xf32>, vector<8x32xf32> -> vector<8x32xf32>
    %c1_218 = arith.constant 1 : index
    %c0_219 = arith.constant 0 : index
    %c0_220 = arith.constant 0 : index
    %265 = vector.load %arg41[%c1_218, %c0_219, %c0_220] : memref<3x32x32xf32, #tpu.memory_space<vmem>>, vector<1x32x32xf32>
    %266 = vector.shape_cast %265 : vector<1x32x32xf32> to vector<32x32xf32>
    %cst_221 = arith.constant dense<0.000000e+00> : vector<8x32xf32>
    %267 = tpu.matmul %261, %266, %cst_221 {dimension_numbers = #tpu.dot_dimension_numbers<[1], [0], [0], [1], [0, 0, 1, 1], [], []>} : vector<8x32xf32>, vector<32x32xf32>, vector<8x32xf32> -> vector<8x32xf32>
    %c2_222 = arith.constant 2 : index
    %c0_223 = arith.constant 0 : index
    %c0_224 = arith.constant 0 : index
    %268 = vector.load %arg41[%c2_222, %c0_223, %c0_224] : memref<3x32x32xf32, #tpu.memory_space<vmem>>, vector<1x32x32xf32>
    %269 = vector.shape_cast %268 : vector<1x32x32xf32> to vector<32x32xf32>
    %cst_225 = arith.constant dense<0.000000e+00> : vector<8x32xf32>
    %270 = tpu.matmul %261, %269, %cst_225 {dimension_numbers = #tpu.dot_dimension_numbers<[1], [0], [0], [1], [0, 0, 1, 1], [], []>} : vector<8x32xf32>, vector<32x32xf32>, vector<8x32xf32> -> vector<8x32xf32>
    %271 = tpu.concatenate %264, %267, %270 in 0 : vector<8x32xf32>, vector<8x32xf32>, vector<8x32xf32> -> vector<24x32xf32>
    %272 = tpu.concatenate %271, %256 in 0 : vector<24x32xf32>, vector<8x32xf32> -> vector<32x32xf32>
    %c0_226 = arith.constant 0 : index
    %c0_227 = arith.constant 0 : index
    %273 = vector.load %arg37[%c0_226, %c0_227] : memref<16x32xf32, #tpu.memory_space<vmem>>, vector<16x32xf32>
    %cst_228 = arith.constant dense<0.000000e+00> : vector<16x32xf32>
    %274 = tpu.matmul %273, %272, %cst_228 {dimension_numbers = #tpu.dot_dimension_numbers<[1], [0], [0], [1], [0, 0, 1, 1], [], []>} : vector<16x32xf32>, vector<32x32xf32>, vector<16x32xf32> -> vector<16x32xf32>
    %c0_229 = arith.constant 0 : index
    %c0_230 = arith.constant 0 : index
    %275 = vector.load %arg38[%c0_229, %c0_230] : memref<16x1xf32, #tpu.memory_space<vmem>>, vector<16x1xf32>
    %276 = vector.broadcast %275 : vector<16x1xf32> to vector<16x32xf32>
    %277 = arith.addf %274, %276 : vector<16x32xf32>
    %278 = vector.extract_strided_slice %277 {offsets = [0, 0], sizes = [8, 32], strides = [1, 1]} : vector<16x32xf32> to vector<8x32xf32>
    %279 = vector.extract_strided_slice %277 {offsets = [8, 0], sizes = [8, 32], strides = [1, 1]} : vector<16x32xf32> to vector<8x32xf32>
    %c0_231 = arith.constant 0 : index
    %c0_232 = arith.constant 0 : index
    %280 = vector.load %arg39[%c0_231, %c0_232] : memref<8x8xf32, #tpu.memory_space<vmem>>, vector<8x8xf32>
    %cst_233 = arith.constant 0.000000e+00 : f32
    %281 = vector.broadcast %cst_233 : f32 to vector<8x32xf32>
    %282 = arith.cmpf ogt, %278, %281 : vector<8x32xf32>
    %cst_234 = arith.constant 2.000000e-01 : f32
    %283 = vector.broadcast %cst_234 : f32 to vector<8x32xf32>
    %284 = arith.mulf %283, %278 : vector<8x32xf32>
    %285 = arith.select %282, %278, %284 : vector<8x32xi1>, vector<8x32xf32>
    %cst_235 = arith.constant dense<0.000000e+00> : vector<8x32xf32>
    %286 = tpu.matmul %280, %285, %cst_235 {dimension_numbers = #tpu.dot_dimension_numbers<[1], [0], [0], [1], [0, 0, 1, 1], [], []>} : vector<8x8xf32>, vector<8x32xf32>, vector<8x32xf32> -> vector<8x32xf32>
    %c0_236 = arith.constant 0 : index
    %c0_237 = arith.constant 0 : index
    %287 = vector.load %arg40[%c0_236, %c0_237] : memref<8x1xf32, #tpu.memory_space<vmem>>, vector<8x1xf32>
    %288 = vector.broadcast %287 : vector<8x1xf32> to vector<8x32xf32>
    %289 = arith.addf %286, %288 : vector<8x32xf32>
    %290 = arith.addf %289, %279 : vector<8x32xf32>
    %cst_238 = arith.constant 0.000000e+00 : f32
    %291 = vector.broadcast %cst_238 : f32 to vector<8x32xf32>
    %292 = arith.cmpf ogt, %290, %291 : vector<8x32xf32>
    %cst_239 = arith.constant 2.000000e-01 : f32
    %293 = vector.broadcast %cst_239 : f32 to vector<8x32xf32>
    %294 = arith.mulf %293, %290 : vector<8x32xf32>
    %295 = arith.select %292, %290, %294 : vector<8x32xi1>, vector<8x32xf32>
    %c0_240 = arith.constant 0 : index
    %c0_241 = arith.constant 0 : index
    %c0_242 = arith.constant 0 : index
    %296 = vector.load %arg44[%c0_240, %c0_241, %c0_242] : memref<7x32x32xf32, #tpu.memory_space<vmem>>, vector<1x32x32xf32>
    %297 = vector.shape_cast %296 : vector<1x32x32xf32> to vector<32x32xf32>
    %cst_243 = arith.constant dense<0.000000e+00> : vector<8x32xf32>
    %298 = tpu.matmul %295, %297, %cst_243 {dimension_numbers = #tpu.dot_dimension_numbers<[1], [0], [0], [1], [0, 0, 1, 1], [], []>} : vector<8x32xf32>, vector<32x32xf32>, vector<8x32xf32> -> vector<8x32xf32>
    %c1_244 = arith.constant 1 : index
    %c0_245 = arith.constant 0 : index
    %c0_246 = arith.constant 0 : index
    %299 = vector.load %arg44[%c1_244, %c0_245, %c0_246] : memref<7x32x32xf32, #tpu.memory_space<vmem>>, vector<1x32x32xf32>
    %300 = vector.shape_cast %299 : vector<1x32x32xf32> to vector<32x32xf32>
    %cst_247 = arith.constant dense<0.000000e+00> : vector<8x32xf32>
    %301 = tpu.matmul %295, %300, %cst_247 {dimension_numbers = #tpu.dot_dimension_numbers<[1], [0], [0], [1], [0, 0, 1, 1], [], []>} : vector<8x32xf32>, vector<32x32xf32>, vector<8x32xf32> -> vector<8x32xf32>
    %c2_248 = arith.constant 2 : index
    %c0_249 = arith.constant 0 : index
    %c0_250 = arith.constant 0 : index
    %302 = vector.load %arg44[%c2_248, %c0_249, %c0_250] : memref<7x32x32xf32, #tpu.memory_space<vmem>>, vector<1x32x32xf32>
    %303 = vector.shape_cast %302 : vector<1x32x32xf32> to vector<32x32xf32>
    %cst_251 = arith.constant dense<0.000000e+00> : vector<8x32xf32>
    %304 = tpu.matmul %295, %303, %cst_251 {dimension_numbers = #tpu.dot_dimension_numbers<[1], [0], [0], [1], [0, 0, 1, 1], [], []>} : vector<8x32xf32>, vector<32x32xf32>, vector<8x32xf32> -> vector<8x32xf32>
    %c3_252 = arith.constant 3 : index
    %c0_253 = arith.constant 0 : index
    %c0_254 = arith.constant 0 : index
    %305 = vector.load %arg44[%c3_252, %c0_253, %c0_254] : memref<7x32x32xf32, #tpu.memory_space<vmem>>, vector<1x32x32xf32>
    %306 = vector.shape_cast %305 : vector<1x32x32xf32> to vector<32x32xf32>
    %cst_255 = arith.constant dense<0.000000e+00> : vector<8x32xf32>
    %307 = tpu.matmul %295, %306, %cst_255 {dimension_numbers = #tpu.dot_dimension_numbers<[1], [0], [0], [1], [0, 0, 1, 1], [], []>} : vector<8x32xf32>, vector<32x32xf32>, vector<8x32xf32> -> vector<8x32xf32>
    %c4_256 = arith.constant 4 : index
    %c0_257 = arith.constant 0 : index
    %c0_258 = arith.constant 0 : index
    %308 = vector.load %arg44[%c4_256, %c0_257, %c0_258] : memref<7x32x32xf32, #tpu.memory_space<vmem>>, vector<1x32x32xf32>
    %309 = vector.shape_cast %308 : vector<1x32x32xf32> to vector<32x32xf32>
    %cst_259 = arith.constant dense<0.000000e+00> : vector<8x32xf32>
    %310 = tpu.matmul %295, %309, %cst_259 {dimension_numbers = #tpu.dot_dimension_numbers<[1], [0], [0], [1], [0, 0, 1, 1], [], []>} : vector<8x32xf32>, vector<32x32xf32>, vector<8x32xf32> -> vector<8x32xf32>
    %c5_260 = arith.constant 5 : index
    %c0_261 = arith.constant 0 : index
    %c0_262 = arith.constant 0 : index
    %311 = vector.load %arg44[%c5_260, %c0_261, %c0_262] : memref<7x32x32xf32, #tpu.memory_space<vmem>>, vector<1x32x32xf32>
    %312 = vector.shape_cast %311 : vector<1x32x32xf32> to vector<32x32xf32>
    %cst_263 = arith.constant dense<0.000000e+00> : vector<8x32xf32>
    %313 = tpu.matmul %295, %312, %cst_263 {dimension_numbers = #tpu.dot_dimension_numbers<[1], [0], [0], [1], [0, 0, 1, 1], [], []>} : vector<8x32xf32>, vector<32x32xf32>, vector<8x32xf32> -> vector<8x32xf32>
    %c6_264 = arith.constant 6 : index
    %c0_265 = arith.constant 0 : index
    %c0_266 = arith.constant 0 : index
    %314 = vector.load %arg44[%c6_264, %c0_265, %c0_266] : memref<7x32x32xf32, #tpu.memory_space<vmem>>, vector<1x32x32xf32>
    %315 = vector.shape_cast %314 : vector<1x32x32xf32> to vector<32x32xf32>
    %cst_267 = arith.constant dense<0.000000e+00> : vector<8x32xf32>
    %316 = tpu.matmul %295, %315, %cst_267 {dimension_numbers = #tpu.dot_dimension_numbers<[1], [0], [0], [1], [0, 0, 1, 1], [], []>} : vector<8x32xf32>, vector<32x32xf32>, vector<8x32xf32> -> vector<8x32xf32>
    %317 = tpu.concatenate %298, %301, %304, %307, %310, %313, %316 in 0 : vector<8x32xf32>, vector<8x32xf32>, vector<8x32xf32>, vector<8x32xf32>, vector<8x32xf32>, vector<8x32xf32>, vector<8x32xf32> -> vector<56x32xf32>
    %c0_268 = arith.constant 0 : index
    %c0_269 = arith.constant 0 : index
    %318 = vector.load %arg42[%c0_268, %c0_269] : memref<4x56xf32, #tpu.memory_space<vmem>>, vector<4x56xf32>
    %cst_270 = arith.constant dense<0.000000e+00> : vector<4x32xf32>
    %319 = tpu.matmul %318, %317, %cst_270 {dimension_numbers = #tpu.dot_dimension_numbers<[1], [0], [0], [1], [0, 0, 1, 1], [], []>} : vector<4x56xf32>, vector<56x32xf32>, vector<4x32xf32> -> vector<4x32xf32>
    %c0_271 = arith.constant 0 : index
    %c0_272 = arith.constant 0 : index
    %320 = vector.load %arg43[%c0_271, %c0_272] : memref<4x1xf32, #tpu.memory_space<vmem>>, vector<4x1xf32>
    %321 = vector.broadcast %320 : vector<4x1xf32> to vector<4x32xf32>
    %322 = arith.addf %319, %321 : vector<4x32xf32>
    %323 = math.tanh %322 : vector<4x32xf32>
    %c0_273 = arith.constant 0 : index
    %c0_274 = arith.constant 0 : index
    %c0_275 = arith.constant 0 : index
    %324 = vector.load %arg46[%c0_273, %c0_274, %c0_275] : memref<16x32x32xf32, #tpu.memory_space<vmem>>, vector<1x32x32xf32>
    %325 = vector.shape_cast %324 : vector<1x32x32xf32> to vector<32x32xf32>
    %cst_276 = arith.constant dense<0.000000e+00> : vector<4x32xf32>
    %326 = tpu.matmul %323, %325, %cst_276 {dimension_numbers = #tpu.dot_dimension_numbers<[1], [0], [0], [1], [0, 0, 1, 1], [], []>} : vector<4x32xf32>, vector<32x32xf32>, vector<4x32xf32> -> vector<4x32xf32>
    %c1_277 = arith.constant 1 : index
    %c0_278 = arith.constant 0 : index
    %c0_279 = arith.constant 0 : index
    %327 = vector.load %arg46[%c1_277, %c0_278, %c0_279] : memref<16x32x32xf32, #tpu.memory_space<vmem>>, vector<1x32x32xf32>
    %328 = vector.shape_cast %327 : vector<1x32x32xf32> to vector<32x32xf32>
    %cst_280 = arith.constant dense<0.000000e+00> : vector<4x32xf32>
    %329 = tpu.matmul %323, %328, %cst_280 {dimension_numbers = #tpu.dot_dimension_numbers<[1], [0], [0], [1], [0, 0, 1, 1], [], []>} : vector<4x32xf32>, vector<32x32xf32>, vector<4x32xf32> -> vector<4x32xf32>
    %c2_281 = arith.constant 2 : index
    %c0_282 = arith.constant 0 : index
    %c0_283 = arith.constant 0 : index
    %330 = vector.load %arg46[%c2_281, %c0_282, %c0_283] : memref<16x32x32xf32, #tpu.memory_space<vmem>>, vector<1x32x32xf32>
    %331 = vector.shape_cast %330 : vector<1x32x32xf32> to vector<32x32xf32>
    %cst_284 = arith.constant dense<0.000000e+00> : vector<4x32xf32>
    %332 = tpu.matmul %323, %331, %cst_284 {dimension_numbers = #tpu.dot_dimension_numbers<[1], [0], [0], [1], [0, 0, 1, 1], [], []>} : vector<4x32xf32>, vector<32x32xf32>, vector<4x32xf32> -> vector<4x32xf32>
    %c3_285 = arith.constant 3 : index
    %c0_286 = arith.constant 0 : index
    %c0_287 = arith.constant 0 : index
    %333 = vector.load %arg46[%c3_285, %c0_286, %c0_287] : memref<16x32x32xf32, #tpu.memory_space<vmem>>, vector<1x32x32xf32>
    %334 = vector.shape_cast %333 : vector<1x32x32xf32> to vector<32x32xf32>
    %cst_288 = arith.constant dense<0.000000e+00> : vector<4x32xf32>
    %335 = tpu.matmul %323, %334, %cst_288 {dimension_numbers = #tpu.dot_dimension_numbers<[1], [0], [0], [1], [0, 0, 1, 1], [], []>} : vector<4x32xf32>, vector<32x32xf32>, vector<4x32xf32> -> vector<4x32xf32>
    %c4_289 = arith.constant 4 : index
    %c0_290 = arith.constant 0 : index
    %c0_291 = arith.constant 0 : index
    %336 = vector.load %arg46[%c4_289, %c0_290, %c0_291] : memref<16x32x32xf32, #tpu.memory_space<vmem>>, vector<1x32x32xf32>
    %337 = vector.shape_cast %336 : vector<1x32x32xf32> to vector<32x32xf32>
    %cst_292 = arith.constant dense<0.000000e+00> : vector<4x32xf32>
    %338 = tpu.matmul %323, %337, %cst_292 {dimension_numbers = #tpu.dot_dimension_numbers<[1], [0], [0], [1], [0, 0, 1, 1], [], []>} : vector<4x32xf32>, vector<32x32xf32>, vector<4x32xf32> -> vector<4x32xf32>
    %c5_293 = arith.constant 5 : index
    %c0_294 = arith.constant 0 : index
    %c0_295 = arith.constant 0 : index
    %339 = vector.load %arg46[%c5_293, %c0_294, %c0_295] : memref<16x32x32xf32, #tpu.memory_space<vmem>>, vector<1x32x32xf32>
    %340 = vector.shape_cast %339 : vector<1x32x32xf32> to vector<32x32xf32>
    %cst_296 = arith.constant dense<0.000000e+00> : vector<4x32xf32>
    %341 = tpu.matmul %323, %340, %cst_296 {dimension_numbers = #tpu.dot_dimension_numbers<[1], [0], [0], [1], [0, 0, 1, 1], [], []>} : vector<4x32xf32>, vector<32x32xf32>, vector<4x32xf32> -> vector<4x32xf32>
    %c6_297 = arith.constant 6 : index
    %c0_298 = arith.constant 0 : index
    %c0_299 = arith.constant 0 : index
    %342 = vector.load %arg46[%c6_297, %c0_298, %c0_299] : memref<16x32x32xf32, #tpu.memory_space<vmem>>, vector<1x32x32xf32>
    %343 = vector.shape_cast %342 : vector<1x32x32xf32> to vector<32x32xf32>
    %cst_300 = arith.constant dense<0.000000e+00> : vector<4x32xf32>
    %344 = tpu.matmul %323, %343, %cst_300 {dimension_numbers = #tpu.dot_dimension_numbers<[1], [0], [0], [1], [0, 0, 1, 1], [], []>} : vector<4x32xf32>, vector<32x32xf32>, vector<4x32xf32> -> vector<4x32xf32>
    %c7 = arith.constant 7 : index
    %c0_301 = arith.constant 0 : index
    %c0_302 = arith.constant 0 : index
    %345 = vector.load %arg46[%c7, %c0_301, %c0_302] : memref<16x32x32xf32, #tpu.memory_space<vmem>>, vector<1x32x32xf32>
    %346 = vector.shape_cast %345 : vector<1x32x32xf32> to vector<32x32xf32>
    %cst_303 = arith.constant dense<0.000000e+00> : vector<4x32xf32>
    %347 = tpu.matmul %323, %346, %cst_303 {dimension_numbers = #tpu.dot_dimension_numbers<[1], [0], [0], [1], [0, 0, 1, 1], [], []>} : vector<4x32xf32>, vector<32x32xf32>, vector<4x32xf32> -> vector<4x32xf32>
    %c8 = arith.constant 8 : index
    %c0_304 = arith.constant 0 : index
    %c0_305 = arith.constant 0 : index
    %348 = vector.load %arg46[%c8, %c0_304, %c0_305] : memref<16x32x32xf32, #tpu.memory_space<vmem>>, vector<1x32x32xf32>
    %349 = vector.shape_cast %348 : vector<1x32x32xf32> to vector<32x32xf32>
    %cst_306 = arith.constant dense<0.000000e+00> : vector<4x32xf32>
    %350 = tpu.matmul %323, %349, %cst_306 {dimension_numbers = #tpu.dot_dimension_numbers<[1], [0], [0], [1], [0, 0, 1, 1], [], []>} : vector<4x32xf32>, vector<32x32xf32>, vector<4x32xf32> -> vector<4x32xf32>
    %c9 = arith.constant 9 : index
    %c0_307 = arith.constant 0 : index
    %c0_308 = arith.constant 0 : index
    %351 = vector.load %arg46[%c9, %c0_307, %c0_308] : memref<16x32x32xf32, #tpu.memory_space<vmem>>, vector<1x32x32xf32>
    %352 = vector.shape_cast %351 : vector<1x32x32xf32> to vector<32x32xf32>
    %cst_309 = arith.constant dense<0.000000e+00> : vector<4x32xf32>
    %353 = tpu.matmul %323, %352, %cst_309 {dimension_numbers = #tpu.dot_dimension_numbers<[1], [0], [0], [1], [0, 0, 1, 1], [], []>} : vector<4x32xf32>, vector<32x32xf32>, vector<4x32xf32> -> vector<4x32xf32>
    %c10 = arith.constant 10 : index
    %c0_310 = arith.constant 0 : index
    %c0_311 = arith.constant 0 : index
    %354 = vector.load %arg46[%c10, %c0_310, %c0_311] : memref<16x32x32xf32, #tpu.memory_space<vmem>>, vector<1x32x32xf32>
    %355 = vector.shape_cast %354 : vector<1x32x32xf32> to vector<32x32xf32>
    %cst_312 = arith.constant dense<0.000000e+00> : vector<4x32xf32>
    %356 = tpu.matmul %323, %355, %cst_312 {dimension_numbers = #tpu.dot_dimension_numbers<[1], [0], [0], [1], [0, 0, 1, 1], [], []>} : vector<4x32xf32>, vector<32x32xf32>, vector<4x32xf32> -> vector<4x32xf32>
    %c11 = arith.constant 11 : index
    %c0_313 = arith.constant 0 : index
    %c0_314 = arith.constant 0 : index
    %357 = vector.load %arg46[%c11, %c0_313, %c0_314] : memref<16x32x32xf32, #tpu.memory_space<vmem>>, vector<1x32x32xf32>
    %358 = vector.shape_cast %357 : vector<1x32x32xf32> to vector<32x32xf32>
    %cst_315 = arith.constant dense<0.000000e+00> : vector<4x32xf32>
    %359 = tpu.matmul %323, %358, %cst_315 {dimension_numbers = #tpu.dot_dimension_numbers<[1], [0], [0], [1], [0, 0, 1, 1], [], []>} : vector<4x32xf32>, vector<32x32xf32>, vector<4x32xf32> -> vector<4x32xf32>
    %c12 = arith.constant 12 : index
    %c0_316 = arith.constant 0 : index
    %c0_317 = arith.constant 0 : index
    %360 = vector.load %arg46[%c12, %c0_316, %c0_317] : memref<16x32x32xf32, #tpu.memory_space<vmem>>, vector<1x32x32xf32>
    %361 = vector.shape_cast %360 : vector<1x32x32xf32> to vector<32x32xf32>
    %cst_318 = arith.constant dense<0.000000e+00> : vector<4x32xf32>
    %362 = tpu.matmul %323, %361, %cst_318 {dimension_numbers = #tpu.dot_dimension_numbers<[1], [0], [0], [1], [0, 0, 1, 1], [], []>} : vector<4x32xf32>, vector<32x32xf32>, vector<4x32xf32> -> vector<4x32xf32>
    %c13 = arith.constant 13 : index
    %c0_319 = arith.constant 0 : index
    %c0_320 = arith.constant 0 : index
    %363 = vector.load %arg46[%c13, %c0_319, %c0_320] : memref<16x32x32xf32, #tpu.memory_space<vmem>>, vector<1x32x32xf32>
    %364 = vector.shape_cast %363 : vector<1x32x32xf32> to vector<32x32xf32>
    %cst_321 = arith.constant dense<0.000000e+00> : vector<4x32xf32>
    %365 = tpu.matmul %323, %364, %cst_321 {dimension_numbers = #tpu.dot_dimension_numbers<[1], [0], [0], [1], [0, 0, 1, 1], [], []>} : vector<4x32xf32>, vector<32x32xf32>, vector<4x32xf32> -> vector<4x32xf32>
    %c14 = arith.constant 14 : index
    %c0_322 = arith.constant 0 : index
    %c0_323 = arith.constant 0 : index
    %366 = vector.load %arg46[%c14, %c0_322, %c0_323] : memref<16x32x32xf32, #tpu.memory_space<vmem>>, vector<1x32x32xf32>
    %367 = vector.shape_cast %366 : vector<1x32x32xf32> to vector<32x32xf32>
    %cst_324 = arith.constant dense<0.000000e+00> : vector<4x32xf32>
    %368 = tpu.matmul %323, %367, %cst_324 {dimension_numbers = #tpu.dot_dimension_numbers<[1], [0], [0], [1], [0, 0, 1, 1], [], []>} : vector<4x32xf32>, vector<32x32xf32>, vector<4x32xf32> -> vector<4x32xf32>
    %c15 = arith.constant 15 : index
    %c0_325 = arith.constant 0 : index
    %c0_326 = arith.constant 0 : index
    %369 = vector.load %arg46[%c15, %c0_325, %c0_326] : memref<16x32x32xf32, #tpu.memory_space<vmem>>, vector<1x32x32xf32>
    %370 = vector.shape_cast %369 : vector<1x32x32xf32> to vector<32x32xf32>
    %cst_327 = arith.constant dense<0.000000e+00> : vector<4x32xf32>
    %371 = tpu.matmul %323, %370, %cst_327 {dimension_numbers = #tpu.dot_dimension_numbers<[1], [0], [0], [1], [0, 0, 1, 1], [], []>} : vector<4x32xf32>, vector<32x32xf32>, vector<4x32xf32> -> vector<4x32xf32>
    %372 = tpu.concatenate %326, %329, %332, %335, %338, %341, %344, %347, %350, %353, %356, %359, %362, %365, %368, %371 in 0 : vector<4x32xf32>, vector<4x32xf32>, vector<4x32xf32>, vector<4x32xf32>, vector<4x32xf32>, vector<4x32xf32>, vector<4x32xf32>, vector<4x32xf32>, vector<4x32xf32>, vector<4x32xf32>, vector<4x32xf32>, vector<4x32xf32>, vector<4x32xf32>, vector<4x32xf32>, vector<4x32xf32>, vector<4x32xf32> -> vector<64x32xf32>
    %c0_328 = arith.constant 0 : index
    %c0_329 = arith.constant 0 : index
    %c0_330 = arith.constant 0 : index
    %373 = vector.load %arg45[%c0_328, %c0_329, %c0_330] : memref<4x1x64xf32, #tpu.memory_space<vmem>>, vector<1x1x64xf32>
    %374 = vector.shape_cast %373 : vector<1x1x64xf32> to vector<1x64xf32>
    %cst_331 = arith.constant dense<0.000000e+00> : vector<1x32xf32>
    %375 = tpu.matmul %374, %372, %cst_331 {dimension_numbers = #tpu.dot_dimension_numbers<[1], [0], [0], [1], [0, 0, 1, 1], [], []>} : vector<1x64xf32>, vector<64x32xf32>, vector<1x32xf32> -> vector<1x32xf32>
    %c0_332 = arith.constant 0 : index
    %c0_333 = arith.constant 0 : index
    %c0_334 = arith.constant 0 : index
    %376 = vector.load %arg47[%c0_332, %c0_333, %c0_334] : memref<4x32x128xf32, #tpu.memory_space<vmem>>, vector<1x32x128xf32>
    %377 = vector.shape_cast %376 : vector<1x32x128xf32> to vector<32x128xf32>
    %cst_335 = arith.constant dense<0.000000e+00> : vector<1x128xf32>
    %378 = tpu.matmul %375, %377, %cst_335 {dimension_numbers = #tpu.dot_dimension_numbers<[1], [0], [0], [1], [0, 0, 1, 1], [], []>} : vector<1x32xf32>, vector<32x128xf32>, vector<1x128xf32> -> vector<1x128xf32>
    %c1_336 = arith.constant 1 : index
    %c0_337 = arith.constant 0 : index
    %c0_338 = arith.constant 0 : index
    %379 = vector.load %arg45[%c1_336, %c0_337, %c0_338] : memref<4x1x64xf32, #tpu.memory_space<vmem>>, vector<1x1x64xf32>
    %380 = vector.shape_cast %379 : vector<1x1x64xf32> to vector<1x64xf32>
    %cst_339 = arith.constant dense<0.000000e+00> : vector<1x32xf32>
    %381 = tpu.matmul %380, %372, %cst_339 {dimension_numbers = #tpu.dot_dimension_numbers<[1], [0], [0], [1], [0, 0, 1, 1], [], []>} : vector<1x64xf32>, vector<64x32xf32>, vector<1x32xf32> -> vector<1x32xf32>
    %c1_340 = arith.constant 1 : index
    %c0_341 = arith.constant 0 : index
    %c0_342 = arith.constant 0 : index
    %382 = vector.load %arg47[%c1_340, %c0_341, %c0_342] : memref<4x32x128xf32, #tpu.memory_space<vmem>>, vector<1x32x128xf32>
    %383 = vector.shape_cast %382 : vector<1x32x128xf32> to vector<32x128xf32>
    %cst_343 = arith.constant dense<0.000000e+00> : vector<1x128xf32>
    %384 = tpu.matmul %381, %383, %cst_343 {dimension_numbers = #tpu.dot_dimension_numbers<[1], [0], [0], [1], [0, 0, 1, 1], [], []>} : vector<1x32xf32>, vector<32x128xf32>, vector<1x128xf32> -> vector<1x128xf32>
    %385 = arith.addf %378, %384 : vector<1x128xf32>
    %c2_344 = arith.constant 2 : index
    %c0_345 = arith.constant 0 : index
    %c0_346 = arith.constant 0 : index
    %386 = vector.load %arg45[%c2_344, %c0_345, %c0_346] : memref<4x1x64xf32, #tpu.memory_space<vmem>>, vector<1x1x64xf32>
    %387 = vector.shape_cast %386 : vector<1x1x64xf32> to vector<1x64xf32>
    %cst_347 = arith.constant dense<0.000000e+00> : vector<1x32xf32>
    %388 = tpu.matmul %387, %372, %cst_347 {dimension_numbers = #tpu.dot_dimension_numbers<[1], [0], [0], [1], [0, 0, 1, 1], [], []>} : vector<1x64xf32>, vector<64x32xf32>, vector<1x32xf32> -> vector<1x32xf32>
    %c2_348 = arith.constant 2 : index
    %c0_349 = arith.constant 0 : index
    %c0_350 = arith.constant 0 : index
    %389 = vector.load %arg47[%c2_348, %c0_349, %c0_350] : memref<4x32x128xf32, #tpu.memory_space<vmem>>, vector<1x32x128xf32>
    %390 = vector.shape_cast %389 : vector<1x32x128xf32> to vector<32x128xf32>
    %cst_351 = arith.constant dense<0.000000e+00> : vector<1x128xf32>
    %391 = tpu.matmul %388, %390, %cst_351 {dimension_numbers = #tpu.dot_dimension_numbers<[1], [0], [0], [1], [0, 0, 1, 1], [], []>} : vector<1x32xf32>, vector<32x128xf32>, vector<1x128xf32> -> vector<1x128xf32>
    %392 = arith.addf %385, %391 : vector<1x128xf32>
    %c3_352 = arith.constant 3 : index
    %c0_353 = arith.constant 0 : index
    %c0_354 = arith.constant 0 : index
    %393 = vector.load %arg45[%c3_352, %c0_353, %c0_354] : memref<4x1x64xf32, #tpu.memory_space<vmem>>, vector<1x1x64xf32>
    %394 = vector.shape_cast %393 : vector<1x1x64xf32> to vector<1x64xf32>
    %cst_355 = arith.constant dense<0.000000e+00> : vector<1x32xf32>
    %395 = tpu.matmul %394, %372, %cst_355 {dimension_numbers = #tpu.dot_dimension_numbers<[1], [0], [0], [1], [0, 0, 1, 1], [], []>} : vector<1x64xf32>, vector<64x32xf32>, vector<1x32xf32> -> vector<1x32xf32>
    %c3_356 = arith.constant 3 : index
    %c0_357 = arith.constant 0 : index
    %c0_358 = arith.constant 0 : index
    %396 = vector.load %arg47[%c3_356, %c0_357, %c0_358] : memref<4x32x128xf32, #tpu.memory_space<vmem>>, vector<1x32x128xf32>
    %397 = vector.shape_cast %396 : vector<1x32x128xf32> to vector<32x128xf32>
    %cst_359 = arith.constant dense<0.000000e+00> : vector<1x128xf32>
    %398 = tpu.matmul %395, %397, %cst_359 {dimension_numbers = #tpu.dot_dimension_numbers<[1], [0], [0], [1], [0, 0, 1, 1], [], []>} : vector<1x32xf32>, vector<32x128xf32>, vector<1x128xf32> -> vector<1x128xf32>
    %399 = arith.addf %392, %398 : vector<1x128xf32>
    %c0_360 = arith.constant 0 : index
    %c0_361 = arith.constant 0 : index
    %400 = vector.load %arg48[%c0_360, %c0_361] : memref<2x128xf32, #tpu.memory_space<vmem>>, vector<1x128xf32>
    tpu.vector_store %arg48[%c0_360, %c0_361], %399 {strides = array<i32>} : memref<2x128xf32, #tpu.memory_space<vmem>>, vector<1x128xf32>,
    %c1_362 = arith.constant 1 : index
    %c0_363 = arith.constant 0 : index
    %c0_364 = arith.constant 0 : index
    %401 = vector.load %arg0[%c1_362, %c0_363, %c0_364] : memref<2x16x8xf32, #tpu.memory_space<vmem>>, vector<1x16x8xf32>
    %402 = vector.shape_cast %401 : vector<1x16x8xf32> to vector<16x8xf32>
    %c0_365 = arith.constant 0 : index
    %c0_366 = arith.constant 0 : index
    %c0_367 = arith.constant 0 : index
    %403 = vector.load %arg3[%c0_365, %c0_366, %c0_367] : memref<7x8x8xf32, #tpu.memory_space<vmem>>, vector<1x8x8xf32>
    %404 = vector.shape_cast %403 : vector<1x8x8xf32> to vector<8x8xf32>
    %cst_368 = arith.constant dense<0.000000e+00> : vector<16x8xf32>
    %405 = tpu.matmul %402, %404, %cst_368 {dimension_numbers = #tpu.dot_dimension_numbers<[1], [0], [0], [1], [0, 0, 1, 1], [], []>} : vector<16x8xf32>, vector<8x8xf32>, vector<16x8xf32> -> vector<16x8xf32>
    %c1_369 = arith.constant 1 : index
    %c0_370 = arith.constant 0 : index
    %c0_371 = arith.constant 0 : index
    %406 = vector.load %arg3[%c1_369, %c0_370, %c0_371] : memref<7x8x8xf32, #tpu.memory_space<vmem>>, vector<1x8x8xf32>
    %407 = vector.shape_cast %406 : vector<1x8x8xf32> to vector<8x8xf32>
    %cst_372 = arith.constant dense<0.000000e+00> : vector<16x8xf32>
    %408 = tpu.matmul %402, %407, %cst_372 {dimension_numbers = #tpu.dot_dimension_numbers<[1], [0], [0], [1], [0, 0, 1, 1], [], []>} : vector<16x8xf32>, vector<8x8xf32>, vector<16x8xf32> -> vector<16x8xf32>
    %c2_373 = arith.constant 2 : index
    %c0_374 = arith.constant 0 : index
    %c0_375 = arith.constant 0 : index
    %409 = vector.load %arg3[%c2_373, %c0_374, %c0_375] : memref<7x8x8xf32, #tpu.memory_space<vmem>>, vector<1x8x8xf32>
    %410 = vector.shape_cast %409 : vector<1x8x8xf32> to vector<8x8xf32>
    %cst_376 = arith.constant dense<0.000000e+00> : vector<16x8xf32>
    %411 = tpu.matmul %402, %410, %cst_376 {dimension_numbers = #tpu.dot_dimension_numbers<[1], [0], [0], [1], [0, 0, 1, 1], [], []>} : vector<16x8xf32>, vector<8x8xf32>, vector<16x8xf32> -> vector<16x8xf32>
    %c3_377 = arith.constant 3 : index
    %c0_378 = arith.constant 0 : index
    %c0_379 = arith.constant 0 : index
    %412 = vector.load %arg3[%c3_377, %c0_378, %c0_379] : memref<7x8x8xf32, #tpu.memory_space<vmem>>, vector<1x8x8xf32>
    %413 = vector.shape_cast %412 : vector<1x8x8xf32> to vector<8x8xf32>
    %cst_380 = arith.constant dense<0.000000e+00> : vector<16x8xf32>
    %414 = tpu.matmul %402, %413, %cst_380 {dimension_numbers = #tpu.dot_dimension_numbers<[1], [0], [0], [1], [0, 0, 1, 1], [], []>} : vector<16x8xf32>, vector<8x8xf32>, vector<16x8xf32> -> vector<16x8xf32>
    %c4_381 = arith.constant 4 : index
    %c0_382 = arith.constant 0 : index
    %c0_383 = arith.constant 0 : index
    %415 = vector.load %arg3[%c4_381, %c0_382, %c0_383] : memref<7x8x8xf32, #tpu.memory_space<vmem>>, vector<1x8x8xf32>
    %416 = vector.shape_cast %415 : vector<1x8x8xf32> to vector<8x8xf32>
    %cst_384 = arith.constant dense<0.000000e+00> : vector<16x8xf32>
    %417 = tpu.matmul %402, %416, %cst_384 {dimension_numbers = #tpu.dot_dimension_numbers<[1], [0], [0], [1], [0, 0, 1, 1], [], []>} : vector<16x8xf32>, vector<8x8xf32>, vector<16x8xf32> -> vector<16x8xf32>
    %c5_385 = arith.constant 5 : index
    %c0_386 = arith.constant 0 : index
    %c0_387 = arith.constant 0 : index
    %418 = vector.load %arg3[%c5_385, %c0_386, %c0_387] : memref<7x8x8xf32, #tpu.memory_space<vmem>>, vector<1x8x8xf32>
    %419 = vector.shape_cast %418 : vector<1x8x8xf32> to vector<8x8xf32>
    %cst_388 = arith.constant dense<0.000000e+00> : vector<16x8xf32>
    %420 = tpu.matmul %402, %419, %cst_388 {dimension_numbers = #tpu.dot_dimension_numbers<[1], [0], [0], [1], [0, 0, 1, 1], [], []>} : vector<16x8xf32>, vector<8x8xf32>, vector<16x8xf32> -> vector<16x8xf32>
    %c6_389 = arith.constant 6 : index
    %c0_390 = arith.constant 0 : index
    %c0_391 = arith.constant 0 : index
    %421 = vector.load %arg3[%c6_389, %c0_390, %c0_391] : memref<7x8x8xf32, #tpu.memory_space<vmem>>, vector<1x8x8xf32>
    %422 = vector.shape_cast %421 : vector<1x8x8xf32> to vector<8x8xf32>
    %cst_392 = arith.constant dense<0.000000e+00> : vector<16x8xf32>
    %423 = tpu.matmul %402, %422, %cst_392 {dimension_numbers = #tpu.dot_dimension_numbers<[1], [0], [0], [1], [0, 0, 1, 1], [], []>} : vector<16x8xf32>, vector<8x8xf32>, vector<16x8xf32> -> vector<16x8xf32>
    %424 = tpu.concatenate %405, %408, %411, %414, %417, %420, %423 in 0 : vector<16x8xf32>, vector<16x8xf32>, vector<16x8xf32>, vector<16x8xf32>, vector<16x8xf32>, vector<16x8xf32>, vector<16x8xf32> -> vector<112x8xf32>
    %c0_393 = arith.constant 0 : index
    %c0_394 = arith.constant 0 : index
    %425 = vector.load %arg1[%c0_393, %c0_394] : memref<32x112xf32, #tpu.memory_space<vmem>>, vector<32x112xf32>
    %cst_395 = arith.constant dense<0.000000e+00> : vector<32x8xf32>
    %426 = tpu.matmul %425, %424, %cst_395 {dimension_numbers = #tpu.dot_dimension_numbers<[1], [0], [0], [1], [0, 0, 1, 1], [], []>} : vector<32x112xf32>, vector<112x8xf32>, vector<32x8xf32> -> vector<32x8xf32>
    %c0_396 = arith.constant 0 : index
    %c0_397 = arith.constant 0 : index
    %427 = vector.load %arg2[%c0_396, %c0_397] : memref<32x1xf32, #tpu.memory_space<vmem>>, vector<32x1xf32>
    %428 = vector.broadcast %427 : vector<32x1xf32> to vector<32x8xf32>
    %429 = arith.addf %426, %428 : vector<32x8xf32>
    %cst_398 = arith.constant 0.000000e+00 : f32
    %430 = vector.broadcast %cst_398 : f32 to vector<32x8xf32>
    %431 = arith.cmpf ogt, %429, %430 : vector<32x8xf32>
    %cst_399 = arith.constant 2.000000e-01 : f32
    %432 = vector.broadcast %cst_399 : f32 to vector<32x8xf32>
    %433 = arith.mulf %432, %429 : vector<32x8xf32>
    %434 = arith.select %431, %429, %433 : vector<32x8xi1>, vector<32x8xf32>
    %c0_400 = arith.constant 0 : index
    %c0_401 = arith.constant 0 : index
    %c0_402 = arith.constant 0 : index
    %435 = vector.load %arg6[%c0_400, %c0_401, %c0_402] : memref<3x8x8xf32, #tpu.memory_space<vmem>>, vector<1x8x8xf32>
    %436 = vector.shape_cast %435 : vector<1x8x8xf32> to vector<8x8xf32>
    %cst_403 = arith.constant dense<0.000000e+00> : vector<32x8xf32>
    %437 = tpu.matmul %434, %436, %cst_403 {dimension_numbers = #tpu.dot_dimension_numbers<[1], [0], [0], [1], [0, 0, 1, 1], [], []>} : vector<32x8xf32>, vector<8x8xf32>, vector<32x8xf32> -> vector<32x8xf32>
    %c1_404 = arith.constant 1 : index
    %c0_405 = arith.constant 0 : index
    %c0_406 = arith.constant 0 : index
    %438 = vector.load %arg6[%c1_404, %c0_405, %c0_406] : memref<3x8x8xf32, #tpu.memory_space<vmem>>, vector<1x8x8xf32>
    %439 = vector.shape_cast %438 : vector<1x8x8xf32> to vector<8x8xf32>
    %cst_407 = arith.constant dense<0.000000e+00> : vector<32x8xf32>
    %440 = tpu.matmul %434, %439, %cst_407 {dimension_numbers = #tpu.dot_dimension_numbers<[1], [0], [0], [1], [0, 0, 1, 1], [], []>} : vector<32x8xf32>, vector<8x8xf32>, vector<32x8xf32> -> vector<32x8xf32>
    %c2_408 = arith.constant 2 : index
    %c0_409 = arith.constant 0 : index
    %c0_410 = arith.constant 0 : index
    %441 = vector.load %arg6[%c2_408, %c0_409, %c0_410] : memref<3x8x8xf32, #tpu.memory_space<vmem>>, vector<1x8x8xf32>
    %442 = vector.shape_cast %441 : vector<1x8x8xf32> to vector<8x8xf32>
    %cst_411 = arith.constant dense<0.000000e+00> : vector<32x8xf32>
    %443 = tpu.matmul %434, %442, %cst_411 {dimension_numbers = #tpu.dot_dimension_numbers<[1], [0], [0], [1], [0, 0, 1, 1], [], []>} : vector<32x8xf32>, vector<8x8xf32>, vector<32x8xf32> -> vector<32x8xf32>
    %444 = tpu.concatenate %437, %440, %443 in 0 : vector<32x8xf32>, vector<32x8xf32>, vector<32x8xf32> -> vector<96x8xf32>
    %c0_412 = arith.constant 0 : index
    %c0_413 = arith.constant 0 : index
    %445 = vector.load %arg4[%c0_412, %c0_413] : memref<32x96xf32, #tpu.memory_space<vmem>>, vector<32x96xf32>
    %cst_414 = arith.constant dense<0.000000e+00> : vector<32x8xf32>
    %446 = tpu.matmul %445, %444, %cst_414 {dimension_numbers = #tpu.dot_dimension_numbers<[1], [0], [0], [1], [0, 0, 1, 1], [], []>} : vector<32x96xf32>, vector<96x8xf32>, vector<32x8xf32> -> vector<32x8xf32>
    %c0_415 = arith.constant 0 : index
    %c0_416 = arith.constant 0 : index
    %447 = vector.load %arg5[%c0_415, %c0_416] : memref<32x1xf32, #tpu.memory_space<vmem>>, vector<32x1xf32>
    %448 = vector.broadcast %447 : vector<32x1xf32> to vector<32x8xf32>
    %449 = arith.addf %446, %448 : vector<32x8xf32>
    %450 = vector.extract_strided_slice %449 {offsets = [0, 0], sizes = [16, 8], strides = [1, 1]} : vector<32x8xf32> to vector<16x8xf32>
    %c0_417 = arith.constant 0 : index
    %c0_418 = arith.constant 0 : index
    %c0_419 = arith.constant 0 : index
    %451 = vector.load %arg7[%c0_417, %c0_418, %c0_419] : memref<2x8x16xf32, #tpu.memory_space<vmem>>, vector<1x8x16xf32>
    %452 = vector.shape_cast %451 : vector<1x8x16xf32> to vector<8x16xf32>
    %cst_420 = arith.constant dense<0.000000e+00> : vector<16x16xf32>
    %453 = tpu.matmul %450, %452, %cst_420 {dimension_numbers = #tpu.dot_dimension_numbers<[1], [0], [0], [1], [0, 0, 1, 1], [], []>} : vector<16x8xf32>, vector<8x16xf32>, vector<16x16xf32> -> vector<16x16xf32>
    %454 = vector.extract_strided_slice %449 {offsets = [16, 0], sizes = [16, 8], strides = [1, 1]} : vector<32x8xf32> to vector<16x8xf32>
    %c1_421 = arith.constant 1 : index
    %c0_422 = arith.constant 0 : index
    %c0_423 = arith.constant 0 : index
    %455 = vector.load %arg7[%c1_421, %c0_422, %c0_423] : memref<2x8x16xf32, #tpu.memory_space<vmem>>, vector<1x8x16xf32>
    %456 = vector.shape_cast %455 : vector<1x8x16xf32> to vector<8x16xf32>
    %cst_424 = arith.constant dense<0.000000e+00> : vector<16x16xf32>
    %457 = tpu.matmul %454, %456, %cst_424 {dimension_numbers = #tpu.dot_dimension_numbers<[1], [0], [0], [1], [0, 0, 1, 1], [], []>} : vector<16x8xf32>, vector<8x16xf32>, vector<16x16xf32> -> vector<16x16xf32>
    %458 = arith.addf %453, %457 : vector<16x16xf32>
    %cst_425 = arith.constant 0.000000e+00 : f32
    %459 = vector.broadcast %cst_425 : f32 to vector<16x16xf32>
    %460 = arith.cmpf ogt, %458, %459 : vector<16x16xf32>
    %cst_426 = arith.constant 2.000000e-01 : f32
    %461 = vector.broadcast %cst_426 : f32 to vector<16x16xf32>
    %462 = arith.mulf %461, %458 : vector<16x16xf32>
    %463 = arith.select %460, %458, %462 : vector<16x16xi1>, vector<16x16xf32>
    %c0_427 = arith.constant 0 : index
    %c0_428 = arith.constant 0 : index
    %c0_429 = arith.constant 0 : index
    %464 = vector.load %arg12[%c0_427, %c0_428, %c0_429] : memref<3x16x16xf32, #tpu.memory_space<vmem>>, vector<1x16x16xf32>
    %465 = vector.shape_cast %464 : vector<1x16x16xf32> to vector<16x16xf32>
    %cst_430 = arith.constant dense<0.000000e+00> : vector<16x16xf32>
    %466 = tpu.matmul %463, %465, %cst_430 {dimension_numbers = #tpu.dot_dimension_numbers<[1], [0], [0], [1], [0, 0, 1, 1], [], []>} : vector<16x16xf32>, vector<16x16xf32>, vector<16x16xf32> -> vector<16x16xf32>
    %c1_431 = arith.constant 1 : index
    %c0_432 = arith.constant 0 : index
    %c0_433 = arith.constant 0 : index
    %467 = vector.load %arg12[%c1_431, %c0_432, %c0_433] : memref<3x16x16xf32, #tpu.memory_space<vmem>>, vector<1x16x16xf32>
    %468 = vector.shape_cast %467 : vector<1x16x16xf32> to vector<16x16xf32>
    %cst_434 = arith.constant dense<0.000000e+00> : vector<16x16xf32>
    %469 = tpu.matmul %463, %468, %cst_434 {dimension_numbers = #tpu.dot_dimension_numbers<[1], [0], [0], [1], [0, 0, 1, 1], [], []>} : vector<16x16xf32>, vector<16x16xf32>, vector<16x16xf32> -> vector<16x16xf32>
    %c2_435 = arith.constant 2 : index
    %c0_436 = arith.constant 0 : index
    %c0_437 = arith.constant 0 : index
    %470 = vector.load %arg12[%c2_435, %c0_436, %c0_437] : memref<3x16x16xf32, #tpu.memory_space<vmem>>, vector<1x16x16xf32>
    %471 = vector.shape_cast %470 : vector<1x16x16xf32> to vector<16x16xf32>
    %cst_438 = arith.constant dense<0.000000e+00> : vector<16x16xf32>
    %472 = tpu.matmul %463, %471, %cst_438 {dimension_numbers = #tpu.dot_dimension_numbers<[1], [0], [0], [1], [0, 0, 1, 1], [], []>} : vector<16x16xf32>, vector<16x16xf32>, vector<16x16xf32> -> vector<16x16xf32>
    %473 = tpu.concatenate %466, %469, %472 in 0 : vector<16x16xf32>, vector<16x16xf32>, vector<16x16xf32> -> vector<48x16xf32>
    %474 = tpu.concatenate %473, %458 in 0 : vector<48x16xf32>, vector<16x16xf32> -> vector<64x16xf32>
    %c0_439 = arith.constant 0 : index
    %c0_440 = arith.constant 0 : index
    %475 = vector.load %arg8[%c0_439, %c0_440] : memref<32x64xf32, #tpu.memory_space<vmem>>, vector<32x64xf32>
    %cst_441 = arith.constant dense<0.000000e+00> : vector<32x16xf32>
    %476 = tpu.matmul %475, %474, %cst_441 {dimension_numbers = #tpu.dot_dimension_numbers<[1], [0], [0], [1], [0, 0, 1, 1], [], []>} : vector<32x64xf32>, vector<64x16xf32>, vector<32x16xf32> -> vector<32x16xf32>
    %c0_442 = arith.constant 0 : index
    %c0_443 = arith.constant 0 : index
    %477 = vector.load %arg9[%c0_442, %c0_443] : memref<32x1xf32, #tpu.memory_space<vmem>>, vector<32x1xf32>
    %478 = vector.broadcast %477 : vector<32x1xf32> to vector<32x16xf32>
    %479 = arith.addf %476, %478 : vector<32x16xf32>
    %480 = vector.extract_strided_slice %479 {offsets = [0, 0], sizes = [16, 16], strides = [1, 1]} : vector<32x16xf32> to vector<16x16xf32>
    %481 = vector.extract_strided_slice %479 {offsets = [16, 0], sizes = [16, 16], strides = [1, 1]} : vector<32x16xf32> to vector<16x16xf32>
    %c0_444 = arith.constant 0 : index
    %c0_445 = arith.constant 0 : index
    %482 = vector.load %arg10[%c0_444, %c0_445] : memref<16x16xf32, #tpu.memory_space<vmem>>, vector<16x16xf32>
    %cst_446 = arith.constant 0.000000e+00 : f32
    %483 = vector.broadcast %cst_446 : f32 to vector<16x16xf32>
    %484 = arith.cmpf ogt, %480, %483 : vector<16x16xf32>
    %cst_447 = arith.constant 2.000000e-01 : f32
    %485 = vector.broadcast %cst_447 : f32 to vector<16x16xf32>
    %486 = arith.mulf %485, %480 : vector<16x16xf32>
    %487 = arith.select %484, %480, %486 : vector<16x16xi1>, vector<16x16xf32>
    %cst_448 = arith.constant dense<0.000000e+00> : vector<16x16xf32>
    %488 = tpu.matmul %482, %487, %cst_448 {dimension_numbers = #tpu.dot_dimension_numbers<[1], [0], [0], [1], [0, 0, 1, 1], [], []>} : vector<16x16xf32>, vector<16x16xf32>, vector<16x16xf32> -> vector<16x16xf32>
    %c0_449 = arith.constant 0 : index
    %c0_450 = arith.constant 0 : index
    %489 = vector.load %arg11[%c0_449, %c0_450] : memref<16x1xf32, #tpu.memory_space<vmem>>, vector<16x1xf32>
    %490 = vector.broadcast %489 : vector<16x1xf32> to vector<16x16xf32>
    %491 = arith.addf %488, %490 : vector<16x16xf32>
    %492 = arith.addf %491, %481 : vector<16x16xf32>
    %cst_451 = arith.constant 0.000000e+00 : f32
    %493 = vector.broadcast %cst_451 : f32 to vector<16x16xf32>
    %494 = arith.cmpf ogt, %492, %493 : vector<16x16xf32>
    %cst_452 = arith.constant 2.000000e-01 : f32
    %495 = vector.broadcast %cst_452 : f32 to vector<16x16xf32>
    %496 = arith.mulf %495, %492 : vector<16x16xf32>
    %497 = arith.select %494, %492, %496 : vector<16x16xi1>, vector<16x16xf32>
    %c0_453 = arith.constant 0 : index
    %c0_454 = arith.constant 0 : index
    %c0_455 = arith.constant 0 : index
    %498 = vector.load %arg17[%c0_453, %c0_454, %c0_455] : memref<3x16x16xf32, #tpu.memory_space<vmem>>, vector<1x16x16xf32>
    %499 = vector.shape_cast %498 : vector<1x16x16xf32> to vector<16x16xf32>
    %cst_456 = arith.constant dense<0.000000e+00> : vector<16x16xf32>
    %500 = tpu.matmul %497, %499, %cst_456 {dimension_numbers = #tpu.dot_dimension_numbers<[1], [0], [0], [1], [0, 0, 1, 1], [], []>} : vector<16x16xf32>, vector<16x16xf32>, vector<16x16xf32> -> vector<16x16xf32>
    %c1_457 = arith.constant 1 : index
    %c0_458 = arith.constant 0 : index
    %c0_459 = arith.constant 0 : index
    %501 = vector.load %arg17[%c1_457, %c0_458, %c0_459] : memref<3x16x16xf32, #tpu.memory_space<vmem>>, vector<1x16x16xf32>
    %502 = vector.shape_cast %501 : vector<1x16x16xf32> to vector<16x16xf32>
    %cst_460 = arith.constant dense<0.000000e+00> : vector<16x16xf32>
    %503 = tpu.matmul %497, %502, %cst_460 {dimension_numbers = #tpu.dot_dimension_numbers<[1], [0], [0], [1], [0, 0, 1, 1], [], []>} : vector<16x16xf32>, vector<16x16xf32>, vector<16x16xf32> -> vector<16x16xf32>
    %c2_461 = arith.constant 2 : index
    %c0_462 = arith.constant 0 : index
    %c0_463 = arith.constant 0 : index
    %504 = vector.load %arg17[%c2_461, %c0_462, %c0_463] : memref<3x16x16xf32, #tpu.memory_space<vmem>>, vector<1x16x16xf32>
    %505 = vector.shape_cast %504 : vector<1x16x16xf32> to vector<16x16xf32>
    %cst_464 = arith.constant dense<0.000000e+00> : vector<16x16xf32>
    %506 = tpu.matmul %497, %505, %cst_464 {dimension_numbers = #tpu.dot_dimension_numbers<[1], [0], [0], [1], [0, 0, 1, 1], [], []>} : vector<16x16xf32>, vector<16x16xf32>, vector<16x16xf32> -> vector<16x16xf32>
    %507 = tpu.concatenate %500, %503, %506 in 0 : vector<16x16xf32>, vector<16x16xf32>, vector<16x16xf32> -> vector<48x16xf32>
    %508 = tpu.concatenate %507, %492 in 0 : vector<48x16xf32>, vector<16x16xf32> -> vector<64x16xf32>
    %c0_465 = arith.constant 0 : index
    %c0_466 = arith.constant 0 : index
    %509 = vector.load %arg13[%c0_465, %c0_466] : memref<32x64xf32, #tpu.memory_space<vmem>>, vector<32x64xf32>
    %cst_467 = arith.constant dense<0.000000e+00> : vector<32x16xf32>
    %510 = tpu.matmul %509, %508, %cst_467 {dimension_numbers = #tpu.dot_dimension_numbers<[1], [0], [0], [1], [0, 0, 1, 1], [], []>} : vector<32x64xf32>, vector<64x16xf32>, vector<32x16xf32> -> vector<32x16xf32>
    %c0_468 = arith.constant 0 : index
    %c0_469 = arith.constant 0 : index
    %511 = vector.load %arg14[%c0_468, %c0_469] : memref<32x1xf32, #tpu.memory_space<vmem>>, vector<32x1xf32>
    %512 = vector.broadcast %511 : vector<32x1xf32> to vector<32x16xf32>
    %513 = arith.addf %510, %512 : vector<32x16xf32>
    %514 = vector.extract_strided_slice %513 {offsets = [0, 0], sizes = [16, 16], strides = [1, 1]} : vector<32x16xf32> to vector<16x16xf32>
    %515 = vector.extract_strided_slice %513 {offsets = [16, 0], sizes = [16, 16], strides = [1, 1]} : vector<32x16xf32> to vector<16x16xf32>
    %c0_470 = arith.constant 0 : index
    %c0_471 = arith.constant 0 : index
    %516 = vector.load %arg15[%c0_470, %c0_471] : memref<16x16xf32, #tpu.memory_space<vmem>>, vector<16x16xf32>
    %cst_472 = arith.constant 0.000000e+00 : f32
    %517 = vector.broadcast %cst_472 : f32 to vector<16x16xf32>
    %518 = arith.cmpf ogt, %514, %517 : vector<16x16xf32>
    %cst_473 = arith.constant 2.000000e-01 : f32
    %519 = vector.broadcast %cst_473 : f32 to vector<16x16xf32>
    %520 = arith.mulf %519, %514 : vector<16x16xf32>
    %521 = arith.select %518, %514, %520 : vector<16x16xi1>, vector<16x16xf32>
    %cst_474 = arith.constant dense<0.000000e+00> : vector<16x16xf32>
    %522 = tpu.matmul %516, %521, %cst_474 {dimension_numbers = #tpu.dot_dimension_numbers<[1], [0], [0], [1], [0, 0, 1, 1], [], []>} : vector<16x16xf32>, vector<16x16xf32>, vector<16x16xf32> -> vector<16x16xf32>
    %c0_475 = arith.constant 0 : index
    %c0_476 = arith.constant 0 : index
    %523 = vector.load %arg16[%c0_475, %c0_476] : memref<16x1xf32, #tpu.memory_space<vmem>>, vector<16x1xf32>
    %524 = vector.broadcast %523 : vector<16x1xf32> to vector<16x16xf32>
    %525 = arith.addf %522, %524 : vector<16x16xf32>
    %526 = arith.addf %525, %515 : vector<16x16xf32>
    %cst_477 = arith.constant 0.000000e+00 : f32
    %527 = vector.broadcast %cst_477 : f32 to vector<16x16xf32>
    %528 = arith.cmpf ogt, %526, %527 : vector<16x16xf32>
    %cst_478 = arith.constant 2.000000e-01 : f32
    %529 = vector.broadcast %cst_478 : f32 to vector<16x16xf32>
    %530 = arith.mulf %529, %526 : vector<16x16xf32>
    %531 = arith.select %528, %526, %530 : vector<16x16xi1>, vector<16x16xf32>
    %c0_479 = arith.constant 0 : index
    %c0_480 = arith.constant 0 : index
    %c0_481 = arith.constant 0 : index
    %532 = vector.load %arg22[%c0_479, %c0_480, %c0_481] : memref<3x16x16xf32, #tpu.memory_space<vmem>>, vector<1x16x16xf32>
    %533 = vector.shape_cast %532 : vector<1x16x16xf32> to vector<16x16xf32>
    %cst_482 = arith.constant dense<0.000000e+00> : vector<16x16xf32>
    %534 = tpu.matmul %531, %533, %cst_482 {dimension_numbers = #tpu.dot_dimension_numbers<[1], [0], [0], [1], [0, 0, 1, 1], [], []>} : vector<16x16xf32>, vector<16x16xf32>, vector<16x16xf32> -> vector<16x16xf32>
    %c1_483 = arith.constant 1 : index
    %c0_484 = arith.constant 0 : index
    %c0_485 = arith.constant 0 : index
    %535 = vector.load %arg22[%c1_483, %c0_484, %c0_485] : memref<3x16x16xf32, #tpu.memory_space<vmem>>, vector<1x16x16xf32>
    %536 = vector.shape_cast %535 : vector<1x16x16xf32> to vector<16x16xf32>
    %cst_486 = arith.constant dense<0.000000e+00> : vector<16x16xf32>
    %537 = tpu.matmul %531, %536, %cst_486 {dimension_numbers = #tpu.dot_dimension_numbers<[1], [0], [0], [1], [0, 0, 1, 1], [], []>} : vector<16x16xf32>, vector<16x16xf32>, vector<16x16xf32> -> vector<16x16xf32>
    %c2_487 = arith.constant 2 : index
    %c0_488 = arith.constant 0 : index
    %c0_489 = arith.constant 0 : index
    %538 = vector.load %arg22[%c2_487, %c0_488, %c0_489] : memref<3x16x16xf32, #tpu.memory_space<vmem>>, vector<1x16x16xf32>
    %539 = vector.shape_cast %538 : vector<1x16x16xf32> to vector<16x16xf32>
    %cst_490 = arith.constant dense<0.000000e+00> : vector<16x16xf32>
    %540 = tpu.matmul %531, %539, %cst_490 {dimension_numbers = #tpu.dot_dimension_numbers<[1], [0], [0], [1], [0, 0, 1, 1], [], []>} : vector<16x16xf32>, vector<16x16xf32>, vector<16x16xf32> -> vector<16x16xf32>
    %541 = tpu.concatenate %534, %537, %540 in 0 : vector<16x16xf32>, vector<16x16xf32>, vector<16x16xf32> -> vector<48x16xf32>
    %542 = tpu.concatenate %541, %526 in 0 : vector<48x16xf32>, vector<16x16xf32> -> vector<64x16xf32>
    %c0_491 = arith.constant 0 : index
    %c0_492 = arith.constant 0 : index
    %543 = vector.load %arg18[%c0_491, %c0_492] : memref<32x64xf32, #tpu.memory_space<vmem>>, vector<32x64xf32>
    %cst_493 = arith.constant dense<0.000000e+00> : vector<32x16xf32>
    %544 = tpu.matmul %543, %542, %cst_493 {dimension_numbers = #tpu.dot_dimension_numbers<[1], [0], [0], [1], [0, 0, 1, 1], [], []>} : vector<32x64xf32>, vector<64x16xf32>, vector<32x16xf32> -> vector<32x16xf32>
    %c0_494 = arith.constant 0 : index
    %c0_495 = arith.constant 0 : index
    %545 = vector.load %arg19[%c0_494, %c0_495] : memref<32x1xf32, #tpu.memory_space<vmem>>, vector<32x1xf32>
    %546 = vector.broadcast %545 : vector<32x1xf32> to vector<32x16xf32>
    %547 = arith.addf %544, %546 : vector<32x16xf32>
    %548 = vector.extract_strided_slice %547 {offsets = [0, 0], sizes = [16, 16], strides = [1, 1]} : vector<32x16xf32> to vector<16x16xf32>
    %549 = vector.extract_strided_slice %547 {offsets = [16, 0], sizes = [16, 16], strides = [1, 1]} : vector<32x16xf32> to vector<16x16xf32>
    %c0_496 = arith.constant 0 : index
    %c0_497 = arith.constant 0 : index
    %550 = vector.load %arg20[%c0_496, %c0_497] : memref<16x16xf32, #tpu.memory_space<vmem>>, vector<16x16xf32>
    %cst_498 = arith.constant 0.000000e+00 : f32
    %551 = vector.broadcast %cst_498 : f32 to vector<16x16xf32>
    %552 = arith.cmpf ogt, %548, %551 : vector<16x16xf32>
    %cst_499 = arith.constant 2.000000e-01 : f32
    %553 = vector.broadcast %cst_499 : f32 to vector<16x16xf32>
    %554 = arith.mulf %553, %548 : vector<16x16xf32>
    %555 = arith.select %552, %548, %554 : vector<16x16xi1>, vector<16x16xf32>
    %cst_500 = arith.constant dense<0.000000e+00> : vector<16x16xf32>
    %556 = tpu.matmul %550, %555, %cst_500 {dimension_numbers = #tpu.dot_dimension_numbers<[1], [0], [0], [1], [0, 0, 1, 1], [], []>} : vector<16x16xf32>, vector<16x16xf32>, vector<16x16xf32> -> vector<16x16xf32>
    %c0_501 = arith.constant 0 : index
    %c0_502 = arith.constant 0 : index
    %557 = vector.load %arg21[%c0_501, %c0_502] : memref<16x1xf32, #tpu.memory_space<vmem>>, vector<16x1xf32>
    %558 = vector.broadcast %557 : vector<16x1xf32> to vector<16x16xf32>
    %559 = arith.addf %556, %558 : vector<16x16xf32>
    %560 = arith.addf %559, %549 : vector<16x16xf32>
    %cst_503 = arith.constant 0.000000e+00 : f32
    %561 = vector.broadcast %cst_503 : f32 to vector<16x16xf32>
    %562 = arith.cmpf ogt, %560, %561 : vector<16x16xf32>
    %cst_504 = arith.constant 2.000000e-01 : f32
    %563 = vector.broadcast %cst_504 : f32 to vector<16x16xf32>
    %564 = arith.mulf %563, %560 : vector<16x16xf32>
    %565 = arith.select %562, %560, %564 : vector<16x16xi1>, vector<16x16xf32>
    %c0_505 = arith.constant 0 : index
    %c0_506 = arith.constant 0 : index
    %c0_507 = arith.constant 0 : index
    %566 = vector.load %arg25[%c0_505, %c0_506, %c0_507] : memref<3x16x16xf32, #tpu.memory_space<vmem>>, vector<1x16x16xf32>
    %567 = vector.shape_cast %566 : vector<1x16x16xf32> to vector<16x16xf32>
    %cst_508 = arith.constant dense<0.000000e+00> : vector<16x16xf32>
    %568 = tpu.matmul %565, %567, %cst_508 {dimension_numbers = #tpu.dot_dimension_numbers<[1], [0], [0], [1], [0, 0, 1, 1], [], []>} : vector<16x16xf32>, vector<16x16xf32>, vector<16x16xf32> -> vector<16x16xf32>
    %c1_509 = arith.constant 1 : index
    %c0_510 = arith.constant 0 : index
    %c0_511 = arith.constant 0 : index
    %569 = vector.load %arg25[%c1_509, %c0_510, %c0_511] : memref<3x16x16xf32, #tpu.memory_space<vmem>>, vector<1x16x16xf32>
    %570 = vector.shape_cast %569 : vector<1x16x16xf32> to vector<16x16xf32>
    %cst_512 = arith.constant dense<0.000000e+00> : vector<16x16xf32>
    %571 = tpu.matmul %565, %570, %cst_512 {dimension_numbers = #tpu.dot_dimension_numbers<[1], [0], [0], [1], [0, 0, 1, 1], [], []>} : vector<16x16xf32>, vector<16x16xf32>, vector<16x16xf32> -> vector<16x16xf32>
    %c2_513 = arith.constant 2 : index
    %c0_514 = arith.constant 0 : index
    %c0_515 = arith.constant 0 : index
    %572 = vector.load %arg25[%c2_513, %c0_514, %c0_515] : memref<3x16x16xf32, #tpu.memory_space<vmem>>, vector<1x16x16xf32>
    %573 = vector.shape_cast %572 : vector<1x16x16xf32> to vector<16x16xf32>
    %cst_516 = arith.constant dense<0.000000e+00> : vector<16x16xf32>
    %574 = tpu.matmul %565, %573, %cst_516 {dimension_numbers = #tpu.dot_dimension_numbers<[1], [0], [0], [1], [0, 0, 1, 1], [], []>} : vector<16x16xf32>, vector<16x16xf32>, vector<16x16xf32> -> vector<16x16xf32>
    %575 = tpu.concatenate %568, %571, %574 in 0 : vector<16x16xf32>, vector<16x16xf32>, vector<16x16xf32> -> vector<48x16xf32>
    %c0_517 = arith.constant 0 : index
    %c0_518 = arith.constant 0 : index
    %576 = vector.load %arg23[%c0_517, %c0_518] : memref<16x48xf32, #tpu.memory_space<vmem>>, vector<16x48xf32>
    %cst_519 = arith.constant dense<0.000000e+00> : vector<16x16xf32>
    %577 = tpu.matmul %576, %575, %cst_519 {dimension_numbers = #tpu.dot_dimension_numbers<[1], [0], [0], [1], [0, 0, 1, 1], [], []>} : vector<16x48xf32>, vector<48x16xf32>, vector<16x16xf32> -> vector<16x16xf32>
    %c0_520 = arith.constant 0 : index
    %c0_521 = arith.constant 0 : index
    %578 = vector.load %arg24[%c0_520, %c0_521] : memref<16x1xf32, #tpu.memory_space<vmem>>, vector<16x1xf32>
    %579 = vector.broadcast %578 : vector<16x1xf32> to vector<16x16xf32>
    %580 = arith.addf %577, %579 : vector<16x16xf32>
    %581 = vector.extract_strided_slice %580 {offsets = [0, 0], sizes = [8, 16], strides = [1, 1]} : vector<16x16xf32> to vector<8x16xf32>
    %c0_522 = arith.constant 0 : index
    %c0_523 = arith.constant 0 : index
    %c0_524 = arith.constant 0 : index
    %582 = vector.load %arg26[%c0_522, %c0_523, %c0_524] : memref<2x16x32xf32, #tpu.memory_space<vmem>>, vector<1x16x32xf32>
    %583 = vector.shape_cast %582 : vector<1x16x32xf32> to vector<16x32xf32>
    %cst_525 = arith.constant dense<0.000000e+00> : vector<8x32xf32>
    %584 = tpu.matmul %581, %583, %cst_525 {dimension_numbers = #tpu.dot_dimension_numbers<[1], [0], [0], [1], [0, 0, 1, 1], [], []>} : vector<8x16xf32>, vector<16x32xf32>, vector<8x32xf32> -> vector<8x32xf32>
    %585 = vector.extract_strided_slice %580 {offsets = [8, 0], sizes = [8, 16], strides = [1, 1]} : vector<16x16xf32> to vector<8x16xf32>
    %c1_526 = arith.constant 1 : index
    %c0_527 = arith.constant 0 : index
    %c0_528 = arith.constant 0 : index
    %586 = vector.load %arg26[%c1_526, %c0_527, %c0_528] : memref<2x16x32xf32, #tpu.memory_space<vmem>>, vector<1x16x32xf32>
    %587 = vector.shape_cast %586 : vector<1x16x32xf32> to vector<16x32xf32>
    %cst_529 = arith.constant dense<0.000000e+00> : vector<8x32xf32>
    %588 = tpu.matmul %585, %587, %cst_529 {dimension_numbers = #tpu.dot_dimension_numbers<[1], [0], [0], [1], [0, 0, 1, 1], [], []>} : vector<8x16xf32>, vector<16x32xf32>, vector<8x32xf32> -> vector<8x32xf32>
    %589 = arith.addf %584, %588 : vector<8x32xf32>
    %cst_530 = arith.constant 0.000000e+00 : f32
    %590 = vector.broadcast %cst_530 : f32 to vector<8x32xf32>
    %591 = arith.cmpf ogt, %589, %590 : vector<8x32xf32>
    %cst_531 = arith.constant 2.000000e-01 : f32
    %592 = vector.broadcast %cst_531 : f32 to vector<8x32xf32>
    %593 = arith.mulf %592, %589 : vector<8x32xf32>
    %594 = arith.select %591, %589, %593 : vector<8x32xi1>, vector<8x32xf32>
    %c0_532 = arith.constant 0 : index
    %c0_533 = arith.constant 0 : index
    %c0_534 = arith.constant 0 : index
    %595 = vector.load %arg31[%c0_532, %c0_533, %c0_534] : memref<3x32x32xf32, #tpu.memory_space<vmem>>, vector<1x32x32xf32>
    %596 = vector.shape_cast %595 : vector<1x32x32xf32> to vector<32x32xf32>
    %cst_535 = arith.constant dense<0.000000e+00> : vector<8x32xf32>
    %597 = tpu.matmul %594, %596, %cst_535 {dimension_numbers = #tpu.dot_dimension_numbers<[1], [0], [0], [1], [0, 0, 1, 1], [], []>} : vector<8x32xf32>, vector<32x32xf32>, vector<8x32xf32> -> vector<8x32xf32>
    %c1_536 = arith.constant 1 : index
    %c0_537 = arith.constant 0 : index
    %c0_538 = arith.constant 0 : index
    %598 = vector.load %arg31[%c1_536, %c0_537, %c0_538] : memref<3x32x32xf32, #tpu.memory_space<vmem>>, vector<1x32x32xf32>
    %599 = vector.shape_cast %598 : vector<1x32x32xf32> to vector<32x32xf32>
    %cst_539 = arith.constant dense<0.000000e+00> : vector<8x32xf32>
    %600 = tpu.matmul %594, %599, %cst_539 {dimension_numbers = #tpu.dot_dimension_numbers<[1], [0], [0], [1], [0, 0, 1, 1], [], []>} : vector<8x32xf32>, vector<32x32xf32>, vector<8x32xf32> -> vector<8x32xf32>
    %c2_540 = arith.constant 2 : index
    %c0_541 = arith.constant 0 : index
    %c0_542 = arith.constant 0 : index
    %601 = vector.load %arg31[%c2_540, %c0_541, %c0_542] : memref<3x32x32xf32, #tpu.memory_space<vmem>>, vector<1x32x32xf32>
    %602 = vector.shape_cast %601 : vector<1x32x32xf32> to vector<32x32xf32>
    %cst_543 = arith.constant dense<0.000000e+00> : vector<8x32xf32>
    %603 = tpu.matmul %594, %602, %cst_543 {dimension_numbers = #tpu.dot_dimension_numbers<[1], [0], [0], [1], [0, 0, 1, 1], [], []>} : vector<8x32xf32>, vector<32x32xf32>, vector<8x32xf32> -> vector<8x32xf32>
    %604 = tpu.concatenate %597, %600, %603 in 0 : vector<8x32xf32>, vector<8x32xf32>, vector<8x32xf32> -> vector<24x32xf32>
    %605 = tpu.concatenate %604, %589 in 0 : vector<24x32xf32>, vector<8x32xf32> -> vector<32x32xf32>
    %c0_544 = arith.constant 0 : index
    %c0_545 = arith.constant 0 : index
    %606 = vector.load %arg27[%c0_544, %c0_545] : memref<16x32xf32, #tpu.memory_space<vmem>>, vector<16x32xf32>
    %cst_546 = arith.constant dense<0.000000e+00> : vector<16x32xf32>
    %607 = tpu.matmul %606, %605, %cst_546 {dimension_numbers = #tpu.dot_dimension_numbers<[1], [0], [0], [1], [0, 0, 1, 1], [], []>} : vector<16x32xf32>, vector<32x32xf32>, vector<16x32xf32> -> vector<16x32xf32>
    %c0_547 = arith.constant 0 : index
    %c0_548 = arith.constant 0 : index
    %608 = vector.load %arg28[%c0_547, %c0_548] : memref<16x1xf32, #tpu.memory_space<vmem>>, vector<16x1xf32>
    %609 = vector.broadcast %608 : vector<16x1xf32> to vector<16x32xf32>
    %610 = arith.addf %607, %609 : vector<16x32xf32>
    %611 = vector.extract_strided_slice %610 {offsets = [0, 0], sizes = [8, 32], strides = [1, 1]} : vector<16x32xf32> to vector<8x32xf32>
    %612 = vector.extract_strided_slice %610 {offsets = [8, 0], sizes = [8, 32], strides = [1, 1]} : vector<16x32xf32> to vector<8x32xf32>
    %c0_549 = arith.constant 0 : index
    %c0_550 = arith.constant 0 : index
    %613 = vector.load %arg29[%c0_549, %c0_550] : memref<8x8xf32, #tpu.memory_space<vmem>>, vector<8x8xf32>
    %cst_551 = arith.constant 0.000000e+00 : f32
    %614 = vector.broadcast %cst_551 : f32 to vector<8x32xf32>
    %615 = arith.cmpf ogt, %611, %614 : vector<8x32xf32>
    %cst_552 = arith.constant 2.000000e-01 : f32
    %616 = vector.broadcast %cst_552 : f32 to vector<8x32xf32>
    %617 = arith.mulf %616, %611 : vector<8x32xf32>
    %618 = arith.select %615, %611, %617 : vector<8x32xi1>, vector<8x32xf32>
    %cst_553 = arith.constant dense<0.000000e+00> : vector<8x32xf32>
    %619 = tpu.matmul %613, %618, %cst_553 {dimension_numbers = #tpu.dot_dimension_numbers<[1], [0], [0], [1], [0, 0, 1, 1], [], []>} : vector<8x8xf32>, vector<8x32xf32>, vector<8x32xf32> -> vector<8x32xf32>
    %c0_554 = arith.constant 0 : index
    %c0_555 = arith.constant 0 : index
    %620 = vector.load %arg30[%c0_554, %c0_555] : memref<8x1xf32, #tpu.memory_space<vmem>>, vector<8x1xf32>
    %621 = vector.broadcast %620 : vector<8x1xf32> to vector<8x32xf32>
    %622 = arith.addf %619, %621 : vector<8x32xf32>
    %623 = arith.addf %622, %612 : vector<8x32xf32>
    %cst_556 = arith.constant 0.000000e+00 : f32
    %624 = vector.broadcast %cst_556 : f32 to vector<8x32xf32>
    %625 = arith.cmpf ogt, %623, %624 : vector<8x32xf32>
    %cst_557 = arith.constant 2.000000e-01 : f32
    %626 = vector.broadcast %cst_557 : f32 to vector<8x32xf32>
    %627 = arith.mulf %626, %623 : vector<8x32xf32>
    %628 = arith.select %625, %623, %627 : vector<8x32xi1>, vector<8x32xf32>
    %c0_558 = arith.constant 0 : index
    %c0_559 = arith.constant 0 : index
    %c0_560 = arith.constant 0 : index
    %629 = vector.load %arg36[%c0_558, %c0_559, %c0_560] : memref<3x32x32xf32, #tpu.memory_space<vmem>>, vector<1x32x32xf32>
    %630 = vector.shape_cast %629 : vector<1x32x32xf32> to vector<32x32xf32>
    %cst_561 = arith.constant dense<0.000000e+00> : vector<8x32xf32>
    %631 = tpu.matmul %628, %630, %cst_561 {dimension_numbers = #tpu.dot_dimension_numbers<[1], [0], [0], [1], [0, 0, 1, 1], [], []>} : vector<8x32xf32>, vector<32x32xf32>, vector<8x32xf32> -> vector<8x32xf32>
    %c1_562 = arith.constant 1 : index
    %c0_563 = arith.constant 0 : index
    %c0_564 = arith.constant 0 : index
    %632 = vector.load %arg36[%c1_562, %c0_563, %c0_564] : memref<3x32x32xf32, #tpu.memory_space<vmem>>, vector<1x32x32xf32>
    %633 = vector.shape_cast %632 : vector<1x32x32xf32> to vector<32x32xf32>
    %cst_565 = arith.constant dense<0.000000e+00> : vector<8x32xf32>
    %634 = tpu.matmul %628, %633, %cst_565 {dimension_numbers = #tpu.dot_dimension_numbers<[1], [0], [0], [1], [0, 0, 1, 1], [], []>} : vector<8x32xf32>, vector<32x32xf32>, vector<8x32xf32> -> vector<8x32xf32>
    %c2_566 = arith.constant 2 : index
    %c0_567 = arith.constant 0 : index
    %c0_568 = arith.constant 0 : index
    %635 = vector.load %arg36[%c2_566, %c0_567, %c0_568] : memref<3x32x32xf32, #tpu.memory_space<vmem>>, vector<1x32x32xf32>
    %636 = vector.shape_cast %635 : vector<1x32x32xf32> to vector<32x32xf32>
    %cst_569 = arith.constant dense<0.000000e+00> : vector<8x32xf32>
    %637 = tpu.matmul %628, %636, %cst_569 {dimension_numbers = #tpu.dot_dimension_numbers<[1], [0], [0], [1], [0, 0, 1, 1], [], []>} : vector<8x32xf32>, vector<32x32xf32>, vector<8x32xf32> -> vector<8x32xf32>
    %638 = tpu.concatenate %631, %634, %637 in 0 : vector<8x32xf32>, vector<8x32xf32>, vector<8x32xf32> -> vector<24x32xf32>
    %639 = tpu.concatenate %638, %623 in 0 : vector<24x32xf32>, vector<8x32xf32> -> vector<32x32xf32>
    %c0_570 = arith.constant 0 : index
    %c0_571 = arith.constant 0 : index
    %640 = vector.load %arg32[%c0_570, %c0_571] : memref<16x32xf32, #tpu.memory_space<vmem>>, vector<16x32xf32>
    %cst_572 = arith.constant dense<0.000000e+00> : vector<16x32xf32>
    %641 = tpu.matmul %640, %639, %cst_572 {dimension_numbers = #tpu.dot_dimension_numbers<[1], [0], [0], [1], [0, 0, 1, 1], [], []>} : vector<16x32xf32>, vector<32x32xf32>, vector<16x32xf32> -> vector<16x32xf32>
    %c0_573 = arith.constant 0 : index
    %c0_574 = arith.constant 0 : index
    %642 = vector.load %arg33[%c0_573, %c0_574] : memref<16x1xf32, #tpu.memory_space<vmem>>, vector<16x1xf32>
    %643 = vector.broadcast %642 : vector<16x1xf32> to vector<16x32xf32>
    %644 = arith.addf %641, %643 : vector<16x32xf32>
    %645 = vector.extract_strided_slice %644 {offsets = [0, 0], sizes = [8, 32], strides = [1, 1]} : vector<16x32xf32> to vector<8x32xf32>
    %646 = vector.extract_strided_slice %644 {offsets = [8, 0], sizes = [8, 32], strides = [1, 1]} : vector<16x32xf32> to vector<8x32xf32>
    %c0_575 = arith.constant 0 : index
    %c0_576 = arith.constant 0 : index
    %647 = vector.load %arg34[%c0_575, %c0_576] : memref<8x8xf32, #tpu.memory_space<vmem>>, vector<8x8xf32>
    %cst_577 = arith.constant 0.000000e+00 : f32
    %648 = vector.broadcast %cst_577 : f32 to vector<8x32xf32>
    %649 = arith.cmpf ogt, %645, %648 : vector<8x32xf32>
    %cst_578 = arith.constant 2.000000e-01 : f32
    %650 = vector.broadcast %cst_578 : f32 to vector<8x32xf32>
    %651 = arith.mulf %650, %645 : vector<8x32xf32>
    %652 = arith.select %649, %645, %651 : vector<8x32xi1>, vector<8x32xf32>
    %cst_579 = arith.constant dense<0.000000e+00> : vector<8x32xf32>
    %653 = tpu.matmul %647, %652, %cst_579 {dimension_numbers = #tpu.dot_dimension_numbers<[1], [0], [0], [1], [0, 0, 1, 1], [], []>} : vector<8x8xf32>, vector<8x32xf32>, vector<8x32xf32> -> vector<8x32xf32>
    %c0_580 = arith.constant 0 : index
    %c0_581 = arith.constant 0 : index
    %654 = vector.load %arg35[%c0_580, %c0_581] : memref<8x1xf32, #tpu.memory_space<vmem>>, vector<8x1xf32>
    %655 = vector.broadcast %654 : vector<8x1xf32> to vector<8x32xf32>
    %656 = arith.addf %653, %655 : vector<8x32xf32>
    %657 = arith.addf %656, %646 : vector<8x32xf32>
    %cst_582 = arith.constant 0.000000e+00 : f32
    %658 = vector.broadcast %cst_582 : f32 to vector<8x32xf32>
    %659 = arith.cmpf ogt, %657, %658 : vector<8x32xf32>
    %cst_583 = arith.constant 2.000000e-01 : f32
    %660 = vector.broadcast %cst_583 : f32 to vector<8x32xf32>
    %661 = arith.mulf %660, %657 : vector<8x32xf32>
    %662 = arith.select %659, %657, %661 : vector<8x32xi1>, vector<8x32xf32>
    %c0_584 = arith.constant 0 : index
    %c0_585 = arith.constant 0 : index
    %c0_586 = arith.constant 0 : index
    %663 = vector.load %arg41[%c0_584, %c0_585, %c0_586] : memref<3x32x32xf32, #tpu.memory_space<vmem>>, vector<1x32x32xf32>
    %664 = vector.shape_cast %663 : vector<1x32x32xf32> to vector<32x32xf32>
    %cst_587 = arith.constant dense<0.000000e+00> : vector<8x32xf32>
    %665 = tpu.matmul %662, %664, %cst_587 {dimension_numbers = #tpu.dot_dimension_numbers<[1], [0], [0], [1], [0, 0, 1, 1], [], []>} : vector<8x32xf32>, vector<32x32xf32>, vector<8x32xf32> -> vector<8x32xf32>
    %c1_588 = arith.constant 1 : index
    %c0_589 = arith.constant 0 : index
    %c0_590 = arith.constant 0 : index
    %666 = vector.load %arg41[%c1_588, %c0_589, %c0_590] : memref<3x32x32xf32, #tpu.memory_space<vmem>>, vector<1x32x32xf32>
    %667 = vector.shape_cast %666 : vector<1x32x32xf32> to vector<32x32xf32>
    %cst_591 = arith.constant dense<0.000000e+00> : vector<8x32xf32>
    %668 = tpu.matmul %662, %667, %cst_591 {dimension_numbers = #tpu.dot_dimension_numbers<[1], [0], [0], [1], [0, 0, 1, 1], [], []>} : vector<8x32xf32>, vector<32x32xf32>, vector<8x32xf32> -> vector<8x32xf32>
    %c2_592 = arith.constant 2 : index
    %c0_593 = arith.constant 0 : index
    %c0_594 = arith.constant 0 : index
    %669 = vector.load %arg41[%c2_592, %c0_593, %c0_594] : memref<3x32x32xf32, #tpu.memory_space<vmem>>, vector<1x32x32xf32>
    %670 = vector.shape_cast %669 : vector<1x32x32xf32> to vector<32x32xf32>
    %cst_595 = arith.constant dense<0.000000e+00> : vector<8x32xf32>
    %671 = tpu.matmul %662, %670, %cst_595 {dimension_numbers = #tpu.dot_dimension_numbers<[1], [0], [0], [1], [0, 0, 1, 1], [], []>} : vector<8x32xf32>, vector<32x32xf32>, vector<8x32xf32> -> vector<8x32xf32>
    %672 = tpu.concatenate %665, %668, %671 in 0 : vector<8x32xf32>, vector<8x32xf32>, vector<8x32xf32> -> vector<24x32xf32>
    %673 = tpu.concatenate %672, %657 in 0 : vector<24x32xf32>, vector<8x32xf32> -> vector<32x32xf32>
    %c0_596 = arith.constant 0 : index
    %c0_597 = arith.constant 0 : index
    %674 = vector.load %arg37[%c0_596, %c0_597] : memref<16x32xf32, #tpu.memory_space<vmem>>, vector<16x32xf32>
    %cst_598 = arith.constant dense<0.000000e+00> : vector<16x32xf32>
    %675 = tpu.matmul %674, %673, %cst_598 {dimension_numbers = #tpu.dot_dimension_numbers<[1], [0], [0], [1], [0, 0, 1, 1], [], []>} : vector<16x32xf32>, vector<32x32xf32>, vector<16x32xf32> -> vector<16x32xf32>
    %c0_599 = arith.constant 0 : index
    %c0_600 = arith.constant 0 : index
    %676 = vector.load %arg38[%c0_599, %c0_600] : memref<16x1xf32, #tpu.memory_space<vmem>>, vector<16x1xf32>
    %677 = vector.broadcast %676 : vector<16x1xf32> to vector<16x32xf32>
    %678 = arith.addf %675, %677 : vector<16x32xf32>
    %679 = vector.extract_strided_slice %678 {offsets = [0, 0], sizes = [8, 32], strides = [1, 1]} : vector<16x32xf32> to vector<8x32xf32>
    %680 = vector.extract_strided_slice %678 {offsets = [8, 0], sizes = [8, 32], strides = [1, 1]} : vector<16x32xf32> to vector<8x32xf32>
    %c0_601 = arith.constant 0 : index
    %c0_602 = arith.constant 0 : index
    %681 = vector.load %arg39[%c0_601, %c0_602] : memref<8x8xf32, #tpu.memory_space<vmem>>, vector<8x8xf32>
    %cst_603 = arith.constant 0.000000e+00 : f32
    %682 = vector.broadcast %cst_603 : f32 to vector<8x32xf32>
    %683 = arith.cmpf ogt, %679, %682 : vector<8x32xf32>
    %cst_604 = arith.constant 2.000000e-01 : f32
    %684 = vector.broadcast %cst_604 : f32 to vector<8x32xf32>
    %685 = arith.mulf %684, %679 : vector<8x32xf32>
    %686 = arith.select %683, %679, %685 : vector<8x32xi1>, vector<8x32xf32>
    %cst_605 = arith.constant dense<0.000000e+00> : vector<8x32xf32>
    %687 = tpu.matmul %681, %686, %cst_605 {dimension_numbers = #tpu.dot_dimension_numbers<[1], [0], [0], [1], [0, 0, 1, 1], [], []>} : vector<8x8xf32>, vector<8x32xf32>, vector<8x32xf32> -> vector<8x32xf32>
    %c0_606 = arith.constant 0 : index
    %c0_607 = arith.constant 0 : index
    %688 = vector.load %arg40[%c0_606, %c0_607] : memref<8x1xf32, #tpu.memory_space<vmem>>, vector<8x1xf32>
    %689 = vector.broadcast %688 : vector<8x1xf32> to vector<8x32xf32>
    %690 = arith.addf %687, %689 : vector<8x32xf32>
    %691 = arith.addf %690, %680 : vector<8x32xf32>
    %cst_608 = arith.constant 0.000000e+00 : f32
    %692 = vector.broadcast %cst_608 : f32 to vector<8x32xf32>
    %693 = arith.cmpf ogt, %691, %692 : vector<8x32xf32>
    %cst_609 = arith.constant 2.000000e-01 : f32
    %694 = vector.broadcast %cst_609 : f32 to vector<8x32xf32>
    %695 = arith.mulf %694, %691 : vector<8x32xf32>
    %696 = arith.select %693, %691, %695 : vector<8x32xi1>, vector<8x32xf32>
    %c0_610 = arith.constant 0 : index
    %c0_611 = arith.constant 0 : index
    %c0_612 = arith.constant 0 : index
    %697 = vector.load %arg44[%c0_610, %c0_611, %c0_612] : memref<7x32x32xf32, #tpu.memory_space<vmem>>, vector<1x32x32xf32>
    %698 = vector.shape_cast %697 : vector<1x32x32xf32> to vector<32x32xf32>
    %cst_613 = arith.constant dense<0.000000e+00> : vector<8x32xf32>
    %699 = tpu.matmul %696, %698, %cst_613 {dimension_numbers = #tpu.dot_dimension_numbers<[1], [0], [0], [1], [0, 0, 1, 1], [], []>} : vector<8x32xf32>, vector<32x32xf32>, vector<8x32xf32> -> vector<8x32xf32>
    %c1_614 = arith.constant 1 : index
    %c0_615 = arith.constant 0 : index
    %c0_616 = arith.constant 0 : index
    %700 = vector.load %arg44[%c1_614, %c0_615, %c0_616] : memref<7x32x32xf32, #tpu.memory_space<vmem>>, vector<1x32x32xf32>
    %701 = vector.shape_cast %700 : vector<1x32x32xf32> to vector<32x32xf32>
    %cst_617 = arith.constant dense<0.000000e+00> : vector<8x32xf32>
    %702 = tpu.matmul %696, %701, %cst_617 {dimension_numbers = #tpu.dot_dimension_numbers<[1], [0], [0], [1], [0, 0, 1, 1], [], []>} : vector<8x32xf32>, vector<32x32xf32>, vector<8x32xf32> -> vector<8x32xf32>
    %c2_618 = arith.constant 2 : index
    %c0_619 = arith.constant 0 : index
    %c0_620 = arith.constant 0 : index
    %703 = vector.load %arg44[%c2_618, %c0_619, %c0_620] : memref<7x32x32xf32, #tpu.memory_space<vmem>>, vector<1x32x32xf32>
    %704 = vector.shape_cast %703 : vector<1x32x32xf32> to vector<32x32xf32>
    %cst_621 = arith.constant dense<0.000000e+00> : vector<8x32xf32>
    %705 = tpu.matmul %696, %704, %cst_621 {dimension_numbers = #tpu.dot_dimension_numbers<[1], [0], [0], [1], [0, 0, 1, 1], [], []>} : vector<8x32xf32>, vector<32x32xf32>, vector<8x32xf32> -> vector<8x32xf32>
    %c3_622 = arith.constant 3 : index
    %c0_623 = arith.constant 0 : index
    %c0_624 = arith.constant 0 : index
    %706 = vector.load %arg44[%c3_622, %c0_623, %c0_624] : memref<7x32x32xf32, #tpu.memory_space<vmem>>, vector<1x32x32xf32>
    %707 = vector.shape_cast %706 : vector<1x32x32xf32> to vector<32x32xf32>
    %cst_625 = arith.constant dense<0.000000e+00> : vector<8x32xf32>
    %708 = tpu.matmul %696, %707, %cst_625 {dimension_numbers = #tpu.dot_dimension_numbers<[1], [0], [0], [1], [0, 0, 1, 1], [], []>} : vector<8x32xf32>, vector<32x32xf32>, vector<8x32xf32> -> vector<8x32xf32>
    %c4_626 = arith.constant 4 : index
    %c0_627 = arith.constant 0 : index
    %c0_628 = arith.constant 0 : index
    %709 = vector.load %arg44[%c4_626, %c0_627, %c0_628] : memref<7x32x32xf32, #tpu.memory_space<vmem>>, vector<1x32x32xf32>
    %710 = vector.shape_cast %709 : vector<1x32x32xf32> to vector<32x32xf32>
    %cst_629 = arith.constant dense<0.000000e+00> : vector<8x32xf32>
    %711 = tpu.matmul %696, %710, %cst_629 {dimension_numbers = #tpu.dot_dimension_numbers<[1], [0], [0], [1], [0, 0, 1, 1], [], []>} : vector<8x32xf32>, vector<32x32xf32>, vector<8x32xf32> -> vector<8x32xf32>
    %c5_630 = arith.constant 5 : index
    %c0_631 = arith.constant 0 : index
    %c0_632 = arith.constant 0 : index
    %712 = vector.load %arg44[%c5_630, %c0_631, %c0_632] : memref<7x32x32xf32, #tpu.memory_space<vmem>>, vector<1x32x32xf32>
    %713 = vector.shape_cast %712 : vector<1x32x32xf32> to vector<32x32xf32>
    %cst_633 = arith.constant dense<0.000000e+00> : vector<8x32xf32>
    %714 = tpu.matmul %696, %713, %cst_633 {dimension_numbers = #tpu.dot_dimension_numbers<[1], [0], [0], [1], [0, 0, 1, 1], [], []>} : vector<8x32xf32>, vector<32x32xf32>, vector<8x32xf32> -> vector<8x32xf32>
    %c6_634 = arith.constant 6 : index
    %c0_635 = arith.constant 0 : index
    %c0_636 = arith.constant 0 : index
    %715 = vector.load %arg44[%c6_634, %c0_635, %c0_636] : memref<7x32x32xf32, #tpu.memory_space<vmem>>, vector<1x32x32xf32>
    %716 = vector.shape_cast %715 : vector<1x32x32xf32> to vector<32x32xf32>
    %cst_637 = arith.constant dense<0.000000e+00> : vector<8x32xf32>
    %717 = tpu.matmul %696, %716, %cst_637 {dimension_numbers = #tpu.dot_dimension_numbers<[1], [0], [0], [1], [0, 0, 1, 1], [], []>} : vector<8x32xf32>, vector<32x32xf32>, vector<8x32xf32> -> vector<8x32xf32>
    %718 = tpu.concatenate %699, %702, %705, %708, %711, %714, %717 in 0 : vector<8x32xf32>, vector<8x32xf32>, vector<8x32xf32>, vector<8x32xf32>, vector<8x32xf32>, vector<8x32xf32>, vector<8x32xf32> -> vector<56x32xf32>
    %c0_638 = arith.constant 0 : index
    %c0_639 = arith.constant 0 : index
    %719 = vector.load %arg42[%c0_638, %c0_639] : memref<4x56xf32, #tpu.memory_space<vmem>>, vector<4x56xf32>
    %cst_640 = arith.constant dense<0.000000e+00> : vector<4x32xf32>
    %720 = tpu.matmul %719, %718, %cst_640 {dimension_numbers = #tpu.dot_dimension_numbers<[1], [0], [0], [1], [0, 0, 1, 1], [], []>} : vector<4x56xf32>, vector<56x32xf32>, vector<4x32xf32> -> vector<4x32xf32>
    %c0_641 = arith.constant 0 : index
    %c0_642 = arith.constant 0 : index
    %721 = vector.load %arg43[%c0_641, %c0_642] : memref<4x1xf32, #tpu.memory_space<vmem>>, vector<4x1xf32>
    %722 = vector.broadcast %721 : vector<4x1xf32> to vector<4x32xf32>
    %723 = arith.addf %720, %722 : vector<4x32xf32>
    %724 = math.tanh %723 : vector<4x32xf32>
    %c0_643 = arith.constant 0 : index
    %c0_644 = arith.constant 0 : index
    %c0_645 = arith.constant 0 : index
    %725 = vector.load %arg46[%c0_643, %c0_644, %c0_645] : memref<16x32x32xf32, #tpu.memory_space<vmem>>, vector<1x32x32xf32>
    %726 = vector.shape_cast %725 : vector<1x32x32xf32> to vector<32x32xf32>
    %cst_646 = arith.constant dense<0.000000e+00> : vector<4x32xf32>
    %727 = tpu.matmul %724, %726, %cst_646 {dimension_numbers = #tpu.dot_dimension_numbers<[1], [0], [0], [1], [0, 0, 1, 1], [], []>} : vector<4x32xf32>, vector<32x32xf32>, vector<4x32xf32> -> vector<4x32xf32>
    %c1_647 = arith.constant 1 : index
    %c0_648 = arith.constant 0 : index
    %c0_649 = arith.constant 0 : index
    %728 = vector.load %arg46[%c1_647, %c0_648, %c0_649] : memref<16x32x32xf32, #tpu.memory_space<vmem>>, vector<1x32x32xf32>
    %729 = vector.shape_cast %728 : vector<1x32x32xf32> to vector<32x32xf32>
    %cst_650 = arith.constant dense<0.000000e+00> : vector<4x32xf32>
    %730 = tpu.matmul %724, %729, %cst_650 {dimension_numbers = #tpu.dot_dimension_numbers<[1], [0], [0], [1], [0, 0, 1, 1], [], []>} : vector<4x32xf32>, vector<32x32xf32>, vector<4x32xf32> -> vector<4x32xf32>
    %c2_651 = arith.constant 2 : index
    %c0_652 = arith.constant 0 : index
    %c0_653 = arith.constant 0 : index
    %731 = vector.load %arg46[%c2_651, %c0_652, %c0_653] : memref<16x32x32xf32, #tpu.memory_space<vmem>>, vector<1x32x32xf32>
    %732 = vector.shape_cast %731 : vector<1x32x32xf32> to vector<32x32xf32>
    %cst_654 = arith.constant dense<0.000000e+00> : vector<4x32xf32>
    %733 = tpu.matmul %724, %732, %cst_654 {dimension_numbers = #tpu.dot_dimension_numbers<[1], [0], [0], [1], [0, 0, 1, 1], [], []>} : vector<4x32xf32>, vector<32x32xf32>, vector<4x32xf32> -> vector<4x32xf32>
    %c3_655 = arith.constant 3 : index
    %c0_656 = arith.constant 0 : index
    %c0_657 = arith.constant 0 : index
    %734 = vector.load %arg46[%c3_655, %c0_656, %c0_657] : memref<16x32x32xf32, #tpu.memory_space<vmem>>, vector<1x32x32xf32>
    %735 = vector.shape_cast %734 : vector<1x32x32xf32> to vector<32x32xf32>
    %cst_658 = arith.constant dense<0.000000e+00> : vector<4x32xf32>
    %736 = tpu.matmul %724, %735, %cst_658 {dimension_numbers = #tpu.dot_dimension_numbers<[1], [0], [0], [1], [0, 0, 1, 1], [], []>} : vector<4x32xf32>, vector<32x32xf32>, vector<4x32xf32> -> vector<4x32xf32>
    %c4_659 = arith.constant 4 : index
    %c0_660 = arith.constant 0 : index
    %c0_661 = arith.constant 0 : index
    %737 = vector.load %arg46[%c4_659, %c0_660, %c0_661] : memref<16x32x32xf32, #tpu.memory_space<vmem>>, vector<1x32x32xf32>
    %738 = vector.shape_cast %737 : vector<1x32x32xf32> to vector<32x32xf32>
    %cst_662 = arith.constant dense<0.000000e+00> : vector<4x32xf32>
    %739 = tpu.matmul %724, %738, %cst_662 {dimension_numbers = #tpu.dot_dimension_numbers<[1], [0], [0], [1], [0, 0, 1, 1], [], []>} : vector<4x32xf32>, vector<32x32xf32>, vector<4x32xf32> -> vector<4x32xf32>
    %c5_663 = arith.constant 5 : index
    %c0_664 = arith.constant 0 : index
    %c0_665 = arith.constant 0 : index
    %740 = vector.load %arg46[%c5_663, %c0_664, %c0_665] : memref<16x32x32xf32, #tpu.memory_space<vmem>>, vector<1x32x32xf32>
    %741 = vector.shape_cast %740 : vector<1x32x32xf32> to vector<32x32xf32>
    %cst_666 = arith.constant dense<0.000000e+00> : vector<4x32xf32>
    %742 = tpu.matmul %724, %741, %cst_666 {dimension_numbers = #tpu.dot_dimension_numbers<[1], [0], [0], [1], [0, 0, 1, 1], [], []>} : vector<4x32xf32>, vector<32x32xf32>, vector<4x32xf32> -> vector<4x32xf32>
    %c6_667 = arith.constant 6 : index
    %c0_668 = arith.constant 0 : index
    %c0_669 = arith.constant 0 : index
    %743 = vector.load %arg46[%c6_667, %c0_668, %c0_669] : memref<16x32x32xf32, #tpu.memory_space<vmem>>, vector<1x32x32xf32>
    %744 = vector.shape_cast %743 : vector<1x32x32xf32> to vector<32x32xf32>
    %cst_670 = arith.constant dense<0.000000e+00> : vector<4x32xf32>
    %745 = tpu.matmul %724, %744, %cst_670 {dimension_numbers = #tpu.dot_dimension_numbers<[1], [0], [0], [1], [0, 0, 1, 1], [], []>} : vector<4x32xf32>, vector<32x32xf32>, vector<4x32xf32> -> vector<4x32xf32>
    %c7_671 = arith.constant 7 : index
    %c0_672 = arith.constant 0 : index
    %c0_673 = arith.constant 0 : index
    %746 = vector.load %arg46[%c7_671, %c0_672, %c0_673] : memref<16x32x32xf32, #tpu.memory_space<vmem>>, vector<1x32x32xf32>
    %747 = vector.shape_cast %746 : vector<1x32x32xf32> to vector<32x32xf32>
    %cst_674 = arith.constant dense<0.000000e+00> : vector<4x32xf32>
    %748 = tpu.matmul %724, %747, %cst_674 {dimension_numbers = #tpu.dot_dimension_numbers<[1], [0], [0], [1], [0, 0, 1, 1], [], []>} : vector<4x32xf32>, vector<32x32xf32>, vector<4x32xf32> -> vector<4x32xf32>
    %c8_675 = arith.constant 8 : index
    %c0_676 = arith.constant 0 : index
    %c0_677 = arith.constant 0 : index
    %749 = vector.load %arg46[%c8_675, %c0_676, %c0_677] : memref<16x32x32xf32, #tpu.memory_space<vmem>>, vector<1x32x32xf32>
    %750 = vector.shape_cast %749 : vector<1x32x32xf32> to vector<32x32xf32>
    %cst_678 = arith.constant dense<0.000000e+00> : vector<4x32xf32>
    %751 = tpu.matmul %724, %750, %cst_678 {dimension_numbers = #tpu.dot_dimension_numbers<[1], [0], [0], [1], [0, 0, 1, 1], [], []>} : vector<4x32xf32>, vector<32x32xf32>, vector<4x32xf32> -> vector<4x32xf32>
    %c9_679 = arith.constant 9 : index
    %c0_680 = arith.constant 0 : index
    %c0_681 = arith.constant 0 : index
    %752 = vector.load %arg46[%c9_679, %c0_680, %c0_681] : memref<16x32x32xf32, #tpu.memory_space<vmem>>, vector<1x32x32xf32>
    %753 = vector.shape_cast %752 : vector<1x32x32xf32> to vector<32x32xf32>
    %cst_682 = arith.constant dense<0.000000e+00> : vector<4x32xf32>
    %754 = tpu.matmul %724, %753, %cst_682 {dimension_numbers = #tpu.dot_dimension_numbers<[1], [0], [0], [1], [0, 0, 1, 1], [], []>} : vector<4x32xf32>, vector<32x32xf32>, vector<4x32xf32> -> vector<4x32xf32>
    %c10_683 = arith.constant 10 : index
    %c0_684 = arith.constant 0 : index
    %c0_685 = arith.constant 0 : index
    %755 = vector.load %arg46[%c10_683, %c0_684, %c0_685] : memref<16x32x32xf32, #tpu.memory_space<vmem>>, vector<1x32x32xf32>
    %756 = vector.shape_cast %755 : vector<1x32x32xf32> to vector<32x32xf32>
    %cst_686 = arith.constant dense<0.000000e+00> : vector<4x32xf32>
    %757 = tpu.matmul %724, %756, %cst_686 {dimension_numbers = #tpu.dot_dimension_numbers<[1], [0], [0], [1], [0, 0, 1, 1], [], []>} : vector<4x32xf32>, vector<32x32xf32>, vector<4x32xf32> -> vector<4x32xf32>
    %c11_687 = arith.constant 11 : index
    %c0_688 = arith.constant 0 : index
    %c0_689 = arith.constant 0 : index
    %758 = vector.load %arg46[%c11_687, %c0_688, %c0_689] : memref<16x32x32xf32, #tpu.memory_space<vmem>>, vector<1x32x32xf32>
    %759 = vector.shape_cast %758 : vector<1x32x32xf32> to vector<32x32xf32>
    %cst_690 = arith.constant dense<0.000000e+00> : vector<4x32xf32>
    %760 = tpu.matmul %724, %759, %cst_690 {dimension_numbers = #tpu.dot_dimension_numbers<[1], [0], [0], [1], [0, 0, 1, 1], [], []>} : vector<4x32xf32>, vector<32x32xf32>, vector<4x32xf32> -> vector<4x32xf32>
    %c12_691 = arith.constant 12 : index
    %c0_692 = arith.constant 0 : index
    %c0_693 = arith.constant 0 : index
    %761 = vector.load %arg46[%c12_691, %c0_692, %c0_693] : memref<16x32x32xf32, #tpu.memory_space<vmem>>, vector<1x32x32xf32>
    %762 = vector.shape_cast %761 : vector<1x32x32xf32> to vector<32x32xf32>
    %cst_694 = arith.constant dense<0.000000e+00> : vector<4x32xf32>
    %763 = tpu.matmul %724, %762, %cst_694 {dimension_numbers = #tpu.dot_dimension_numbers<[1], [0], [0], [1], [0, 0, 1, 1], [], []>} : vector<4x32xf32>, vector<32x32xf32>, vector<4x32xf32> -> vector<4x32xf32>
    %c13_695 = arith.constant 13 : index
    %c0_696 = arith.constant 0 : index
    %c0_697 = arith.constant 0 : index
    %764 = vector.load %arg46[%c13_695, %c0_696, %c0_697] : memref<16x32x32xf32, #tpu.memory_space<vmem>>, vector<1x32x32xf32>
    %765 = vector.shape_cast %764 : vector<1x32x32xf32> to vector<32x32xf32>
    %cst_698 = arith.constant dense<0.000000e+00> : vector<4x32xf32>
    %766 = tpu.matmul %724, %765, %cst_698 {dimension_numbers = #tpu.dot_dimension_numbers<[1], [0], [0], [1], [0, 0, 1, 1], [], []>} : vector<4x32xf32>, vector<32x32xf32>, vector<4x32xf32> -> vector<4x32xf32>
    %c14_699 = arith.constant 14 : index
    %c0_700 = arith.constant 0 : index
    %c0_701 = arith.constant 0 : index
    %767 = vector.load %arg46[%c14_699, %c0_700, %c0_701] : memref<16x32x32xf32, #tpu.memory_space<vmem>>, vector<1x32x32xf32>
    %768 = vector.shape_cast %767 : vector<1x32x32xf32> to vector<32x32xf32>
    %cst_702 = arith.constant dense<0.000000e+00> : vector<4x32xf32>
    %769 = tpu.matmul %724, %768, %cst_702 {dimension_numbers = #tpu.dot_dimension_numbers<[1], [0], [0], [1], [0, 0, 1, 1], [], []>} : vector<4x32xf32>, vector<32x32xf32>, vector<4x32xf32> -> vector<4x32xf32>
    %c15_703 = arith.constant 15 : index
    %c0_704 = arith.constant 0 : index
    %c0_705 = arith.constant 0 : index
    %770 = vector.load %arg46[%c15_703, %c0_704, %c0_705] : memref<16x32x32xf32, #tpu.memory_space<vmem>>, vector<1x32x32xf32>
    %771 = vector.shape_cast %770 : vector<1x32x32xf32> to vector<32x32xf32>
    %cst_706 = arith.constant dense<0.000000e+00> : vector<4x32xf32>
    %772 = tpu.matmul %724, %771, %cst_706 {dimension_numbers = #tpu.dot_dimension_numbers<[1], [0], [0], [1], [0, 0, 1, 1], [], []>} : vector<4x32xf32>, vector<32x32xf32>, vector<4x32xf32> -> vector<4x32xf32>
    %773 = tpu.concatenate %727, %730, %733, %736, %739, %742, %745, %748, %751, %754, %757, %760, %763, %766, %769, %772 in 0 : vector<4x32xf32>, vector<4x32xf32>, vector<4x32xf32>, vector<4x32xf32>, vector<4x32xf32>, vector<4x32xf32>, vector<4x32xf32>, vector<4x32xf32>, vector<4x32xf32>, vector<4x32xf32>, vector<4x32xf32>, vector<4x32xf32>, vector<4x32xf32>, vector<4x32xf32>, vector<4x32xf32>, vector<4x32xf32> -> vector<64x32xf32>
    %c0_707 = arith.constant 0 : index
    %c0_708 = arith.constant 0 : index
    %c0_709 = arith.constant 0 : index
    %774 = vector.load %arg45[%c0_707, %c0_708, %c0_709] : memref<4x1x64xf32, #tpu.memory_space<vmem>>, vector<1x1x64xf32>
    %775 = vector.shape_cast %774 : vector<1x1x64xf32> to vector<1x64xf32>
    %cst_710 = arith.constant dense<0.000000e+00> : vector<1x32xf32>
    %776 = tpu.matmul %775, %773, %cst_710 {dimension_numbers = #tpu.dot_dimension_numbers<[1], [0], [0], [1], [0, 0, 1, 1], [], []>} : vector<1x64xf32>, vector<64x32xf32>, vector<1x32xf32> -> vector<1x32xf32>
    %c0_711 = arith.constant 0 : index
    %c0_712 = arith.constant 0 : index
    %c0_713 = arith.constant 0 : index
    %777 = vector.load %arg47[%c0_711, %c0_712, %c0_713] : memref<4x32x128xf32, #tpu.memory_space<vmem>>, vector<1x32x128xf32>
    %778 = vector.shape_cast %777 : vector<1x32x128xf32> to vector<32x128xf32>
    %cst_714 = arith.constant dense<0.000000e+00> : vector<1x128xf32>
    %779 = tpu.matmul %776, %778, %cst_714 {dimension_numbers = #tpu.dot_dimension_numbers<[1], [0], [0], [1], [0, 0, 1, 1], [], []>} : vector<1x32xf32>, vector<32x128xf32>, vector<1x128xf32> -> vector<1x128xf32>
    %c1_715 = arith.constant 1 : index
    %c0_716 = arith.constant 0 : index
    %c0_717 = arith.constant 0 : index
    %780 = vector.load %arg45[%c1_715, %c0_716, %c0_717] : memref<4x1x64xf32, #tpu.memory_space<vmem>>, vector<1x1x64xf32>
    %781 = vector.shape_cast %780 : vector<1x1x64xf32> to vector<1x64xf32>
    %cst_718 = arith.constant dense<0.000000e+00> : vector<1x32xf32>
    %782 = tpu.matmul %781, %773, %cst_718 {dimension_numbers = #tpu.dot_dimension_numbers<[1], [0], [0], [1], [0, 0, 1, 1], [], []>} : vector<1x64xf32>, vector<64x32xf32>, vector<1x32xf32> -> vector<1x32xf32>
    %c1_719 = arith.constant 1 : index
    %c0_720 = arith.constant 0 : index
    %c0_721 = arith.constant 0 : index
    %783 = vector.load %arg47[%c1_719, %c0_720, %c0_721] : memref<4x32x128xf32, #tpu.memory_space<vmem>>, vector<1x32x128xf32>
    %784 = vector.shape_cast %783 : vector<1x32x128xf32> to vector<32x128xf32>
    %cst_722 = arith.constant dense<0.000000e+00> : vector<1x128xf32>
    %785 = tpu.matmul %782, %784, %cst_722 {dimension_numbers = #tpu.dot_dimension_numbers<[1], [0], [0], [1], [0, 0, 1, 1], [], []>} : vector<1x32xf32>, vector<32x128xf32>, vector<1x128xf32> -> vector<1x128xf32>
    %786 = arith.addf %779, %785 : vector<1x128xf32>
    %c2_723 = arith.constant 2 : index
    %c0_724 = arith.constant 0 : index
    %c0_725 = arith.constant 0 : index
    %787 = vector.load %arg45[%c2_723, %c0_724, %c0_725] : memref<4x1x64xf32, #tpu.memory_space<vmem>>, vector<1x1x64xf32>
    %788 = vector.shape_cast %787 : vector<1x1x64xf32> to vector<1x64xf32>
    %cst_726 = arith.constant dense<0.000000e+00> : vector<1x32xf32>
    %789 = tpu.matmul %788, %773, %cst_726 {dimension_numbers = #tpu.dot_dimension_numbers<[1], [0], [0], [1], [0, 0, 1, 1], [], []>} : vector<1x64xf32>, vector<64x32xf32>, vector<1x32xf32> -> vector<1x32xf32>
    %c2_727 = arith.constant 2 : index
    %c0_728 = arith.constant 0 : index
    %c0_729 = arith.constant 0 : index
    %790 = vector.load %arg47[%c2_727, %c0_728, %c0_729] : memref<4x32x128xf32, #tpu.memory_space<vmem>>, vector<1x32x128xf32>
    %791 = vector.shape_cast %790 : vector<1x32x128xf32> to vector<32x128xf32>
    %cst_730 = arith.constant dense<0.000000e+00> : vector<1x128xf32>
    %792 = tpu.matmul %789, %791, %cst_730 {dimension_numbers = #tpu.dot_dimension_numbers<[1], [0], [0], [1], [0, 0, 1, 1], [], []>} : vector<1x32xf32>, vector<32x128xf32>, vector<1x128xf32> -> vector<1x128xf32>
    %793 = arith.addf %786, %792 : vector<1x128xf32>
    %c3_731 = arith.constant 3 : index
    %c0_732 = arith.constant 0 : index
    %c0_733 = arith.constant 0 : index
    %794 = vector.load %arg45[%c3_731, %c0_732, %c0_733] : memref<4x1x64xf32, #tpu.memory_space<vmem>>, vector<1x1x64xf32>
    %795 = vector.shape_cast %794 : vector<1x1x64xf32> to vector<1x64xf32>
    %cst_734 = arith.constant dense<0.000000e+00> : vector<1x32xf32>
    %796 = tpu.matmul %795, %773, %cst_734 {dimension_numbers = #tpu.dot_dimension_numbers<[1], [0], [0], [1], [0, 0, 1, 1], [], []>} : vector<1x64xf32>, vector<64x32xf32>, vector<1x32xf32> -> vector<1x32xf32>
    %c3_735 = arith.constant 3 : index
    %c0_736 = arith.constant 0 : index
    %c0_737 = arith.constant 0 : index
    %797 = vector.load %arg47[%c3_735, %c0_736, %c0_737] : memref<4x32x128xf32, #tpu.memory_space<vmem>>, vector<1x32x128xf32>
    %798 = vector.shape_cast %797 : vector<1x32x128xf32> to vector<32x128xf32>
    %cst_738 = arith.constant dense<0.000000e+00> : vector<1x128xf32>
    %799 = tpu.matmul %796, %798, %cst_738 {dimension_numbers = #tpu.dot_dimension_numbers<[1], [0], [0], [1], [0, 0, 1, 1], [], []>} : vector<1x32xf32>, vector<32x128xf32>, vector<1x128xf32> -> vector<1x128xf32>
    %800 = arith.addf %793, %799 : vector<1x128xf32>
    %c1_739 = arith.constant 1 : index
    %c0_740 = arith.constant 0 : index
    %801 = vector.load %arg48[%c1_739, %c0_740] : memref<2x128xf32, #tpu.memory_space<vmem>>, vector<1x128xf32>
    tpu.vector_store %arg48[%c1_739, %c0_740], %800 {strides = array<i32>} : memref<2x128xf32, #tpu.memory_space<vmem>>, vector<1x128xf32>,
    return
  }
}

</mosaic_0001>

<bundles_post_ra>
// kernel: _melgan_forward.1
= control target key start
LH: loop header
LB: loop body
LE: loop exit
PB: predicated region body
PF: predicated region fallthrough
CT: control target
= control target key end

     0   :  { %s17880_s6 = smov 1   ;;  %s17881_s10 = smov 2   ;;  %s19522_s0 = inlined_call_operand.smem [shape: u32[49], index: -1, kind: input, shape index: {}] }
   0x1   :  { %s17970_s5 = sld [smem:[%s19522_s0]]   ;;  %s17882_s14 = smov 3  }
   0x2   :  { %s17975_s9 = sld [smem:[%s19522_s0 + %s17880_s6]]   ;;  %s17883_s18 = smov 4  }
   0x3   :  { %s17980_s13 = sld [smem:[%s19522_s0 + %s17881_s10]]   ;;  %s17884_s22 = smov 5  }
   0x4   :  { %s17985_s17 = sld [smem:[%s19522_s0 + %s17882_s14]]   ;;  %s17885_s26 = smov 6  }
   0x5   :  { %s17990_s21 = sld [smem:[%s19522_s0 + %s17883_s18]]   ;;  %s17886_s30 = smov 7  }
   0x6   :  { %s17995_s25 = sld [smem:[%s19522_s0 + %s17884_s22]]   ;;  %s17887_s4 = smov 8  }
   0x7   :  { %19541 = sst [smem:[#allocation59_spill]] %s17970_s5  ;;  %s17888_s10 = smov 9  }
   0x8   :  { %19542 = sst [smem:[#allocation60_spill]] %s17975_s9  ;;  %s17889_s15 = smov 10  }
   0x9   :  { %19543 = sst [smem:[#allocation61_spill]] %s17980_s13  ;;  %s17890_s20 = smov 11  }
   0xa   :  { %19544 = sst [smem:[#allocation62_spill]] %s17985_s17  ;;  %s17892_s1 = smov 13  }
   0xb   :  { %s18000_s29 = sld [smem:[%s19522_s0 + %s17885_s26]]   ;;  %s17891_s26 = smov 12  }
   0xc   :  { %19545 = sst [smem:[#allocation63_spill]] %s17995_s25  ;;  %s17893_s7 = smov 14  }
   0xd   :  { %s18005_s3 = sld [smem:[%s19522_s0 + %s17886_s30]]   ;;  %s17895_s22 = smov 16  }
   0xe   :  { %s18010_s8 = sld [smem:[%s19522_s0 + %s17887_s4]]   ;;  %s17896_s28 = smov 17  }
   0xf   :  { %s18015_s14 = sld [smem:[%s19522_s0 + %s17888_s10]]  }
  0x10   :  { %s18020_s19 = sld [smem:[%s19522_s0 + %s17889_s15]]   ;;  %s17894_s15 = smov 15  }
  0x11   :  { %s18025_s24 = sld [smem:[%s19522_s0 + %s17890_s20]]  }
  0x12   :  { %s18030_s30 = sld [smem:[%s19522_s0 + %s17891_s26]]  }
  0x13   :  { %s18035_s6 = sld [smem:[%s19522_s0 + %s17892_s1]]  }
  0x14   :  { %s18040_s12 = sld [smem:[%s19522_s0 + %s17893_s7]]   ;;  %s17897_s7 = smov 18  }
  0x15   :  { %19546 = sst [smem:[#allocation64_spill]] %s18015_s14 }
  0x16   :  { %19547 = sst [smem:[#allocation65_spill]] %s18020_s19 }
  0x17   :  { %19548 = sst [smem:[#allocation66_spill]] %s18025_s24 }
  0x18   :  { %s18045_s20 = sld [smem:[%s19522_s0 + %s17894_s15]]   ;;  %s17898_s15 = smov 19  }
  0x19   :  { %19549 = sst [smem:[#allocation67_spill]] %s18035_s6 }
  0x1a   :  { %19550 = sst [smem:[#allocation68_spill]] %s18040_s12 }
  0x1b   :  { %s18050_s27 = sld [smem:[%s19522_s0 + %s17895_s22]]   ;;  %s17899_s22 = smov 20  }
  0x1c   :  { %s18055_s4 = sld [smem:[%s19522_s0 + %s17896_s28]]   ;;  %s17900_s28 = smov 21  }
  0x1d   :  { %s18060_s9 = sld [smem:[%s19522_s0 + %s17897_s7]]   ;;  %s17901_s7 = smov 22  }
  0x1e   :  { %s18065_s12 = sld [smem:[%s19522_s0 + %s17898_s15]]   ;;  %s17902_s15 = smov 23  }
  0x1f   :  { %s18075_s24 = sld [smem:[%s19522_s0 + %s17900_s28]]   ;;  %s17904_s28 = smov 25  }
  0x20   :  { %s18080_s14 = sld [smem:[%s19522_s0 + %s17901_s7]]   ;;  %s17905_s7 = smov 26  }
  0x21   :  { %19551 = sst [smem:[#allocation69_spill]] %s18050_s27 }
  0x22   :  { %19552 = sst [smem:[#allocation70_spill]] %s18055_s4 }
  0x23   :  { %s18070_s27 = sld [smem:[%s19522_s0 + %s17899_s22]]   ;;  %s17903_s22 = smov 24  }
  0x24   :  { %19553 = sst [smem:[#allocation71_spill]] %s18065_s12 }
  0x25   :  { %19555 = sst [smem:[#allocation73_spill]] %s18075_s24 }
  0x26   :  { %s18085_s12 = sld [smem:[%s19522_s0 + %s17902_s15]]   ;;  %s17906_s15 = smov 27  }
  0x27   :  { %s18090_s25 = sld [smem:[%s19522_s0 + %s17903_s22]]   ;;  %s17907_s22 = smov 28  }
  0x28   :  { %s18095_s24 = sld [smem:[%s19522_s0 + %s17904_s28]]   ;;  %s17908_s28 = smov 29  }
  0x29   :  { %19554 = sst [smem:[#allocation72_spill]] %s18070_s27 }
  0x2a   :  { %s18100_s13 = sld [smem:[%s19522_s0 + %s17905_s7]]   ;;  %s17909_s7 = smov 30  }
  0x2b   :  { %s18105_s5 = sld [smem:[%s19522_s0 + %s17906_s15]]   ;;  %s17910_s15 = smov 31  }
  0x2c   :  { %19556 = sst [smem:[#allocation74_spill]] %s18085_s12 }
  0x2d   :  { %19557 = sst [smem:[#allocation75_spill]] %s18090_s25 }
  0x2e   :  { %s18110_s25 = sld [smem:[%s19522_s0 + %s17907_s22]]   ;;  %s17911_s22 = smov 32  }
  0x2f   :  { %s18115_s17 = sld [smem:[%s19522_s0 + %s17908_s28]]   ;;  %s17912_s28 = smov 33  }
  0x30   :  { %19558 = sst [smem:[#allocation76_spill]] %s18100_s13 }
  0x31   :  { %s18120_s13 = sld [smem:[%s19522_s0 + %s17909_s7]]   ;;  %s17913_s7 = smov 34  }
  0x32   :  { %s18125_s12 = sld [smem:[%s19522_s0 + %s17910_s15]]   ;;  %s17914_s15 = smov 35  }
  0x33   :  { %s18145_s27 = sld [smem:[%s19522_s0 + %s17914_s15]]   ;;  %s17918_s15 = smov 39  }
  0x34   :  { %19559 = sst [smem:[#allocation77_spill]] %s18110_s25 }
  0x35   :  { %19560 = sst [smem:[#allocation78_spill]] %s18115_s17 }
  0x36   :  { %s18130_s25 = sld [smem:[%s19522_s0 + %s17911_s22]]   ;;  %s17915_s22 = smov 36  }
  0x37   :  { %19561 = sst [smem:[#allocation79_spill]] %s18120_s13 }
  0x38   :  { %s18135_s17 = sld [smem:[%s19522_s0 + %s17912_s28]]   ;;  %s17916_s28 = smov 37  }
  0x39   :  { %s18140_s13 = sld [smem:[%s19522_s0 + %s17913_s7]]   ;;  %s17917_s7 = smov 38  }
  0x3a   :  { %19564 = sst [smem:[#allocation82_spill]] %s18145_s27 }
  0x3b   :  { %s18160_s4 = sld [smem:[%s19522_s0 + %s17917_s7]]   ;;  %s17921_s7 = smov 42  }
  0x3c   :  { %19562 = sst [smem:[#allocation80_spill]] %s18130_s25 }
  0x3d   :  { %s18150_s25 = sld [smem:[%s19522_s0 + %s17915_s22]]   ;;  %s17919_s22 = smov 40  }
  0x3e   :  { %19563 = sst [smem:[#allocation81_spill]] %s18135_s17 }
  0x3f   :  { %s18155_s17 = sld [smem:[%s19522_s0 + %s17916_s28]]   ;;  %s17920_s28 = smov 41  }
  0x40   :  { %s18165_s27 = sld [smem:[%s19522_s0 + %s17918_s15]]   ;;  %s17922_s15 = smov 43  }
  0x41   :  { %19566 = sst [smem:[#allocation84_spill]] %s18160_s4 }
  0x42   :  { %s18175_s6 = sld [smem:[%s19522_s0 + %s17920_s28]]   ;;  %s17924_s28 = smov 45  }
  0x43   :  { %19565 = sst [smem:[#allocation83_spill]] %s18150_s25 }
  0x44   :  { %s18170_s25 = sld [smem:[%s19522_s0 + %s17919_s22]]   ;;  %s17923_s22 = smov 44  }
  0x45   :  { %s18180_s4 = sld [smem:[%s19522_s0 + %s17921_s7]]   ;;  %s17925_s7 = smov 46  }
  0x46   :  { %19567 = sst [smem:[#allocation85_spill]] %s18165_s27 }
  0x47   :  { %s18185_s27 = sld [smem:[%s19522_s0 + %s17922_s15]]   ;;  %s17926_s15 = smov 47  }
  0x48   :  { %s18195_s19 = sld [smem:[%s19522_s0 + %s17924_s28]]  }
  0x4a   :  { %19568 = sst [smem:[#allocation86_spill]] %s18170_s25 }
  0x4b   :  { %19569 = sst [smem:[#allocation87_spill]] %s18180_s4 }
  0x4c   :  { %s18190_s25 = sld [smem:[%s19522_s0 + %s17923_s22]]   ;;  %s17927_s22 = smov 48  }
  0x4d   :  { %19570 = sst [smem:[#allocation88_spill]] %s18185_s27 }
  0x4e   :  { %s18200_s4 = sld [smem:[%s19522_s0 + %s17925_s7]]  }
  0x4f   :  { %s18205_s27 = sld [smem:[%s19522_s0 + %s17926_s15]]  }
  0x52   :  { %19571 = sst [smem:[#allocation89_spill]] %s18190_s25 }
  0x53   :  { %s18210_s25 = sld [smem:[%s19522_s0 + %s17927_s22]]  }
  0x54   :  { %102 = vsyncpa [#allocation3], 0 }
  0x55   :  { %103 = vsyncpa [#allocation6], 0 }
  0x56   :  { %104 = vsyncpa [#allocation9], 0 }
  0x57   :  { %105 = vsyncpa [#allocation12], 0 }
  0x58   :  { %106 = vsyncpa [#allocation15], 0 }
  0x59   :  { %107 = vsyncpa [#allocation18], 0 }
  0x5a   :  { %108 = vsyncpa [#allocation21], 0 }
  0x5b   :  { %109 = vsyncpa [#allocation24], 0 }
  0x5c   :  { %110 = vsyncpa [#allocation27], 0 }
  0x5d   :  { %111 = vsyncpa [#allocation30], 0 }
  0x5e   :  { %112 = vsyncpa [#allocation33], 0 }
  0x5f   :  { %113 = vsyncpa [#allocation36], 0 }
  0x60   :  { %114 = vsyncpa [#allocation39], 0 }
  0x61   :  { %115 = vsyncpa [#allocation42], 0 }
  0x62   :  { %116 = vsyncpa [#allocation4], 0  ;;  %s17928_s28 = smov [#allocation5]   ;;  %s17929_s2 = smov [#allocation8]  }
  0x63   :  { %s144_s1 = sshll.u32 %s17928_s28, 4  ;;  %s168_s0 = sshll.u32 %s17929_s2, 4  ;;  %s145_s1 = int_to_ptr.vmem [resolvable:$true] %s144_s1  ;;  %s169_s0 = int_to_ptr.vmem [resolvable:$true] %s168_s0 }
  0x64   :  { %s17318_s7 = scalar_lea.vmem %s145_s1, 384  ;;  %p17323_p1 = scmp.lt.s32.totalorder %s145_s1, %s145_s1 }
  0x65   :  { %p17319_p0 = scmp.ne.s32.totalorder %s145_s1, %s17318_s7  ;;  %p17324_p2 = scmp.lt.s32.totalorder %s17318_s7, %s17318_s7 }
  0x67   :  { %p17325_p3 = por %p17324_p2, %p17323_p1 }
  0x69   :  { %p17326_p4 = pnand %p17325_p3, %p17319_p0 }
  0x6b   :  { %17329 = shalt.err (!%p17326_p4)
}
  0x6c   :  { %s17930_s10 = smov 128   ;;  %s17931_s11 = smov 8  }
  0x6d   :  { %150 = dma.hbm_to_vmem [thread:$0]  %s18000_s29, 384, %s145_s1, [#allocation6], %s17930_s10, %s17930_s10, %s17931_s11  }
  0x6e   :  { %s17338_s15 = scalar_lea.vmem %s169_s0, 512  ;;  %p17343_p6 = scmp.lt.s32.totalorder %s169_s0, %s169_s0 }
  0x6f   :  { %p17339_p5 = scmp.ne.s32.totalorder %s169_s0, %s17338_s15  ;;  %p17344_p7 = scmp.lt.s32.totalorder %s17338_s15, %s17338_s15 }
  0x71   :  { %p17345_p8 = por %p17344_p7, %p17343_p6 }
  0x73   :  { %p17346_p9 = pnand %p17345_p8, %p17339_p5 }
  0x75   :  { %17349 = shalt.err (!%p17346_p9)
}
  0x76   :  { %174 = dma.hbm_to_vmem [thread:$0]  %s18010_s8, 512, %s169_s0, [#allocation9], %s17930_s10, %s17930_s10, %s17931_s11  }
  0x77   :  { %s17932_s16 = smov [#allocation11]   ;;  %s17933_s22 = smov [#allocation14]  }
  0x78   :  { %s196_s18 = sshll.u32 %s17932_s16, 4  ;;  %s222_s23 = sshll.u32 %s17933_s22, 4  ;;  %s197_s18 = int_to_ptr.vmem [resolvable:$true] %s196_s18  ;;  %s223_s23 = int_to_ptr.vmem [resolvable:$true] %s222_s23 }
  0x79   :  { %s17358_s26 = scalar_lea.vmem %s197_s18, 768  ;;  %p17363_p11 = scmp.lt.s32.totalorder %s197_s18, %s197_s18 }
  0x7a   :  { %p17359_p10 = scmp.ne.s32.totalorder %s197_s18, %s17358_s26  ;;  %p17364_p12 = scmp.lt.s32.totalorder %s17358_s26, %s17358_s26 }
  0x7c   :  { %p17365_p13 = por %p17364_p12, %p17363_p11 }
  0x7e   :  { %p17366_p0 = pnand %p17365_p13, %p17359_p10 }
  0x80   :  { %17369 = shalt.err (!%p17366_p0)
}
  0x81   :  { %202 = dma.hbm_to_vmem [thread:$0]  %s18030_s30, 768, %s197_s18, [#allocation12], %s17930_s10, %s17930_s10, %s17931_s11  }
  0x82   :  { %s17378_s29 = scalar_lea.vmem %s223_s23, 256  ;;  %p17383_p2 = scmp.lt.s32.totalorder %s223_s23, %s223_s23 }
  0x83   :  { %p17379_p1 = scmp.ne.s32.totalorder %s223_s23, %s17378_s29  ;;  %p17384_p3 = scmp.lt.s32.totalorder %s17378_s29, %s17378_s29 }
  0x85   :  { %p17385_p4 = por %p17384_p3, %p17383_p2 }
  0x87   :  { %p17386_p5 = pnand %p17385_p4, %p17379_p1 }
  0x89   :  { %17389 = shalt.err (!%p17386_p5)
}
  0x8a   :  { %228 = dma.hbm_to_vmem [thread:$0]  %s18045_s20, 256, %s223_s23, [#allocation15], %s17930_s10, %s17930_s10, %s17931_s11  }
  0x8b   :  { %s17934_s8 = smov [#allocation17]   ;;  %s17935_s1 = smov [#allocation20]  }
  0x8c   :  { %s248_s28 = sshll.u32 %s17934_s8, 4  ;;  %s276_s2 = sshll.u32 %s17935_s1, 4  ;;  %s249_s28 = int_to_ptr.vmem [resolvable:$true] %s248_s28  ;;  %s277_s2 = int_to_ptr.vmem [resolvable:$true] %s276_s2 }
  0x8d   :  { %s17398_s0 = scalar_lea.vmem %s249_s28, 512  ;;  %p17403_p7 = scmp.lt.s32.totalorder %s249_s28, %s249_s28 }
  0x8e   :  { %p17399_p6 = scmp.ne.s32.totalorder %s249_s28, %s17398_s0  ;;  %p17404_p8 = scmp.lt.s32.totalorder %s17398_s0, %s17398_s0 }
  0x90   :  { %p17405_p9 = por %p17404_p8, %p17403_p7 }
  0x92   :  { %p17406_p10 = pnand %p17405_p9, %p17399_p6 }
  0x94   :  { %17409 = shalt.err (!%p17406_p10)
}
  0x95   :  { %254 = dma.hbm_to_vmem [thread:$0]  %s18060_s9, 512, %s249_s28, [#allocation18], %s17930_s10, %s17930_s10, %s17931_s11  }
  0x96   :  { %s17418_s30 = scalar_lea.vmem %s277_s2, 768  ;;  %p17423_p12 = scmp.lt.s32.totalorder %s277_s2, %s277_s2 }
  0x97   :  { %p17419_p11 = scmp.ne.s32.totalorder %s277_s2, %s17418_s30  ;;  %p17424_p13 = scmp.lt.s32.totalorder %s17418_s30, %s17418_s30 }
  0x99   :  { %p17425_p0 = por %p17424_p13, %p17423_p12 }
  0x9b   :  { %p17426_p1 = pnand %p17425_p0, %p17419_p11 }
  0x9d   :  { %17429 = shalt.err (!%p17426_p1)
}
  0x9e   :  { %282 = dma.hbm_to_vmem [thread:$0]  %s18080_s14, 768, %s277_s2, [#allocation21], %s17930_s10, %s17930_s10, %s17931_s11  }
  0x9f   :  { %s17936_s20 = smov [#allocation23]   ;;  %s17937_s15 = smov [#allocation26]  }
  0xa0   :  { %s302_s7 = sshll.u32 %s17936_s20, 4  ;;  %s326_s16 = sshll.u32 %s17937_s15, 4  ;;  %s303_s7 = int_to_ptr.vmem [resolvable:$true] %s302_s7  ;;  %s327_s16 = int_to_ptr.vmem [resolvable:$true] %s326_s16 }
  0xa1   :  { %s17438_s18 = scalar_lea.vmem %s303_s7, 768  ;;  %p17443_p3 = scmp.lt.s32.totalorder %s303_s7, %s303_s7 }
  0xa2   :  { %p17439_p2 = scmp.ne.s32.totalorder %s303_s7, %s17438_s18  ;;  %p17444_p4 = scmp.lt.s32.totalorder %s17438_s18, %s17438_s18 }
  0xa4   :  { %p17445_p5 = por %p17444_p4, %p17443_p3 }
  0xa6   :  { %p17446_p6 = pnand %p17445_p5, %p17439_p2 }
  0xa8   :  { %17449 = shalt.err (!%p17446_p6)
}
  0xa9   :  { %308 = dma.hbm_to_vmem [thread:$0]  %s18095_s24, 768, %s303_s7, [#allocation24], %s17930_s10, %s17930_s10, %s17931_s11  }
  0xaa   :  { %s17458_s9 = scalar_lea.vmem %s327_s16, 256  ;;  %p17463_p8 = scmp.lt.s32.totalorder %s327_s16, %s327_s16 }
  0xab   :  { %p17459_p7 = scmp.ne.s32.totalorder %s327_s16, %s17458_s9  ;;  %p17464_p9 = scmp.lt.s32.totalorder %s17458_s9, %s17458_s9 }
  0xad   :  { %p17465_p10 = por %p17464_p9, %p17463_p8 }
  0xaf   :  { %p17466_p11 = pnand %p17465_p10, %p17459_p7 }
  0xb1   :  { %17469 = shalt.err (!%p17466_p11)
}
  0xb2   :  { %332 = dma.hbm_to_vmem [thread:$0]  %s18105_s5, 256, %s327_s16, [#allocation27], %s17930_s10, %s17930_s10, %s17931_s11  }
  0xb3   :  { %s17938_s14 = smov [#allocation29]   ;;  %s17939_s23 = smov [#allocation32]  }
  0xb4   :  { %s352_s22 = sshll.u32 %s17938_s14, 4  ;;  %s379_s26 = sshll.u32 %s17939_s23, 4  ;;  %s353_s22 = int_to_ptr.vmem [resolvable:$true] %s352_s22  ;;  %s380_s26 = int_to_ptr.vmem [resolvable:$true] %s379_s26 }
  0xb5   :  { %s17478_s29 = scalar_lea.vmem %s353_s22, 1536  ;;  %p17483_p13 = scmp.lt.s32.totalorder %s353_s22, %s353_s22 }
  0xb6   :  { %p17479_p12 = scmp.ne.s32.totalorder %s353_s22, %s17478_s29  ;;  %p17484_p0 = scmp.lt.s32.totalorder %s17478_s29, %s17478_s29 }
  0xb8   :  { %p17485_p1 = por %p17484_p0, %p17483_p13 }
  0xba   :  { %p17486_p2 = pnand %p17485_p1, %p17479_p12 }
  0xbc   :  { %17489 = shalt.err (!%p17486_p2)
}
  0xbd   :  { %358 = dma.hbm_to_vmem [thread:$0]  %s18125_s12, 1536, %s353_s22, [#allocation30], %s17930_s10, %s17930_s10, %s17931_s11  }
  0xbe   :  { %s17498_s24 = scalar_lea.vmem %s380_s26, 128  ;;  %p17503_p4 = scmp.lt.s32.totalorder %s380_s26, %s380_s26 }
  0xbf   :  { %p17499_p3 = scmp.ne.s32.totalorder %s380_s26, %s17498_s24  ;;  %p17504_p5 = scmp.lt.s32.totalorder %s17498_s24, %s17498_s24 }
  0xc1   :  { %p17505_p6 = por %p17504_p5, %p17503_p4 }
  0xc3   :  { %p17506_p7 = pnand %p17505_p6, %p17499_p3 }
  0xc5   :  { %17509 = shalt.err (!%p17506_p7)
}
  0xc6   :  { %382 = dma.hbm_to_vmem [thread:$0]  %s18140_s13, 128, %s380_s26, [#allocation33]  }
  0xc7   :  { %s17940_s5 = smov [#allocation35]   ;;  %s17941_s28 = smov [#allocation38]  }
  0xc8   :  { %s402_s8 = sshll.u32 %s17940_s5, 4  ;;  %s428_s1 = sshll.u32 %s17941_s28, 4  ;;  %s403_s8 = int_to_ptr.vmem [resolvable:$true] %s402_s8  ;;  %s429_s1 = int_to_ptr.vmem [resolvable:$true] %s428_s1 }
  0xc9   :  { %s17518_s2 = scalar_lea.vmem %s403_s8, 256  ;;  %p17523_p9 = scmp.lt.s32.totalorder %s403_s8, %s403_s8 }
  0xca   :  { %p17519_p8 = scmp.ne.s32.totalorder %s403_s8, %s17518_s2  ;;  %p17524_p10 = scmp.lt.s32.totalorder %s17518_s2, %s17518_s2 }
  0xcc   :  { %p17525_p11 = por %p17524_p10, %p17523_p9 }
  0xce   :  { %p17526_p12 = pnand %p17525_p11, %p17519_p8 }
  0xd0   :  { %17529 = shalt.err (!%p17526_p12)
}
  0xd1   :  { %408 = dma.hbm_to_vmem [thread:$0]  %s18155_s17, 256, %s403_s8, [#allocation36], %s17930_s10, %s17930_s10, %s17931_s11  }
  0xd2   :  { %s17538_s12 = scalar_lea.vmem %s429_s1, 1536  ;;  %p17543_p0 = scmp.lt.s32.totalorder %s429_s1, %s429_s1 }
  0xd3   :  { %p17539_p13 = scmp.ne.s32.totalorder %s429_s1, %s17538_s12  ;;  %p17544_p1 = scmp.lt.s32.totalorder %s17538_s12, %s17538_s12 }
  0xd5   :  { %p17545_p2 = por %p17544_p1, %p17543_p0 }
  0xd7   :  { %p17546_p3 = pnand %p17545_p2, %p17539_p13 }
  0xd9   :  { %17549 = shalt.err (!%p17546_p3)
}
  0xda   :  { %434 = dma.hbm_to_vmem [thread:$0]  %s18175_s6, 1536, %s429_s1, [#allocation39], %s17930_s10, %s17930_s10, %s17931_s11  }
  0xdb   :  { %s17942_s13 = smov [#allocation2]   ;;  %s17943_s30 = smov [#allocation7]  }
  0xdc   :  { %s130_s0 = sshll.u32 %s17942_s13, 4  ;;  %s156_s20 = sshll.u32 %s17943_s30, 4  ;;  %s131_s0 = int_to_ptr.vmem [resolvable:$true] %s130_s0  ;;  %s157_s20 = int_to_ptr.vmem [resolvable:$true] %s156_s20 }
  0xdd   :  { %s17558_s7 = scalar_lea.vmem %s131_s0, 512  ;;  %p17563_p5 = scmp.lt.s32.totalorder %s131_s0, %s131_s0 }
  0xde   :  { %p17559_p4 = scmp.ne.s32.totalorder %s131_s0, %s17558_s7  ;;  %p17564_p6 = scmp.lt.s32.totalorder %s17558_s7, %s17558_s7 }
  0xe0   :  { %p17565_p7 = por %p17564_p6, %p17563_p5 }
  0xe2   :  { %p17566_p8 = pnand %p17565_p7, %p17559_p4 }
  0xe4   :  { %17569 = shalt.err (!%p17566_p8)
}
  0xe5   :  { %136 = dma.hbm_to_vmem [thread:$0]  %s17990_s21, 512, %s131_s0, [#allocation3], %s17930_s10, %s17930_s10, %s17931_s11  }
  0xe6   :  { %s17578_s17 = scalar_lea.vmem %s157_s20, 256  ;;  %p17583_p10 = scmp.lt.s32.totalorder %s157_s20, %s157_s20 }
  0xe7   :  { %p17579_p9 = scmp.ne.s32.totalorder %s157_s20, %s17578_s17  ;;  %p17584_p11 = scmp.lt.s32.totalorder %s17578_s17, %s17578_s17 }
  0xe9   :  { %p17585_p12 = por %p17584_p11, %p17583_p10 }
  0xeb   :  { %p17586_p13 = pnand %p17585_p12, %p17579_p9 }
  0xed   :  { %17589 = shalt.err (!%p17586_p13)
}
  0xee   :  { %162 = dma.hbm_to_vmem [thread:$0]  %s18005_s3, 256, %s157_s20, [#allocation6], %s17930_s10, %s17930_s10, %s17931_s11  }
  0xef   :  { %s17944_s6 = smov [#allocation10]   ;;  %s17945_s16 = smov [#allocation13]  }
  0xf0   :  { %s182_s15 = sshll.u32 %s17944_s6, 4  ;;  %s208_s18 = sshll.u32 %s17945_s16, 4  ;;  %s183_s15 = int_to_ptr.vmem [resolvable:$true] %s182_s15  ;;  %s209_s18 = int_to_ptr.vmem [resolvable:$true] %s208_s18 }
  0xf1   :  { %s17598_s9 = scalar_lea.vmem %s183_s15, 256  ;;  %p17603_p1 = scmp.lt.s32.totalorder %s183_s15, %s183_s15 }
  0xf2   :  { %p17599_p0 = scmp.ne.s32.totalorder %s183_s15, %s17598_s9  ;;  %p17604_p2 = scmp.lt.s32.totalorder %s17598_s9, %s17598_s9 }
  0xf4   :  { %p17605_p3 = por %p17604_p2, %p17603_p1 }
  0xf6   :  { %p17606_p4 = pnand %p17605_p3, %p17599_p0 }
  0xf8   :  { %17609 = shalt.err (!%p17606_p4)
}
  0xf9   :  { %s19572_s21 = sld [smem:[#allocation65_spill]]  ;;  %s17618_s14 = scalar_lea.vmem %s209_s18, 512 }
  0xfa   :  { %p17619_p5 = scmp.ne.s32.totalorder %s209_s18, %s17618_s14  ;;  %p17623_p6 = scmp.lt.s32.totalorder %s209_s18, %s209_s18 }
  0xfb   :  { %p17624_p7 = scmp.lt.s32.totalorder %s17618_s14, %s17618_s14 }
  0xfd   :  { %p17625_p8 = por %p17624_p7, %p17623_p6 }
  0xff   :  { %188 = dma.hbm_to_vmem [thread:$0]  %s19572_s21, 256, %s183_s15, [#allocation9], %s17930_s10, %s17930_s10, %s17931_s11  }
 0x100   :  { %p17626_p9 = pnand %p17625_p8, %p17619_p5 }
 0x102   :  { %17629 = shalt.err (!%p17626_p9)
}
 0x103   :  { %s19573_s3 = sld [smem:[#allocation67_spill]]  ;;  %s17946_s22 = smov [#allocation16]  }
 0x104   :  { %s236_s23 = sshll.u32 %s17946_s22, 4  ;;  %s17947_s26 = smov [#allocation19]   ;;  %s237_s23 = int_to_ptr.vmem [resolvable:$true] %s236_s23 }
 0x105   :  { %s262_s29 = sshll.u32 %s17947_s26, 4  ;;  %s17638_s24 = scalar_lea.vmem %s237_s23, 768  ;;  %s263_s29 = int_to_ptr.vmem [resolvable:$true] %s262_s29 }
 0x106   :  { %p17639_p10 = scmp.ne.s32.totalorder %s237_s23, %s17638_s24  ;;  %p17643_p11 = scmp.lt.s32.totalorder %s237_s23, %s237_s23 }
 0x107   :  { %p17644_p12 = scmp.lt.s32.totalorder %s17638_s24, %s17638_s24 }
 0x109   :  { %214 = dma.hbm_to_vmem [thread:$0]  %s19573_s3, 512, %s209_s18, [#allocation12], %s17930_s10, %s17930_s10, %s17931_s11  }
 0x10a   :  { %p17645_p13 = por %p17644_p12, %p17643_p11 }
 0x10c   :  { %p17646_p0 = pnand %p17645_p13, %p17639_p10 }
 0x10e   :  { %17649 = shalt.err (!%p17646_p0)
}
 0x10f   :  { %s19574_s5 = sld [smem:[#allocation70_spill]]  ;;  %s17658_s8 = scalar_lea.vmem %s263_s29, 256 }
 0x110   :  { %p17659_p1 = scmp.ne.s32.totalorder %s263_s29, %s17658_s8  ;;  %p17663_p2 = scmp.lt.s32.totalorder %s263_s29, %s263_s29 }
 0x111   :  { %p17664_p3 = scmp.lt.s32.totalorder %s17658_s8, %s17658_s8 }
 0x113   :  { %p17665_p4 = por %p17664_p3, %p17663_p2 }
 0x115   :  { %242 = dma.hbm_to_vmem [thread:$0]  %s19574_s5, 768, %s237_s23, [#allocation15], %s17930_s10, %s17930_s10, %s17931_s11  }
 0x116   :  { %p17666_p5 = pnand %p17665_p4, %p17659_p1 }
 0x118   :  { %17669 = shalt.err (!%p17666_p5)
}
 0x119   :  { %s19575_s28 = sld [smem:[#allocation72_spill]]  ;;  %s17948_s1 = smov [#allocation22]  }
 0x11a   :  { %s288_s2 = sshll.u32 %s17948_s1, 4  ;;  %s17949_s12 = smov [#allocation25]   ;;  %s289_s2 = int_to_ptr.vmem [resolvable:$true] %s288_s2 }
 0x11b   :  { %s314_s13 = sshll.u32 %s17949_s12, 4  ;;  %s17678_s0 = scalar_lea.vmem %s289_s2, 256  ;;  %s315_s13 = int_to_ptr.vmem [resolvable:$true] %s314_s13 }
 0x11c   :  { %p17679_p6 = scmp.ne.s32.totalorder %s289_s2, %s17678_s0  ;;  %p17683_p7 = scmp.lt.s32.totalorder %s289_s2, %s289_s2 }
 0x11d   :  { %p17684_p8 = scmp.lt.s32.totalorder %s17678_s0, %s17678_s0 }
 0x11f   :  { %268 = dma.hbm_to_vmem [thread:$0]  %s19575_s28, 256, %s263_s29, [#allocation18], %s17930_s10, %s17930_s10, %s17931_s11  }
 0x120   :  { %p17685_p9 = por %p17684_p8, %p17683_p7 }
 0x122   :  { %p17686_p10 = pnand %p17685_p9, %p17679_p6 }
 0x124   :  { %17689 = shalt.err (!%p17686_p10)
}
 0x125   :  { %s19576_s30 = sld [smem:[#allocation74_spill]]  ;;  %s17698_s20 = scalar_lea.vmem %s315_s13, 512 }
 0x126   :  { %p17699_p11 = scmp.ne.s32.totalorder %s315_s13, %s17698_s20  ;;  %p17703_p12 = scmp.lt.s32.totalorder %s315_s13, %s315_s13 }
 0x127   :  { %p17704_p13 = scmp.lt.s32.totalorder %s17698_s20, %s17698_s20 }
 0x129   :  { %p17705_p0 = por %p17704_p13, %p17703_p12 }
 0x12b   :  { %294 = dma.hbm_to_vmem [thread:$0]  %s19576_s30, 256, %s289_s2, [#allocation21], %s17930_s10, %s17930_s10, %s17931_s11  }
 0x12c   :  { %p17706_p1 = pnand %p17705_p0, %p17699_p11 }
 0x12e   :  { %17709 = shalt.err (!%p17706_p1)
}
 0x12f   :  { %s19577_s7 = sld [smem:[#allocation76_spill]]  ;;  %s17950_s17 = smov [#allocation28]  }
 0x130   :  { %s341_s6 = sshll.u32 %s17950_s17, 4  ;;  %s17951_s15 = smov [#allocation31]   ;;  %s342_s6 = int_to_ptr.vmem [resolvable:$true] %s341_s6 }
 0x131   :  { %s364_s16 = sshll.u32 %s17951_s15, 4  ;;  %s17718_s18 = scalar_lea.vmem %s342_s6, 128  ;;  %s365_s16 = int_to_ptr.vmem [resolvable:$true] %s364_s16 }
 0x132   :  { %p17719_p2 = scmp.ne.s32.totalorder %s342_s6, %s17718_s18  ;;  %p17723_p3 = scmp.lt.s32.totalorder %s342_s6, %s342_s6 }
 0x133   :  { %p17724_p4 = scmp.lt.s32.totalorder %s17718_s18, %s17718_s18 }
 0x135   :  { %320 = dma.hbm_to_vmem [thread:$0]  %s19577_s7, 512, %s315_s13, [#allocation24], %s17930_s10, %s17930_s10, %s17931_s11  }
 0x136   :  { %p17725_p5 = por %p17724_p4, %p17723_p3 }
 0x138   :  { %p17726_p6 = pnand %p17725_p5, %p17719_p2 }
 0x13a   :  { %17729 = shalt.err (!%p17726_p6)
}
 0x13b   :  { %s19578_s9 = sld [smem:[#allocation78_spill]]  ;;  %s17738_s21 = scalar_lea.vmem %s365_s16, 256 }
 0x13c   :  { %p17739_p7 = scmp.ne.s32.totalorder %s365_s16, %s17738_s21  ;;  %p17743_p8 = scmp.lt.s32.totalorder %s365_s16, %s365_s16 }
 0x13d   :  { %p17744_p9 = scmp.lt.s32.totalorder %s17738_s21, %s17738_s21 }
 0x13f   :  { %p17745_p10 = por %p17744_p9, %p17743_p8 }
 0x141   :  { %344 = dma.hbm_to_vmem [thread:$0]  %s19578_s9, 128, %s342_s6, [#allocation27]  }
 0x142   :  { %p17746_p11 = pnand %p17745_p10, %p17739_p7 }
 0x144   :  { %17749 = shalt.err (!%p17746_p11)
}
 0x145   :  { %s19579_s14 = sld [smem:[#allocation80_spill]]  ;;  %s17952_s3 = smov [#allocation34]  }
 0x146   :  { %s390_s22 = sshll.u32 %s17952_s3, 4  ;;  %s17953_s23 = smov [#allocation37]   ;;  %s391_s22 = int_to_ptr.vmem [resolvable:$true] %s390_s22 }
 0x147   :  { %s417_s26 = sshll.u32 %s17953_s23, 4  ;;  %s17758_s29 = scalar_lea.vmem %s391_s22, 1536  ;;  %s418_s26 = int_to_ptr.vmem [resolvable:$true] %s417_s26 }
 0x148   :  { %p17759_p12 = scmp.ne.s32.totalorder %s391_s22, %s17758_s29  ;;  %p17763_p13 = scmp.lt.s32.totalorder %s391_s22, %s391_s22 }
 0x149   :  { %p17764_p0 = scmp.lt.s32.totalorder %s17758_s29, %s17758_s29 }
 0x14b   :  { %370 = dma.hbm_to_vmem [thread:$0]  %s19579_s14, 256, %s365_s16, [#allocation30], %s17930_s10, %s17930_s10, %s17931_s11  }
 0x14c   :  { %p17765_p1 = por %p17764_p0, %p17763_p13 }
 0x14e   :  { %p17766_p2 = pnand %p17765_p1, %p17759_p12 }
 0x150   :  { %17769 = shalt.err (!%p17766_p2)
}
 0x151   :  { %s19580_s24 = sld [smem:[#allocation83_spill]]  ;;  %s17778_s5 = scalar_lea.vmem %s418_s26, 128 }
 0x152   :  { %p17779_p3 = scmp.ne.s32.totalorder %s418_s26, %s17778_s5  ;;  %p17783_p4 = scmp.lt.s32.totalorder %s418_s26, %s418_s26 }
 0x153   :  { %p17784_p5 = scmp.lt.s32.totalorder %s17778_s5, %s17778_s5 }
 0x155   :  { %p17785_p6 = por %p17784_p5, %p17783_p4 }
 0x157   :  { %396 = dma.hbm_to_vmem [thread:$0]  %s19580_s24, 1536, %s391_s22, [#allocation33], %s17930_s10, %s17930_s10, %s17931_s11  }
 0x158   :  { %p17786_p7 = pnand %p17785_p6, %p17779_p3 }
 0x15a   :  { %17789 = shalt.err (!%p17786_p7)
}
 0x15b   :  { %s19581_s8 = sld [smem:[#allocation85_spill]]  ;;  %s17954_s28 = smov [#allocation40]  }
 0x15c   :  { %s446_s1 = sshll.u32 %s17954_s28, 4  ;;  %s447_s1 = int_to_ptr.vmem [resolvable:$true] %s446_s1 }
 0x15d   :  { %s17798_s2 = scalar_lea.vmem %s447_s1, 64  ;;  %p17803_p9 = scmp.lt.s32.totalorder %s447_s1, %s447_s1 }
 0x15e   :  { %p17799_p8 = scmp.ne.s32.totalorder %s447_s1, %s17798_s2  ;;  %p17804_p10 = scmp.lt.s32.totalorder %s17798_s2, %s17798_s2 }
 0x160   :  { %p17805_p11 = por %p17804_p10, %p17803_p9 }
 0x161   :  { %420 = dma.hbm_to_vmem [thread:$0]  %s19581_s8, 128, %s418_s26, [#allocation36]  }
 0x162   :  { %p17806_p12 = pnand %p17805_p11, %p17799_p8 }
 0x164   :  { %17809 = shalt.err (!%p17806_p12)
}
 0x165   :  { %s17955_s12 = smov 16   ;;  %s17956_s13 = smov 1  }
 0x166   :  { %452 = dma.hbm_to_vmem [thread:$0]  %s18195_s19, 64, %s447_s1, [#allocation39], %s17955_s12, %s17955_s12, %s17956_s13  }
 0x167   :  { %s17957_s0 = smov [#allocation41]  }
 0x168   :  { %s458_s30 = sshll.u32 %s17957_s0, 4  ;;  %s459_s30 = int_to_ptr.vmem [resolvable:$true] %s458_s30 }
 0x169   :  { %s17818_s20 = scalar_lea.vmem %s459_s30, 8192  ;;  %p17823_p0 = scmp.lt.s32.totalorder %s459_s30, %s459_s30 }
 0x16a   :  { %p17819_p13 = scmp.ne.s32.totalorder %s459_s30, %s17818_s20  ;;  %p17824_p1 = scmp.lt.s32.totalorder %s17818_s20, %s17818_s20 }
 0x16c   :  { %p17825_p2 = por %p17824_p1, %p17823_p0 }
 0x16e   :  { %p17826_p3 = pnand %p17825_p2, %p17819_p13 }
 0x170   :  { %17829 = shalt.err (!%p17826_p3)
}
 0x171   :  { %464 = dma.hbm_to_vmem [thread:$0]  %s18200_s4, 8192, %s459_s30, [#allocation42], %s17930_s10, %s17930_s10, %s17931_s11  }
 0x172   :  { %17850 = dma.done.wait [#allocation3], 512  }
 0x173   :  { %17851 = vsyncadd [#allocation3], 4294966784 }
 0x174   :  { %17852 = dma.done.wait [#allocation6], 640  }
 0x175   :  { %17853 = vsyncadd [#allocation6], 4294966656 }
 0x176   :  { %17854 = dma.done.wait [#allocation9], 768  }
 0x177   :  { %17855 = vsyncadd [#allocation9], 4294966528 }
 0x178   :  { %17856 = dma.done.wait [#allocation12], 1280  }
 0x179   :  { %17857 = vsyncadd [#allocation12], 4294966016 }
 0x17a   :  { %17858 = dma.done.wait [#allocation15], 1024  }
 0x17b   :  { %17859 = vsyncadd [#allocation15], 4294966272 }
 0x17c   :  { %17860 = dma.done.wait [#allocation18], 768  }
 0x17d   :  { %17861 = vsyncadd [#allocation18], 4294966528 }
 0x17e   :  { %17862 = dma.done.wait [#allocation21], 1024  }
 0x17f   :  { %17863 = vsyncadd [#allocation21], 4294966272 }
 0x180   :  { %17864 = dma.done.wait [#allocation24], 1280  }
 0x181   :  { %17865 = vsyncadd [#allocation24], 4294966016 }
 0x182   :  { %17866 = dma.done.wait [#allocation27], 384  }
 0x183   :  { %17867 = vsyncadd [#allocation27], 4294966912 }
 0x184   :  { %17868 = dma.done.wait [#allocation30], 1792  }
 0x185   :  { %17869 = vsyncadd [#allocation30], 4294965504 }
 0x186   :  { %17870 = dma.done.wait [#allocation33], 1664  }
 0x187   :  { %17871 = vsyncadd [#allocation33], 4294965632 }
 0x188   :  { %17872 = dma.done.wait [#allocation36], 384  }
 0x189   :  { %17873 = vsyncadd [#allocation36], 4294966912 }
 0x18a   :  { %17874 = dma.done.wait [#allocation39], 1600  }
 0x18b   :  { %17875 = vsyncadd [#allocation39], 4294965696 }
 0x18c   :  { %17876 = dma.done.wait [#allocation42], 8192  }
 0x18d   :  { %17877 = vsyncadd [#allocation42], 4294959104  ;;  %s19582_s19 = sld [smem:[#allocation62_spill]]  ;;  %v17958_v0 = vmov 0   ;;  %vm548_vm0 = vcmask 64512   ;;  %vm1120_vm1 = vcmask 916480  }
 0x18e   :  { %s19583_s4 = sld [smem:[#allocation59_spill]]  ;;  %17304 = vset.pattern.permute.xlu0 %v17958_v0  ;;  %17305 = vset.pattern.permute.xlu1 %v17958_v0  ;;  %vm1530_vm6 = vcmask 785408   ;;  %vm1801_vm8 = vcmask 130048   ;;  %vm2067_vm10 = vcmask 523264   ;;  %s17961_s28 = smov [#allocation43]  }
 0x18f   :  { %s19584_s10 = sld [smem:[#allocation61_spill]]  ;;  %s14190_s1 = sshll.u32 %s17961_s28, 4  ;;  %s14191_s1 = int_to_ptr.vmem [resolvable:$true] %s14190_s1 }
 0x190   :  { %s19585_s11 = sld [smem:[#allocation63_spill]]  ;;  %s17830_s2 = scalar_lea.vmem %s14191_s1, 32 }
 0x191   :  { %s19586_s7 = sld [smem:[#allocation64_spill]]  ;;  %p17831_p4 = scmp.ne.s32.totalorder %s14191_s1, %s17830_s2 }
 0x192   :  { %s19587_s17 = sld [smem:[#allocation66_spill]]  ;;  %p17835_p5 = scmp.lt.s32.totalorder %s14191_s1, %s14191_s1 }
 0x193   :  { %v547_v1 = vld [vmem:[%s19582_s19] sm:$0xff]  ;;  %v14265_v2 = vld [vmem:[%s19582_s19 + $0x10] sm:$0xff]  ;;  %v14262_v5 = vld [vmem:[%s19582_s19 + $0x8] sm:$0xff]  ;;  %s19588_s6 = sld [smem:[#allocation68_spill]]  ;;  %p17836_p6 = scmp.lt.s32.totalorder %s17830_s2, %s17830_s2 }
 0x194   :  { %v545_v3 = vld [vmem:[%s19583_s4] sm:$0xff]  ;;  %15482 = vmatprep.subr.mxu1 %v547_v1  ;;  %15492 = vmatprep.subr.mxu0 %v14265_v2  ;;  %v546_v4 = vld [vmem:[%s19583_s4 + $0x8] sm:$0xff]  ;;  %v14268_v7 = vld [vmem:[%s19582_s19 + $0x18] sm:$0xff]  ;;  %s19589_s15 = sld [smem:[#allocation69_spill]] }
 0x195   :  { %15483 = vmatpush3.msra.mxu1 %v547_v1  ;;  %15484 = vmatprep.mubr.msk.f32.mxu1 %vm548_vm0, %v545_v3  ;;  %v14271_v6 = vld [vmem:[%s19582_s19 + $0x20] sm:$0xff]  ;;  %v14277_v8 = vld [vmem:[%s19582_s19 + $0x30] sm:$0xff]  ;;  %v14274_v9 = vld [vmem:[%s19582_s19 + $0x28] sm:$0xff]  ;;  %s19590_s16 = sld [smem:[#allocation71_spill]]  ;;  %p17837_p7 = por %p17836_p6, %p17835_p5 }
 0x196   :  { %15493 = vmatpush3.msra.mxu0 %v14265_v2  ;;  %15494 = vmatprep.mubr.msk.f32.mxu0 %vm548_vm0, %v545_v3  ;;  %v18324_v10 = vld [vmem:[%s19584_s10] sm:$0xff]  ;;  %v18329_v11 = vld [vmem:[%s19584_s10 + $0x10] sm:$0xff]  ;;  %v18335_v12 = vld [vmem:[%s19584_s10 + $0x8] sm:$0xff]  ;;  %s19591_s18 = sld [smem:[#allocation73_spill]] }
 0x197   :  { %15485 = vmatmul.mubr.msk.f32.vlgmr.msra.gmra.mxu1 %vm548_vm0, %v546_v4  ;;  %15495 = vmatmul.mubr.msk.f32.vlgmr.msra.gmra.mxu0 %vm548_vm0, %v546_v4  ;;  %v18339_v13 = vld [vmem:[%s19584_s10 + $0x18] sm:$0xff]  ;;  %v18344_v14 = vld [vmem:[%s19585_s11 + $0x10] sm:$0xff]  ;;  %v18352_v16 = vld [vmem:[%s19585_s11] sm:$0xff]  ;;  %s19592_s9 = sld [smem:[#allocation75_spill]]  ;;  %p17838_p8 = pnand %p17837_p7, %p17831_p4 }
 0x198   :  { %15487 = vmatprep.subr.mxu1 %v14262_v5  ;;  %15502 = vmatprep.subr.mxu0 %v14271_v6  ;;  %v18347_v15 = vld [vmem:[%s19585_s11 + $0x18] sm:$0xff]  ;;  %v18355_v17 = vld [vmem:[%s19585_s11 + $0x8] sm:$0xff]  ;;  %v18363_v19 = vld [vmem:[%s19586_s7] sm:$0xff]  ;;  %s19593_s21 = sld [smem:[#allocation77_spill]] }
 0x199   :  { %15488 = vmatpush3.msra.mxu1 %v14262_v5  ;;  %15489 = vmatprep.mubr.msk.f32.mxu1 %vm548_vm0, %v545_v3  ;;  %v18360_v18 = vld [vmem:[%s19586_s7 + $0x8] sm:$0xff]  ;;  %v18368_v20 = vld [vmem:[%s19586_s7 + $0x10] sm:$0xff]  ;;  %v18371_v21 = vld [vmem:[%s19587_s17] sm:$0xff]  ;;  %s19594_s14 = sld [smem:[#allocation79_spill]] }
 0x19a   :  { %15503 = vmatpush3.msra.mxu0 %v14271_v6  ;;  %15504 = vmatprep.mubr.msk.f32.mxu0 %vm548_vm0, %v545_v3  ;;  %v18376_v22 = vld [vmem:[%s19586_s7 + $0x18] sm:$0xff]  ;;  %v18379_v23 = vld [vmem:[%s19587_s17 + $0x8] sm:$0xff]  ;;  %v18387_v25 = vld [vmem:[%s19588_s6] sm:$0xff]  ;;  %s19595_s3 = sld [smem:[#allocation81_spill]] }
 0x19b   :  { %15490 = vmatmul.mubr.msk.f32.vlgmr.msra.gmra.mxu1 %vm548_vm0, %v546_v4  ;;  %15505 = vmatmul.mubr.msk.f32.vlgmr.msra.gmra.mxu0 %vm548_vm0, %v546_v4  ;;  %v18384_v24 = vld [vmem:[%s19588_s6 + $0x8] sm:$0xff]  ;;  %v2519_v26 = vld [vmem:[%s19588_s6 + $0x10] sm:$0xff]  ;;  %v2646_v27 = vld [vmem:[%s19589_s15] sm:$0xff]  ;;  %s19596_s22 = sld [smem:[#allocation82_spill]] }
 0x19c   :  { %15497 = vmatprep.subr.mxu1 %v14268_v7  ;;  %15512 = vmatprep.subr.mxu0 %v14277_v8  ;;  %v2520_v28 = vld [vmem:[%s19588_s6 + $0x18] sm:$0xff]  ;;  %v2647_v29 = vld [vmem:[%s19589_s15 + $0x8] sm:$0xff]  ;;  %v2990_v31 = vld [vmem:[%s19590_s16] sm:$0xff]  ;;  %s19597_s23 = sld [smem:[#allocation84_spill]] }
 0x19d   :  { %15498 = vmatpush3.msra.mxu1 %v14268_v7  ;;  %15499 = vmatprep.mubr.msk.f32.mxu1 %vm548_vm0, %v545_v3  ;;  %v2991_v30 = vld [vmem:[%s19590_s16 + $0x8] sm:$0xff]  ;;  %v2992_v32 = vld [vmem:[%s19590_s16 + $0x10] sm:$0xff]  ;;  %v3119_v33 = vld [vmem:[%s19591_s18] sm:$0xff]  ;;  %s19598_s26 = sld [smem:[#allocation86_spill]] }
 0x19e   :  { %15513 = vmatpush3.msra.mxu0 %v14277_v8  ;;  %15514 = vmatprep.mubr.msk.f32.mxu0 %vm548_vm0, %v545_v3  ;;  %v2993_v34 = vld [vmem:[%s19590_s16 + $0x18] sm:$0xff]  ;;  %v3120_v35 = vld [vmem:[%s19591_s18 + $0x8] sm:$0xff]  ;;  %v3461_v37 = vld [vmem:[%s19592_s9] sm:$0xff]  ;;  %s19599_s29 = sld [smem:[#allocation88_spill]] }
 0x19f   :  { %15500 = vmatmul.mubr.msk.f32.vlgmr.msra.gmra.mxu1 %vm548_vm0, %v546_v4  ;;  %15515 = vmatmul.mubr.msk.f32.vlgmr.msra.gmra.mxu0 %vm548_vm0, %v546_v4  ;;  %v3462_v36 = vld [vmem:[%s19592_s9 + $0x8] sm:$0xff]  ;;  %v3939_v38 = vld [vmem:[%s19593_s21] sm:$0xff]  ;;  %s19600_s24 = sld [smem:[#allocation60_spill]] }
 0x1a0   :  { %15507 = vmatprep.subr.mxu1 %v14274_v9  ;;  %15509 = vmatprep.mubr.msk.f32.mxu1 %vm548_vm0, %v545_v3  ;;  %v3940_v39 = vld [vmem:[%s19593_s21 + $0x8] sm:$0xff]  ;;  %v4036_v40 = vld [vmem:[%s19594_s14] sm:$0xff]  ;;  %s19601_s5 = sld [smem:[#allocation89_spill]] }
 0x1a1   :  { %15508 = vmatpush3.msra.mxu1 %v14274_v9  ;;  %1102 = vperm.xlu0 %17304, %v18324_v10   ;;  %v4348_v41 = vld [vmem:[%s19595_s3] sm:$0xff]  ;;  %v4349_v42 = vld [vmem:[%s19595_s3 + $0x8] sm:$0xff]  ;;  %s19602_s8 = sld [smem:[#allocation87_spill]] }
 0x1a2   :  { %1112 = vperm.xlu1 %17305, %v18329_v11   ;;  %v4445_v43 = vld [vmem:[%s19596_s22] sm:$0xff]  ;;  %v4758_v45 = vld [vmem:[%s19597_s23 + $0x8] sm:$0xff] }
 0x1a3   :  { %15510 = vmatmul.mubr.msk.f32.vlgmr.msra.gmra.mxu1 %vm548_vm0, %v546_v4  ;;  %v4757_v44 = vld [vmem:[%s19597_s23] sm:$0xff]  ;;  %v1329_v4 = vld [vmem:[#allocation5 + $0x8] sm:$0xff] }
 0x1a4   :  { %v4854_v46 = vld [vmem:[%s19598_s26] sm:$0xff] }
 0x1a5   :  { %1107 = vperm.xlu0 %17304, %v18335_v12   ;;  %v5465_v47 = vld [vmem:[%s19599_s29] sm:$0xf]  ;;  %v1093_v0 = vld [vmem:[%s19600_s24 + $0x8] sm:$0xff]  ;;  %v1094_v1 = vld [vmem:[%s19600_s24 + $0x10] sm:$0xff] }
 0x1a6   :  { %1117 = vperm.xlu1 %17305, %v18339_v13   ;;  %v1092_v48 = vld [vmem:[%s19600_s24] sm:$0xff]  ;;  %v1095_v2 = vld [vmem:[%s19600_s24 + $0x18] sm:$0xff] }
 0x1a7   :  { %15545 = vmatprep.mubr.msk.f32.mxu1 %vm1120_vm1, %v1092_v48  ;;  %v12278_v49 = vld [vmem:[%s19599_s29] sm:$0xf] }
 0x1a8   :  { %v1230_v3 = vld [vmem:[#allocation5] sm:$0xff] }
 0x1a9   :  { %1522 = vperm.xlu0 %17304, %v18344_v14   ;;  %15551 = vmatprep.subr.mxu0 %v1230_v3 }
 0x1aa   :  { %1527 = vperm.xlu1 %17305, %v18347_v15   ;;  %15552 = vmatpush3.msra.mxu0 %v1230_v3 }
 0x1ab   :  { %15559 = vmatprep.subr.mxu0 %v1329_v4 }
 0x1ad   :  { %1512 = vperm.xlu0 %17304, %v18352_v16  }
 0x1ae   :  { %1517 = vperm.xlu1 %17305, %v18355_v17  }
 0x1b1   :  { %2054 = vperm.xlu0 %17304, %v18360_v18  }
 0x1b2   :  { %2049 = vperm.xlu1 %17305, %v18363_v19  }
 0x1b5   :  { %2059 = vperm.xlu0 %17304, %v18368_v20  }
 0x1b6   :  { %2177 = vperm.xlu1 %17305, %v18371_v21  }
 0x1b9   :  { %2064 = vperm.xlu0 %17304, %v18376_v22  }
 0x1ba   :  { %2182 = vperm.xlu1 %17305, %v18379_v23  }
 0x1bd   :  { %2528 = vperm.xlu0 %17304, %v18384_v24  }
 0x1be   :  { %2523 = vperm.xlu1 %17305, %v18387_v25  }
 0x1c1   :  { %2533 = vperm.xlu0 %17304, %v2519_v26  }
 0x1c2   :  { %2650 = vperm.xlu1 %17305, %v2646_v27  }
 0x1c5   :  { %2538 = vperm.xlu0 %17304, %v2520_v28  }
 0x1c6   :  { %2655 = vperm.xlu1 %17305, %v2647_v29  }
 0x1c9   :  { %3001 = vperm.xlu0 %17304, %v2991_v30  }
 0x1ca   :  { %2996 = vperm.xlu1 %17305, %v2990_v31  }
 0x1cd   :  { %3006 = vperm.xlu0 %17304, %v2992_v32  }
 0x1ce   :  { %3123 = vperm.xlu1 %17305, %v3119_v33  }
 0x1d1   :  { %3011 = vperm.xlu0 %17304, %v2993_v34  }
 0x1d2   :  { %3128 = vperm.xlu1 %17305, %v3120_v35  }
 0x1d5   :  { %3470 = vperm.xlu0 %17304, %v3462_v36  }
 0x1d6   :  { %3465 = vperm.xlu1 %17305, %v3461_v37  }
 0x1d9   :  { %3943 = vperm.xlu0 %17304, %v3939_v38  }
 0x1da   :  { %3948 = vperm.xlu1 %17305, %v3940_v39  }
 0x1dd   :  { %4039 = vperm.xlu0 %17304, %v4036_v40  }
 0x1de   :  { %4352 = vperm.xlu1 %17305, %v4348_v41  }
 0x1e1   :  { %4357 = vperm.xlu0 %17304, %v4349_v42  }
 0x1e2   :  { %4448 = vperm.xlu1 %17305, %v4445_v43  }
 0x1e5   :  { %4761 = vperm.xlu0 %17304, %v4757_v44  }
 0x1e6   :  { %4766 = vperm.xlu1 %17305, %v4758_v45  }
 0x1e9   :  { %4857 = vperm.xlu0 %17304, %v4854_v46  }
 0x1ea   :  { %5468 = vperm.xlu1 %17305, %v5465_v47  }
 0x1ed   :  { %7945 = vperm.xlu0 %17304, %v18324_v10  }
 0x1ee   :  { %7950 = vperm.xlu1 %17305, %v18335_v12  }
 0x1f1   :  { %7955 = vperm.xlu0 %17304, %v18329_v11  }
 0x1f2   :  { %7960 = vperm.xlu1 %17305, %v18339_v13  }
 0x1f5   :  { %8362 = vperm.xlu0 %17304, %v18344_v14  }
 0x1f6   :  { %8367 = vperm.xlu1 %17305, %v18347_v15  }
 0x1f9   :  { %8352 = vperm.xlu0 %17304, %v18352_v16  }
 0x1fa   :  { %8357 = vperm.xlu1 %17305, %v18355_v17  }
 0x1fd   :  { %8889 = vperm.xlu0 %17304, %v18360_v18  }
 0x1fe   :  { %8884 = vperm.xlu1 %17305, %v18363_v19  }
 0x201   :  { %8894 = vperm.xlu0 %17304, %v18368_v20  }
 0x202   :  { %9011 = vperm.xlu1 %17305, %v18371_v21  }
 0x205   :  { %8899 = vperm.xlu0 %17304, %v18376_v22   ;;  %v1416_v22 = vld [vmem:[#allocation5 + $0x10] sm:$0xff] }
 0x206   :  { %9016 = vperm.xlu1 %17305, %v18379_v23  }
 0x209   :  { %9360 = vperm.xlu0 %17304, %v18384_v24  }
 0x20a   :  { %9355 = vperm.xlu1 %17305, %v18387_v25  }
 0x20d   :  { %9365 = vperm.xlu0 %17304, %v2519_v26   ;;  %v1502_v26 = vld [vmem:[#allocation2] sm:$0xff] }
 0x20e   :  { %9482 = vperm.xlu1 %17305, %v2646_v27  }
 0x211   :  { %9370 = vperm.xlu0 %17304, %v2520_v28  }
 0x212   :  { %9487 = vperm.xlu1 %17305, %v2647_v29  }
 0x215   :  { %9831 = vperm.xlu0 %17304, %v2991_v30  }
 0x216   :  { %9826 = vperm.xlu1 %17305, %v2990_v31  }
 0x219   :  { %9836 = vperm.xlu0 %17304, %v2992_v32  }
 0x21a   :  { %9953 = vperm.xlu1 %17305, %v3119_v33  }
 0x21c   :  { %v1103_v5 = vpop.permute.xlu0 %1102 }
 0x21d   :  { %9841 = vperm.xlu0 %17304, %v2993_v34   ;;  %v1113_v6 = vpop.permute.xlu1 %1112 }
 0x21e   :  { %9958 = vperm.xlu1 %17305, %v3120_v35  }
 0x220   :  { %v1108_v7 = vpop.permute.xlu0 %1107 }
 0x221   :  { %10298 = vperm.xlu0 %17304, %v3462_v36   ;;  %v1118_v12 = vpop.permute.xlu1 %1117 }
 0x222   :  { %10293 = vperm.xlu1 %17305, %v3461_v37  }
 0x225   :  { %10766 = vperm.xlu0 %17304, %v3939_v38   ;;  %v1528_v48 = vpop.permute.xlu1 %1527 }
 0x226   :  { %10771 = vperm.xlu1 %17305, %v3940_v39   ;;  %v1503_v39 = vld [vmem:[#allocation2 + $0x8] sm:$0xff] }
 0x229   :  { %10862 = vperm.xlu0 %17304, %v4036_v40   ;;  %v1504_v40 = vld [vmem:[#allocation2 + $0x10] sm:$0xff] }
 0x22a   :  { %11173 = vperm.xlu1 %17305, %v4348_v41   ;;  %v1505_v41 = vld [vmem:[#allocation2 + $0x18] sm:$0xff] }
 0x22d   :  { %11178 = vperm.xlu0 %17304, %v4349_v42   ;;  %v1630_v42 = vld [vmem:[#allocation7 + $0x8] sm:$0xff] }
 0x22e   :  { %11269 = vperm.xlu1 %17305, %v4445_v43   ;;  %v1628_v43 = vld [vmem:[#allocation7] sm:$0xff] }
 0x231   :  { %11580 = vperm.xlu0 %17304, %v4757_v44  }
 0x232   :  { %11585 = vperm.xlu1 %17305, %v4758_v45   ;;  %v1523_v45 = vpop.permute.xlu0 %1522 }
 0x235   :  { %11676 = vperm.xlu0 %17304, %v4854_v46  }
 0x236   :  { %12281 = vperm.xlu1 %17305, %v12278_v49  }
 0x257   :  { %v15486_v50 = vpop.f32.mrf.mxu1  ;;  %v15496_v51 = vpop.f32.mrf.mxu0 }
 0x259   :  { %v621_v52 = vpop.f32.mrf.mxu1  ;;  %v775_v53 = vpop.f32.mrf.mxu0 }
 0x25b   :  { %v15491_v54 = vpop.f32.mrf.mxu1  ;;  %v15506_v55 = vpop.f32.mrf.mxu0 }
 0x25d   :  { %v698_v56 = vpop.f32.mrf.mxu1  ;;  %v929_v57 = vpop.f32.mrf.mxu0 }
 0x25f   :  { %v15501_v58 = vpop.f32.mrf.mxu1  ;;  %v15516_v59 = vpop.f32.mrf.mxu0 }
 0x260   :  { %15517 = vmatprep.subr.mxu1 %v15516_v59 }
 0x261   :  { %v852_v60 = vpop.f32.mrf.mxu1  ;;  %v1083_v61 = vpop.f32.mrf.mxu0  ;;  %15518 = vmatpush3.msra.mxu1 %v15516_v59 }
 0x262   :  { %15519 = vmatprep.subr.mxu1 %v1083_v61 }
 0x263   :  { %v15511_v62 = vpop.f32.mrf.mxu1  ;;  %15520 = vmatpush3.msra.mxu1 %v1083_v61 }
 0x264   :  { %15521 = vmatprep.subr.mxu1 %v15511_v62 }
 0x265   :  { %v1006_v63 = vpop.f32.mrf.mxu1  ;;  %15522 = vmatpush3.msra.mxu1 %v15511_v62 }
 0x266   :  { %15523 = vmatprep.subr.mxu1 %v1006_v63 }
 0x267   :  { %15524 = vmatpush3.msra.mxu1 %v1006_v63 }
 0x268   :  { %15525 = vmatprep.subr.mxu1 %v15506_v55 }
 0x269   :  { %15526 = vmatpush3.msra.mxu1 %v15506_v55 }
 0x26a   :  { %15527 = vmatprep.subr.mxu1 %v929_v57 }
 0x26b   :  { %15528 = vmatpush3.msra.mxu1 %v929_v57  ;;  %v1799_v57 = vld [vmem:[#allocation11] sm:$0xff] }
 0x26c   :  { %15529 = vmatprep.subr.mxu1 %v15501_v58 }
 0x26d   :  { %15530 = vmatpush3.msra.mxu1 %v15501_v58  ;;  %v1885_v58 = vld [vmem:[#allocation11 + $0x18] sm:$0xff] }
 0x26e   :  { %15531 = vmatprep.subr.mxu1 %v852_v60 }
 0x26f   :  { %15532 = vmatpush3.msra.mxu1 %v852_v60 }
 0x270   :  { %15533 = vmatprep.subr.mxu1 %v15496_v51 }
 0x271   :  { %15534 = vmatpush3.msra.mxu1 %v15496_v51  ;;  %v1513_v51 = vpop.permute.xlu0 %1512 }
 0x272   :  { %15535 = vmatprep.subr.mxu1 %v775_v53 }
 0x273   :  { %15536 = vmatpush3.msra.mxu1 %v775_v53 }
 0x274   :  { %15537 = vmatprep.subr.mxu1 %v15491_v54 }
 0x275   :  { %15538 = vmatpush3.msra.mxu1 %v15491_v54  ;;  %v1518_v54 = vpop.permute.xlu1 %1517 }
 0x276   :  { %15539 = vmatprep.subr.mxu1 %v698_v56 }
 0x277   :  { %15540 = vmatpush3.msra.mxu1 %v698_v56  ;;  %v1800_v56 = vld [vmem:[#allocation11 + $0x8] sm:$0xff] }
 0x278   :  { %15541 = vmatprep.subr.mxu1 %v15486_v50 }
 0x279   :  { %15542 = vmatpush3.msra.mxu1 %v15486_v50 }
 0x27a   :  { %15543 = vmatprep.subr.mxu1 %v621_v52 }
 0x27b   :  { %15544 = vmatpush3.msra.mxu1 %v621_v52 }
 0x27c   :  { %15546 = vmatmul.mubr.msk.f32.vlgmr.msra.gmra.mxu1 %vm1120_vm1, %v1093_v0  ;;  %15605 = vmatprep.subr.mxu1 %v1630_v42 }
 0x27d   :  { %15548 = vmatprep.mubr.msk.f32.mxu1 %vm1120_vm1, %v1094_v1  ;;  %15606 = vmatpush3.msra.mxu1 %v1630_v42 }
 0x27e   :  { %15610 = vmatprep.subr.mxu1 %v1628_v43 }
 0x280   :  { %15549 = vmatmul.mubr.msk.f32.gmra.mxu1 %vm1120_vm1, %v1095_v2 }
 0x33c   :  { %v15547_v8 = vpop.f32.mrf.mxu1 }
 0x33d   :  { %v1205_v9 = vadd.f32 %v15547_v8, %v1108_v7  ;;  %v1962_v7 = vld [vmem:[#allocation11 + $0x20] sm:$0xff]  ;;  %v2039_v8 = vld [vmem:[#allocation8] sm:$0xff] }
 0x33e   :  { %v1199_v10 = vpop.f32.mrf.mxu1 }
 0x33f   :  { %v1200_v11 = vadd.f32 %v1199_v10, %v1103_v5  ;;  %v1223_v13 = vmul.f32 0.2, %v1205_v9  ;;  %vm1219_vm2 = vcmp.gt.f32.partialorder %v1205_v9, 0.0  ;;  %v1884_v5 = vld [vmem:[#allocation11 + $0x10] sm:$0xff] }
 0x340   :  { %v15550_v14 = vpop.f32.mrf.mxu1 }
 0x341   :  { %v1222_v15 = vmul.f32 0.2, %v1200_v11  ;;  %v1215_v16 = vadd.f32 %v15550_v14, %v1118_v12  ;;  %vm1218_vm3 = vcmp.gt.f32.partialorder %v1200_v11, 0.0  ;;  %v1227_v20 = vsel %vm1219_vm2, %v1205_v9, %v1223_v13 }
 0x342   :  { %v1209_v17 = vpop.f32.mrf.mxu1 }
 0x343   :  { %v1210_v18 = vadd.f32 %v1209_v17, %v1113_v6  ;;  %v1226_v19 = vsel %vm1218_vm3, %v1200_v11, %v1222_v15  ;;  %v1225_v21 = vmul.f32 0.2, %v1215_v16  ;;  %vm1221_vm4 = vcmp.gt.f32.partialorder %v1215_v16, 0.0  ;;  %v1963_v6 = vld [vmem:[#allocation11 + $0x28] sm:$0xff]  ;;  %v2040_v15 = vld [vmem:[#allocation8 + $0x8] sm:$0xff] }
 0x344   :  { %15553 = vmatprep.mubr.msk.f32.mxu0 %vm548_vm0, %v1226_v19  ;;  %v2042_v17 = vld [vmem:[#allocation8 + $0x18] sm:$0xff] }
 0x345   :  { %v1224_v23 = vmul.f32 0.2, %v1210_v18  ;;  %15554 = vmatmul.mubr.msk.f32.vlgmr.msra.gmra.mxu0 %vm548_vm0, %v1227_v20  ;;  %vm1220_vm5 = vcmp.gt.f32.partialorder %v1210_v18, 0.0  ;;  %v1229_v25 = vsel %vm1221_vm4, %v1215_v16, %v1225_v21  ;;  %v2041_v16 = vld [vmem:[#allocation8 + $0x10] sm:$0xff] }
 0x346   :  { %15560 = vmatpush3.msra.mxu0 %v1329_v4 }
 0x347   :  { %v1228_v24 = vsel %vm1220_vm5, %v1210_v18, %v1224_v23  ;;  %15567 = vmatprep.subr.mxu0 %v1416_v22  ;;  %v2165_v18 = vld [vmem:[#allocation10] sm:$0xff] }
 0x348   :  { %15556 = vmatprep.mubr.msk.f32.mxu0 %vm548_vm0, %v1228_v24 }
 0x349   :  { %15557 = vmatmul.mubr.msk.f32.gmra.mxu0 %vm548_vm0, %v1229_v25 }
 0x34a   :  { %15561 = vmatprep.mubr.msk.f32.mxu0 %vm548_vm0, %v1226_v19 }
 0x34d   :  { %15562 = vmatmul.mubr.msk.f32.vlgmr.msra.gmra.mxu0 %vm548_vm0, %v1227_v20 }
 0x34e   :  { %15564 = vmatprep.mubr.msk.f32.mxu0 %vm548_vm0, %v1228_v24  ;;  %15568 = vmatpush3.msra.mxu0 %v1416_v22  ;;  %v2050_v22 = vpop.permute.xlu1 %2049 }
 0x351   :  { %15565 = vmatmul.mubr.msk.f32.gmra.mxu0 %vm548_vm0, %v1229_v25 }
 0x352   :  { %15569 = vmatprep.mubr.msk.f32.mxu0 %vm548_vm0, %v1226_v19  ;;  %v2055_v19 = vpop.permute.xlu0 %2054 }
 0x355   :  { %15570 = vmatmul.mubr.msk.f32.vlgmr.msra.gmra.mxu0 %vm548_vm0, %v1227_v20 }
 0x356   :  { %15572 = vmatprep.mubr.msk.f32.mxu0 %vm548_vm0, %v1228_v24 }
 0x359   :  { %15573 = vmatmul.mubr.msk.f32.gmra.mxu0 %vm548_vm0, %v1229_v25 }
 0x35a   :  { %15599 = vmatprep.mubr.msk.f32.mxu0 %vm1530_vm6, %v1502_v26 }
 0x405   :  { %v15555_v27 = vpop.f32.mrf.mxu0 }
 0x407   :  { %v1309_v28 = vpop.f32.mrf.mxu0 }
 0x409   :  { %v15558_v29 = vpop.f32.mrf.mxu0 }
 0x40b   :  { %v1319_v30 = vpop.f32.mrf.mxu0 }
 0x40d   :  { %v15563_v31 = vpop.f32.mrf.mxu0 }
 0x40f   :  { %v1396_v32 = vpop.f32.mrf.mxu0 }
 0x411   :  { %v15566_v33 = vpop.f32.mrf.mxu0 }
 0x413   :  { %v1406_v34 = vpop.f32.mrf.mxu0 }
 0x415   :  { %v15571_v35 = vpop.f32.mrf.mxu0 }
 0x417   :  { %v1483_v36 = vpop.f32.mrf.mxu0 }
 0x419   :  { %v15574_v37 = vpop.f32.mrf.mxu0 }
 0x41a   :  { %15575 = vmatprep.subr.mxu0 %v15574_v37 }
 0x41b   :  { %v1493_v38 = vpop.f32.mrf.mxu0  ;;  %15576 = vmatpush3.msra.mxu0 %v15574_v37 }
 0x41c   :  { %15577 = vmatprep.subr.mxu0 %v1493_v38 }
 0x41d   :  { %15578 = vmatpush3.msra.mxu0 %v1493_v38 }
 0x41e   :  { %15579 = vmatprep.subr.mxu0 %v15571_v35 }
 0x41f   :  { %15580 = vmatpush3.msra.mxu0 %v15571_v35 }
 0x420   :  { %15581 = vmatprep.subr.mxu0 %v1483_v36 }
 0x421   :  { %15582 = vmatpush3.msra.mxu0 %v1483_v36 }
 0x422   :  { %15583 = vmatprep.subr.mxu0 %v15566_v33 }
 0x423   :  { %15584 = vmatpush3.msra.mxu0 %v15566_v33  ;;  %v2060_v33 = vpop.permute.xlu0 %2059 }
 0x424   :  { %15585 = vmatprep.subr.mxu0 %v1406_v34 }
 0x425   :  { %15586 = vmatpush3.msra.mxu0 %v1406_v34  ;;  %v2178_v34 = vpop.permute.xlu1 %2177 }
 0x426   :  { %15587 = vmatprep.subr.mxu0 %v15563_v31 }
 0x427   :  { %15588 = vmatpush3.msra.mxu0 %v15563_v31  ;;  %v2274_v31 = vld [vmem:[#allocation16] sm:$0xff]  ;;  %v2065_v36 = vpop.permute.xlu0 %2064 }
 0x428   :  { %15589 = vmatprep.subr.mxu0 %v1396_v32 }
 0x429   :  { %15590 = vmatpush3.msra.mxu0 %v1396_v32  ;;  %v2359_v32 = vld [vmem:[#allocation16 + $0x18] sm:$0xff]  ;;  %v2183_v37 = vpop.permute.xlu1 %2182 }
 0x42a   :  { %15591 = vmatprep.subr.mxu0 %v15558_v29 }
 0x42b   :  { %15592 = vmatpush3.msra.mxu0 %v15558_v29  ;;  %v2166_v29 = vld [vmem:[#allocation10 + $0x8] sm:$0xff] }
 0x42c   :  { %15593 = vmatprep.subr.mxu0 %v1319_v30 }
 0x42d   :  { %15594 = vmatpush3.msra.mxu0 %v1319_v30  ;;  %v2275_v30 = vld [vmem:[#allocation16 + $0x8] sm:$0xff] }
 0x42e   :  { %15595 = vmatprep.subr.mxu0 %v15555_v27 }
 0x42f   :  { %15596 = vmatpush3.msra.mxu0 %v15555_v27 }
 0x430   :  { %15597 = vmatprep.subr.mxu0 %v1309_v28 }
 0x431   :  { %15598 = vmatpush3.msra.mxu0 %v1309_v28 }
 0x432   :  { %15600 = vmatmul.mubr.msk.f32.vlgmr.msra.gmra.mxu0 %vm1530_vm6, %v1503_v39 }
 0x433   :  { %15602 = vmatprep.mubr.msk.f32.mxu0 %vm1530_vm6, %v1504_v40 }
 0x436   :  { %15603 = vmatmul.mubr.msk.f32.gmra.mxu0 %vm1530_vm6, %v1505_v41 }
 0x437   :  { %15652 = vmatprep.mubr.msk.f32.mxu0 %vm2067_vm10, %v2039_v8 }
 0x4f2   :  { %v15601_v44 = vpop.f32.mrf.mxu0 }
 0x4f3   :  { %v1615_v55 = vadd.f32 %v15601_v44, %v1518_v54  ;;  %v2513_v54 = vld [vmem:[#allocation13] sm:$0xff] }
 0x4f4   :  { %v1609_v46 = vpop.f32.mrf.mxu0 }
 0x4f5   :  { %v1610_v53 = vadd.f32 %v1609_v46, %v1513_v51  ;;  %v2358_v51 = vld [vmem:[#allocation16 + $0x10] sm:$0xff] }
 0x4f6   :  { %v15604_v47 = vpop.f32.mrf.mxu0 }
 0x4f7   :  { %v1625_v52 = vadd.f32 %v15604_v47, %v1528_v48 }
 0x4f8   :  { %v1619_v49 = vpop.f32.mrf.mxu0 }
 0x4f9   :  { %v1620_v50 = vadd.f32 %v1619_v49, %v1523_v45 }
 0x4fb   :  { %15607 = vmatprep.mubr.msk.f32.mxu1 %vm548_vm0, %v1620_v50 }
 0x4fc   :  { %15608 = vmatmul.mubr.msk.f32.vlgmr.msra.gmra.mxu1 %vm548_vm0, %v1625_v52  ;;  %v2437_v52 = vld [vmem:[#allocation16 + $0x28] sm:$0xff] }
 0x4fd   :  { %15612 = vmatprep.mubr.msk.f32.mxu1 %vm548_vm0, %v1610_v53  ;;  %15611 = vmatpush3.msra.mxu1 %v1628_v43  ;;  %v2436_v53 = vld [vmem:[#allocation16 + $0x20] sm:$0xff] }
 0x4fe   :  { %15615 = vmatprep.subr.mxu1 %v1800_v56 }
 0x500   :  { %15613 = vmatmul.mubr.msk.f32.vlgmr.msra.gmra.mxu1 %vm548_vm0, %v1615_v55 }
 0x501   :  { %15616 = vmatpush3.msra.mxu1 %v1800_v56 }
 0x502   :  { %15617 = vmatprep.subr.mxu1 %v1799_v57 }
 0x503   :  { %15618 = vmatpush3.msra.mxu1 %v1799_v57 }
 0x504   :  { %15622 = vmatprep.subr.mxu1 %v1885_v58 }
 0x5bc   :  { %v15609_v59 = vpop.f32.mrf.mxu1 }
 0x5be   :  { %v1703_v60 = vpop.f32.mrf.mxu1 }
 0x5c0   :  { %v15614_v61 = vpop.f32.mrf.mxu1 }
 0x5c1   :  { %v1790_v62 = vadd.f32 %v15614_v61, %v15609_v59  ;;  %v2514_v61 = vld [vmem:[#allocation13 + $0x8] sm:$0xff] }
 0x5c2   :  { %v1784_v63 = vpop.f32.mrf.mxu1 }
 0x5c3   :  { %v1785_v0 = vadd.f32 %v1784_v63, %v1703_v60  ;;  %15636 = vmatprep.subr.mxu0 %v1790_v62  ;;  %v1796_v1 = vmul.f32 0.2, %v1790_v62  ;;  %vm1794_vm9 = vcmp.gt.f32.partialorder %v1790_v62, 0.0  ;;  %v2516_v63 = vld [vmem:[#allocation13 + $0x18] sm:$0xff] }
 0x5c4   :  { %15637 = vmatpush3.msra.mxu0 %v1790_v62 }
 0x5c5   :  { %15638 = vmatprep.subr.mxu0 %v1785_v0  ;;  %vm1793_vm7 = vcmp.gt.f32.partialorder %v1785_v0, 0.0  ;;  %v1795_v2 = vmul.f32 0.2, %v1785_v0  ;;  %v1798_v4 = vsel %vm1794_vm9, %v1790_v62, %v1796_v1  ;;  %v2515_v62 = vld [vmem:[#allocation13 + $0x10] sm:$0xff]  ;;  %v2529_v1 = vpop.permute.xlu0 %2528 }
 0x5c6   :  { %15639 = vmatpush3.msra.mxu0 %v1785_v0 }
 0x5c7   :  { %v1797_v3 = vsel %vm1793_vm7, %v1785_v0, %v1795_v2  ;;  %v2638_v0 = vld [vmem:[#allocation14] sm:$0xff] }
 0x5c8   :  { %15619 = vmatprep.mubr.msk.f32.mxu1 %vm1801_vm8, %v1797_v3 }
 0x5c9   :  { %15620 = vmatmul.mubr.msk.f32.vlgmr.msra.gmra.mxu1 %vm1801_vm8, %v1798_v4 }
 0x5ca   :  { %15623 = vmatpush3.msra.mxu1 %v1885_v58  ;;  %15626 = vmatprep.mubr.msk.f32.mxu1 %vm1801_vm8, %v1797_v3 }
 0x5cb   :  { %15624 = vmatprep.subr.mxu1 %v1884_v5 }
 0x5cc   :  { %15625 = vmatpush3.msra.mxu1 %v1884_v5 }
 0x5cd   :  { %15627 = vmatmul.mubr.msk.f32.vlgmr.msra.gmra.mxu1 %vm1801_vm8, %v1798_v4  ;;  %15629 = vmatprep.subr.mxu1 %v1963_v6 }
 0x5ce   :  { %15630 = vmatpush3.msra.mxu1 %v1963_v6  ;;  %15633 = vmatprep.mubr.msk.f32.mxu1 %vm1801_vm8, %v1797_v3 }
 0x5cf   :  { %15631 = vmatprep.subr.mxu1 %v1962_v7 }
 0x5d0   :  { %15632 = vmatpush3.msra.mxu1 %v1962_v7 }
 0x5d1   :  { %15634 = vmatmul.mubr.msk.f32.vlgmr.msra.gmra.mxu1 %vm1801_vm8, %v1798_v4  ;;  %v2524_v4 = vpop.permute.xlu1 %2523 }
 0x5d2   :  { %15662 = vmatprep.mubr.msk.f32.mxu1 %vm1801_vm8, %v2165_v18 }
 0x689   :  { %v15621_v9 = vpop.f32.mrf.mxu1 }
 0x68b   :  { %v1874_v10 = vpop.f32.mrf.mxu1 }
 0x68d   :  { %v15628_v11 = vpop.f32.mrf.mxu1 }
 0x68f   :  { %v1952_v12 = vpop.f32.mrf.mxu1 }
 0x691   :  { %v15635_v13 = vpop.f32.mrf.mxu1 }
 0x692   :  { %15640 = vmatprep.subr.mxu0 %v15635_v13 }
 0x693   :  { %v2030_v14 = vpop.f32.mrf.mxu1  ;;  %15641 = vmatpush3.msra.mxu0 %v15635_v13  ;;  %v2747_v13 = vld [vmem:[#allocation20] sm:$0xff] }
 0x694   :  { %15642 = vmatprep.subr.mxu0 %v2030_v14 }
 0x695   :  { %15643 = vmatpush3.msra.mxu0 %v2030_v14  ;;  %v2832_v14 = vld [vmem:[#allocation20 + $0x18] sm:$0xff] }
 0x696   :  { %15644 = vmatprep.subr.mxu0 %v15628_v11 }
 0x697   :  { %15645 = vmatpush3.msra.mxu0 %v15628_v11  ;;  %v2639_v11 = vld [vmem:[#allocation14 + $0x8] sm:$0xff] }
 0x698   :  { %15646 = vmatprep.subr.mxu0 %v1952_v12 }
 0x699   :  { %15647 = vmatpush3.msra.mxu0 %v1952_v12  ;;  %v2748_v12 = vld [vmem:[#allocation20 + $0x8] sm:$0xff] }
 0x69a   :  { %15648 = vmatprep.subr.mxu0 %v15621_v9 }
 0x69b   :  { %15649 = vmatpush3.msra.mxu0 %v15621_v9 }
 0x69c   :  { %15650 = vmatprep.subr.mxu0 %v1874_v10 }
 0x69d   :  { %15651 = vmatpush3.msra.mxu0 %v1874_v10 }
 0x69e   :  { %15653 = vmatmul.mubr.msk.f32.vlgmr.msra.gmra.mxu0 %vm2067_vm10, %v2040_v15  ;;  %v2534_v15 = vpop.permute.xlu0 %2533 }
 0x69f   :  { %15655 = vmatprep.mubr.msk.f32.mxu0 %vm2067_vm10, %v2041_v16  ;;  %v2651_v16 = vpop.permute.xlu1 %2650 }
 0x6a2   :  { %15656 = vmatmul.mubr.msk.f32.gmra.mxu0 %vm2067_vm10, %v2042_v17  ;;  %v2539_v18 = vpop.permute.xlu0 %2538 }
 0x6a3   :  { %15702 = vmatprep.mubr.msk.f32.mxu0 %vm2067_vm10, %v2513_v54 }
 0x75e   :  { %v15654_v20 = vpop.f32.mrf.mxu0 }
 0x75f   :  { %v2152_v21 = vadd.f32 %v15654_v20, %v2055_v19  ;;  %v2656_v19 = vpop.permute.xlu1 %2655 }
 0x760   :  { %v2146_v23 = vpop.f32.mrf.mxu0 }
 0x761   :  { %v2170_v24 = vmul.f32 0.2, %v2152_v21  ;;  %v2147_v25 = vadd.f32 %v2146_v23, %v2050_v22  ;;  %vm2168_vm11 = vcmp.gt.f32.partialorder %v2152_v21, 0.0 }
 0x762   :  { %v15657_v35 = vpop.f32.mrf.mxu0 }
 0x763   :  { %v2172_v26 = vsel %vm2168_vm11, %v2152_v21, %v2170_v24  ;;  %vm2167_vm12 = vcmp.gt.f32.partialorder %v2147_v25, 0.0  ;;  %v2169_v27 = vmul.f32 0.2, %v2147_v25  ;;  %v2162_v40 = vadd.f32 %v15657_v35, %v2065_v36  ;;  %v2909_v35 = vld [vmem:[#allocation20 + $0x20] sm:$0xff]  ;;  %v2986_v36 = vld [vmem:[#allocation17] sm:$0xff] }
 0x764   :  { %15658 = vmatprep.subr.mxu1 %v2172_v26  ;;  %v2156_v38 = vpop.f32.mrf.mxu0 }
 0x765   :  { %15659 = vmatpush3.msra.mxu1 %v2172_v26  ;;  %v2171_v28 = vsel %vm2167_vm12, %v2147_v25, %v2169_v27  ;;  %v2157_v43 = vadd.f32 %v2156_v38, %v2060_v33  ;;  %v2831_v33 = vld [vmem:[#allocation20 + $0x10] sm:$0xff]  ;;  %vm3473_vm12 = vcmask 392192  }
 0x766   :  { %15660 = vmatprep.subr.mxu1 %v2171_v28 }
 0x767   :  { %15661 = vmatpush3.msra.mxu1 %v2171_v28 }
 0x768   :  { %15663 = vmatmul.mubr.msk.f32.vlgmr.msra.gmra.mxu1 %vm1801_vm8, %v2166_v29  ;;  %15665 = vmatprep.subr.mxu1 %v2275_v30 }
 0x769   :  { %15666 = vmatpush3.msra.mxu1 %v2275_v30 }
 0x76a   :  { %15667 = vmatprep.subr.mxu1 %v2274_v31 }
 0x76b   :  { %15668 = vmatpush3.msra.mxu1 %v2274_v31 }
 0x76c   :  { %15672 = vmatprep.subr.mxu1 %v2359_v32 }
 0x828   :  { %v15664_v39 = vpop.f32.mrf.mxu1 }
 0x829   :  { %v2263_v41 = vadd.f32 %v15664_v39, %v2183_v37 }
 0x82a   :  { %v2257_v42 = vpop.f32.mrf.mxu1 }
 0x82b   :  { %v2267_v44 = vadd.f32 %v2263_v41, %v2162_v40  ;;  %v2258_v45 = vadd.f32 %v2257_v42, %v2178_v34  ;;  %v2910_v34 = vld [vmem:[#allocation20 + $0x28] sm:$0xff] }
 0x82d   :  { %v2266_v46 = vadd.f32 %v2258_v45, %v2157_v43  ;;  %15686 = vmatprep.subr.mxu0 %v2267_v44  ;;  %v2271_v47 = vmul.f32 0.2, %v2267_v44  ;;  %vm2269_vm14 = vcmp.gt.f32.partialorder %v2267_v44, 0.0  ;;  %v2987_v43 = vld [vmem:[#allocation17 + $0x8] sm:$0xff]  ;;  %v2989_v45 = vld [vmem:[#allocation17 + $0x18] sm:$0xff] }
 0x82e   :  { %15687 = vmatpush3.msra.mxu0 %v2267_v44 }
 0x82f   :  { %15688 = vmatprep.subr.mxu0 %v2266_v46  ;;  %vm2268_vm13 = vcmp.gt.f32.partialorder %v2266_v46, 0.0  ;;  %v2270_v48 = vmul.f32 0.2, %v2266_v46  ;;  %v2273_v50 = vsel %vm2269_vm14, %v2267_v44, %v2271_v47  ;;  %v2988_v44 = vld [vmem:[#allocation17 + $0x10] sm:$0xff]  ;;  %v3002_v47 = vpop.permute.xlu0 %3001 }
 0x830   :  { %15689 = vmatpush3.msra.mxu0 %v2266_v46 }
 0x831   :  { %v2272_v49 = vsel %vm2268_vm13, %v2266_v46, %v2270_v48  ;;  %v3111_v46 = vld [vmem:[#allocation19] sm:$0xff]  ;;  %vm17960_vm13 = vmmov 0  }
 0x832   :  { %15669 = vmatprep.mubr.msk.f32.mxu1 %vm1801_vm8, %v2272_v49 }
 0x833   :  { %15670 = vmatmul.mubr.msk.f32.vlgmr.msra.gmra.mxu1 %vm1801_vm8, %v2273_v50 }
 0x834   :  { %15673 = vmatpush3.msra.mxu1 %v2359_v32  ;;  %15676 = vmatprep.mubr.msk.f32.mxu1 %vm1801_vm8, %v2272_v49 }
 0x835   :  { %15674 = vmatprep.subr.mxu1 %v2358_v51 }
 0x836   :  { %15675 = vmatpush3.msra.mxu1 %v2358_v51 }
 0x837   :  { %15677 = vmatmul.mubr.msk.f32.vlgmr.msra.gmra.mxu1 %vm1801_vm8, %v2273_v50  ;;  %15679 = vmatprep.subr.mxu1 %v2437_v52 }
 0x838   :  { %15680 = vmatpush3.msra.mxu1 %v2437_v52  ;;  %15683 = vmatprep.mubr.msk.f32.mxu1 %vm1801_vm8, %v2272_v49 }
 0x839   :  { %15681 = vmatprep.subr.mxu1 %v2436_v53 }
 0x83a   :  { %15682 = vmatpush3.msra.mxu1 %v2436_v53 }
 0x83b   :  { %15684 = vmatmul.mubr.msk.f32.vlgmr.msra.gmra.mxu1 %vm1801_vm8, %v2273_v50  ;;  %v2997_v50 = vpop.permute.xlu1 %2996 }
 0x83c   :  { %15712 = vmatprep.mubr.msk.f32.mxu1 %vm1801_vm8, %v2638_v0 }
 0x8f3   :  { %v15671_v55 = vpop.f32.mrf.mxu1 }
 0x8f5   :  { %v2348_v56 = vpop.f32.mrf.mxu1 }
 0x8f7   :  { %v15678_v57 = vpop.f32.mrf.mxu1 }
 0x8f9   :  { %v2426_v58 = vpop.f32.mrf.mxu1 }
 0x8fb   :  { %v15685_v59 = vpop.f32.mrf.mxu1 }
 0x8fc   :  { %15690 = vmatprep.subr.mxu0 %v15685_v59 }
 0x8fd   :  { %v2504_v60 = vpop.f32.mrf.mxu1  ;;  %15691 = vmatpush3.msra.mxu0 %v15685_v59  ;;  %v3220_v59 = vld [vmem:[#allocation23] sm:$0xff] }
 0x8fe   :  { %15692 = vmatprep.subr.mxu0 %v2504_v60 }
 0x8ff   :  { %15693 = vmatpush3.msra.mxu0 %v2504_v60  ;;  %v3305_v60 = vld [vmem:[#allocation23 + $0x18] sm:$0xff] }
 0x900   :  { %15694 = vmatprep.subr.mxu0 %v15678_v57 }
 0x901   :  { %15695 = vmatpush3.msra.mxu0 %v15678_v57  ;;  %v3112_v57 = vld [vmem:[#allocation19 + $0x8] sm:$0xff] }
 0x902   :  { %15696 = vmatprep.subr.mxu0 %v2426_v58 }
 0x903   :  { %15697 = vmatpush3.msra.mxu0 %v2426_v58  ;;  %v3221_v58 = vld [vmem:[#allocation23 + $0x8] sm:$0xff] }
 0x904   :  { %15698 = vmatprep.subr.mxu0 %v15671_v55 }
 0x905   :  { %15699 = vmatpush3.msra.mxu0 %v15671_v55 }
 0x906   :  { %15700 = vmatprep.subr.mxu0 %v2348_v56 }
 0x907   :  { %15701 = vmatpush3.msra.mxu0 %v2348_v56 }
 0x908   :  { %15703 = vmatmul.mubr.msk.f32.vlgmr.msra.gmra.mxu0 %vm2067_vm10, %v2514_v61  ;;  %v3007_v61 = vpop.permute.xlu0 %3006 }
 0x909   :  { %15705 = vmatprep.mubr.msk.f32.mxu0 %vm2067_vm10, %v2515_v62  ;;  %v3124_v62 = vpop.permute.xlu1 %3123 }
 0x90c   :  { %15706 = vmatmul.mubr.msk.f32.gmra.mxu0 %vm2067_vm10, %v2516_v63  ;;  %v3012_v0 = vpop.permute.xlu0 %3011 }
 0x90d   :  { %15752 = vmatprep.mubr.msk.f32.mxu0 %vm2067_vm10, %v2986_v36 }
 0x9c8   :  { %v15704_v2 = vpop.f32.mrf.mxu0 }
 0x9c9   :  { %v2625_v3 = vadd.f32 %v15704_v2, %v2529_v1  ;;  %v3129_v1 = vpop.permute.xlu1 %3128 }
 0x9ca   :  { %v2619_v5 = vpop.f32.mrf.mxu0 }
 0x9cb   :  { %v2643_v6 = vmul.f32 0.2, %v2625_v3  ;;  %v2620_v7 = vadd.f32 %v2619_v5, %v2524_v4  ;;  %vm2641_vm15 = vcmp.gt.f32.partialorder %v2625_v3, 0.0 }
 0x9cc   :  { %v15707_v17 = vpop.f32.mrf.mxu0 }
 0x9cd   :  { %v2645_v8 = vsel %vm2641_vm15, %v2625_v3, %v2643_v6  ;;  %vm2640_vm2 = vcmp.gt.f32.partialorder %v2620_v7, 0.0  ;;  %v2642_v9 = vmul.f32 0.2, %v2620_v7  ;;  %v2635_v22 = vadd.f32 %v15707_v17, %v2539_v18  ;;  %v3382_v17 = vld [vmem:[#allocation23 + $0x20] sm:$0xff]  ;;  %v3459_v18 = vld [vmem:[#allocation22] sm:$0xff] }
 0x9ce   :  { %15708 = vmatprep.subr.mxu1 %v2645_v8  ;;  %v2629_v20 = vpop.f32.mrf.mxu0  ;;  %vm3713_vm15 = vcmask 261120  }
 0x9cf   :  { %15709 = vmatpush3.msra.mxu1 %v2645_v8  ;;  %v2644_v10 = vsel %vm2640_vm2, %v2620_v7, %v2642_v9  ;;  %v2630_v25 = vadd.f32 %v2629_v20, %v2534_v15  ;;  %v3304_v15 = vld [vmem:[#allocation23 + $0x10] sm:$0xff] }
 0x9d0   :  { %15710 = vmatprep.subr.mxu1 %v2644_v10 }
 0x9d1   :  { %15711 = vmatpush3.msra.mxu1 %v2644_v10 }
 0x9d2   :  { %15713 = vmatmul.mubr.msk.f32.vlgmr.msra.gmra.mxu1 %vm1801_vm8, %v2639_v11  ;;  %15715 = vmatprep.subr.mxu1 %v2748_v12 }
 0x9d3   :  { %15716 = vmatpush3.msra.mxu1 %v2748_v12 }
 0x9d4   :  { %15717 = vmatprep.subr.mxu1 %v2747_v13 }
 0x9d5   :  { %15718 = vmatpush3.msra.mxu1 %v2747_v13 }
 0x9d6   :  { %15722 = vmatprep.subr.mxu1 %v2832_v14 }
 0xa92   :  { %v15714_v21 = vpop.f32.mrf.mxu1 }
 0xa93   :  { %v2736_v23 = vadd.f32 %v15714_v21, %v2656_v19  ;;  %v17959_v19 = vmov 0.0  }
 0xa94   :  { %v2730_v24 = vpop.f32.mrf.mxu1 }
 0xa95   :  { %v2740_v26 = vadd.f32 %v2736_v23, %v2635_v22  ;;  %v2731_v27 = vadd.f32 %v2730_v24, %v2651_v16  ;;  %v3383_v16 = vld [vmem:[#allocation23 + $0x28] sm:$0xff] }
 0xa97   :  { %v2739_v28 = vadd.f32 %v2731_v27, %v2630_v25  ;;  %15736 = vmatprep.subr.mxu0 %v2740_v26  ;;  %v2744_v29 = vmul.f32 0.2, %v2740_v26  ;;  %vm2742_vm4 = vcmp.gt.f32.partialorder %v2740_v26, 0.0  ;;  %v3559_v27 = vld [vmem:[#allocation25 + $0x18] sm:$0xff] }
 0xa98   :  { %15737 = vmatpush3.msra.mxu0 %v2740_v26 }
 0xa99   :  { %15738 = vmatprep.subr.mxu0 %v2739_v28  ;;  %vm2741_vm3 = vcmp.gt.f32.partialorder %v2739_v28, 0.0  ;;  %v2743_v30 = vmul.f32 0.2, %v2739_v28  ;;  %v2746_v32 = vsel %vm2742_vm4, %v2740_v26, %v2744_v29  ;;  %v3460_v26 = vld [vmem:[#allocation22 + $0x8] sm:$0xff]  ;;  %v3471_v29 = vpop.permute.xlu0 %3470 }
 0xa9a   :  { %15739 = vmatpush3.msra.mxu0 %v2739_v28 }
 0xa9b   :  { %v2745_v31 = vsel %vm2741_vm3, %v2739_v28, %v2743_v30  ;;  %v3558_v28 = vld [vmem:[#allocation25 + $0x10] sm:$0xff] }
 0xa9c   :  { %15719 = vmatprep.mubr.msk.f32.mxu1 %vm1801_vm8, %v2745_v31 }
 0xa9d   :  { %15720 = vmatmul.mubr.msk.f32.vlgmr.msra.gmra.mxu1 %vm1801_vm8, %v2746_v32 }
 0xa9e   :  { %15723 = vmatpush3.msra.mxu1 %v2832_v14  ;;  %15726 = vmatprep.mubr.msk.f32.mxu1 %vm1801_vm8, %v2745_v31 }
 0xa9f   :  { %15724 = vmatprep.subr.mxu1 %v2831_v33 }
 0xaa0   :  { %15725 = vmatpush3.msra.mxu1 %v2831_v33 }
 0xaa1   :  { %15727 = vmatmul.mubr.msk.f32.vlgmr.msra.gmra.mxu1 %vm1801_vm8, %v2746_v32  ;;  %15729 = vmatprep.subr.mxu1 %v2910_v34 }
 0xaa2   :  { %15730 = vmatpush3.msra.mxu1 %v2910_v34  ;;  %15733 = vmatprep.mubr.msk.f32.mxu1 %vm1801_vm8, %v2745_v31  ;;  %v3555_v34 = vld [vmem:[#allocation25] sm:$0xff] }
 0xaa3   :  { %15731 = vmatprep.subr.mxu1 %v2909_v35 }
 0xaa4   :  { %15732 = vmatpush3.msra.mxu1 %v2909_v35  ;;  %v3466_v35 = vpop.permute.xlu1 %3465 }
 0xaa5   :  { %15734 = vmatmul.mubr.msk.f32.vlgmr.msra.gmra.mxu1 %vm1801_vm8, %v2746_v32  ;;  %v3556_v32 = vld [vmem:[#allocation25 + $0x8] sm:$0xff] }
 0xaa6   :  { %15762 = vmatprep.mubr.msk.f32.mxu1 %vm1801_vm8, %v3111_v46 }
 0xb5d   :  { %v15721_v37 = vpop.f32.mrf.mxu1 }
 0xb5f   :  { %v2821_v38 = vpop.f32.mrf.mxu1 }
 0xb61   :  { %v15728_v39 = vpop.f32.mrf.mxu1 }
 0xb63   :  { %v2899_v40 = vpop.f32.mrf.mxu1 }
 0xb65   :  { %v15735_v41 = vpop.f32.mrf.mxu1 }
 0xb66   :  { %15740 = vmatprep.subr.mxu0 %v15735_v41 }
 0xb67   :  { %v2977_v42 = vpop.f32.mrf.mxu1  ;;  %15741 = vmatpush3.msra.mxu0 %v15735_v41  ;;  %v3789_v41 = vld [vmem:[#allocation29 + $0x28] sm:$0xff] }
 0xb68   :  { %15742 = vmatprep.subr.mxu0 %v2977_v42 }
 0xb69   :  { %15743 = vmatpush3.msra.mxu0 %v2977_v42  ;;  %v3710_v42 = vld [vmem:[#allocation29 + $0x8] sm:$0xff] }
 0xb6a   :  { %15744 = vmatprep.subr.mxu0 %v15728_v39 }
 0xb6b   :  { %15745 = vmatpush3.msra.mxu0 %v15728_v39  ;;  %v3790_v39 = vld [vmem:[#allocation29 + $0x30] sm:$0xff] }
 0xb6c   :  { %15746 = vmatprep.subr.mxu0 %v2899_v40 }
 0xb6d   :  { %15747 = vmatpush3.msra.mxu0 %v2899_v40  ;;  %v3711_v40 = vld [vmem:[#allocation29 + $0x10] sm:$0xff] }
 0xb6e   :  { %15748 = vmatprep.subr.mxu0 %v15721_v37 }
 0xb6f   :  { %15749 = vmatpush3.msra.mxu0 %v15721_v37  ;;  %v3791_v37 = vld [vmem:[#allocation29 + $0x38] sm:$0xff] }
 0xb70   :  { %15750 = vmatprep.subr.mxu0 %v2821_v38 }
 0xb71   :  { %15751 = vmatpush3.msra.mxu0 %v2821_v38  ;;  %v3712_v38 = vld [vmem:[#allocation29 + $0x18] sm:$0xff] }
 0xb72   :  { %15753 = vmatmul.mubr.msk.f32.vlgmr.msra.gmra.mxu0 %vm2067_vm10, %v2987_v43  ;;  %v3788_v43 = vld [vmem:[#allocation29 + $0x20] sm:$0xff] }
 0xb73   :  { %15755 = vmatprep.mubr.msk.f32.mxu0 %vm2067_vm10, %v2988_v44  ;;  %v3709_v44 = vld [vmem:[#allocation29] sm:$0xff] }
 0xb76   :  { %15756 = vmatmul.mubr.msk.f32.gmra.mxu0 %vm2067_vm10, %v2989_v45 }
 0xb77   :  { %15798 = vmatprep.mubr.msk.f32.mxu0 %vm3473_vm12, %v3459_v18 }
 0xc32   :  { %v15754_v48 = vpop.f32.mrf.mxu0 }
 0xc33   :  { %v3098_v49 = vadd.f32 %v15754_v48, %v3002_v47 }
 0xc34   :  { %v3092_v51 = vpop.f32.mrf.mxu0 }
 0xc35   :  { %v3116_v52 = vmul.f32 0.2, %v3098_v49  ;;  %v3093_v53 = vadd.f32 %v3092_v51, %v2997_v50  ;;  %vm3114_vm5 = vcmp.gt.f32.partialorder %v3098_v49, 0.0  ;;  %v3866_v51 = vld [vmem:[#allocation29 + $0x58] sm:$0xff] }
 0xc36   :  { %v15757_v63 = vpop.f32.mrf.mxu0 }
 0xc37   :  { %v3118_v54 = vsel %vm3114_vm5, %v3098_v49, %v3116_v52  ;;  %vm3113_vm7 = vcmp.gt.f32.partialorder %v3093_v53, 0.0  ;;  %v3115_v55 = vmul.f32 0.2, %v3093_v53  ;;  %v3108_v4 = vadd.f32 %v15757_v63, %v3012_v0  ;;  %v3938_v63 = vld [vmem:[#allocation26 + $0x8] sm:$0xff] }
 0xc38   :  { %15758 = vmatprep.subr.mxu1 %v3118_v54  ;;  %v3102_v2 = vpop.f32.mrf.mxu0 }
 0xc39   :  { %15759 = vmatpush3.msra.mxu1 %v3118_v54  ;;  %v3117_v56 = vsel %vm3113_vm7, %v3093_v53, %v3115_v55  ;;  %v3103_v7 = vadd.f32 %v3102_v2, %v3007_v61  ;;  %v3865_v53 = vld [vmem:[#allocation29 + $0x50] sm:$0xff]  ;;  %v3864_v54 = vld [vmem:[#allocation29 + $0x48] sm:$0xff]  ;;  %v3863_v55 = vld [vmem:[#allocation29 + $0x40] sm:$0xff] }
 0xc3a   :  { %15760 = vmatprep.subr.mxu1 %v3117_v56 }
 0xc3b   :  { %15761 = vmatpush3.msra.mxu1 %v3117_v56  ;;  %v3937_v56 = vld [vmem:[#allocation26] sm:$0xff] }
 0xc3c   :  { %15763 = vmatmul.mubr.msk.f32.vlgmr.msra.gmra.mxu1 %vm1801_vm8, %v3112_v57  ;;  %15765 = vmatprep.subr.mxu1 %v3221_v58 }
 0xc3d   :  { %15766 = vmatpush3.msra.mxu1 %v3221_v58 }
 0xc3e   :  { %15767 = vmatprep.subr.mxu1 %v3220_v59 }
 0xc3f   :  { %15768 = vmatpush3.msra.mxu1 %v3220_v59 }
 0xc40   :  { %15772 = vmatprep.subr.mxu1 %v3305_v60 }
 0xcfc   :  { %v15764_v3 = vpop.f32.mrf.mxu1 }
 0xcfd   :  { %v3209_v5 = vadd.f32 %v15764_v3, %v3129_v1  ;;  %v3944_v1 = vpop.permute.xlu0 %3943 }
 0xcfe   :  { %v3203_v6 = vpop.f32.mrf.mxu1 }
 0xcff   :  { %v3213_v8 = vadd.f32 %v3209_v5, %v3108_v4  ;;  %v3204_v9 = vadd.f32 %v3203_v6, %v3124_v62  ;;  %v4032_v5 = vld [vmem:[#allocation28] sm:$0xff] }
 0xd01   :  { %v3212_v10 = vadd.f32 %v3204_v9, %v3103_v7  ;;  %v3217_v11 = vmul.f32 0.2, %v3213_v8  ;;  %vm3215_vm9 = vcmp.gt.f32.partialorder %v3213_v8, 0.0  ;;  %v4200_v7 = vld [vmem:[#allocation34 + $0x38] sm:$0xff]  ;;  %v4199_v9 = vld [vmem:[#allocation34 + $0x30] sm:$0xff] }
 0xd03   :  { %vm3214_vm11 = vcmp.gt.f32.partialorder %v3212_v10, 0.0  ;;  %v3216_v12 = vmul.f32 0.2, %v3212_v10  ;;  %v3219_v14 = vsel %vm3215_vm9, %v3213_v8, %v3217_v11  ;;  %v4122_v8 = vld [vmem:[#allocation34 + $0x18] sm:$0xff]  ;;  %v4198_v11 = vld [vmem:[#allocation34 + $0x28] sm:$0xff] }
 0xd05   :  { %v3218_v13 = vsel %vm3214_vm11, %v3212_v10, %v3216_v12  ;;  %v4121_v10 = vld [vmem:[#allocation34 + $0x10] sm:$0xff]  ;;  %v4120_v12 = vld [vmem:[#allocation34 + $0x8] sm:$0xff]  ;;  %vm5471_vm11 = vcmask 457728  }
 0xd06   :  { %15769 = vmatprep.mubr.msk.f32.mxu1 %vm1801_vm8, %v3218_v13 }
 0xd07   :  { %15770 = vmatmul.mubr.msk.f32.vlgmr.msra.gmra.mxu1 %vm1801_vm8, %v3219_v14 }
 0xd08   :  { %15773 = vmatpush3.msra.mxu1 %v3305_v60  ;;  %15776 = vmatprep.mubr.msk.f32.mxu1 %vm1801_vm8, %v3218_v13 }
 0xd09   :  { %15774 = vmatprep.subr.mxu1 %v3304_v15 }
 0xd0a   :  { %15775 = vmatpush3.msra.mxu1 %v3304_v15  ;;  %v3949_v15 = vpop.permute.xlu1 %3948 }
 0xd0b   :  { %15777 = vmatmul.mubr.msk.f32.vlgmr.msra.gmra.mxu1 %vm1801_vm8, %v3219_v14  ;;  %15779 = vmatprep.subr.mxu1 %v3383_v16 }
 0xd0c   :  { %15780 = vmatpush3.msra.mxu1 %v3383_v16  ;;  %15783 = vmatprep.mubr.msk.f32.mxu1 %vm1801_vm8, %v3218_v13  ;;  %v4197_v13 = vld [vmem:[#allocation34 + $0x20] sm:$0xff]  ;;  %v4040_v16 = vpop.permute.xlu0 %4039 }
 0xd0d   :  { %15781 = vmatprep.subr.mxu1 %v3382_v17 }
 0xd0e   :  { %15782 = vmatpush3.msra.mxu1 %v3382_v17 }
 0xd0f   :  { %15784 = vmatmul.mubr.msk.f32.vlgmr.msra.gmra.mxu1 %vm1801_vm8, %v3219_v14  ;;  %15801 = vmatprep.subr.mxu1 %v17959_v19  ;;  %v4119_v14 = vld [vmem:[#allocation34] sm:$0xff] }
 0xd10   :  { %15802 = vmatpush3.msra.mxu1 %v3559_v27  ;;  %15805 = vmatprep.mubr.msk.f32.mxu1 %vm17960_vm13, %v17959_v19  ;;  %v4273_v27 = vld [vmem:[#allocation34 + $0x48] sm:$0xff] }
 0xd11   :  { %15803 = vmatprep.subr.mxu1 %v17959_v19 }
 0xd12   :  { %15804 = vmatpush3.msra.mxu1 %v3558_v28  ;;  %v4272_v28 = vld [vmem:[#allocation34 + $0x40] sm:$0xff] }
 0xd13   :  { %15808 = vmatprep.subr.mxu1 %v17959_v19 }
 0xdc7   :  { %v15771_v20 = vpop.f32.mrf.mxu1 }
 0xdc9   :  { %v3294_v21 = vpop.f32.mrf.mxu1 }
 0xdcb   :  { %v15778_v22 = vpop.f32.mrf.mxu1 }
 0xdcd   :  { %v3372_v23 = vpop.f32.mrf.mxu1 }
 0xdcf   :  { %v15785_v24 = vpop.f32.mrf.mxu1 }
 0xdd0   :  { %15786 = vmatprep.subr.mxu0 %v15785_v24 }
 0xdd1   :  { %v3450_v25 = vpop.f32.mrf.mxu1  ;;  %15787 = vmatpush3.msra.mxu0 %v15785_v24  ;;  %v4275_v24 = vld [vmem:[#allocation34 + $0x58] sm:$0xff] }
 0xdd2   :  { %15788 = vmatprep.subr.mxu0 %v3450_v25 }
 0xdd3   :  { %15789 = vmatpush3.msra.mxu0 %v3450_v25 }
 0xdd4   :  { %15790 = vmatprep.subr.mxu0 %v15778_v22 }
 0xdd5   :  { %15791 = vmatpush3.msra.mxu0 %v15778_v22 }
 0xdd6   :  { %15792 = vmatprep.subr.mxu0 %v3372_v23 }
 0xdd7   :  { %15793 = vmatpush3.msra.mxu0 %v3372_v23 }
 0xdd8   :  { %15794 = vmatprep.subr.mxu0 %v15771_v20 }
 0xdd9   :  { %15795 = vmatpush3.msra.mxu0 %v15771_v20 }
 0xdda   :  { %15796 = vmatprep.subr.mxu0 %v3294_v21 }
 0xddb   :  { %15797 = vmatpush3.msra.mxu0 %v3294_v21 }
 0xddc   :  { %15799 = vmatmul.mubr.msk.f32.vlgmr.msra.gmra.mxu0 %vm3473_vm12, %v3460_v26  ;;  %15815 = vmatprep.subr.mxu0 %v17959_v19  ;;  %v4274_v26 = vld [vmem:[#allocation34 + $0x50] sm:$0xff] }
 0xddd   :  { %15823 = vmatprep.mubr.msk.f32.mxu0 %vm17960_vm13, %v17959_v19  ;;  %15816 = vmatpush3.msra.mxu0 %v3712_v38  ;;  %v4353_v38 = vpop.permute.xlu1 %4352 }
 0xdde   :  { %15817 = vmatprep.subr.mxu0 %v17959_v19 }
 0xddf   :  { %15818 = vmatpush3.msra.mxu0 %v3711_v40 }
 0xde0   :  { %15819 = vmatprep.subr.mxu0 %v17959_v19 }
 0xde1   :  { %15820 = vmatpush3.msra.mxu0 %v3710_v42  ;;  %v4441_v42 = vld [vmem:[#allocation32] sm:$0xff] }
 0xde2   :  { %15821 = vmatprep.subr.mxu0 %v17959_v19 }
 0xde3   :  { %15822 = vmatpush3.msra.mxu0 %v3709_v44  ;;  %v4609_v44 = vld [vmem:[#allocation38 + $0x38] sm:$0xff] }
 0xde4   :  { %15837 = vmatprep.subr.mxu0 %v17959_v19 }
 0xe9c   :  { %v15800_v30 = vpop.f32.mrf.mxu0 }
 0xe9d   :  { %v3552_v31 = vadd.f32 %v15800_v30, %v3471_v29  ;;  %v4346_v29 = vld [vmem:[#allocation31] sm:$0xff] }
 0xe9e   :  { %v3546_v33 = vpop.f32.mrf.mxu0 }
 0xe9f   :  { %15806 = vmatmul.mubr.msk.f32.vlgmr.msra.gmra.mxu1 %vm1801_vm8, %v3552_v31  ;;  %v3547_v36 = vadd.f32 %v3546_v33, %v3466_v35 }
 0xea0   :  { %15809 = vmatpush3.msra.mxu1 %v3556_v32  ;;  %15812 = vmatprep.mubr.msk.f32.mxu1 %vm17960_vm13, %v17959_v19 }
 0xea1   :  { %15810 = vmatprep.subr.mxu1 %v17959_v19 }
 0xea2   :  { %15811 = vmatpush3.msra.mxu1 %v3555_v34 }
 0xea3   :  { %15813 = vmatmul.mubr.msk.f32.vlgmr.msra.gmra.mxu1 %vm1801_vm8, %v3547_v36  ;;  %15826 = vmatprep.subr.mxu1 %v17959_v19  ;;  %v4347_v36 = vld [vmem:[#allocation31 + $0x8] sm:$0xff] }
 0xea4   :  { %15834 = vmatprep.mubr.msk.f32.mxu1 %vm17960_vm13, %v17959_v19  ;;  %15827 = vmatpush3.msra.mxu1 %v3791_v37 }
 0xea5   :  { %15828 = vmatprep.subr.mxu1 %v17959_v19 }
 0xea6   :  { %15829 = vmatpush3.msra.mxu1 %v3790_v39 }
 0xea7   :  { %15830 = vmatprep.subr.mxu1 %v17959_v19 }
 0xea8   :  { %15831 = vmatpush3.msra.mxu1 %v3789_v41 }
 0xea9   :  { %15832 = vmatprep.subr.mxu1 %v17959_v19 }
 0xeaa   :  { %15833 = vmatpush3.msra.mxu1 %v3788_v43 }
 0xf5f   :  { %v3629_v45 = vpop.f32.mrf.mxu1 }
 0xf61   :  { %v15807_v46 = vpop.f32.mrf.mxu1 }
 0xf62   :  { %v4608_v46 = vld [vmem:[#allocation38 + $0x30] sm:$0xff] }
 0xf63   :  { %v3702_v47 = vpop.f32.mrf.mxu1 }
 0xf64   :  { %v3703_v48 = vadd.f32 %v3702_v47, %v3629_v45  ;;  %v4531_v45 = vld [vmem:[#allocation38 + $0x18] sm:$0xff]  ;;  %v4530_v47 = vld [vmem:[#allocation38 + $0x10] sm:$0xff] }
 0xf65   :  { %v15814_v49 = vpop.f32.mrf.mxu1 }
 0xf66   :  { %15848 = vmatprep.subr.mxu1 %v3703_v48  ;;  %vm3706_vm14 = vcmp.gt.f32.partialorder %v3703_v48, 0.0  ;;  %v3707_v50 = vmul.f32 0.2, %v3703_v48  ;;  %v4529_v49 = vld [vmem:[#allocation38 + $0x8] sm:$0xff] }
 0xf68   :  { %v3708_v52 = vsel %vm3706_vm14, %v3703_v48, %v3707_v50  ;;  %v4606_v50 = vld [vmem:[#allocation38 + $0x20] sm:$0xff]  ;;  %vm6772_vm14 = vcmask 1043456  }
 0xf69   :  { %15824 = vmatmul.mubr.msk.f32.vlgmr.msra.gmra.mxu0 %vm3713_vm15, %v3708_v52  ;;  %15835 = vmatmul.mubr.msk.f32.vlgmr.msra.gmra.mxu1 %vm3713_vm15, %v3708_v52 }
 0xf6a   :  { %15838 = vmatpush3.msra.mxu0 %v3866_v51  ;;  %15849 = vmatpush3.msra.mxu1 %v3703_v48  ;;  %v4607_v48 = vld [vmem:[#allocation38 + $0x28] sm:$0xff]  ;;  %v4528_v51 = vld [vmem:[#allocation38] sm:$0xff] }
 0xf6b   :  { %15839 = vmatprep.subr.mxu0 %v17959_v19  ;;  %15845 = vmatprep.mubr.msk.f32.mxu0 %vm17960_vm13, %v17959_v19 }
 0xf6c   :  { %15840 = vmatpush3.msra.mxu0 %v3865_v53  ;;  %15856 = vmatprep.mubr.msk.f32.mxu1 %vm3713_vm15, %v3937_v56  ;;  %v4449_v53 = vpop.permute.xlu1 %4448 }
 0xf6d   :  { %15841 = vmatprep.subr.mxu0 %v17959_v19 }
 0xf6e   :  { %15842 = vmatpush3.msra.mxu0 %v3864_v54 }
 0xf6f   :  { %15843 = vmatprep.subr.mxu0 %v17959_v19 }
 0xf70   :  { %15844 = vmatpush3.msra.mxu0 %v3863_v55 }
 0xf71   :  { %15846 = vmatmul.mubr.msk.f32.vlgmr.msra.gmra.mxu0 %vm3713_vm15, %v3708_v52  ;;  %15859 = vmatprep.subr.mxu0 %v17959_v19  ;;  %v4358_v52 = vpop.permute.xlu0 %4357 }
 0xf72   :  { %15861 = vmatprep.mubr.msk.f32.mxu0 %vm17960_vm13, %v17959_v19 }
0x1029   :  { %v3783_v57 = vpop.f32.mrf.mxu0  ;;  %v3858_v58 = vpop.f32.mrf.mxu1 }
0x102b   :  { %v15825_v59 = vpop.f32.mrf.mxu0  ;;  %v15836_v60 = vpop.f32.mrf.mxu1 }
0x102c   :  { %v4684_v60 = vld [vmem:[#allocation38 + $0x58] sm:$0xff] }
0x1031   :  { %v3933_v61 = vpop.f32.mrf.mxu0 }
0x1032   :  { %15850 = vmatprep.subr.mxu1 %v3933_v61 }
0x1033   :  { %v15847_v62 = vpop.f32.mrf.mxu0  ;;  %15851 = vmatpush3.msra.mxu1 %v3933_v61 }
0x1034   :  { %15852 = vmatprep.subr.mxu1 %v3858_v58  ;;  %v4683_v62 = vld [vmem:[#allocation38 + $0x50] sm:$0xff] }
0x1035   :  { %15853 = vmatpush3.msra.mxu1 %v3858_v58 }
0x1036   :  { %15854 = vmatprep.subr.mxu1 %v3783_v57 }
0x1037   :  { %15855 = vmatpush3.msra.mxu1 %v3783_v57 }
0x1038   :  { %15857 = vmatmul.mubr.msk.f32.vlgmr.msra.gmra.mxu1 %vm3713_vm15, %v3938_v63  ;;  %15864 = vmatprep.subr.mxu1 %v17959_v19  ;;  %v4682_v63 = vld [vmem:[#allocation38 + $0x48] sm:$0xff] }
0x1039   :  { %15872 = vmatprep.mubr.msk.f32.mxu1 %vm17960_vm13, %v17959_v19  ;;  %15865 = vmatpush3.msra.mxu1 %v4122_v8  ;;  %v4756_v8 = vld [vmem:[#allocation35 + $0x8] sm:$0xff] }
0x103a   :  { %15866 = vmatprep.subr.mxu1 %v17959_v19 }
0x103b   :  { %15867 = vmatpush3.msra.mxu1 %v4121_v10  ;;  %v4762_v10 = vpop.permute.xlu0 %4761 }
0x103c   :  { %15868 = vmatprep.subr.mxu1 %v17959_v19 }
0x103d   :  { %15869 = vmatpush3.msra.mxu1 %v4120_v12 }
0x103e   :  { %15870 = vmatprep.subr.mxu1 %v17959_v19 }
0x103f   :  { %15871 = vmatpush3.msra.mxu1 %v4119_v14  ;;  %v4850_v14 = vld [vmem:[#allocation37] sm:$0xff] }
0x1040   :  { %15886 = vmatprep.subr.mxu1 %v17959_v19 }
0x10f8   :  { %v15858_v0 = vpop.f32.mrf.mxu1 }
0x10f9   :  { %v4029_v18 = vadd.f32 %v15858_v0, %v3949_v15  ;;  %v4681_v0 = vld [vmem:[#allocation38 + $0x40] sm:$0xff] }
0x10fa   :  { %v4023_v2 = vpop.f32.mrf.mxu1 }
0x10fb   :  { %v4024_v3 = vadd.f32 %v4023_v2, %v3944_v1  ;;  %v4755_v1 = vld [vmem:[#allocation35] sm:$0xff] }
0x10fd   :  { %v4034_v4 = vmul.f32 0.2, %v4024_v3  ;;  %vm4033_vm2 = vcmp.gt.f32.partialorder %v4024_v3, 0.0 }
0x10ff   :  { %v4035_v6 = vsel %vm4033_vm2, %v4024_v3, %v4034_v4 }
0x1100   :  { %15860 = vmatpush3.msra.mxu0 %v4035_v6 }
0x1101   :  { %15862 = vmatmul.mubr.msk.f32.vlgmr.msra.gmra.mxu0 %vm548_vm0, %v4032_v5  ;;  %15875 = vmatprep.subr.mxu0 %v17959_v19 }
0x1102   :  { %15876 = vmatpush3.msra.mxu0 %v4200_v7  ;;  %15883 = vmatprep.mubr.msk.f32.mxu0 %vm17960_vm13, %v17959_v19 }
0x1103   :  { %15877 = vmatprep.subr.mxu0 %v17959_v19 }
0x1104   :  { %15878 = vmatpush3.msra.mxu0 %v4199_v9 }
0x1105   :  { %15879 = vmatprep.subr.mxu0 %v17959_v19 }
0x1106   :  { %15880 = vmatpush3.msra.mxu0 %v4198_v11 }
0x1107   :  { %15881 = vmatprep.subr.mxu0 %v17959_v19 }
0x1108   :  { %15882 = vmatpush3.msra.mxu0 %v4197_v13 }
0x11c1   :  { %v4111_v17 = vpop.f32.mrf.mxu0 }
0x11c2   :  { %v4112_v20 = vadd.f32 %v4111_v17, %v4040_v16  ;;  %v4940_v16 = vld [vmem:[%s19601_s5 + $0x18] sm:$0xff] }
0x11c3   :  { %v15863_v21 = vpop.f32.mrf.mxu0  ;;  %v14372_v17 = vld [vmem:[%s19601_s5 + $0x38] sm:$0xff] }
0x11c4   :  { %v4115_v22 = vadd.f32 %v4112_v20, %v4029_v18  ;;  %v4939_v18 = vld [vmem:[%s19601_s5 + $0x10] sm:$0xff]  ;;  %v4938_v21 = vld [vmem:[%s19601_s5 + $0x8] sm:$0xff] }
0x11c5   :  { %v14371_v20 = vld [vmem:[%s19601_s5 + $0x30] sm:$0xff] }
0x11c6   :  { %15897 = vmatprep.subr.mxu0 %v4115_v22  ;;  %vm4116_vm3 = vcmp.gt.f32.partialorder %v4115_v22, 0.0  ;;  %v4117_v23 = vmul.f32 0.2, %v4115_v22 }
0x11c8   :  { %v4118_v25 = vsel %vm4116_vm3, %v4115_v22, %v4117_v23  ;;  %v4937_v23 = vld [vmem:[%s19601_s5] sm:$0xff] }
0x11c9   :  { %15873 = vmatmul.mubr.msk.f32.vlgmr.msra.gmra.mxu1 %vm3713_vm15, %v4118_v25  ;;  %15884 = vmatmul.mubr.msk.f32.vlgmr.msra.gmra.mxu0 %vm3713_vm15, %v4118_v25 }
0x11ca   :  { %15887 = vmatpush3.msra.mxu1 %v4275_v24  ;;  %15898 = vmatpush3.msra.mxu0 %v4115_v22  ;;  %v14370_v22 = vld [vmem:[%s19601_s5 + $0x28] sm:$0xff]  ;;  %v14369_v24 = vld [vmem:[%s19601_s5 + $0x20] sm:$0xff] }
0x11cb   :  { %15888 = vmatprep.subr.mxu1 %v17959_v19  ;;  %15894 = vmatprep.mubr.msk.f32.mxu1 %vm17960_vm13, %v17959_v19 }
0x11cc   :  { %15889 = vmatpush3.msra.mxu1 %v4274_v26  ;;  %15905 = vmatprep.mubr.msk.f32.mxu0 %vm3713_vm15, %v4346_v29  ;;  %v4858_v26 = vpop.permute.xlu0 %4857 }
0x11cd   :  { %15890 = vmatprep.subr.mxu1 %v17959_v19 }
0x11ce   :  { %15891 = vmatpush3.msra.mxu1 %v4273_v27 }
0x11cf   :  { %15892 = vmatprep.subr.mxu1 %v17959_v19 }
0x11d0   :  { %15893 = vmatpush3.msra.mxu1 %v4272_v28 }
0x11d1   :  { %15895 = vmatmul.mubr.msk.f32.vlgmr.msra.gmra.mxu1 %vm3713_vm15, %v4118_v25  ;;  %15908 = vmatprep.subr.mxu1 %v17959_v19  ;;  %v4767_v25 = vpop.permute.xlu1 %4766 }
0x11d2   :  { %15910 = vmatprep.mubr.msk.f32.mxu1 %vm17960_vm13, %v17959_v19 }
0x1289   :  { %v4192_v30 = vpop.f32.mrf.mxu1  ;;  %v4267_v31 = vpop.f32.mrf.mxu0 }
0x128b   :  { %v15874_v32 = vpop.f32.mrf.mxu1  ;;  %v15885_v33 = vpop.f32.mrf.mxu0 }
0x128c   :  { %v14377_v33 = vld [vmem:[%s19601_s5 + $0x58] sm:$0xff] }
0x1291   :  { %v4342_v34 = vpop.f32.mrf.mxu1 }
0x1292   :  { %15899 = vmatprep.subr.mxu0 %v4342_v34 }
0x1293   :  { %v15896_v35 = vpop.f32.mrf.mxu1  ;;  %15900 = vmatpush3.msra.mxu0 %v4342_v34  ;;  %v14382_v34 = vld [vmem:[%s19601_s5 + $0x78] sm:$0xff] }
0x1294   :  { %15901 = vmatprep.subr.mxu0 %v4267_v31 }
0x1295   :  { %15902 = vmatpush3.msra.mxu0 %v4267_v31 }
0x1296   :  { %15903 = vmatprep.subr.mxu0 %v4192_v30 }
0x1297   :  { %15904 = vmatpush3.msra.mxu0 %v4192_v30 }
0x1298   :  { %15906 = vmatmul.mubr.msk.f32.vlgmr.msra.gmra.mxu0 %vm3713_vm15, %v4347_v36  ;;  %15913 = vmatprep.subr.mxu0 %v17959_v19  ;;  %v14376_v36 = vld [vmem:[%s19601_s5 + $0x50] sm:$0xff] }
0x1299   :  { %15921 = vmatprep.mubr.msk.f32.mxu0 %vm17960_vm13, %v17959_v19  ;;  %15914 = vmatpush3.msra.mxu0 %v4531_v45  ;;  %v14391_v45 = vld [vmem:[%s19601_s5 + $0xb0] sm:$0xff] }
0x129a   :  { %15915 = vmatprep.subr.mxu0 %v17959_v19 }
0x129b   :  { %15916 = vmatpush3.msra.mxu0 %v4530_v47  ;;  %v14390_v47 = vld [vmem:[%s19601_s5 + $0xa8] sm:$0xff] }
0x129c   :  { %15917 = vmatprep.subr.mxu0 %v17959_v19 }
0x129d   :  { %15918 = vmatpush3.msra.mxu0 %v4529_v49  ;;  %v14389_v49 = vld [vmem:[%s19601_s5 + $0xa0] sm:$0xff] }
0x129e   :  { %15919 = vmatprep.subr.mxu0 %v17959_v19 }
0x129f   :  { %15920 = vmatpush3.msra.mxu0 %v4528_v51  ;;  %v14396_v51 = vld [vmem:[%s19601_s5 + $0xd0] sm:$0xff] }
0x12a0   :  { %15935 = vmatprep.subr.mxu0 %v17959_v19 }
0x1358   :  { %v15907_v37 = vpop.f32.mrf.mxu0 }
0x1359   :  { %v4438_v55 = vadd.f32 %v15907_v37, %v4358_v52  ;;  %v14381_v37 = vld [vmem:[%s19601_s5 + $0x70] sm:$0xff]  ;;  %v14395_v52 = vld [vmem:[%s19601_s5 + $0xc8] sm:$0xff] }
0x135a   :  { %v4432_v39 = vpop.f32.mrf.mxu0 }
0x135b   :  { %v4433_v40 = vadd.f32 %v4432_v39, %v4353_v38  ;;  %v14375_v38 = vld [vmem:[%s19601_s5 + $0x48] sm:$0xff] }
0x135c   :  { %v14380_v39 = vld [vmem:[%s19601_s5 + $0x68] sm:$0xff] }
0x135d   :  { %v4443_v41 = vmul.f32 0.2, %v4433_v40  ;;  %vm4442_vm4 = vcmp.gt.f32.partialorder %v4433_v40, 0.0 }
0x135f   :  { %v4444_v43 = vsel %vm4442_vm4, %v4433_v40, %v4443_v41  ;;  %v14374_v40 = vld [vmem:[%s19601_s5 + $0x40] sm:$0xff] }
0x1360   :  { %15909 = vmatpush3.msra.mxu1 %v4444_v43  ;;  %v14379_v41 = vld [vmem:[%s19601_s5 + $0x60] sm:$0xff]  ;;  %v14392_v43 = vld [vmem:[%s19601_s5 + $0xb8] sm:$0xff] }
0x1361   :  { %15911 = vmatmul.mubr.msk.f32.vlgmr.msra.gmra.mxu1 %vm548_vm0, %v4441_v42  ;;  %15924 = vmatprep.subr.mxu1 %v17959_v19  ;;  %v14387_v42 = vld [vmem:[%s19601_s5 + $0x98] sm:$0xff] }
0x1362   :  { %15925 = vmatpush3.msra.mxu1 %v4609_v44  ;;  %15932 = vmatprep.mubr.msk.f32.mxu1 %vm17960_vm13, %v17959_v19  ;;  %v14386_v44 = vld [vmem:[%s19601_s5 + $0x90] sm:$0xff] }
0x1363   :  { %15926 = vmatprep.subr.mxu1 %v17959_v19 }
0x1364   :  { %15927 = vmatpush3.msra.mxu1 %v4608_v46  ;;  %v14385_v46 = vld [vmem:[%s19601_s5 + $0x88] sm:$0xff] }
0x1365   :  { %15928 = vmatprep.subr.mxu1 %v17959_v19 }
0x1366   :  { %15929 = vmatpush3.msra.mxu1 %v4607_v48  ;;  %v14384_v48 = vld [vmem:[%s19601_s5 + $0x80] sm:$0xff] }
0x1367   :  { %15930 = vmatprep.subr.mxu1 %v17959_v19 }
0x1368   :  { %15931 = vmatpush3.msra.mxu1 %v4606_v50  ;;  %v14397_v50 = vld [vmem:[%s19601_s5 + $0xd8] sm:$0xff] }
0x1421   :  { %v4520_v54 = vpop.f32.mrf.mxu1 }
0x1422   :  { %v4521_v56 = vadd.f32 %v4520_v54, %v4449_v53  ;;  %v14394_v53 = vld [vmem:[%s19601_s5 + $0xc0] sm:$0xff] }
0x1423   :  { %v15912_v57 = vpop.f32.mrf.mxu1 }
0x1424   :  { %v4524_v58 = vadd.f32 %v4521_v56, %v4438_v55 }
0x1426   :  { %15946 = vmatprep.subr.mxu1 %v4524_v58  ;;  %vm4525_vm5 = vcmp.gt.f32.partialorder %v4524_v58, 0.0  ;;  %v4526_v59 = vmul.f32 0.2, %v4524_v58 }
0x1428   :  { %v4527_v61 = vsel %vm4525_vm5, %v4524_v58, %v4526_v59 }
0x1429   :  { %15922 = vmatmul.mubr.msk.f32.vlgmr.msra.gmra.mxu0 %vm3713_vm15, %v4527_v61  ;;  %15933 = vmatmul.mubr.msk.f32.vlgmr.msra.gmra.mxu1 %vm3713_vm15, %v4527_v61 }
0x142a   :  { %15936 = vmatpush3.msra.mxu0 %v4684_v60  ;;  %15947 = vmatpush3.msra.mxu1 %v4524_v58 }
0x142b   :  { %15937 = vmatprep.subr.mxu0 %v17959_v19  ;;  %15943 = vmatprep.mubr.msk.f32.mxu0 %vm17960_vm13, %v17959_v19 }
0x142c   :  { %15938 = vmatpush3.msra.mxu0 %v4683_v62  ;;  %15954 = vmatprep.mubr.msk.f32.mxu1 %vm3713_vm15, %v4755_v1 }
0x142d   :  { %15939 = vmatprep.subr.mxu0 %v17959_v19 }
0x142e   :  { %15940 = vmatpush3.msra.mxu0 %v4682_v63 }
0x142f   :  { %15941 = vmatprep.subr.mxu0 %v17959_v19 }
0x1430   :  { %15942 = vmatpush3.msra.mxu0 %v4681_v0 }
0x1431   :  { %15944 = vmatmul.mubr.msk.f32.vlgmr.msra.gmra.mxu0 %vm3713_vm15, %v4527_v61  ;;  %15957 = vmatprep.subr.mxu0 %v17959_v19 }
0x1432   :  { %15959 = vmatprep.mubr.msk.f32.mxu0 %vm17960_vm13, %v17959_v19 }
0x14e9   :  { %v4601_v2 = vpop.f32.mrf.mxu0  ;;  %v4676_v3 = vpop.f32.mrf.mxu1 }
0x14eb   :  { %v15923_v4 = vpop.f32.mrf.mxu0  ;;  %v15934_v5 = vpop.f32.mrf.mxu1 }
0x14ec   :  { %v5464_v4 = vld [vmem:[%s19602_s8] sm:$0xf]  ;;  %v5549_v5 = vld [vmem:[#allocation41 + $0x18] sm:$0xff] }
0x14f1   :  { %v4751_v6 = vpop.f32.mrf.mxu0 }
0x14f2   :  { %15948 = vmatprep.subr.mxu1 %v4751_v6 }
0x14f3   :  { %v15945_v7 = vpop.f32.mrf.mxu0  ;;  %15949 = vmatpush3.msra.mxu1 %v4751_v6  ;;  %v5702_v6 = vld [vmem:[#allocation41 + $0x58] sm:$0xff] }
0x14f4   :  { %15950 = vmatprep.subr.mxu1 %v4676_v3  ;;  %v5548_v7 = vld [vmem:[#allocation41 + $0x10] sm:$0xff] }
0x14f5   :  { %15951 = vmatpush3.msra.mxu1 %v4676_v3 }
0x14f6   :  { %15952 = vmatprep.subr.mxu1 %v4601_v2 }
0x14f7   :  { %15953 = vmatpush3.msra.mxu1 %v4601_v2 }
0x14f8   :  { %15955 = vmatmul.mubr.msk.f32.vlgmr.msra.gmra.mxu1 %vm3713_vm15, %v4756_v8  ;;  %15962 = vmatprep.subr.mxu1 %v17959_v19  ;;  %v5701_v8 = vld [vmem:[#allocation41 + $0x50] sm:$0xff] }
0x14f9   :  { %15970 = vmatprep.mubr.msk.f32.mxu1 %vm17960_vm13, %v17959_v19  ;;  %15963 = vmatpush3.msra.mxu1 %v4940_v16 }
0x14fa   :  { %15964 = vmatprep.subr.mxu1 %v17959_v19 }
0x14fb   :  { %15965 = vmatpush3.msra.mxu1 %v4939_v18  ;;  %v5852_v18 = vld [vmem:[#allocation41 + $0x98] sm:$0xff] }
0x14fc   :  { %15966 = vmatprep.subr.mxu1 %v17959_v19 }
0x14fd   :  { %15967 = vmatpush3.msra.mxu1 %v4938_v21  ;;  %v5626_v21 = vld [vmem:[#allocation41 + $0x30] sm:$0xff] }
0x14fe   :  { %15968 = vmatprep.subr.mxu1 %v17959_v19 }
0x14ff   :  { %15969 = vmatpush3.msra.mxu1 %v4937_v23  ;;  %v5625_v23 = vld [vmem:[#allocation41 + $0x28] sm:$0xff] }
0x1500   :  { %15984 = vmatprep.subr.mxu1 %v17959_v19 }
0x15b8   :  { %v15956_v9 = vpop.f32.mrf.mxu1 }
0x15b9   :  { %v4847_v28 = vadd.f32 %v15956_v9, %v4767_v25  ;;  %v5547_v9 = vld [vmem:[#allocation41 + $0x8] sm:$0xff]  ;;  %v5624_v25 = vld [vmem:[#allocation41 + $0x20] sm:$0xff] }
0x15ba   :  { %v4841_v11 = vpop.f32.mrf.mxu1 }
0x15bb   :  { %v4842_v12 = vadd.f32 %v4841_v11, %v4762_v10  ;;  %v5700_v10 = vld [vmem:[#allocation41 + $0x48] sm:$0xff]  ;;  %v5546_v11 = vld [vmem:[#allocation41] sm:$0xff] }
0x15bd   :  { %v4852_v13 = vmul.f32 0.2, %v4842_v12  ;;  %vm4851_vm7 = vcmp.gt.f32.partialorder %v4842_v12, 0.0 }
0x15bf   :  { %v4853_v15 = vsel %vm4851_vm7, %v4842_v12, %v4852_v13  ;;  %v5699_v12 = vld [vmem:[#allocation41 + $0x40] sm:$0xff]  ;;  %v5469_v13 = vpop.permute.xlu1 %5468 }
0x15c0   :  { %15958 = vmatpush3.msra.mxu0 %v4853_v15 }
0x15c1   :  { %15960 = vmatmul.mubr.msk.f32.vlgmr.msra.gmra.mxu0 %vm548_vm0, %v4850_v14  ;;  %15973 = vmatprep.subr.mxu0 %v17959_v19 }
0x15c2   :  { %15981 = vmatprep.mubr.msk.f32.mxu0 %vm17960_vm13, %v17959_v19  ;;  %15974 = vmatpush3.msra.mxu0 %v14372_v17  ;;  %v5627_v17 = vld [vmem:[#allocation41 + $0x38] sm:$0xff] }
0x15c3   :  { %15975 = vmatprep.subr.mxu0 %v17959_v19 }
0x15c4   :  { %15976 = vmatpush3.msra.mxu0 %v14371_v20 }
0x15c5   :  { %15977 = vmatprep.subr.mxu0 %v17959_v19 }
0x15c6   :  { %15978 = vmatpush3.msra.mxu0 %v14370_v22  ;;  %v5851_v22 = vld [vmem:[#allocation41 + $0x90] sm:$0xff] }
0x15c7   :  { %15979 = vmatprep.subr.mxu0 %v17959_v19 }
0x15c8   :  { %15980 = vmatpush3.msra.mxu0 %v14369_v24  ;;  %v5850_v24 = vld [vmem:[#allocation41 + $0x88] sm:$0xff] }
0x15c9   :  { %15995 = vmatprep.subr.mxu0 %v17959_v19 }
0x1681   :  { %v4929_v27 = vpop.f32.mrf.mxu0 }
0x1682   :  { %v4930_v29 = vadd.f32 %v4929_v27, %v4858_v26  ;;  %v5849_v26 = vld [vmem:[#allocation41 + $0x80] sm:$0xff]  ;;  %v5777_v27 = vld [vmem:[#allocation41 + $0x78] sm:$0xff] }
0x1683   :  { %v15961_v30 = vpop.f32.mrf.mxu0 }
0x1684   :  { %v4933_v31 = vadd.f32 %v4930_v29, %v4847_v28  ;;  %v6002_v28 = vld [vmem:[#allocation41 + $0xd8] sm:$0xff]  ;;  %v5776_v29 = vld [vmem:[#allocation41 + $0x70] sm:$0xff] }
0x1685   :  { %v6001_v30 = vld [vmem:[#allocation41 + $0xd0] sm:$0xff] }
0x1686   :  { %vm4934_vm9 = vcmp.gt.f32.partialorder %v4933_v31, 0.0  ;;  %v4935_v32 = vmul.f32 0.2, %v4933_v31 }
0x1688   :  { %v18617_v35 = vsel %vm4934_vm9, %v4933_v31, %v4935_v32  ;;  %v5775_v31 = vld [vmem:[#allocation41 + $0x68] sm:$0xff] }
0x1689   :  { %15971 = vmatmul.mubr.msk.f32.vlgmr.msra.gmra.mxu1 %vm3713_vm15, %v18617_v35  ;;  %15982 = vmatmul.mubr.msk.f32.vlgmr.msra.gmra.mxu0 %vm3713_vm15, %v18617_v35  ;;  %v6000_v32 = vld [vmem:[#allocation41 + $0xc8] sm:$0xff] }
0x168a   :  { %15985 = vmatpush3.msra.mxu1 %v14377_v33  ;;  %15996 = vmatpush3.msra.mxu0 %v14382_v34  ;;  %v5774_v33 = vld [vmem:[#allocation41 + $0x60] sm:$0xff] }
0x168b   :  { %15986 = vmatprep.subr.mxu1 %v17959_v19  ;;  %15997 = vmatprep.subr.mxu0 %v17959_v19  ;;  %v5999_v34 = vld [vmem:[#allocation41 + $0xc0] sm:$0xff] }
0x168c   :  { %15987 = vmatpush3.msra.mxu1 %v14376_v36  ;;  %15998 = vmatpush3.msra.mxu0 %v14381_v37  ;;  %v6152_v36 = vld [vmem:[#allocation41 + $0x118] sm:$0xff]  ;;  %v5926_v37 = vld [vmem:[#allocation41 + $0xb0] sm:$0xff] }
0x168d   :  { %15988 = vmatprep.subr.mxu1 %v17959_v19  ;;  %15999 = vmatprep.subr.mxu0 %v17959_v19 }
0x168e   :  { %15989 = vmatpush3.msra.mxu1 %v14375_v38  ;;  %16000 = vmatpush3.msra.mxu0 %v14380_v39  ;;  %v6151_v38 = vld [vmem:[#allocation41 + $0x110] sm:$0xff]  ;;  %v5925_v39 = vld [vmem:[#allocation41 + $0xa8] sm:$0xff] }
0x168f   :  { %15990 = vmatprep.subr.mxu1 %v17959_v19  ;;  %16001 = vmatprep.subr.mxu0 %v17959_v19 }
0x1690   :  { %15991 = vmatpush3.msra.mxu1 %v14374_v40  ;;  %15992 = vmatprep.mubr.msk.f32.mxu1 %vm17960_vm13, %v17959_v19  ;;  %v6150_v40 = vld [vmem:[#allocation41 + $0x108] sm:$0xff] }
0x1691   :  { %16002 = vmatpush3.msra.mxu0 %v14379_v41  ;;  %16003 = vmatprep.mubr.msk.f32.mxu0 %vm17960_vm13, %v17959_v19  ;;  %v5924_v41 = vld [vmem:[#allocation41 + $0xa0] sm:$0xff] }
0x1692   :  { %15993 = vmatmul.mubr.msk.f32.vlgmr.msra.gmra.mxu1 %vm3713_vm15, %v18617_v35  ;;  %16004 = vmatmul.mubr.msk.f32.vlgmr.msra.gmra.mxu0 %vm3713_vm15, %v18617_v35 }
0x1693   :  { %16006 = vmatprep.subr.mxu1 %v17959_v19  ;;  %16017 = vmatprep.subr.mxu0 %v17959_v19 }
0x1694   :  { %16007 = vmatpush3.msra.mxu1 %v14387_v42  ;;  %16018 = vmatpush3.msra.mxu0 %v14392_v43  ;;  %v6149_v42 = vld [vmem:[#allocation41 + $0x100] sm:$0xff]  ;;  %v6077_v43 = vld [vmem:[#allocation41 + $0xf8] sm:$0xff] }
0x1695   :  { %16008 = vmatprep.subr.mxu1 %v17959_v19  ;;  %16019 = vmatprep.subr.mxu0 %v17959_v19 }
0x1696   :  { %16009 = vmatpush3.msra.mxu1 %v14386_v44  ;;  %16020 = vmatpush3.msra.mxu0 %v14391_v45  ;;  %v6302_v44 = vld [vmem:[#allocation41 + $0x158] sm:$0xff]  ;;  %v6076_v45 = vld [vmem:[#allocation41 + $0xf0] sm:$0xff] }
0x1697   :  { %16010 = vmatprep.subr.mxu1 %v17959_v19  ;;  %16021 = vmatprep.subr.mxu0 %v17959_v19 }
0x1698   :  { %16011 = vmatpush3.msra.mxu1 %v14385_v46  ;;  %16022 = vmatpush3.msra.mxu0 %v14390_v47  ;;  %v6301_v46 = vld [vmem:[#allocation41 + $0x150] sm:$0xff]  ;;  %v6075_v47 = vld [vmem:[#allocation41 + $0xe8] sm:$0xff] }
0x1699   :  { %16012 = vmatprep.subr.mxu1 %v17959_v19  ;;  %16023 = vmatprep.subr.mxu0 %v17959_v19 }
0x169a   :  { %16013 = vmatpush3.msra.mxu1 %v14384_v48  ;;  %16014 = vmatprep.mubr.msk.f32.mxu1 %vm17960_vm13, %v17959_v19  ;;  %v6300_v48 = vld [vmem:[#allocation41 + $0x148] sm:$0xff] }
0x169b   :  { %16024 = vmatpush3.msra.mxu0 %v14389_v49  ;;  %16025 = vmatprep.mubr.msk.f32.mxu0 %vm17960_vm13, %v17959_v19  ;;  %v6074_v49 = vld [vmem:[#allocation41 + $0xe0] sm:$0xff] }
0x169c   :  { %16015 = vmatmul.mubr.msk.f32.vlgmr.msra.gmra.mxu1 %vm3713_vm15, %v18617_v35  ;;  %16026 = vmatmul.mubr.msk.f32.vlgmr.msra.gmra.mxu0 %vm3713_vm15, %v18617_v35 }
0x169d   :  { %16028 = vmatprep.subr.mxu1 %v17959_v19  ;;  %16036 = vmatprep.mubr.msk.f32.mxu1 %vm17960_vm13, %v17959_v19 }
0x169e   :  { %16029 = vmatpush3.msra.mxu1 %v14397_v50  ;;  %16039 = vmatprep.subr.mxu0 %v17959_v19  ;;  %v6299_v50 = vld [vmem:[#allocation41 + $0x140] sm:$0xff] }
0x169f   :  { %16030 = vmatprep.subr.mxu1 %v17959_v19  ;;  %16053 = vmatprep.mubr.msk.f32.mxu0 %vm17960_vm13, %v17959_v19 }
0x16a0   :  { %16031 = vmatpush3.msra.mxu1 %v14396_v51  ;;  %v6227_v51 = vld [vmem:[#allocation41 + $0x138] sm:$0xff] }
0x16a1   :  { %16032 = vmatprep.subr.mxu1 %v17959_v19 }
0x16a2   :  { %16033 = vmatpush3.msra.mxu1 %v14395_v52  ;;  %v6452_v52 = vld [vmem:[#allocation41 + $0x198] sm:$0xff] }
0x16a3   :  { %16034 = vmatprep.subr.mxu1 %v17959_v19 }
0x16a4   :  { %16035 = vmatpush3.msra.mxu1 %v14394_v53  ;;  %v6226_v53 = vld [vmem:[#allocation41 + $0x130] sm:$0xff] }
0x16a5   :  { %16037 = vmatmul.mubr.msk.f32.vlgmr.msra.gmra.mxu1 %vm3713_vm15, %v18617_v35  ;;  %16056 = vmatprep.subr.mxu1 %v17959_v19  ;;  %v5927_v35 = vld [vmem:[#allocation41 + $0xb8] sm:$0xff] }
0x16a6   :  { %16064 = vmatprep.mubr.msk.f32.mxu1 %vm17960_vm13, %v17959_v19  ;;  %16057 = vmatpush3.msra.mxu1 %v5549_v5  ;;  %v6525_v5 = vld [vmem:[#allocation41 + $0x1a8] sm:$0xff] }
0x16a7   :  { %16058 = vmatprep.subr.mxu1 %v17959_v19 }
0x16a8   :  { %16059 = vmatpush3.msra.mxu1 %v5548_v7  ;;  %v6677_v7 = vld [vmem:[#allocation41 + $0x1f8] sm:$0xff] }
0x16a9   :  { %16060 = vmatprep.subr.mxu1 %v17959_v19 }
0x16aa   :  { %16061 = vmatpush3.msra.mxu1 %v5547_v9  ;;  %v6675_v9 = vld [vmem:[#allocation41 + $0x1e8] sm:$0xff] }
0x16ab   :  { %16062 = vmatprep.subr.mxu1 %v17959_v19 }
0x16ac   :  { %16063 = vmatpush3.msra.mxu1 %v5546_v11 }
0x16ad   :  { %16067 = vmatprep.subr.mxu1 %v17959_v19 }
0x1749   :  { %v5010_v54 = vpop.f32.mrf.mxu1  ;;  %v5085_v55 = vpop.f32.mrf.mxu0 }
0x174b   :  { %v15972_v56 = vpop.f32.mrf.mxu1  ;;  %v15983_v57 = vpop.f32.mrf.mxu0 }
0x174c   :  { %v6450_v56 = vld [vmem:[#allocation41 + $0x188] sm:$0xff]  ;;  %v6224_v57 = vld [vmem:[#allocation41 + $0x120] sm:$0xff] }
0x1752   :  { %v5160_v58 = vpop.f32.mrf.mxu1  ;;  %v5235_v59 = vpop.f32.mrf.mxu0 }
0x1754   :  { %v15994_v60 = vpop.f32.mrf.mxu1  ;;  %v16005_v61 = vpop.f32.mrf.mxu0 }
0x1755   :  { %v6602_v60 = vld [vmem:[#allocation41 + $0x1d8] sm:$0xff]  ;;  %v6376_v61 = vld [vmem:[#allocation41 + $0x170] sm:$0xff] }
0x175c   :  { %v5310_v62 = vpop.f32.mrf.mxu1  ;;  %v5385_v63 = vpop.f32.mrf.mxu0 }
0x175e   :  { %v16016_v0 = vpop.f32.mrf.mxu1  ;;  %v16027_v1 = vpop.f32.mrf.mxu0 }
0x175f   :  { %v6600_v0 = vld [vmem:[#allocation41 + $0x1c8] sm:$0xff]  ;;  %v6374_v1 = vld [vmem:[#allocation41 + $0x160] sm:$0xff] }
0x1765   :  { %v5460_v2 = vpop.f32.mrf.mxu1 }
0x1766   :  { %16040 = vmatpush3.msra.mxu0 %v5460_v2  ;;  %v6599_v2 = vld [vmem:[#allocation41 + $0x1c0] sm:$0xff] }
0x1767   :  { %v16038_v3 = vpop.f32.mrf.mxu1  ;;  %16041 = vmatprep.subr.mxu0 %v17959_v19 }
0x1768   :  { %16042 = vmatpush3.msra.mxu0 %v5385_v63  ;;  %v6375_v63 = vld [vmem:[#allocation41 + $0x168] sm:$0xff]  ;;  %v6527_v3 = vld [vmem:[#allocation41 + $0x1b8] sm:$0xff] }
0x1769   :  { %16043 = vmatprep.subr.mxu0 %v17959_v19 }
0x176a   :  { %16044 = vmatpush3.msra.mxu0 %v5310_v62  ;;  %v6601_v62 = vld [vmem:[#allocation41 + $0x1d0] sm:$0xff] }
0x176b   :  { %16045 = vmatprep.subr.mxu0 %v17959_v19 }
0x176c   :  { %16046 = vmatpush3.msra.mxu0 %v5235_v59  ;;  %v6377_v59 = vld [vmem:[#allocation41 + $0x178] sm:$0xff] }
0x176d   :  { %16047 = vmatprep.subr.mxu0 %v17959_v19 }
0x176e   :  { %16048 = vmatpush3.msra.mxu0 %v5160_v58  ;;  %v6449_v58 = vld [vmem:[#allocation41 + $0x180] sm:$0xff] }
0x176f   :  { %16049 = vmatprep.subr.mxu0 %v17959_v19 }
0x1770   :  { %16050 = vmatpush3.msra.mxu0 %v5085_v55  ;;  %v6225_v55 = vld [vmem:[#allocation41 + $0x128] sm:$0xff] }
0x1771   :  { %16051 = vmatprep.subr.mxu0 %v17959_v19 }
0x1772   :  { %16052 = vmatpush3.msra.mxu0 %v5010_v54  ;;  %v6451_v54 = vld [vmem:[#allocation41 + $0x190] sm:$0xff] }
0x1773   :  { %16054 = vmatmul.mubr.msk.f32.vlgmr.msra.gmra.mxu0 %vm5471_vm11, %v5464_v4  ;;  %16078 = vmatprep.subr.mxu0 %v17959_v19  ;;  %v6526_v4 = vld [vmem:[#allocation41 + $0x1b0] sm:$0xff] }
0x1774   :  { %16086 = vmatprep.mubr.msk.f32.mxu0 %vm17960_vm13, %v17959_v19  ;;  %16079 = vmatpush3.msra.mxu0 %v5702_v6  ;;  %v6524_v6 = vld [vmem:[#allocation41 + $0x1a0] sm:$0xff] }
0x1775   :  { %16080 = vmatprep.subr.mxu0 %v17959_v19 }
0x1776   :  { %16081 = vmatpush3.msra.mxu0 %v5701_v8  ;;  %v6676_v8 = vld [vmem:[#allocation41 + $0x1f0] sm:$0xff] }
0x1777   :  { %16082 = vmatprep.subr.mxu0 %v17959_v19 }
0x1778   :  { %16083 = vmatpush3.msra.mxu0 %v5700_v10  ;;  %v6674_v10 = vld [vmem:[#allocation41 + $0x1e0] sm:$0xff] }
0x1779   :  { %16084 = vmatprep.subr.mxu0 %v17959_v19 }
0x177a   :  { %16085 = vmatpush3.msra.mxu0 %v5699_v12 }
0x177b   :  { %16100 = vmatprep.subr.mxu0 %v17959_v19 }
0x1833   :  { %v5541_v14 = vpop.f32.mrf.mxu0 }
0x1834   :  { %v5542_v15 = vadd.f32 %v5541_v14, %v5469_v13 }
0x1835   :  { %v16055_v16 = vpop.f32.mrf.mxu0 }
0x1836   :  { %17306 = vtanh.f32 %v5542_v15 }
0x1843   :  { %v18704_v20 = vpop.eup %17306 }
0x1844   :  { %16065 = vmatmul.mubr.msk.f32.vlgmr.msra.gmra.mxu1 %vm3713_vm15, %v18704_v20  ;;  %16087 = vmatmul.mubr.msk.f32.vlgmr.msra.gmra.mxu0 %vm3713_vm15, %v18704_v20 }
0x1845   :  { %16068 = vmatpush3.msra.mxu1 %v5627_v17  ;;  %16101 = vmatpush3.msra.mxu0 %v5852_v18 }
0x1846   :  { %16069 = vmatprep.subr.mxu1 %v17959_v19  ;;  %16102 = vmatprep.subr.mxu0 %v17959_v19 }
0x1847   :  { %16070 = vmatpush3.msra.mxu1 %v5626_v21  ;;  %16103 = vmatpush3.msra.mxu0 %v5851_v22 }
0x1848   :  { %16071 = vmatprep.subr.mxu1 %v17959_v19  ;;  %16104 = vmatprep.subr.mxu0 %v17959_v19 }
0x1849   :  { %16072 = vmatpush3.msra.mxu1 %v5625_v23  ;;  %16105 = vmatpush3.msra.mxu0 %v5850_v24 }
0x184a   :  { %16073 = vmatprep.subr.mxu1 %v17959_v19  ;;  %16106 = vmatprep.subr.mxu0 %v17959_v19 }
0x184b   :  { %16074 = vmatpush3.msra.mxu1 %v5624_v25  ;;  %16075 = vmatprep.mubr.msk.f32.mxu1 %vm17960_vm13, %v17959_v19 }
0x184c   :  { %16107 = vmatpush3.msra.mxu0 %v5849_v26  ;;  %16108 = vmatprep.mubr.msk.f32.mxu0 %vm17960_vm13, %v17959_v19 }
0x184d   :  { %16076 = vmatmul.mubr.msk.f32.vlgmr.msra.gmra.mxu1 %vm3713_vm15, %v18704_v20  ;;  %16089 = vmatprep.subr.mxu1 %v17959_v19 }
0x184e   :  { %16109 = vmatmul.mubr.msk.f32.vlgmr.msra.gmra.mxu0 %vm3713_vm15, %v18704_v20  ;;  %16122 = vmatprep.subr.mxu0 %v17959_v19 }
0x184f   :  { %16090 = vmatpush3.msra.mxu1 %v5777_v27  ;;  %16123 = vmatpush3.msra.mxu0 %v6002_v28 }
0x1850   :  { %16091 = vmatprep.subr.mxu1 %v17959_v19  ;;  %16124 = vmatprep.subr.mxu0 %v17959_v19 }
0x1851   :  { %16092 = vmatpush3.msra.mxu1 %v5776_v29  ;;  %16125 = vmatpush3.msra.mxu0 %v6001_v30 }
0x1852   :  { %16093 = vmatprep.subr.mxu1 %v17959_v19  ;;  %16126 = vmatprep.subr.mxu0 %v17959_v19 }
0x1853   :  { %16094 = vmatpush3.msra.mxu1 %v5775_v31  ;;  %16127 = vmatpush3.msra.mxu0 %v6000_v32 }
0x1854   :  { %16095 = vmatprep.subr.mxu1 %v17959_v19  ;;  %16128 = vmatprep.subr.mxu0 %v17959_v19 }
0x1855   :  { %16096 = vmatpush3.msra.mxu1 %v5774_v33  ;;  %16097 = vmatprep.mubr.msk.f32.mxu1 %vm17960_vm13, %v17959_v19 }
0x1856   :  { %16129 = vmatpush3.msra.mxu0 %v5999_v34  ;;  %16130 = vmatprep.mubr.msk.f32.mxu0 %vm17960_vm13, %v17959_v19 }
0x1857   :  { %16098 = vmatmul.mubr.msk.f32.vlgmr.msra.gmra.mxu1 %vm3713_vm15, %v18704_v20  ;;  %16111 = vmatprep.subr.mxu1 %v17959_v19 }
0x1858   :  { %16131 = vmatmul.mubr.msk.f32.vlgmr.msra.gmra.mxu0 %vm3713_vm15, %v18704_v20  ;;  %16144 = vmatprep.subr.mxu0 %v17959_v19 }
0x1859   :  { %16112 = vmatpush3.msra.mxu1 %v5927_v35  ;;  %16145 = vmatpush3.msra.mxu0 %v6152_v36 }
0x185a   :  { %16113 = vmatprep.subr.mxu1 %v17959_v19  ;;  %16146 = vmatprep.subr.mxu0 %v17959_v19 }
0x185b   :  { %16114 = vmatpush3.msra.mxu1 %v5926_v37  ;;  %16147 = vmatpush3.msra.mxu0 %v6151_v38 }
0x185c   :  { %16115 = vmatprep.subr.mxu1 %v17959_v19  ;;  %16148 = vmatprep.subr.mxu0 %v17959_v19 }
0x185d   :  { %16116 = vmatpush3.msra.mxu1 %v5925_v39  ;;  %16149 = vmatpush3.msra.mxu0 %v6150_v40 }
0x185e   :  { %16117 = vmatprep.subr.mxu1 %v17959_v19  ;;  %16150 = vmatprep.subr.mxu0 %v17959_v19 }
0x185f   :  { %16118 = vmatpush3.msra.mxu1 %v5924_v41  ;;  %16119 = vmatprep.mubr.msk.f32.mxu1 %vm17960_vm13, %v17959_v19 }
0x1860   :  { %16151 = vmatpush3.msra.mxu0 %v6149_v42  ;;  %16152 = vmatprep.mubr.msk.f32.mxu0 %vm17960_vm13, %v17959_v19 }
0x1861   :  { %16120 = vmatmul.mubr.msk.f32.vlgmr.msra.gmra.mxu1 %vm3713_vm15, %v18704_v20  ;;  %16133 = vmatprep.subr.mxu1 %v17959_v19 }
0x1862   :  { %16153 = vmatmul.mubr.msk.f32.vlgmr.msra.gmra.mxu0 %vm3713_vm15, %v18704_v20  ;;  %16166 = vmatprep.subr.mxu0 %v17959_v19 }
0x1863   :  { %16134 = vmatpush3.msra.mxu1 %v6077_v43  ;;  %16167 = vmatpush3.msra.mxu0 %v6302_v44 }
0x1864   :  { %16135 = vmatprep.subr.mxu1 %v17959_v19  ;;  %16168 = vmatprep.subr.mxu0 %v17959_v19 }
0x1865   :  { %16136 = vmatpush3.msra.mxu1 %v6076_v45  ;;  %16169 = vmatpush3.msra.mxu0 %v6301_v46 }
0x1866   :  { %16137 = vmatprep.subr.mxu1 %v17959_v19  ;;  %16170 = vmatprep.subr.mxu0 %v17959_v19 }
0x1867   :  { %16138 = vmatpush3.msra.mxu1 %v6075_v47  ;;  %16171 = vmatpush3.msra.mxu0 %v6300_v48 }
0x1868   :  { %16139 = vmatprep.subr.mxu1 %v17959_v19  ;;  %16172 = vmatprep.subr.mxu0 %v17959_v19 }
0x1869   :  { %16140 = vmatpush3.msra.mxu1 %v6074_v49  ;;  %16141 = vmatprep.mubr.msk.f32.mxu1 %vm17960_vm13, %v17959_v19 }
0x186a   :  { %16173 = vmatpush3.msra.mxu0 %v6299_v50  ;;  %16174 = vmatprep.mubr.msk.f32.mxu0 %vm17960_vm13, %v17959_v19 }
0x186b   :  { %16142 = vmatmul.mubr.msk.f32.vlgmr.msra.gmra.mxu1 %vm3713_vm15, %v18704_v20  ;;  %16155 = vmatprep.subr.mxu1 %v17959_v19 }
0x186c   :  { %16175 = vmatmul.mubr.msk.f32.vlgmr.msra.gmra.mxu0 %vm3713_vm15, %v18704_v20  ;;  %16188 = vmatprep.subr.mxu0 %v17959_v19 }
0x186d   :  { %16156 = vmatpush3.msra.mxu1 %v6227_v51  ;;  %16189 = vmatpush3.msra.mxu0 %v6452_v52 }
0x186e   :  { %16157 = vmatprep.subr.mxu1 %v17959_v19  ;;  %16190 = vmatprep.subr.mxu0 %v17959_v19 }
0x186f   :  { %16158 = vmatpush3.msra.mxu1 %v6226_v53  ;;  %16191 = vmatpush3.msra.mxu0 %v6451_v54 }
0x1870   :  { %16159 = vmatprep.subr.mxu1 %v17959_v19  ;;  %16192 = vmatprep.subr.mxu0 %v17959_v19 }
0x1871   :  { %16160 = vmatpush3.msra.mxu1 %v6225_v55  ;;  %16193 = vmatpush3.msra.mxu0 %v6450_v56 }
0x1872   :  { %16161 = vmatprep.subr.mxu1 %v17959_v19  ;;  %16194 = vmatprep.subr.mxu0 %v17959_v19 }
0x1873   :  { %16162 = vmatpush3.msra.mxu1 %v6224_v57  ;;  %16163 = vmatprep.mubr.msk.f32.mxu1 %vm17960_vm13, %v17959_v19 }
0x1874   :  { %16195 = vmatpush3.msra.mxu0 %v6449_v58  ;;  %16196 = vmatprep.mubr.msk.f32.mxu0 %vm17960_vm13, %v17959_v19 }
0x1875   :  { %16164 = vmatmul.mubr.msk.f32.vlgmr.msra.gmra.mxu1 %vm3713_vm15, %v18704_v20  ;;  %16177 = vmatprep.subr.mxu1 %v17959_v19 }
0x1876   :  { %16197 = vmatmul.mubr.msk.f32.vlgmr.msra.gmra.mxu0 %vm3713_vm15, %v18704_v20  ;;  %16210 = vmatprep.subr.mxu0 %v17959_v19 }
0x1877   :  { %16178 = vmatpush3.msra.mxu1 %v6377_v59  ;;  %16211 = vmatpush3.msra.mxu0 %v6602_v60  ;;  %v6781_v60 = vld [vmem:[#allocation40] sm:$0x1] }
0x1878   :  { %16179 = vmatprep.subr.mxu1 %v17959_v19  ;;  %16212 = vmatprep.subr.mxu0 %v17959_v19 }
0x1879   :  { %16180 = vmatpush3.msra.mxu1 %v6376_v61  ;;  %16213 = vmatpush3.msra.mxu0 %v6601_v62  ;;  %v6860_v61 = vld [vmem:[#allocation40 + $0x1] sm:$0x1]  ;;  %v14421_v62 = vld [vmem:[%s18205_s27 + $0x38] sm:$0xff] }
0x187a   :  { %16181 = vmatprep.subr.mxu1 %v17959_v19  ;;  %16214 = vmatprep.subr.mxu0 %v17959_v19 }
0x187b   :  { %16182 = vmatpush3.msra.mxu1 %v6375_v63  ;;  %16215 = vmatpush3.msra.mxu0 %v6600_v0  ;;  %v6858_v63 = vld [vmem:[%s18205_s27 + $0x18] sm:$0xff]  ;;  %v14420_v0 = vld [vmem:[%s18205_s27 + $0x30] sm:$0xff] }
0x187c   :  { %16183 = vmatprep.subr.mxu1 %v17959_v19  ;;  %16216 = vmatprep.subr.mxu0 %v17959_v19 }
0x187d   :  { %16184 = vmatpush3.msra.mxu1 %v6374_v1  ;;  %16185 = vmatprep.mubr.msk.f32.mxu1 %vm17960_vm13, %v17959_v19  ;;  %v6857_v1 = vld [vmem:[%s18205_s27 + $0x10] sm:$0xff] }
0x187e   :  { %16217 = vmatpush3.msra.mxu0 %v6599_v2  ;;  %16218 = vmatprep.mubr.msk.f32.mxu0 %vm17960_vm13, %v17959_v19  ;;  %v14419_v2 = vld [vmem:[%s18205_s27 + $0x28] sm:$0xff] }
0x187f   :  { %16186 = vmatmul.mubr.msk.f32.vlgmr.msra.gmra.mxu1 %vm3713_vm15, %v18704_v20  ;;  %16199 = vmatprep.subr.mxu1 %v17959_v19 }
0x1880   :  { %16219 = vmatmul.mubr.msk.f32.vlgmr.msra.gmra.mxu0 %vm3713_vm15, %v18704_v20  ;;  %16200 = vmatpush3.msra.mxu1 %v6527_v3  ;;  %v6856_v3 = vld [vmem:[%s18205_s27 + $0x8] sm:$0xff] }
0x1881   :  { %16201 = vmatprep.subr.mxu1 %v17959_v19  ;;  %16207 = vmatprep.mubr.msk.f32.mxu1 %vm17960_vm13, %v17959_v19 }
0x1882   :  { %16202 = vmatpush3.msra.mxu1 %v6526_v4  ;;  %16232 = vmatprep.subr.mxu0 %v17959_v19  ;;  %v14418_v4 = vld [vmem:[%s18205_s27 + $0x20] sm:$0xff] }
0x1883   :  { %16203 = vmatprep.subr.mxu1 %v17959_v19  ;;  %16248 = vmatprep.mubr.msk.f32.mxu0 %vm17960_vm13, %v17959_v19 }
0x1884   :  { %16204 = vmatpush3.msra.mxu1 %v6525_v5  ;;  %v6855_v5 = vld [vmem:[%s18205_s27] sm:$0xff] }
0x1885   :  { %16205 = vmatprep.subr.mxu1 %v17959_v19 }
0x1886   :  { %16206 = vmatpush3.msra.mxu1 %v6524_v6 }
0x1887   :  { %16208 = vmatmul.mubr.msk.f32.vlgmr.msra.gmra.mxu1 %vm3713_vm15, %v18704_v20  ;;  %16221 = vmatprep.subr.mxu1 %v17959_v19 }
0x1888   :  { %16222 = vmatpush3.msra.mxu1 %v6677_v7  ;;  %16229 = vmatprep.mubr.msk.f32.mxu1 %vm17960_vm13, %v17959_v19 }
0x1889   :  { %16223 = vmatprep.subr.mxu1 %v17959_v19 }
0x188a   :  { %16224 = vmatpush3.msra.mxu1 %v6676_v8 }
0x188b   :  { %16225 = vmatprep.subr.mxu1 %v17959_v19 }
0x188c   :  { %16226 = vmatpush3.msra.mxu1 %v6675_v9 }
0x188d   :  { %16227 = vmatprep.subr.mxu1 %v17959_v19 }
0x188e   :  { %16228 = vmatpush3.msra.mxu1 %v6674_v10  ;;  %v7086_v10 = vld [vmem:[#allocation40 + $0x2] sm:$0x1] }
0x188f   :  { %16230 = vmatmul.mubr.msk.f32.vlgmr.msra.gmra.mxu1 %vm3713_vm15, %v18704_v20  ;;  %16251 = vmatprep.subr.mxu1 %v17959_v19 }
0x1890   :  { %16267 = vmatprep.mubr.msk.f32.mxu1 %vm17960_vm13, %v17959_v19 }
0x1904   :  { %v5619_v11 = vpop.f32.mrf.mxu1  ;;  %v5769_v12 = vpop.f32.mrf.mxu0 }
0x1906   :  { %v16066_v13 = vpop.f32.mrf.mxu1  ;;  %v16088_v14 = vpop.f32.mrf.mxu0 }
0x1907   :  { %v14426_v13 = vld [vmem:[%s18205_s27 + $0x48] sm:$0xff]  ;;  %v14425_v14 = vld [vmem:[%s18205_s27 + $0x40] sm:$0xff] }
0x190d   :  { %v5694_v15 = vpop.f32.mrf.mxu1 }
0x190e   :  { %v6749_v16 = vrot.slane %v5694_v15, 4  ;;  %v5919_v17 = vpop.f32.mrf.mxu0 }
0x190f   :  { %v16077_v18 = vpop.f32.mrf.mxu1 }
0x1910   :  { %v16110_v21 = vpop.f32.mrf.mxu0  ;;  %v18827_v22 = vsel %vm6772_vm14, %v5619_v11, %v6749_v16  ;;  %v14428_v11 = vld [vmem:[%s18205_s27 + $0x58] sm:$0xff] }
0x1917   :  { %v5844_v23 = vpop.f32.mrf.mxu1 }
0x1918   :  { %v6752_v20 = vrot.slane %v5844_v23, 4  ;;  %v6069_v24 = vpop.f32.mrf.mxu0 }
0x1919   :  { %v16099_v25 = vpop.f32.mrf.mxu1 }
0x191a   :  { %v16132_v26 = vpop.f32.mrf.mxu0  ;;  %v18830_v27 = vsel %vm6772_vm14, %v5769_v12, %v6752_v20  ;;  %v14427_v12 = vld [vmem:[%s18205_s27 + $0x50] sm:$0xff]  ;;  %v14434_v25 = vld [vmem:[%s18205_s27 + $0x78] sm:$0xff] }
0x191b   :  { %v14433_v26 = vld [vmem:[%s18205_s27 + $0x70] sm:$0xff] }
0x1921   :  { %v5994_v28 = vpop.f32.mrf.mxu1 }
0x1922   :  { %v6219_v29 = vpop.f32.mrf.mxu0  ;;  %v6755_v56 = vrot.slane %v5994_v28, 4  ;;  %v14432_v28 = vld [vmem:[%s18205_s27 + $0x68] sm:$0xff] }
0x1923   :  { %v16121_v30 = vpop.f32.mrf.mxu1 }
0x1924   :  { %v16154_v31 = vpop.f32.mrf.mxu0  ;;  %v18868_v59 = vsel %vm6772_vm14, %v5919_v17, %v6755_v56  ;;  %v14437_v30 = vld [vmem:[%s19583_s4 + $0x18] sm:$0xff] }
0x1925   :  { %v7397_v31 = vld [vmem:[%s19582_s19] sm:$0xff] }
0x192b   :  { %v6144_v32 = vpop.f32.mrf.mxu1 }
0x192c   :  { %v6369_v33 = vpop.f32.mrf.mxu0  ;;  %v6758_v54 = vrot.slane %v6144_v32, 4  ;;  %v14449_v32 = vld [vmem:[%s19582_s19 + $0x20] sm:$0xff] }
0x192d   :  { %v16143_v34 = vpop.f32.mrf.mxu1 }
0x192e   :  { %v16176_v35 = vpop.f32.mrf.mxu0  ;;  %v18861_v58 = vsel %vm6772_vm14, %v6069_v24, %v6758_v54  ;;  %v7240_v24 = vld [vmem:[#allocation40 + $0x3] sm:$0x1] }
0x1935   :  { %v6294_v36 = vpop.f32.mrf.mxu1 }
0x1936   :  { %v6519_v37 = vpop.f32.mrf.mxu0  ;;  %v6761_v52 = vrot.slane %v6294_v36, 4 }
0x1937   :  { %v16165_v38 = vpop.f32.mrf.mxu1 }
0x1938   :  { %v16198_v39 = vpop.f32.mrf.mxu0  ;;  %v18854_v57 = vsel %vm6772_vm14, %v6219_v29, %v6761_v52  ;;  %v14436_v29 = vld [vmem:[%s19583_s4 + $0x10] sm:$0xff]  ;;  %v14440_v38 = vld [vmem:[%s19582_s19 + $0x8] sm:$0xff] }
0x193f   :  { %v6444_v40 = vpop.f32.mrf.mxu1 }
0x1940   :  { %v6669_v41 = vpop.f32.mrf.mxu0  ;;  %v6764_v50 = vrot.slane %v6444_v40, 4  ;;  %v14446_v40 = vld [vmem:[%s19582_s19 + $0x18] sm:$0xff] }
0x1941   :  { %v16187_v42 = vpop.f32.mrf.mxu1 }
0x1942   :  { %v16220_v43 = vpop.f32.mrf.mxu0  ;;  %v18847_v55 = vsel %vm6772_vm14, %v6369_v33, %v6764_v50  ;;  %v14455_v33 = vld [vmem:[%s19582_s19 + $0x30] sm:$0xff] }
0x1947   :  { %v6594_v44 = vpop.f32.mrf.mxu1 }
0x1948   :  { %v6767_v47 = vrot.slane %v6594_v44, 4 }
0x1949   :  { %v16209_v45 = vpop.f32.mrf.mxu1 }
0x194a   :  { %v18840_v53 = vsel %vm6772_vm14, %v6519_v37, %v6767_v47 }
0x194f   :  { %v6744_v46 = vpop.f32.mrf.mxu1 }
0x1950   :  { %v6770_v48 = vrot.slane %v6744_v46, 4 }
0x1951   :  { %v16231_v49 = vpop.f32.mrf.mxu1 }
0x1952   :  { %v18833_v51 = vsel %vm6772_vm14, %v6669_v41, %v6770_v48  ;;  %v14452_v41 = vld [vmem:[%s19582_s19 + $0x28] sm:$0xff]  ;;  %v7935_v48 = vld [vmem:[%s19600_s24] sm:$0xff] }
0x1953   :  { %16233 = vmatpush3.msra.mxu0 %v18833_v51  ;;  %16252 = vmatpush3.msra.mxu1 %v18833_v51 }
0x1954   :  { %16234 = vmatprep.subr.mxu0 %v17959_v19  ;;  %16253 = vmatprep.subr.mxu1 %v17959_v19 }
0x1955   :  { %16235 = vmatpush3.msra.mxu0 %v18840_v53  ;;  %16254 = vmatpush3.msra.mxu1 %v18840_v53 }
0x1956   :  { %16236 = vmatprep.subr.mxu0 %v17959_v19  ;;  %16255 = vmatprep.subr.mxu1 %v17959_v19 }
0x1957   :  { %16237 = vmatpush3.msra.mxu0 %v18847_v55  ;;  %16256 = vmatpush3.msra.mxu1 %v18847_v55 }
0x1958   :  { %16238 = vmatprep.subr.mxu0 %v17959_v19  ;;  %16257 = vmatprep.subr.mxu1 %v17959_v19 }
0x1959   :  { %16239 = vmatpush3.msra.mxu0 %v18854_v57  ;;  %16258 = vmatpush3.msra.mxu1 %v18854_v57 }
0x195a   :  { %16240 = vmatprep.subr.mxu0 %v17959_v19  ;;  %16259 = vmatprep.subr.mxu1 %v17959_v19 }
0x195b   :  { %16241 = vmatpush3.msra.mxu0 %v18861_v58  ;;  %16260 = vmatpush3.msra.mxu1 %v18861_v58 }
0x195c   :  { %16242 = vmatprep.subr.mxu0 %v17959_v19  ;;  %16261 = vmatprep.subr.mxu1 %v17959_v19 }
0x195d   :  { %16243 = vmatpush3.msra.mxu0 %v18868_v59  ;;  %16262 = vmatpush3.msra.mxu1 %v18868_v59 }
0x195e   :  { %16244 = vmatprep.subr.mxu0 %v17959_v19  ;;  %16263 = vmatprep.subr.mxu1 %v17959_v19 }
0x195f   :  { %16245 = vmatpush3.msra.mxu0 %v18830_v27  ;;  %16264 = vmatpush3.msra.mxu1 %v18830_v27 }
0x1960   :  { %16246 = vmatprep.subr.mxu0 %v17959_v19  ;;  %16265 = vmatprep.subr.mxu1 %v17959_v19 }
0x1961   :  { %16247 = vmatpush3.msra.mxu0 %v18827_v22  ;;  %16266 = vmatpush3.msra.mxu1 %v18827_v22 }
0x1962   :  { %16249 = vmatmul.mubr.msk.f32.vlgmr.msra.gmra.mxu0 %vm2067_vm10, %v6781_v60  ;;  %16268 = vmatmul.mubr.msk.f32.vlgmr.msra.gmra.mxu1 %vm2067_vm10, %v6860_v61  ;;  %v7936_v60 = vld [vmem:[%s19600_s24 + $0x8] sm:$0xff]  ;;  %v7937_v61 = vld [vmem:[%s19600_s24 + $0x10] sm:$0xff] }
0x1963   :  { %16270 = vmatprep.subr.mxu0 %v17959_v19  ;;  %16281 = vmatprep.subr.mxu1 %v17959_v19 }
0x1964   :  { %16271 = vmatpush3.msra.mxu0 %v14421_v62  ;;  %16282 = vmatpush3.msra.mxu1 %v6858_v63  ;;  %v7938_v62 = vld [vmem:[%s19600_s24 + $0x18] sm:$0xff]  ;;  %v8072_v63 = vld [vmem:[#allocation5] sm:$0xff] }
0x1965   :  { %16272 = vmatprep.subr.mxu0 %v17959_v19  ;;  %16283 = vmatprep.subr.mxu1 %v17959_v19 }
0x1966   :  { %16273 = vmatpush3.msra.mxu0 %v14420_v0  ;;  %16284 = vmatpush3.msra.mxu1 %v6857_v1  ;;  %v8170_v0 = vld [vmem:[#allocation5 + $0x8] sm:$0xff]  ;;  %v7951_v1 = vpop.permute.xlu1 %7950 }
0x1967   :  { %16274 = vmatprep.subr.mxu0 %v17959_v19  ;;  %16285 = vmatprep.subr.mxu1 %v17959_v19 }
0x1968   :  { %16275 = vmatpush3.msra.mxu0 %v14419_v2  ;;  %16286 = vmatpush3.msra.mxu1 %v6856_v3  ;;  %v7946_v2 = vpop.permute.xlu0 %7945 }
0x1969   :  { %16276 = vmatprep.subr.mxu0 %v17959_v19  ;;  %16287 = vmatprep.subr.mxu1 %v17959_v19 }
0x196a   :  { %16277 = vmatpush3.msra.mxu0 %v14418_v4  ;;  %16278 = vmatprep.mubr.msk.f32.mxu0 %vm17960_vm13, %v17959_v19 }
0x196b   :  { %16289 = vmatprep.mubr.msk.f32.mxu1 %vm17960_vm13, %v17959_v19  ;;  %16292 = vmatprep.subr.mxu0 %v17959_v19 }
0x196c   :  { %16288 = vmatpush3.msra.mxu1 %v6855_v5 }
0x196d   :  { %16311 = vmatprep.subr.mxu1 %v17959_v19 }
0x1a22   :  { %v6851_v6 = vpop.f32.mrf.mxu0  ;;  %v6930_v7 = vpop.f32.mrf.mxu1 }
0x1a23   :  { %16279 = vmatmul.mubr.msk.f32.vlgmr.msra.gmra.mxu0 %vm3713_vm15, %v6930_v7  ;;  %16290 = vmatmul.mubr.msk.f32.vlgmr.msra.gmra.mxu1 %vm3713_vm15, %v6851_v6  ;;  %v7961_v7 = vpop.permute.xlu1 %7960 }
0x1a24   :  { %16293 = vmatpush3.msra.mxu0 %v18833_v51  ;;  %v16269_v8 = vpop.f32.mrf.mxu1  ;;  %16308 = vmatprep.mubr.msk.f32.mxu0 %vm17960_vm13, %v17959_v19  ;;  %v16250_v9 = vpop.f32.mrf.mxu0 }
0x1a25   :  { %16294 = vmatprep.subr.mxu0 %v17959_v19  ;;  %16319 = vmatprep.mubr.msk.f32.mxu1 %vm17960_vm13, %v17959_v19 }
0x1a26   :  { %16295 = vmatpush3.msra.mxu0 %v18840_v53  ;;  %16312 = vmatpush3.msra.mxu1 %v14428_v11 }
0x1a27   :  { %16296 = vmatprep.subr.mxu0 %v17959_v19  ;;  %16313 = vmatprep.subr.mxu1 %v17959_v19 }
0x1a28   :  { %16297 = vmatpush3.msra.mxu0 %v18847_v55  ;;  %16314 = vmatpush3.msra.mxu1 %v14427_v12  ;;  %v7956_v12 = vpop.permute.xlu0 %7955 }
0x1a29   :  { %16298 = vmatprep.subr.mxu0 %v17959_v19  ;;  %16315 = vmatprep.subr.mxu1 %v17959_v19 }
0x1a2a   :  { %16299 = vmatpush3.msra.mxu0 %v18854_v57  ;;  %16316 = vmatpush3.msra.mxu1 %v14426_v13 }
0x1a2b   :  { %16300 = vmatprep.subr.mxu0 %v17959_v19  ;;  %16317 = vmatprep.subr.mxu1 %v17959_v19 }
0x1a2c   :  { %16301 = vmatpush3.msra.mxu0 %v18861_v58  ;;  %16318 = vmatpush3.msra.mxu1 %v14425_v14 }
0x1a2d   :  { %16302 = vmatprep.subr.mxu0 %v17959_v19  ;;  %16322 = vmatprep.subr.mxu1 %v17959_v19 }
0x1a2e   :  { %16303 = vmatpush3.msra.mxu0 %v18868_v59 }
0x1a2f   :  { %16304 = vmatprep.subr.mxu0 %v17959_v19 }
0x1a30   :  { %16305 = vmatpush3.msra.mxu0 %v18830_v27 }
0x1a31   :  { %16306 = vmatprep.subr.mxu0 %v17959_v19 }
0x1a32   :  { %16307 = vmatpush3.msra.mxu0 %v18827_v22 }
0x1a33   :  { %16309 = vmatmul.mubr.msk.f32.vlgmr.msra.gmra.mxu0 %vm2067_vm10, %v7086_v10  ;;  %16341 = vmatprep.subr.mxu0 %v17959_v19 }
0x1a34   :  { %16349 = vmatprep.mubr.msk.f32.mxu0 %vm17960_vm13, %v17959_v19  ;;  %16342 = vmatpush3.msra.mxu0 %v14434_v25 }
0x1a35   :  { %16343 = vmatprep.subr.mxu0 %v17959_v19 }
0x1a36   :  { %16344 = vmatpush3.msra.mxu0 %v14433_v26 }
0x1a37   :  { %16345 = vmatprep.subr.mxu0 %v17959_v19 }
0x1a38   :  { %16346 = vmatpush3.msra.mxu0 %v14432_v28 }
0x1a39   :  { %16347 = vmatprep.subr.mxu0 %v17959_v19 }
0x1ae3   :  { %v7008_v15 = vpop.f32.mrf.mxu0  ;;  %v7081_v16 = vpop.f32.mrf.mxu1 }
0x1ae4   :  { %v7082_v17 = vadd.f32 %v7081_v16, %v7008_v15 }
0x1ae5   :  { %v16280_v18 = vpop.f32.mrf.mxu0  ;;  %v16291_v21 = vpop.f32.mrf.mxu1 }
0x1ae6   :  { %v8256_v18 = vld [vmem:[#allocation5 + $0x10] sm:$0xff] }
0x1af3   :  { %v7156_v23 = vpop.f32.mrf.mxu0 }
0x1af4   :  { %16320 = vmatmul.mubr.msk.f32.vlgmr.msra.gmra.mxu1 %vm3713_vm15, %v7156_v23 }
0x1af5   :  { %16323 = vmatpush3.msra.mxu1 %v18833_v51  ;;  %v16310_v20 = vpop.f32.mrf.mxu0  ;;  %16338 = vmatprep.mubr.msk.f32.mxu1 %vm17960_vm13, %v17959_v19 }
0x1af6   :  { %16324 = vmatprep.subr.mxu1 %v17959_v19 }
0x1af7   :  { %16325 = vmatpush3.msra.mxu1 %v18840_v53 }
0x1af8   :  { %16326 = vmatprep.subr.mxu1 %v17959_v19 }
0x1af9   :  { %16327 = vmatpush3.msra.mxu1 %v18847_v55 }
0x1afa   :  { %16328 = vmatprep.subr.mxu1 %v17959_v19 }
0x1afb   :  { %16329 = vmatpush3.msra.mxu1 %v18854_v57 }
0x1afc   :  { %16330 = vmatprep.subr.mxu1 %v17959_v19 }
0x1afd   :  { %16331 = vmatpush3.msra.mxu1 %v18861_v58 }
0x1afe   :  { %16332 = vmatprep.subr.mxu1 %v17959_v19 }
0x1aff   :  { %16333 = vmatpush3.msra.mxu1 %v18868_v59 }
0x1b00   :  { %16334 = vmatprep.subr.mxu1 %v17959_v19 }
0x1b01   :  { %16335 = vmatpush3.msra.mxu1 %v18830_v27  ;;  %v14431_v27 = vld [vmem:[%s18205_s27 + $0x60] sm:$0xff] }
0x1b02   :  { %16336 = vmatprep.subr.mxu1 %v17959_v19  ;;  %16348 = vmatpush3.msra.mxu0 %v14431_v27 }
0x1b03   :  { %16337 = vmatpush3.msra.mxu1 %v18827_v22  ;;  %v14443_v22 = vld [vmem:[%s19582_s19 + $0x10] sm:$0xff]  ;;  %16352 = vmatprep.subr.mxu0 %v7397_v31 }
0x1b04   :  { %16339 = vmatmul.mubr.msk.f32.vlgmr.msra.gmra.mxu1 %vm2067_vm10, %v7240_v24  ;;  %16362 = vmatprep.subr.mxu1 %v14443_v22  ;;  %v8342_v24 = vld [vmem:[#allocation2] sm:$0xff] }
0x1b05   :  { %16363 = vmatpush3.msra.mxu1 %v14443_v22  ;;  %16364 = vmatprep.mubr.msk.f32.mxu1 %vm548_vm0, %v14436_v29 }
0x1b06   :  { %16372 = vmatprep.subr.mxu1 %v14449_v32 }
0x1b08   :  { %16365 = vmatmul.mubr.msk.f32.vlgmr.msra.gmra.mxu1 %vm548_vm0, %v14437_v30 }
0x1b09   :  { %16373 = vmatpush3.msra.mxu1 %v14449_v32  ;;  %16374 = vmatprep.mubr.msk.f32.mxu1 %vm548_vm0, %v14436_v29 }
0x1b0a   :  { %16382 = vmatprep.subr.mxu1 %v14455_v33 }
0x1b0c   :  { %16375 = vmatmul.mubr.msk.f32.vlgmr.msra.gmra.mxu1 %vm548_vm0, %v14437_v30 }
0x1b0d   :  { %16384 = vmatprep.mubr.msk.f32.mxu1 %vm548_vm0, %v14436_v29  ;;  %16383 = vmatpush3.msra.mxu1 %v14455_v33 }
0x1b0e   :  { %16421 = vmatprep.subr.mxu1 %v8072_v63 }
0x1b10   :  { %16385 = vmatmul.mubr.msk.f32.vlgmr.msra.gmra.mxu1 %vm548_vm0, %v14437_v30 }
0x1b11   :  { %16422 = vmatpush3.msra.mxu1 %v8072_v63 }
0x1b12   :  { %16429 = vmatprep.subr.mxu1 %v8170_v0 }
0x1bb4   :  { %v7234_v34 = vpop.f32.mrf.mxu1 }
0x1bb5   :  { %v7238_v35 = vadd.f32 %v7234_v34, %v7082_v17 }
0x1bb6   :  { %v16321_v36 = vpop.f32.mrf.mxu1 }
0x1bb7   :  { %v8343_v36 = vld [vmem:[#allocation2 + $0x8] sm:$0xff] }
0x1bc4   :  { %v7310_v37 = vpop.f32.mrf.mxu1 }
0x1bc5   :  { %16350 = vmatmul.mubr.msk.f32.vlgmr.msra.gmra.mxu0 %vm3713_vm15, %v7310_v37  ;;  %v8344_v37 = vld [vmem:[#allocation2 + $0x10] sm:$0xff] }
0x1bc6   :  { %v16340_v39 = vpop.f32.mrf.mxu1  ;;  %16353 = vmatpush3.msra.mxu0 %v7397_v31  ;;  %16354 = vmatprep.mubr.msk.f32.mxu0 %vm548_vm0, %v14436_v29 }
0x1bc7   :  { %16357 = vmatprep.subr.mxu0 %v14440_v38  ;;  %v8468_v39 = vld [vmem:[#allocation7 + $0x8] sm:$0xff] }
0x1bc8   :  { %v16366_v42 = vpop.f32.mrf.mxu1 }
0x1bc9   :  { %16355 = vmatmul.mubr.msk.f32.vlgmr.msra.gmra.mxu0 %vm548_vm0, %v14437_v30 }
0x1bca   :  { %16358 = vmatpush3.msra.mxu0 %v14440_v38  ;;  %16359 = vmatprep.mubr.msk.f32.mxu0 %vm548_vm0, %v14436_v29  ;;  %v7622_v43 = vpop.f32.mrf.mxu1  ;;  %v8345_v38 = vld [vmem:[#allocation2 + $0x18] sm:$0xff] }
0x1bcb   :  { %16367 = vmatprep.subr.mxu0 %v14446_v40 }
0x1bcc   :  { %v16376_v44 = vpop.f32.mrf.mxu1 }
0x1bcd   :  { %16360 = vmatmul.mubr.msk.f32.vlgmr.msra.gmra.mxu0 %vm548_vm0, %v14437_v30 }
0x1bce   :  { %16368 = vmatpush3.msra.mxu0 %v14446_v40  ;;  %16369 = vmatprep.mubr.msk.f32.mxu0 %vm548_vm0, %v14436_v29  ;;  %v7774_v45 = vpop.f32.mrf.mxu1  ;;  %v8467_v40 = vld [vmem:[#allocation7] sm:$0xff] }
0x1bcf   :  { %16377 = vmatprep.subr.mxu0 %v14452_v41 }
0x1bd0   :  { %v16386_v46 = vpop.f32.mrf.mxu1 }
0x1bd1   :  { %16370 = vmatmul.mubr.msk.f32.vlgmr.msra.gmra.mxu0 %vm548_vm0, %v14437_v30 }
0x1bd2   :  { %16378 = vmatpush3.msra.mxu0 %v14452_v41  ;;  %16379 = vmatprep.mubr.msk.f32.mxu0 %vm548_vm0, %v14436_v29  ;;  %v7926_v47 = vpop.f32.mrf.mxu1 }
0x1bd3   :  { %16387 = vmatprep.subr.mxu0 %v16386_v46 }
0x1bd5   :  { %16380 = vmatmul.mubr.msk.f32.vlgmr.msra.gmra.mxu0 %vm548_vm0, %v14437_v30 }
0x1bd6   :  { %16388 = vmatpush3.msra.mxu0 %v16386_v46  ;;  %16415 = vmatprep.mubr.msk.f32.mxu0 %vm1120_vm1, %v7935_v48 }
0x1bd7   :  { %16389 = vmatprep.subr.mxu0 %v7926_v47 }
0x1bd8   :  { %16390 = vmatpush3.msra.mxu0 %v7926_v47 }
0x1c85   :  { %v7388_v49 = vpop.f32.mrf.mxu0 }
0x1c86   :  { %v7392_v50 = vadd.f32 %v7388_v49, %v7238_v35 }
0x1c87   :  { %v16351_v51 = vpop.f32.mrf.mxu0 }
0x1c88   :  { %7393 = vst [vmem:[#allocation43] sm:$0x1] %v7392_v50 }
0x1c89   :  { %v16356_v52 = vpop.f32.mrf.mxu0 }
0x1c8b   :  { %v7470_v53 = vpop.f32.mrf.mxu0 }
0x1c8d   :  { %v16361_v54 = vpop.f32.mrf.mxu0 }
0x1c8f   :  { %v7546_v55 = vpop.f32.mrf.mxu0 }
0x1c91   :  { %v16371_v56 = vpop.f32.mrf.mxu0 }
0x1c93   :  { %v7698_v57 = vpop.f32.mrf.mxu0 }
0x1c95   :  { %v16381_v58 = vpop.f32.mrf.mxu0 }
0x1c96   :  { %16391 = vmatprep.subr.mxu0 %v16381_v58 }
0x1c97   :  { %v7850_v59 = vpop.f32.mrf.mxu0  ;;  %16392 = vmatpush3.msra.mxu0 %v16381_v58 }
0x1c98   :  { %16393 = vmatprep.subr.mxu0 %v7850_v59 }
0x1c99   :  { %16394 = vmatpush3.msra.mxu0 %v7850_v59 }
0x1c9a   :  { %16395 = vmatprep.subr.mxu0 %v16376_v44 }
0x1c9b   :  { %16396 = vmatpush3.msra.mxu0 %v16376_v44 }
0x1c9c   :  { %16397 = vmatprep.subr.mxu0 %v7774_v45 }
0x1c9d   :  { %16398 = vmatpush3.msra.mxu0 %v7774_v45  ;;  %v8368_v45 = vpop.permute.xlu1 %8367 }
0x1c9e   :  { %16399 = vmatprep.subr.mxu0 %v16371_v56 }
0x1c9f   :  { %16400 = vmatpush3.msra.mxu0 %v16371_v56 }
0x1ca0   :  { %16401 = vmatprep.subr.mxu0 %v7698_v57 }
0x1ca1   :  { %16402 = vmatpush3.msra.mxu0 %v7698_v57  ;;  %v8358_v51 = vpop.permute.xlu1 %8357 }
0x1ca2   :  { %16403 = vmatprep.subr.mxu0 %v16366_v42 }
0x1ca3   :  { %16404 = vmatpush3.msra.mxu0 %v16366_v42  ;;  %v8363_v42 = vpop.permute.xlu0 %8362 }
0x1ca4   :  { %16405 = vmatprep.subr.mxu0 %v7622_v43 }
0x1ca5   :  { %16406 = vmatpush3.msra.mxu0 %v7622_v43 }
0x1ca6   :  { %16407 = vmatprep.subr.mxu0 %v16361_v54 }
0x1ca7   :  { %16408 = vmatpush3.msra.mxu0 %v16361_v54  ;;  %v8353_v48 = vpop.permute.xlu0 %8352  ;;  %v8637_v54 = vld [vmem:[#allocation11] sm:$0xff] }
0x1ca8   :  { %16409 = vmatprep.subr.mxu0 %v7546_v55 }
0x1ca9   :  { %16410 = vmatpush3.msra.mxu0 %v7546_v55  ;;  %v8721_v55 = vld [vmem:[#allocation11 + $0x18] sm:$0xff] }
0x1caa   :  { %16411 = vmatprep.subr.mxu0 %v16356_v52 }
0x1cab   :  { %16412 = vmatpush3.msra.mxu0 %v16356_v52 }
0x1cac   :  { %16413 = vmatprep.subr.mxu0 %v7470_v53 }
0x1cad   :  { %16414 = vmatpush3.msra.mxu0 %v7470_v53  ;;  %v8638_v53 = vld [vmem:[#allocation11 + $0x8] sm:$0xff] }
0x1cae   :  { %16416 = vmatmul.mubr.msk.f32.vlgmr.msra.gmra.mxu0 %vm1120_vm1, %v7936_v60  ;;  %16475 = vmatprep.subr.mxu0 %v8468_v39 }
0x1caf   :  { %16418 = vmatprep.mubr.msk.f32.mxu0 %vm1120_vm1, %v7937_v61  ;;  %16476 = vmatpush3.msra.mxu0 %v8468_v39 }
0x1cb0   :  { %16480 = vmatprep.subr.mxu0 %v8467_v40 }
0x1cb2   :  { %16419 = vmatmul.mubr.msk.f32.gmra.mxu0 %vm1120_vm1, %v7938_v62 }
0x1d6e   :  { %v16417_v3 = vpop.f32.mrf.mxu0 }
0x1d6f   :  { %v8047_v4 = vadd.f32 %v16417_v3, %v7951_v1  ;;  %v8798_v3 = vld [vmem:[#allocation11 + $0x28] sm:$0xff] }
0x1d70   :  { %v8041_v5 = vpop.f32.mrf.mxu0 }
0x1d71   :  { %v8042_v6 = vadd.f32 %v8041_v5, %v7946_v2  ;;  %v8065_v8 = vmul.f32 0.2, %v8047_v4  ;;  %vm8061_vm2 = vcmp.gt.f32.partialorder %v8047_v4, 0.0  ;;  %v8720_v2 = vld [vmem:[#allocation11 + $0x10] sm:$0xff] }
0x1d72   :  { %v16420_v9 = vpop.f32.mrf.mxu0  ;;  %v8874_v5 = vld [vmem:[#allocation8] sm:$0xff] }
0x1d73   :  { %vm8060_vm3 = vcmp.gt.f32.partialorder %v8042_v6, 0.0  ;;  %v8064_v10 = vmul.f32 0.2, %v8042_v6  ;;  %v8057_v11 = vadd.f32 %v16420_v9, %v7961_v7  ;;  %v8069_v16 = vsel %vm8061_vm2, %v8047_v4, %v8065_v8  ;;  %v8797_v4 = vld [vmem:[#allocation11 + $0x20] sm:$0xff] }
0x1d74   :  { %v8051_v13 = vpop.f32.mrf.mxu0 }
0x1d75   :  { %v8052_v14 = vadd.f32 %v8051_v13, %v7956_v12  ;;  %v8068_v15 = vsel %vm8060_vm3, %v8042_v6, %v8064_v10  ;;  %v8067_v17 = vmul.f32 0.2, %v8057_v11  ;;  %vm8063_vm1 = vcmp.gt.f32.partialorder %v8057_v11, 0.0  ;;  %v8875_v12 = vld [vmem:[#allocation8 + $0x8] sm:$0xff]  ;;  %v8876_v13 = vld [vmem:[#allocation8 + $0x10] sm:$0xff] }
0x1d76   :  { %16423 = vmatprep.mubr.msk.f32.mxu1 %vm548_vm0, %v8068_v15 }
0x1d77   :  { %vm8062_vm4 = vcmp.gt.f32.partialorder %v8052_v14, 0.0  ;;  %v8066_v21 = vmul.f32 0.2, %v8052_v14  ;;  %16424 = vmatmul.mubr.msk.f32.vlgmr.msra.gmra.mxu1 %vm548_vm0, %v8069_v16  ;;  %v8071_v20 = vsel %vm8063_vm1, %v8057_v11, %v8067_v17 }
0x1d78   :  { %16430 = vmatpush3.msra.mxu1 %v8170_v0 }
0x1d79   :  { %v8070_v23 = vsel %vm8062_vm4, %v8052_v14, %v8066_v21  ;;  %16437 = vmatprep.subr.mxu1 %v8256_v18  ;;  %v8877_v14 = vld [vmem:[#allocation8 + $0x18] sm:$0xff]  ;;  %v8885_v21 = vpop.permute.xlu1 %8884 }
0x1d7a   :  { %16426 = vmatprep.mubr.msk.f32.mxu1 %vm548_vm0, %v8070_v23 }
0x1d7b   :  { %16427 = vmatmul.mubr.msk.f32.gmra.mxu1 %vm548_vm0, %v8071_v20 }
0x1d7c   :  { %16431 = vmatprep.mubr.msk.f32.mxu1 %vm548_vm0, %v8068_v15 }
0x1d7f   :  { %16432 = vmatmul.mubr.msk.f32.vlgmr.msra.gmra.mxu1 %vm548_vm0, %v8069_v16 }
0x1d80   :  { %16434 = vmatprep.mubr.msk.f32.mxu1 %vm548_vm0, %v8070_v23  ;;  %16438 = vmatpush3.msra.mxu1 %v8256_v18 }
0x1d83   :  { %16435 = vmatmul.mubr.msk.f32.gmra.mxu1 %vm548_vm0, %v8071_v20 }
0x1d84   :  { %16439 = vmatprep.mubr.msk.f32.mxu1 %vm548_vm0, %v8068_v15  ;;  %v8999_v15 = vld [vmem:[#allocation10] sm:$0xff] }
0x1d87   :  { %16440 = vmatmul.mubr.msk.f32.vlgmr.msra.gmra.mxu1 %vm548_vm0, %v8069_v16  ;;  %v8890_v16 = vpop.permute.xlu0 %8889 }
0x1d88   :  { %16442 = vmatprep.mubr.msk.f32.mxu1 %vm548_vm0, %v8070_v23 }
0x1d8b   :  { %16443 = vmatmul.mubr.msk.f32.gmra.mxu1 %vm548_vm0, %v8071_v20 }
0x1d8c   :  { %16469 = vmatprep.mubr.msk.f32.mxu1 %vm1530_vm6, %v8342_v24 }
0x1e37   :  { %v16425_v25 = vpop.f32.mrf.mxu1 }
0x1e39   :  { %v8151_v26 = vpop.f32.mrf.mxu1 }
0x1e3b   :  { %v16428_v28 = vpop.f32.mrf.mxu1 }
0x1e3d   :  { %v8161_v27 = vpop.f32.mrf.mxu1 }
0x1e3f   :  { %v16433_v22 = vpop.f32.mrf.mxu1 }
0x1e41   :  { %v8237_v29 = vpop.f32.mrf.mxu1 }
0x1e43   :  { %v16436_v30 = vpop.f32.mrf.mxu1 }
0x1e45   :  { %v8247_v31 = vpop.f32.mrf.mxu1 }
0x1e47   :  { %v16441_v32 = vpop.f32.mrf.mxu1 }
0x1e49   :  { %v8323_v33 = vpop.f32.mrf.mxu1 }
0x1e4b   :  { %v16444_v34 = vpop.f32.mrf.mxu1 }
0x1e4c   :  { %16445 = vmatprep.subr.mxu1 %v16444_v34 }
0x1e4d   :  { %v8333_v35 = vpop.f32.mrf.mxu1  ;;  %16446 = vmatpush3.msra.mxu1 %v16444_v34 }
0x1e4e   :  { %16447 = vmatprep.subr.mxu1 %v8333_v35 }
0x1e4f   :  { %16448 = vmatpush3.msra.mxu1 %v8333_v35 }
0x1e50   :  { %16449 = vmatprep.subr.mxu1 %v16441_v32 }
0x1e51   :  { %16450 = vmatpush3.msra.mxu1 %v16441_v32  ;;  %v9012_v32 = vpop.permute.xlu1 %9011 }
0x1e52   :  { %16451 = vmatprep.subr.mxu1 %v8323_v33 }
0x1e53   :  { %16452 = vmatpush3.msra.mxu1 %v8323_v33 }
0x1e54   :  { %16453 = vmatprep.subr.mxu1 %v16436_v30 }
0x1e55   :  { %16454 = vmatpush3.msra.mxu1 %v16436_v30  ;;  %v9192_v30 = vld [vmem:[#allocation16 + $0x18] sm:$0xff]  ;;  %v9017_v35 = vpop.permute.xlu1 %9016 }
0x1e56   :  { %16455 = vmatprep.subr.mxu1 %v8247_v31 }
0x1e57   :  { %16456 = vmatpush3.msra.mxu1 %v8247_v31  ;;  %v8895_v31 = vpop.permute.xlu0 %8894 }
0x1e58   :  { %16457 = vmatprep.subr.mxu1 %v16433_v22 }
0x1e59   :  { %16458 = vmatpush3.msra.mxu1 %v16433_v22  ;;  %v9109_v22 = vld [vmem:[#allocation16 + $0x8] sm:$0xff] }
0x1e5a   :  { %16459 = vmatprep.subr.mxu1 %v8237_v29 }
0x1e5b   :  { %16460 = vmatpush3.msra.mxu1 %v8237_v29  ;;  %v9108_v29 = vld [vmem:[#allocation16] sm:$0xff]  ;;  %v8900_v34 = vpop.permute.xlu0 %8899 }
0x1e5c   :  { %16461 = vmatprep.subr.mxu1 %v16428_v28 }
0x1e5d   :  { %16462 = vmatpush3.msra.mxu1 %v16428_v28 }
0x1e5e   :  { %16463 = vmatprep.subr.mxu1 %v8161_v27 }
0x1e5f   :  { %16464 = vmatpush3.msra.mxu1 %v8161_v27  ;;  %v9000_v27 = vld [vmem:[#allocation10 + $0x8] sm:$0xff] }
0x1e60   :  { %16465 = vmatprep.subr.mxu1 %v16425_v25 }
0x1e61   :  { %16466 = vmatpush3.msra.mxu1 %v16425_v25 }
0x1e62   :  { %16467 = vmatprep.subr.mxu1 %v8151_v26 }
0x1e63   :  { %16468 = vmatpush3.msra.mxu1 %v8151_v26 }
0x1e64   :  { %16470 = vmatmul.mubr.msk.f32.vlgmr.msra.gmra.mxu1 %vm1530_vm6, %v8343_v36 }
0x1e65   :  { %16472 = vmatprep.mubr.msk.f32.mxu1 %vm1530_vm6, %v8344_v37 }
0x1e68   :  { %16473 = vmatmul.mubr.msk.f32.gmra.mxu1 %vm1530_vm6, %v8345_v38 }
0x1e69   :  { %16522 = vmatprep.mubr.msk.f32.mxu1 %vm2067_vm10, %v8874_v5 }
0x1f24   :  { %v16471_v41 = vpop.f32.mrf.mxu1 }
0x1f25   :  { %v8454_v52 = vadd.f32 %v16471_v41, %v8358_v51  ;;  %v9268_v51 = vld [vmem:[#allocation16 + $0x20] sm:$0xff] }
0x1f26   :  { %v8448_v43 = vpop.f32.mrf.mxu1 }
0x1f27   :  { %v8449_v50 = vadd.f32 %v8448_v43, %v8353_v48 }
0x1f28   :  { %v16474_v44 = vpop.f32.mrf.mxu1 }
0x1f29   :  { %v8464_v49 = vadd.f32 %v16474_v44, %v8368_v45 }
0x1f2a   :  { %v8458_v46 = vpop.f32.mrf.mxu1 }
0x1f2b   :  { %v8459_v47 = vadd.f32 %v8458_v46, %v8363_v42 }
0x1f2d   :  { %16477 = vmatprep.mubr.msk.f32.mxu0 %vm548_vm0, %v8459_v47 }
0x1f2e   :  { %16478 = vmatmul.mubr.msk.f32.vlgmr.msra.gmra.mxu0 %vm548_vm0, %v8464_v49  ;;  %v9191_v49 = vld [vmem:[#allocation16 + $0x10] sm:$0xff] }
0x1f2f   :  { %16482 = vmatprep.mubr.msk.f32.mxu0 %vm548_vm0, %v8449_v50  ;;  %16481 = vmatpush3.msra.mxu0 %v8467_v40  ;;  %v9269_v50 = vld [vmem:[#allocation16 + $0x28] sm:$0xff] }
0x1f30   :  { %16485 = vmatprep.subr.mxu0 %v8638_v53 }
0x1f32   :  { %16483 = vmatmul.mubr.msk.f32.vlgmr.msra.gmra.mxu0 %vm548_vm0, %v8454_v52  ;;  %v9345_v52 = vld [vmem:[#allocation13] sm:$0xff] }
0x1f33   :  { %16486 = vmatpush3.msra.mxu0 %v8638_v53 }
0x1f34   :  { %16487 = vmatprep.subr.mxu0 %v8637_v54 }
0x1f35   :  { %16488 = vmatpush3.msra.mxu0 %v8637_v54 }
0x1f36   :  { %16492 = vmatprep.subr.mxu0 %v8721_v55 }
0x1fee   :  { %v16479_v56 = vpop.f32.mrf.mxu0 }
0x1ff0   :  { %v8541_v57 = vpop.f32.mrf.mxu0 }
0x1ff2   :  { %v16484_v58 = vpop.f32.mrf.mxu0 }
0x1ff3   :  { %v8628_v59 = vadd.f32 %v16484_v58, %v16479_v56 }
0x1ff4   :  { %v8622_v60 = vpop.f32.mrf.mxu0 }
0x1ff5   :  { %v8623_v61 = vadd.f32 %v8622_v60, %v8541_v57  ;;  %16506 = vmatprep.subr.mxu1 %v8628_v59  ;;  %v8634_v62 = vmul.f32 0.2, %v8628_v59  ;;  %vm8632_vm5 = vcmp.gt.f32.partialorder %v8628_v59, 0.0  ;;  %v9347_v60 = vld [vmem:[#allocation13 + $0x10] sm:$0xff] }
0x1ff6   :  { %16507 = vmatpush3.msra.mxu1 %v8628_v59 }
0x1ff7   :  { %16508 = vmatprep.subr.mxu1 %v8623_v61  ;;  %vm8631_vm6 = vcmp.gt.f32.partialorder %v8623_v61, 0.0  ;;  %v8633_v63 = vmul.f32 0.2, %v8623_v61  ;;  %v8636_v1 = vsel %vm8632_vm5, %v8628_v59, %v8634_v62  ;;  %v9346_v59 = vld [vmem:[#allocation13 + $0x8] sm:$0xff]  ;;  %v9470_v62 = vld [vmem:[#allocation14] sm:$0xff] }
0x1ff8   :  { %16509 = vmatpush3.msra.mxu1 %v8623_v61 }
0x1ff9   :  { %v8635_v0 = vsel %vm8631_vm6, %v8623_v61, %v8633_v63  ;;  %v9348_v61 = vld [vmem:[#allocation13 + $0x18] sm:$0xff]  ;;  %v9361_v63 = vpop.permute.xlu0 %9360 }
0x1ffa   :  { %16489 = vmatprep.mubr.msk.f32.mxu0 %vm1801_vm8, %v8635_v0 }
0x1ffb   :  { %16490 = vmatmul.mubr.msk.f32.vlgmr.msra.gmra.mxu0 %vm1801_vm8, %v8636_v1 }
0x1ffc   :  { %16493 = vmatpush3.msra.mxu0 %v8721_v55  ;;  %16496 = vmatprep.mubr.msk.f32.mxu0 %vm1801_vm8, %v8635_v0 }
0x1ffd   :  { %16494 = vmatprep.subr.mxu0 %v8720_v2 }
0x1ffe   :  { %16495 = vmatpush3.msra.mxu0 %v8720_v2  ;;  %v9356_v2 = vpop.permute.xlu1 %9355 }
0x1fff   :  { %16497 = vmatmul.mubr.msk.f32.vlgmr.msra.gmra.mxu0 %vm1801_vm8, %v8636_v1  ;;  %16499 = vmatprep.subr.mxu0 %v8798_v3 }
0x2000   :  { %16500 = vmatpush3.msra.mxu0 %v8798_v3  ;;  %16503 = vmatprep.mubr.msk.f32.mxu0 %vm1801_vm8, %v8635_v0 }
0x2001   :  { %16501 = vmatprep.subr.mxu0 %v8797_v4 }
0x2002   :  { %16502 = vmatpush3.msra.mxu0 %v8797_v4 }
0x2003   :  { %16504 = vmatmul.mubr.msk.f32.vlgmr.msra.gmra.mxu0 %vm1801_vm8, %v8636_v1 }
0x2004   :  { %16532 = vmatprep.mubr.msk.f32.mxu0 %vm1801_vm8, %v8999_v15 }
0x20bb   :  { %v16491_v6 = vpop.f32.mrf.mxu0 }
0x20bd   :  { %v8711_v7 = vpop.f32.mrf.mxu0 }
0x20bf   :  { %v16498_v8 = vpop.f32.mrf.mxu0 }
0x20c1   :  { %v8788_v9 = vpop.f32.mrf.mxu0 }
0x20c3   :  { %v16505_v10 = vpop.f32.mrf.mxu0 }
0x20c4   :  { %16510 = vmatprep.subr.mxu1 %v16505_v10 }
0x20c5   :  { %v8865_v11 = vpop.f32.mrf.mxu0  ;;  %16511 = vmatpush3.msra.mxu1 %v16505_v10  ;;  %v9580_v10 = vld [vmem:[#allocation20 + $0x8] sm:$0xff] }
0x20c6   :  { %16512 = vmatprep.subr.mxu1 %v8865_v11 }
0x20c7   :  { %16513 = vmatpush3.msra.mxu1 %v8865_v11  ;;  %v9579_v11 = vld [vmem:[#allocation20] sm:$0xff] }
0x20c8   :  { %16514 = vmatprep.subr.mxu1 %v16498_v8 }
0x20c9   :  { %16515 = vmatpush3.msra.mxu1 %v16498_v8 }
0x20ca   :  { %16516 = vmatprep.subr.mxu1 %v8788_v9 }
0x20cb   :  { %16517 = vmatpush3.msra.mxu1 %v8788_v9  ;;  %v9471_v9 = vld [vmem:[#allocation14 + $0x8] sm:$0xff] }
0x20cc   :  { %16518 = vmatprep.subr.mxu1 %v16491_v6 }
0x20cd   :  { %16519 = vmatpush3.msra.mxu1 %v16491_v6 }
0x20ce   :  { %16520 = vmatprep.subr.mxu1 %v8711_v7 }
0x20cf   :  { %16521 = vmatpush3.msra.mxu1 %v8711_v7 }
0x20d0   :  { %16523 = vmatmul.mubr.msk.f32.vlgmr.msra.gmra.mxu1 %vm2067_vm10, %v8875_v12  ;;  %v9663_v12 = vld [vmem:[#allocation20 + $0x18] sm:$0xff] }
0x20d1   :  { %16525 = vmatprep.mubr.msk.f32.mxu1 %vm2067_vm10, %v8876_v13  ;;  %v9366_v13 = vpop.permute.xlu0 %9365 }
0x20d4   :  { %16526 = vmatmul.mubr.msk.f32.gmra.mxu1 %vm2067_vm10, %v8877_v14  ;;  %v9483_v14 = vpop.permute.xlu1 %9482 }
0x20d5   :  { %16572 = vmatprep.mubr.msk.f32.mxu1 %vm2067_vm10, %v9345_v52 }
0x2190   :  { %v16524_v17 = vpop.f32.mrf.mxu1 }
0x2191   :  { %v8986_v18 = vadd.f32 %v16524_v17, %v8890_v16  ;;  %v9371_v16 = vpop.permute.xlu0 %9370  ;;  %v9488_v17 = vpop.permute.xlu1 %9487 }
0x2192   :  { %v8980_v23 = vpop.f32.mrf.mxu1 }
0x2193   :  { %v9004_v20 = vmul.f32 0.2, %v8986_v18  ;;  %v8981_v24 = vadd.f32 %v8980_v23, %v8885_v21  ;;  %vm9002_vm7 = vcmp.gt.f32.partialorder %v8986_v18, 0.0 }
0x2194   :  { %v16527_v33 = vpop.f32.mrf.mxu1 }
0x2195   :  { %v9003_v25 = vmul.f32 0.2, %v8981_v24  ;;  %v9006_v26 = vsel %vm9002_vm7, %v8986_v18, %v9004_v20  ;;  %vm9001_vm9 = vcmp.gt.f32.partialorder %v8981_v24, 0.0  ;;  %v8996_v38 = vadd.f32 %v16527_v33, %v8900_v34  ;;  %v9740_v33 = vld [vmem:[#allocation20 + $0x28] sm:$0xff]  ;;  %v9739_v34 = vld [vmem:[#allocation20 + $0x20] sm:$0xff] }
0x2196   :  { %16528 = vmatprep.subr.mxu0 %v9006_v26  ;;  %v8990_v36 = vpop.f32.mrf.mxu1 }
0x2197   :  { %16529 = vmatpush3.msra.mxu0 %v9006_v26  ;;  %v9005_v28 = vsel %vm9001_vm9, %v8981_v24, %v9003_v25  ;;  %v8991_v41 = vadd.f32 %v8990_v36, %v8895_v31 }
0x2198   :  { %16530 = vmatprep.subr.mxu0 %v9005_v28 }
0x2199   :  { %16531 = vmatpush3.msra.mxu0 %v9005_v28 }
0x219a   :  { %16533 = vmatmul.mubr.msk.f32.vlgmr.msra.gmra.mxu0 %vm1801_vm8, %v9000_v27  ;;  %16535 = vmatprep.subr.mxu0 %v9109_v22 }
0x219b   :  { %16536 = vmatpush3.msra.mxu0 %v9109_v22 }
0x219c   :  { %16537 = vmatprep.subr.mxu0 %v9108_v29 }
0x219d   :  { %16538 = vmatpush3.msra.mxu0 %v9108_v29 }
0x219e   :  { %16542 = vmatprep.subr.mxu0 %v9192_v30 }
0x225a   :  { %v16534_v37 = vpop.f32.mrf.mxu0 }
0x225b   :  { %v9097_v39 = vadd.f32 %v16534_v37, %v9017_v35  ;;  %v9816_v35 = vld [vmem:[#allocation17] sm:$0xff] }
0x225c   :  { %v9091_v40 = vpop.f32.mrf.mxu0 }
0x225d   :  { %v9101_v42 = vadd.f32 %v9097_v39, %v8996_v38  ;;  %v9092_v43 = vadd.f32 %v9091_v40, %v9012_v32  ;;  %v9662_v32 = vld [vmem:[#allocation20 + $0x10] sm:$0xff] }
0x225f   :  { %v9100_v44 = vadd.f32 %v9092_v43, %v8991_v41  ;;  %16556 = vmatprep.subr.mxu1 %v9101_v42  ;;  %v9105_v45 = vmul.f32 0.2, %v9101_v42  ;;  %vm9103_vm3 = vcmp.gt.f32.partialorder %v9101_v42, 0.0  ;;  %v9818_v43 = vld [vmem:[#allocation17 + $0x10] sm:$0xff] }
0x2260   :  { %16557 = vmatpush3.msra.mxu1 %v9101_v42 }
0x2261   :  { %16558 = vmatprep.subr.mxu1 %v9100_v44  ;;  %vm9102_vm2 = vcmp.gt.f32.partialorder %v9100_v44, 0.0  ;;  %v9104_v46 = vmul.f32 0.2, %v9100_v44  ;;  %v9107_v48 = vsel %vm9103_vm3, %v9101_v42, %v9105_v45  ;;  %v9817_v42 = vld [vmem:[#allocation17 + $0x8] sm:$0xff]  ;;  %v9941_v45 = vld [vmem:[#allocation19] sm:$0xff] }
0x2262   :  { %16559 = vmatpush3.msra.mxu1 %v9100_v44 }
0x2263   :  { %v9106_v47 = vsel %vm9102_vm2, %v9100_v44, %v9104_v46  ;;  %v9819_v44 = vld [vmem:[#allocation17 + $0x18] sm:$0xff]  ;;  %v9832_v46 = vpop.permute.xlu0 %9831 }
0x2264   :  { %16539 = vmatprep.mubr.msk.f32.mxu0 %vm1801_vm8, %v9106_v47 }
0x2265   :  { %16540 = vmatmul.mubr.msk.f32.vlgmr.msra.gmra.mxu0 %vm1801_vm8, %v9107_v48 }
0x2266   :  { %16543 = vmatpush3.msra.mxu0 %v9192_v30  ;;  %16546 = vmatprep.mubr.msk.f32.mxu0 %vm1801_vm8, %v9106_v47 }
0x2267   :  { %16544 = vmatprep.subr.mxu0 %v9191_v49 }
0x2268   :  { %16545 = vmatpush3.msra.mxu0 %v9191_v49  ;;  %v9827_v49 = vpop.permute.xlu1 %9826 }
0x2269   :  { %16547 = vmatmul.mubr.msk.f32.vlgmr.msra.gmra.mxu0 %vm1801_vm8, %v9107_v48  ;;  %16549 = vmatprep.subr.mxu0 %v9269_v50 }
0x226a   :  { %16550 = vmatpush3.msra.mxu0 %v9269_v50  ;;  %16553 = vmatprep.mubr.msk.f32.mxu0 %vm1801_vm8, %v9106_v47 }
0x226b   :  { %16551 = vmatprep.subr.mxu0 %v9268_v51 }
0x226c   :  { %16552 = vmatpush3.msra.mxu0 %v9268_v51 }
0x226d   :  { %16554 = vmatmul.mubr.msk.f32.vlgmr.msra.gmra.mxu0 %vm1801_vm8, %v9107_v48 }
0x226e   :  { %16582 = vmatprep.mubr.msk.f32.mxu0 %vm1801_vm8, %v9470_v62 }
0x2325   :  { %v16541_v53 = vpop.f32.mrf.mxu0 }
0x2327   :  { %v9182_v54 = vpop.f32.mrf.mxu0 }
0x2329   :  { %v16548_v55 = vpop.f32.mrf.mxu0 }
0x232b   :  { %v9259_v56 = vpop.f32.mrf.mxu0 }
0x232d   :  { %v16555_v57 = vpop.f32.mrf.mxu0 }
0x232e   :  { %16560 = vmatprep.subr.mxu1 %v16555_v57 }
0x232f   :  { %v9336_v58 = vpop.f32.mrf.mxu0  ;;  %16561 = vmatpush3.msra.mxu1 %v16555_v57  ;;  %v10051_v57 = vld [vmem:[#allocation23 + $0x8] sm:$0xff] }
0x2330   :  { %16562 = vmatprep.subr.mxu1 %v9336_v58 }
0x2331   :  { %16563 = vmatpush3.msra.mxu1 %v9336_v58  ;;  %v10050_v58 = vld [vmem:[#allocation23] sm:$0xff] }
0x2332   :  { %16564 = vmatprep.subr.mxu1 %v16548_v55 }
0x2333   :  { %16565 = vmatpush3.msra.mxu1 %v16548_v55 }
0x2334   :  { %16566 = vmatprep.subr.mxu1 %v9259_v56 }
0x2335   :  { %16567 = vmatpush3.msra.mxu1 %v9259_v56  ;;  %v9942_v56 = vld [vmem:[#allocation19 + $0x8] sm:$0xff] }
0x2336   :  { %16568 = vmatprep.subr.mxu1 %v16541_v53 }
0x2337   :  { %16569 = vmatpush3.msra.mxu1 %v16541_v53 }
0x2338   :  { %16570 = vmatprep.subr.mxu1 %v9182_v54 }
0x2339   :  { %16571 = vmatpush3.msra.mxu1 %v9182_v54 }
0x233a   :  { %16573 = vmatmul.mubr.msk.f32.vlgmr.msra.gmra.mxu1 %vm2067_vm10, %v9346_v59  ;;  %v10134_v59 = vld [vmem:[#allocation23 + $0x18] sm:$0xff] }
0x233b   :  { %16575 = vmatprep.mubr.msk.f32.mxu1 %vm2067_vm10, %v9347_v60  ;;  %v9837_v60 = vpop.permute.xlu0 %9836 }
0x233e   :  { %16576 = vmatmul.mubr.msk.f32.gmra.mxu1 %vm2067_vm10, %v9348_v61  ;;  %v9954_v61 = vpop.permute.xlu1 %9953 }
0x233f   :  { %16622 = vmatprep.mubr.msk.f32.mxu1 %vm2067_vm10, %v9816_v35 }
0x23fa   :  { %v16574_v0 = vpop.f32.mrf.mxu1 }
0x23fb   :  { %v9457_v1 = vadd.f32 %v16574_v0, %v9361_v63  ;;  %v9842_v63 = vpop.permute.xlu0 %9841  ;;  %v9959_v0 = vpop.permute.xlu1 %9958 }
0x23fc   :  { %v9451_v3 = vpop.f32.mrf.mxu1 }
0x23fd   :  { %v9475_v4 = vmul.f32 0.2, %v9457_v1  ;;  %v9452_v5 = vadd.f32 %v9451_v3, %v9356_v2  ;;  %vm9473_vm1 = vcmp.gt.f32.partialorder %v9457_v1, 0.0 }
0x23fe   :  { %v16577_v15 = vpop.f32.mrf.mxu1 }
0x23ff   :  { %v9474_v6 = vmul.f32 0.2, %v9452_v5  ;;  %v9477_v7 = vsel %vm9473_vm1, %v9457_v1, %v9475_v4  ;;  %vm9472_vm4 = vcmp.gt.f32.partialorder %v9452_v5, 0.0  ;;  %v9467_v23 = vadd.f32 %v16577_v15, %v9371_v16  ;;  %v10211_v15 = vld [vmem:[#allocation23 + $0x28] sm:$0xff]  ;;  %v10210_v16 = vld [vmem:[#allocation23 + $0x20] sm:$0xff] }
0x2400   :  { %16578 = vmatprep.subr.mxu0 %v9477_v7  ;;  %v9461_v18 = vpop.f32.mrf.mxu1 }
0x2401   :  { %16579 = vmatpush3.msra.mxu0 %v9477_v7  ;;  %v9476_v8 = vsel %vm9472_vm4, %v9452_v5, %v9474_v6  ;;  %v9462_v25 = vadd.f32 %v9461_v18, %v9366_v13 }
0x2402   :  { %16580 = vmatprep.subr.mxu0 %v9476_v8 }
0x2403   :  { %16581 = vmatpush3.msra.mxu0 %v9476_v8 }
0x2404   :  { %16583 = vmatmul.mubr.msk.f32.vlgmr.msra.gmra.mxu0 %vm1801_vm8, %v9471_v9  ;;  %16585 = vmatprep.subr.mxu0 %v9580_v10 }
0x2405   :  { %16586 = vmatpush3.msra.mxu0 %v9580_v10 }
0x2406   :  { %16587 = vmatprep.subr.mxu0 %v9579_v11 }
0x2407   :  { %16588 = vmatpush3.msra.mxu0 %v9579_v11 }
0x2408   :  { %16592 = vmatprep.subr.mxu0 %v9663_v12 }
0x24c4   :  { %v16584_v21 = vpop.f32.mrf.mxu0 }
0x24c5   :  { %v9568_v20 = vadd.f32 %v16584_v21, %v9488_v17  ;;  %v10287_v17 = vld [vmem:[#allocation22] sm:$0xff] }
0x24c6   :  { %v9562_v24 = vpop.f32.mrf.mxu0 }
0x24c7   :  { %v9572_v26 = vadd.f32 %v9568_v20, %v9467_v23  ;;  %v9563_v28 = vadd.f32 %v9562_v24, %v9483_v14  ;;  %v10133_v14 = vld [vmem:[#allocation23 + $0x10] sm:$0xff] }
0x24c9   :  { %v9571_v27 = vadd.f32 %v9563_v28, %v9462_v25  ;;  %16606 = vmatprep.subr.mxu1 %v9572_v26  ;;  %v9576_v22 = vmul.f32 0.2, %v9572_v26  ;;  %vm9574_vm5 = vcmp.gt.f32.partialorder %v9572_v26, 0.0  ;;  %v10385_v28 = vld [vmem:[#allocation25 + $0x18] sm:$0xff] }
0x24ca   :  { %16607 = vmatpush3.msra.mxu1 %v9572_v26 }
0x24cb   :  { %16608 = vmatprep.subr.mxu1 %v9571_v27  ;;  %vm9573_vm6 = vcmp.gt.f32.partialorder %v9571_v27, 0.0  ;;  %v9575_v29 = vmul.f32 0.2, %v9571_v27  ;;  %v9578_v31 = vsel %vm9574_vm5, %v9572_v26, %v9576_v22  ;;  %v10288_v26 = vld [vmem:[#allocation22 + $0x8] sm:$0xff]  ;;  %v10299_v22 = vpop.permute.xlu0 %10298 }
0x24cc   :  { %16609 = vmatpush3.msra.mxu1 %v9571_v27 }
0x24cd   :  { %v9577_v30 = vsel %vm9573_vm6, %v9571_v27, %v9575_v29  ;;  %v10384_v27 = vld [vmem:[#allocation25 + $0x10] sm:$0xff] }
0x24ce   :  { %16589 = vmatprep.mubr.msk.f32.mxu0 %vm1801_vm8, %v9577_v30 }
0x24cf   :  { %16590 = vmatmul.mubr.msk.f32.vlgmr.msra.gmra.mxu0 %vm1801_vm8, %v9578_v31 }
0x24d0   :  { %16593 = vmatpush3.msra.mxu0 %v9663_v12  ;;  %16596 = vmatprep.mubr.msk.f32.mxu0 %vm1801_vm8, %v9577_v30 }
0x24d1   :  { %16594 = vmatprep.subr.mxu0 %v9662_v32 }
0x24d2   :  { %16595 = vmatpush3.msra.mxu0 %v9662_v32 }
0x24d3   :  { %16597 = vmatmul.mubr.msk.f32.vlgmr.msra.gmra.mxu0 %vm1801_vm8, %v9578_v31  ;;  %16599 = vmatprep.subr.mxu0 %v9740_v33 }
0x24d4   :  { %16600 = vmatpush3.msra.mxu0 %v9740_v33  ;;  %16603 = vmatprep.mubr.msk.f32.mxu0 %vm1801_vm8, %v9577_v30  ;;  %v10382_v33 = vld [vmem:[#allocation25] sm:$0xff] }
0x24d5   :  { %16601 = vmatprep.subr.mxu0 %v9739_v34 }
0x24d6   :  { %16602 = vmatpush3.msra.mxu0 %v9739_v34  ;;  %v10294_v34 = vpop.permute.xlu1 %10293 }
0x24d7   :  { %16604 = vmatmul.mubr.msk.f32.vlgmr.msra.gmra.mxu0 %vm1801_vm8, %v9578_v31  ;;  %v10383_v31 = vld [vmem:[#allocation25 + $0x8] sm:$0xff] }
0x24d8   :  { %16632 = vmatprep.mubr.msk.f32.mxu0 %vm1801_vm8, %v9941_v45 }
0x258f   :  { %v16591_v36 = vpop.f32.mrf.mxu0 }
0x2591   :  { %v9653_v37 = vpop.f32.mrf.mxu0 }
0x2593   :  { %v16598_v38 = vpop.f32.mrf.mxu0 }
0x2595   :  { %v9730_v39 = vpop.f32.mrf.mxu0 }
0x2597   :  { %v16605_v40 = vpop.f32.mrf.mxu0 }
0x2598   :  { %16610 = vmatprep.subr.mxu1 %v16605_v40 }
0x2599   :  { %v9807_v41 = vpop.f32.mrf.mxu0  ;;  %16611 = vmatpush3.msra.mxu1 %v16605_v40  ;;  %v10613_v40 = vld [vmem:[#allocation29 + $0x28] sm:$0xff] }
0x259a   :  { %16612 = vmatprep.subr.mxu1 %v9807_v41 }
0x259b   :  { %16613 = vmatpush3.msra.mxu1 %v9807_v41  ;;  %v10536_v41 = vld [vmem:[#allocation29 + $0x8] sm:$0xff] }
0x259c   :  { %16614 = vmatprep.subr.mxu1 %v16598_v38 }
0x259d   :  { %16615 = vmatpush3.msra.mxu1 %v16598_v38  ;;  %v10614_v38 = vld [vmem:[#allocation29 + $0x30] sm:$0xff] }
0x259e   :  { %16616 = vmatprep.subr.mxu1 %v9730_v39 }
0x259f   :  { %16617 = vmatpush3.msra.mxu1 %v9730_v39  ;;  %v10537_v39 = vld [vmem:[#allocation29 + $0x10] sm:$0xff] }
0x25a0   :  { %16618 = vmatprep.subr.mxu1 %v16591_v36 }
0x25a1   :  { %16619 = vmatpush3.msra.mxu1 %v16591_v36  ;;  %v10615_v36 = vld [vmem:[#allocation29 + $0x38] sm:$0xff] }
0x25a2   :  { %16620 = vmatprep.subr.mxu1 %v9653_v37 }
0x25a3   :  { %16621 = vmatpush3.msra.mxu1 %v9653_v37  ;;  %v10538_v37 = vld [vmem:[#allocation29 + $0x18] sm:$0xff] }
0x25a4   :  { %16623 = vmatmul.mubr.msk.f32.vlgmr.msra.gmra.mxu1 %vm2067_vm10, %v9817_v42  ;;  %v10612_v42 = vld [vmem:[#allocation29 + $0x20] sm:$0xff] }
0x25a5   :  { %16625 = vmatprep.mubr.msk.f32.mxu1 %vm2067_vm10, %v9818_v43  ;;  %v10535_v43 = vld [vmem:[#allocation29] sm:$0xff] }
0x25a8   :  { %16626 = vmatmul.mubr.msk.f32.gmra.mxu1 %vm2067_vm10, %v9819_v44 }
0x25a9   :  { %16668 = vmatprep.mubr.msk.f32.mxu1 %vm3473_vm12, %v10287_v17 }
0x2664   :  { %v16624_v47 = vpop.f32.mrf.mxu1 }
0x2665   :  { %v9928_v48 = vadd.f32 %v16624_v47, %v9832_v46 }
0x2666   :  { %v9922_v50 = vpop.f32.mrf.mxu1 }
0x2667   :  { %v9946_v51 = vmul.f32 0.2, %v9928_v48  ;;  %v9923_v52 = vadd.f32 %v9922_v50, %v9827_v49  ;;  %vm9944_vm7 = vcmp.gt.f32.partialorder %v9928_v48, 0.0  ;;  %v10689_v50 = vld [vmem:[#allocation29 + $0x58] sm:$0xff] }
0x2668   :  { %v16627_v62 = vpop.f32.mrf.mxu1 }
0x2669   :  { %v9945_v53 = vmul.f32 0.2, %v9923_v52  ;;  %v9948_v54 = vsel %vm9944_vm7, %v9928_v48, %v9946_v51  ;;  %vm9943_vm9 = vcmp.gt.f32.partialorder %v9923_v52, 0.0  ;;  %v9938_v3 = vadd.f32 %v16627_v62, %v9842_v63  ;;  %v10761_v62 = vld [vmem:[#allocation26 + $0x8] sm:$0xff] }
0x266a   :  { %16628 = vmatprep.subr.mxu0 %v9948_v54  ;;  %v9932_v1 = vpop.f32.mrf.mxu1 }
0x266b   :  { %16629 = vmatpush3.msra.mxu0 %v9948_v54  ;;  %v9947_v55 = vsel %vm9943_vm9, %v9923_v52, %v9945_v53  ;;  %v9933_v6 = vadd.f32 %v9932_v1, %v9837_v60  ;;  %v10688_v52 = vld [vmem:[#allocation29 + $0x50] sm:$0xff]  ;;  %v10687_v53 = vld [vmem:[#allocation29 + $0x48] sm:$0xff]  ;;  %v10686_v54 = vld [vmem:[#allocation29 + $0x40] sm:$0xff] }
0x266c   :  { %16630 = vmatprep.subr.mxu0 %v9947_v55 }
0x266d   :  { %16631 = vmatpush3.msra.mxu0 %v9947_v55  ;;  %v10760_v55 = vld [vmem:[#allocation26] sm:$0xff] }
0x266e   :  { %16633 = vmatmul.mubr.msk.f32.vlgmr.msra.gmra.mxu0 %vm1801_vm8, %v9942_v56  ;;  %16635 = vmatprep.subr.mxu0 %v10051_v57 }
0x266f   :  { %16636 = vmatpush3.msra.mxu0 %v10051_v57 }
0x2670   :  { %16637 = vmatprep.subr.mxu0 %v10050_v58 }
0x2671   :  { %16638 = vmatpush3.msra.mxu0 %v10050_v58 }
0x2672   :  { %16642 = vmatprep.subr.mxu0 %v10134_v59 }
0x272e   :  { %v16634_v2 = vpop.f32.mrf.mxu0 }
0x272f   :  { %v10039_v4 = vadd.f32 %v16634_v2, %v9959_v0  ;;  %v10767_v0 = vpop.permute.xlu0 %10766 }
0x2730   :  { %v10033_v5 = vpop.f32.mrf.mxu0 }
0x2731   :  { %v10043_v7 = vadd.f32 %v10039_v4, %v9938_v3  ;;  %v10034_v8 = vadd.f32 %v10033_v5, %v9954_v61  ;;  %v10855_v4 = vld [vmem:[#allocation28] sm:$0xff] }
0x2733   :  { %v10042_v9 = vadd.f32 %v10034_v8, %v9933_v6  ;;  %v10047_v10 = vmul.f32 0.2, %v10043_v7  ;;  %vm10045_vm2 = vcmp.gt.f32.partialorder %v10043_v7, 0.0  ;;  %v11022_v6 = vld [vmem:[#allocation34 + $0x38] sm:$0xff]  ;;  %v11021_v8 = vld [vmem:[#allocation34 + $0x30] sm:$0xff] }
0x2735   :  { %v10046_v11 = vmul.f32 0.2, %v10042_v9  ;;  %vm10044_vm3 = vcmp.gt.f32.partialorder %v10042_v9, 0.0  ;;  %v10049_v13 = vsel %vm10045_vm2, %v10043_v7, %v10047_v10  ;;  %v10945_v7 = vld [vmem:[#allocation34 + $0x18] sm:$0xff]  ;;  %v11020_v10 = vld [vmem:[#allocation34 + $0x28] sm:$0xff] }
0x2737   :  { %v10048_v12 = vsel %vm10044_vm3, %v10042_v9, %v10046_v11  ;;  %v10944_v9 = vld [vmem:[#allocation34 + $0x10] sm:$0xff]  ;;  %v10943_v11 = vld [vmem:[#allocation34 + $0x8] sm:$0xff] }
0x2738   :  { %16639 = vmatprep.mubr.msk.f32.mxu0 %vm1801_vm8, %v10048_v12 }
0x2739   :  { %16640 = vmatmul.mubr.msk.f32.vlgmr.msra.gmra.mxu0 %vm1801_vm8, %v10049_v13 }
0x273a   :  { %16643 = vmatpush3.msra.mxu0 %v10134_v59  ;;  %16646 = vmatprep.mubr.msk.f32.mxu0 %vm1801_vm8, %v10048_v12 }
0x273b   :  { %16644 = vmatprep.subr.mxu0 %v10133_v14 }
0x273c   :  { %16645 = vmatpush3.msra.mxu0 %v10133_v14  ;;  %v10772_v14 = vpop.permute.xlu1 %10771 }
0x273d   :  { %16647 = vmatmul.mubr.msk.f32.vlgmr.msra.gmra.mxu0 %vm1801_vm8, %v10049_v13  ;;  %16649 = vmatprep.subr.mxu0 %v10211_v15 }
0x273e   :  { %16650 = vmatpush3.msra.mxu0 %v10211_v15  ;;  %16653 = vmatprep.mubr.msk.f32.mxu0 %vm1801_vm8, %v10048_v12  ;;  %v11019_v12 = vld [vmem:[#allocation34 + $0x20] sm:$0xff]  ;;  %v10863_v15 = vpop.permute.xlu0 %10862 }
0x273f   :  { %16651 = vmatprep.subr.mxu0 %v10210_v16 }
0x2740   :  { %16652 = vmatpush3.msra.mxu0 %v10210_v16 }
0x2741   :  { %16654 = vmatmul.mubr.msk.f32.vlgmr.msra.gmra.mxu0 %vm1801_vm8, %v10049_v13  ;;  %16671 = vmatprep.subr.mxu0 %v17959_v19  ;;  %v10942_v13 = vld [vmem:[#allocation34] sm:$0xff] }
0x2742   :  { %16675 = vmatprep.mubr.msk.f32.mxu0 %vm17960_vm13, %v17959_v19  ;;  %16672 = vmatpush3.msra.mxu0 %v10385_v28  ;;  %v11094_v28 = vld [vmem:[#allocation34 + $0x48] sm:$0xff] }
0x2743   :  { %16673 = vmatprep.subr.mxu0 %v17959_v19 }
0x2744   :  { %16674 = vmatpush3.msra.mxu0 %v10384_v27  ;;  %v11093_v27 = vld [vmem:[#allocation34 + $0x40] sm:$0xff] }
0x2745   :  { %16678 = vmatprep.subr.mxu0 %v17959_v19 }
0x27f9   :  { %v16641_v18 = vpop.f32.mrf.mxu0 }
0x27fb   :  { %v10124_v21 = vpop.f32.mrf.mxu0 }
0x27fd   :  { %v16648_v23 = vpop.f32.mrf.mxu0 }
0x27ff   :  { %v10201_v20 = vpop.f32.mrf.mxu0 }
0x2801   :  { %v16655_v24 = vpop.f32.mrf.mxu0 }
0x2802   :  { %16656 = vmatprep.subr.mxu1 %v16655_v24 }
0x2803   :  { %v10278_v25 = vpop.f32.mrf.mxu0  ;;  %16657 = vmatpush3.msra.mxu1 %v16655_v24  ;;  %v11096_v24 = vld [vmem:[#allocation34 + $0x58] sm:$0xff] }
0x2804   :  { %16658 = vmatprep.subr.mxu1 %v10278_v25 }
0x2805   :  { %16659 = vmatpush3.msra.mxu1 %v10278_v25 }
0x2806   :  { %16660 = vmatprep.subr.mxu1 %v16648_v23 }
0x2807   :  { %16661 = vmatpush3.msra.mxu1 %v16648_v23 }
0x2808   :  { %16662 = vmatprep.subr.mxu1 %v10201_v20 }
0x2809   :  { %16663 = vmatpush3.msra.mxu1 %v10201_v20 }
0x280a   :  { %16664 = vmatprep.subr.mxu1 %v16641_v18 }
0x280b   :  { %16665 = vmatpush3.msra.mxu1 %v16641_v18 }
0x280c   :  { %16666 = vmatprep.subr.mxu1 %v10124_v21 }
0x280d   :  { %16667 = vmatpush3.msra.mxu1 %v10124_v21 }
0x280e   :  { %16669 = vmatmul.mubr.msk.f32.vlgmr.msra.gmra.mxu1 %vm3473_vm12, %v10288_v26  ;;  %16685 = vmatprep.subr.mxu1 %v17959_v19  ;;  %v11095_v26 = vld [vmem:[#allocation34 + $0x50] sm:$0xff] }
0x280f   :  { %16693 = vmatprep.mubr.msk.f32.mxu1 %vm17960_vm13, %v17959_v19  ;;  %16686 = vmatpush3.msra.mxu1 %v10538_v37  ;;  %v11174_v37 = vpop.permute.xlu1 %11173 }
0x2810   :  { %16687 = vmatprep.subr.mxu1 %v17959_v19 }
0x2811   :  { %16688 = vmatpush3.msra.mxu1 %v10537_v39 }
0x2812   :  { %16689 = vmatprep.subr.mxu1 %v17959_v19 }
0x2813   :  { %16690 = vmatpush3.msra.mxu1 %v10536_v41  ;;  %v11262_v41 = vld [vmem:[#allocation32] sm:$0xff] }
0x2814   :  { %16691 = vmatprep.subr.mxu1 %v17959_v19 }
0x2815   :  { %16692 = vmatpush3.msra.mxu1 %v10535_v43  ;;  %v11429_v43 = vld [vmem:[#allocation38 + $0x38] sm:$0xff] }
0x2816   :  { %16707 = vmatprep.subr.mxu1 %v17959_v19 }
0x28ce   :  { %v16670_v29 = vpop.f32.mrf.mxu1 }
0x28cf   :  { %v10379_v30 = vadd.f32 %v16670_v29, %v10299_v22  ;;  %v11167_v22 = vld [vmem:[#allocation31] sm:$0xff] }
0x28d0   :  { %v10373_v32 = vpop.f32.mrf.mxu1 }
0x28d1   :  { %16676 = vmatmul.mubr.msk.f32.vlgmr.msra.gmra.mxu0 %vm1801_vm8, %v10379_v30  ;;  %v10374_v35 = vadd.f32 %v10373_v32, %v10294_v34 }
0x28d2   :  { %16679 = vmatpush3.msra.mxu0 %v10383_v31  ;;  %16682 = vmatprep.mubr.msk.f32.mxu0 %vm17960_vm13, %v17959_v19 }
0x28d3   :  { %16680 = vmatprep.subr.mxu0 %v17959_v19 }
0x28d4   :  { %16681 = vmatpush3.msra.mxu0 %v10382_v33 }
0x28d5   :  { %16683 = vmatmul.mubr.msk.f32.vlgmr.msra.gmra.mxu0 %vm1801_vm8, %v10374_v35  ;;  %16696 = vmatprep.subr.mxu0 %v17959_v19  ;;  %v11168_v35 = vld [vmem:[#allocation31 + $0x8] sm:$0xff] }
0x28d6   :  { %16704 = vmatprep.mubr.msk.f32.mxu0 %vm17960_vm13, %v17959_v19  ;;  %16697 = vmatpush3.msra.mxu0 %v10615_v36 }
0x28d7   :  { %16698 = vmatprep.subr.mxu0 %v17959_v19 }
0x28d8   :  { %16699 = vmatpush3.msra.mxu0 %v10614_v38 }
0x28d9   :  { %16700 = vmatprep.subr.mxu0 %v17959_v19 }
0x28da   :  { %16701 = vmatpush3.msra.mxu0 %v10613_v40 }
0x28db   :  { %16702 = vmatprep.subr.mxu0 %v17959_v19 }
0x28dc   :  { %16703 = vmatpush3.msra.mxu0 %v10612_v42 }
0x2991   :  { %v10455_v44 = vpop.f32.mrf.mxu0 }
0x2993   :  { %v16677_v45 = vpop.f32.mrf.mxu0 }
0x2994   :  { %v11428_v45 = vld [vmem:[#allocation38 + $0x30] sm:$0xff] }
0x2995   :  { %v10528_v46 = vpop.f32.mrf.mxu0 }
0x2996   :  { %v10529_v47 = vadd.f32 %v10528_v46, %v10455_v44  ;;  %v11352_v44 = vld [vmem:[#allocation38 + $0x18] sm:$0xff]  ;;  %v11351_v46 = vld [vmem:[#allocation38 + $0x10] sm:$0xff] }
0x2997   :  { %v16684_v48 = vpop.f32.mrf.mxu0 }
0x2998   :  { %16718 = vmatprep.subr.mxu0 %v10529_v47  ;;  %vm10532_vm8 = vcmp.gt.f32.partialorder %v10529_v47, 0.0  ;;  %v10533_v49 = vmul.f32 0.2, %v10529_v47  ;;  %v11350_v48 = vld [vmem:[#allocation38 + $0x8] sm:$0xff] }
0x299a   :  { %v10534_v51 = vsel %vm10532_vm8, %v10529_v47, %v10533_v49  ;;  %v11426_v49 = vld [vmem:[#allocation38 + $0x20] sm:$0xff] }
0x299b   :  { %16694 = vmatmul.mubr.msk.f32.vlgmr.msra.gmra.mxu1 %vm3713_vm15, %v10534_v51  ;;  %16705 = vmatmul.mubr.msk.f32.vlgmr.msra.gmra.mxu0 %vm3713_vm15, %v10534_v51 }
0x299c   :  { %16708 = vmatpush3.msra.mxu1 %v10689_v50  ;;  %16719 = vmatpush3.msra.mxu0 %v10529_v47  ;;  %v11427_v47 = vld [vmem:[#allocation38 + $0x28] sm:$0xff]  ;;  %v11349_v50 = vld [vmem:[#allocation38] sm:$0xff] }
0x299d   :  { %16709 = vmatprep.subr.mxu1 %v17959_v19  ;;  %16715 = vmatprep.mubr.msk.f32.mxu1 %vm17960_vm13, %v17959_v19 }
0x299e   :  { %16710 = vmatpush3.msra.mxu1 %v10688_v52  ;;  %16726 = vmatprep.mubr.msk.f32.mxu0 %vm3713_vm15, %v10760_v55  ;;  %v11270_v52 = vpop.permute.xlu1 %11269 }
0x299f   :  { %16711 = vmatprep.subr.mxu1 %v17959_v19 }
0x29a0   :  { %16712 = vmatpush3.msra.mxu1 %v10687_v53 }
0x29a1   :  { %16713 = vmatprep.subr.mxu1 %v17959_v19 }
0x29a2   :  { %16714 = vmatpush3.msra.mxu1 %v10686_v54 }
0x29a3   :  { %16716 = vmatmul.mubr.msk.f32.vlgmr.msra.gmra.mxu1 %vm3713_vm15, %v10534_v51  ;;  %16729 = vmatprep.subr.mxu1 %v17959_v19  ;;  %v11179_v51 = vpop.permute.xlu0 %11178 }
0x29a4   :  { %16731 = vmatprep.mubr.msk.f32.mxu1 %vm17960_vm13, %v17959_v19 }
0x2a5b   :  { %v10608_v56 = vpop.f32.mrf.mxu1  ;;  %v10682_v57 = vpop.f32.mrf.mxu0 }
0x2a5d   :  { %v16695_v58 = vpop.f32.mrf.mxu1  ;;  %v16706_v59 = vpop.f32.mrf.mxu0 }
0x2a5e   :  { %v11503_v59 = vld [vmem:[#allocation38 + $0x58] sm:$0xff] }
0x2a63   :  { %v10756_v60 = vpop.f32.mrf.mxu1 }
0x2a64   :  { %16720 = vmatprep.subr.mxu0 %v10756_v60 }
0x2a65   :  { %v16717_v61 = vpop.f32.mrf.mxu1  ;;  %16721 = vmatpush3.msra.mxu0 %v10756_v60 }
0x2a66   :  { %16722 = vmatprep.subr.mxu0 %v10682_v57  ;;  %v11502_v61 = vld [vmem:[#allocation38 + $0x50] sm:$0xff] }
0x2a67   :  { %16723 = vmatpush3.msra.mxu0 %v10682_v57 }
0x2a68   :  { %16724 = vmatprep.subr.mxu0 %v10608_v56 }
0x2a69   :  { %16725 = vmatpush3.msra.mxu0 %v10608_v56 }
0x2a6a   :  { %16727 = vmatmul.mubr.msk.f32.vlgmr.msra.gmra.mxu0 %vm3713_vm15, %v10761_v62  ;;  %16734 = vmatprep.subr.mxu0 %v17959_v19  ;;  %v11501_v62 = vld [vmem:[#allocation38 + $0x48] sm:$0xff] }
0x2a6b   :  { %16742 = vmatprep.mubr.msk.f32.mxu0 %vm17960_vm13, %v17959_v19  ;;  %16735 = vmatpush3.msra.mxu0 %v10945_v7  ;;  %v11575_v7 = vld [vmem:[#allocation35 + $0x8] sm:$0xff] }
0x2a6c   :  { %16736 = vmatprep.subr.mxu0 %v17959_v19 }
0x2a6d   :  { %16737 = vmatpush3.msra.mxu0 %v10944_v9  ;;  %v11581_v9 = vpop.permute.xlu0 %11580 }
0x2a6e   :  { %16738 = vmatprep.subr.mxu0 %v17959_v19 }
0x2a6f   :  { %16739 = vmatpush3.msra.mxu0 %v10943_v11 }
0x2a70   :  { %16740 = vmatprep.subr.mxu0 %v17959_v19 }
0x2a71   :  { %16741 = vmatpush3.msra.mxu0 %v10942_v13  ;;  %v11669_v13 = vld [vmem:[#allocation37] sm:$0xff] }
0x2a72   :  { %16756 = vmatprep.subr.mxu0 %v17959_v19 }
0x2b2a   :  { %v16728_v63 = vpop.f32.mrf.mxu0 }
0x2b2b   :  { %v10852_v17 = vadd.f32 %v16728_v63, %v10772_v14  ;;  %v11500_v63 = vld [vmem:[#allocation38 + $0x40] sm:$0xff] }
0x2b2c   :  { %v10846_v1 = vpop.f32.mrf.mxu0 }
0x2b2d   :  { %v10847_v2 = vadd.f32 %v10846_v1, %v10767_v0  ;;  %v11574_v0 = vld [vmem:[#allocation35] sm:$0xff] }
0x2b2f   :  { %vm10856_vm12 = vcmp.gt.f32.partialorder %v10847_v2, 0.0  ;;  %v10857_v3 = vmul.f32 0.2, %v10847_v2 }
0x2b31   :  { %v10858_v5 = vsel %vm10856_vm12, %v10847_v2, %v10857_v3 }
0x2b32   :  { %16730 = vmatpush3.msra.mxu1 %v10858_v5 }
0x2b33   :  { %16732 = vmatmul.mubr.msk.f32.vlgmr.msra.gmra.mxu1 %vm548_vm0, %v10855_v4  ;;  %16745 = vmatprep.subr.mxu1 %v17959_v19 }
0x2b34   :  { %16746 = vmatpush3.msra.mxu1 %v11022_v6  ;;  %16753 = vmatprep.mubr.msk.f32.mxu1 %vm17960_vm13, %v17959_v19 }
0x2b35   :  { %16747 = vmatprep.subr.mxu1 %v17959_v19 }
0x2b36   :  { %16748 = vmatpush3.msra.mxu1 %v11021_v8 }
0x2b37   :  { %16749 = vmatprep.subr.mxu1 %v17959_v19 }
0x2b38   :  { %16750 = vmatpush3.msra.mxu1 %v11020_v10 }
0x2b39   :  { %16751 = vmatprep.subr.mxu1 %v17959_v19 }
0x2b3a   :  { %16752 = vmatpush3.msra.mxu1 %v11019_v12 }
0x2bf3   :  { %v10934_v16 = vpop.f32.mrf.mxu1 }
0x2bf4   :  { %v10935_v18 = vadd.f32 %v10934_v16, %v10863_v15  ;;  %v11759_v15 = vld [vmem:[%s19601_s5 + $0x18] sm:$0xff] }
0x2bf5   :  { %v16733_v21 = vpop.f32.mrf.mxu1  ;;  %v14550_v16 = vld [vmem:[%s19601_s5 + $0x38] sm:$0xff] }
0x2bf6   :  { %v10938_v23 = vadd.f32 %v10935_v18, %v10852_v17  ;;  %v11758_v17 = vld [vmem:[%s19601_s5 + $0x10] sm:$0xff]  ;;  %v11757_v21 = vld [vmem:[%s19601_s5 + $0x8] sm:$0xff] }
0x2bf7   :  { %v14549_v18 = vld [vmem:[%s19601_s5 + $0x30] sm:$0xff] }
0x2bf8   :  { %16767 = vmatprep.subr.mxu1 %v10938_v23  ;;  %vm10939_vm1 = vcmp.gt.f32.partialorder %v10938_v23, 0.0  ;;  %v10940_v20 = vmul.f32 0.2, %v10938_v23 }
0x2bfa   :  { %v10941_v25 = vsel %vm10939_vm1, %v10938_v23, %v10940_v20  ;;  %v11756_v20 = vld [vmem:[%s19601_s5] sm:$0xff] }
0x2bfb   :  { %16743 = vmatmul.mubr.msk.f32.vlgmr.msra.gmra.mxu0 %vm3713_vm15, %v10941_v25  ;;  %16754 = vmatmul.mubr.msk.f32.vlgmr.msra.gmra.mxu1 %vm3713_vm15, %v10941_v25 }
0x2bfc   :  { %16757 = vmatpush3.msra.mxu0 %v11096_v24  ;;  %16768 = vmatpush3.msra.mxu1 %v10938_v23  ;;  %v14548_v23 = vld [vmem:[%s19601_s5 + $0x28] sm:$0xff]  ;;  %v14547_v24 = vld [vmem:[%s19601_s5 + $0x20] sm:$0xff] }
0x2bfd   :  { %16758 = vmatprep.subr.mxu0 %v17959_v19  ;;  %16764 = vmatprep.mubr.msk.f32.mxu0 %vm17960_vm13, %v17959_v19 }
0x2bfe   :  { %16759 = vmatpush3.msra.mxu0 %v11095_v26  ;;  %16775 = vmatprep.mubr.msk.f32.mxu1 %vm3713_vm15, %v11167_v22  ;;  %v11677_v26 = vpop.permute.xlu0 %11676 }
0x2bff   :  { %16760 = vmatprep.subr.mxu0 %v17959_v19 }
0x2c00   :  { %16761 = vmatpush3.msra.mxu0 %v11094_v28 }
0x2c01   :  { %16762 = vmatprep.subr.mxu0 %v17959_v19 }
0x2c02   :  { %16763 = vmatpush3.msra.mxu0 %v11093_v27 }
0x2c03   :  { %16765 = vmatmul.mubr.msk.f32.vlgmr.msra.gmra.mxu0 %vm3713_vm15, %v10941_v25  ;;  %16778 = vmatprep.subr.mxu0 %v17959_v19  ;;  %v11586_v25 = vpop.permute.xlu1 %11585 }
0x2c04   :  { %16780 = vmatprep.mubr.msk.f32.mxu0 %vm17960_vm13, %v17959_v19 }
0x2cbb   :  { %v11015_v29 = vpop.f32.mrf.mxu0  ;;  %v11089_v30 = vpop.f32.mrf.mxu1 }
0x2cbd   :  { %v16744_v31 = vpop.f32.mrf.mxu0  ;;  %v16755_v32 = vpop.f32.mrf.mxu1 }
0x2cbe   :  { %v14555_v32 = vld [vmem:[%s19601_s5 + $0x58] sm:$0xff] }
0x2cc3   :  { %v11163_v33 = vpop.f32.mrf.mxu0 }
0x2cc4   :  { %16769 = vmatprep.subr.mxu1 %v11163_v33 }
0x2cc5   :  { %v16766_v34 = vpop.f32.mrf.mxu0  ;;  %16770 = vmatpush3.msra.mxu1 %v11163_v33  ;;  %v14560_v33 = vld [vmem:[%s19601_s5 + $0x78] sm:$0xff] }
0x2cc6   :  { %16771 = vmatprep.subr.mxu1 %v11089_v30 }
0x2cc7   :  { %16772 = vmatpush3.msra.mxu1 %v11089_v30 }
0x2cc8   :  { %16773 = vmatprep.subr.mxu1 %v11015_v29 }
0x2cc9   :  { %16774 = vmatpush3.msra.mxu1 %v11015_v29 }
0x2cca   :  { %16776 = vmatmul.mubr.msk.f32.vlgmr.msra.gmra.mxu1 %vm3713_vm15, %v11168_v35  ;;  %16783 = vmatprep.subr.mxu1 %v17959_v19  ;;  %v14554_v35 = vld [vmem:[%s19601_s5 + $0x50] sm:$0xff] }
0x2ccb   :  { %16791 = vmatprep.mubr.msk.f32.mxu1 %vm17960_vm13, %v17959_v19  ;;  %16784 = vmatpush3.msra.mxu1 %v11352_v44  ;;  %v14569_v44 = vld [vmem:[%s19601_s5 + $0xb0] sm:$0xff] }
0x2ccc   :  { %16785 = vmatprep.subr.mxu1 %v17959_v19 }
0x2ccd   :  { %16786 = vmatpush3.msra.mxu1 %v11351_v46  ;;  %v14568_v46 = vld [vmem:[%s19601_s5 + $0xa8] sm:$0xff] }
0x2cce   :  { %16787 = vmatprep.subr.mxu1 %v17959_v19 }
0x2ccf   :  { %16788 = vmatpush3.msra.mxu1 %v11350_v48  ;;  %v14567_v48 = vld [vmem:[%s19601_s5 + $0xa0] sm:$0xff] }
0x2cd0   :  { %16789 = vmatprep.subr.mxu1 %v17959_v19 }
0x2cd1   :  { %16790 = vmatpush3.msra.mxu1 %v11349_v50  ;;  %v14574_v50 = vld [vmem:[%s19601_s5 + $0xd0] sm:$0xff] }
0x2cd2   :  { %16805 = vmatprep.subr.mxu1 %v17959_v19 }
0x2d8a   :  { %v16777_v36 = vpop.f32.mrf.mxu1 }
0x2d8b   :  { %v11259_v54 = vadd.f32 %v16777_v36, %v11179_v51  ;;  %v14559_v36 = vld [vmem:[%s19601_s5 + $0x70] sm:$0xff]  ;;  %v14573_v51 = vld [vmem:[%s19601_s5 + $0xc8] sm:$0xff] }
0x2d8c   :  { %v11253_v38 = vpop.f32.mrf.mxu1 }
0x2d8d   :  { %v11254_v39 = vadd.f32 %v11253_v38, %v11174_v37  ;;  %v14553_v37 = vld [vmem:[%s19601_s5 + $0x48] sm:$0xff] }
0x2d8e   :  { %v14558_v38 = vld [vmem:[%s19601_s5 + $0x68] sm:$0xff] }
0x2d8f   :  { %vm11263_vm4 = vcmp.gt.f32.partialorder %v11254_v39, 0.0  ;;  %v11264_v40 = vmul.f32 0.2, %v11254_v39 }
0x2d91   :  { %v11265_v42 = vsel %vm11263_vm4, %v11254_v39, %v11264_v40  ;;  %v14552_v39 = vld [vmem:[%s19601_s5 + $0x40] sm:$0xff] }
0x2d92   :  { %16779 = vmatpush3.msra.mxu0 %v11265_v42  ;;  %v14557_v40 = vld [vmem:[%s19601_s5 + $0x60] sm:$0xff]  ;;  %v14570_v42 = vld [vmem:[%s19601_s5 + $0xb8] sm:$0xff] }
0x2d93   :  { %16781 = vmatmul.mubr.msk.f32.vlgmr.msra.gmra.mxu0 %vm548_vm0, %v11262_v41  ;;  %16794 = vmatprep.subr.mxu0 %v17959_v19  ;;  %v14565_v41 = vld [vmem:[%s19601_s5 + $0x98] sm:$0xff] }
0x2d94   :  { %16795 = vmatpush3.msra.mxu0 %v11429_v43  ;;  %16802 = vmatprep.mubr.msk.f32.mxu0 %vm17960_vm13, %v17959_v19  ;;  %v14564_v43 = vld [vmem:[%s19601_s5 + $0x90] sm:$0xff] }
0x2d95   :  { %16796 = vmatprep.subr.mxu0 %v17959_v19 }
0x2d96   :  { %16797 = vmatpush3.msra.mxu0 %v11428_v45  ;;  %v14563_v45 = vld [vmem:[%s19601_s5 + $0x88] sm:$0xff] }
0x2d97   :  { %16798 = vmatprep.subr.mxu0 %v17959_v19 }
0x2d98   :  { %16799 = vmatpush3.msra.mxu0 %v11427_v47  ;;  %v14562_v47 = vld [vmem:[%s19601_s5 + $0x80] sm:$0xff] }
0x2d99   :  { %16800 = vmatprep.subr.mxu0 %v17959_v19 }
0x2d9a   :  { %16801 = vmatpush3.msra.mxu0 %v11426_v49  ;;  %v14575_v49 = vld [vmem:[%s19601_s5 + $0xd8] sm:$0xff] }
0x2e53   :  { %v11341_v53 = vpop.f32.mrf.mxu0 }
0x2e54   :  { %v11342_v55 = vadd.f32 %v11341_v53, %v11270_v52  ;;  %v14572_v52 = vld [vmem:[%s19601_s5 + $0xc0] sm:$0xff] }
0x2e55   :  { %v16782_v56 = vpop.f32.mrf.mxu0 }
0x2e56   :  { %v11345_v57 = vadd.f32 %v11342_v55, %v11259_v54 }
0x2e58   :  { %16816 = vmatprep.subr.mxu0 %v11345_v57  ;;  %vm11346_vm6 = vcmp.gt.f32.partialorder %v11345_v57, 0.0  ;;  %v11347_v58 = vmul.f32 0.2, %v11345_v57 }
0x2e5a   :  { %v11348_v60 = vsel %vm11346_vm6, %v11345_v57, %v11347_v58 }
0x2e5b   :  { %16792 = vmatmul.mubr.msk.f32.vlgmr.msra.gmra.mxu1 %vm3713_vm15, %v11348_v60  ;;  %16803 = vmatmul.mubr.msk.f32.vlgmr.msra.gmra.mxu0 %vm3713_vm15, %v11348_v60 }
0x2e5c   :  { %16806 = vmatpush3.msra.mxu1 %v11503_v59  ;;  %16817 = vmatpush3.msra.mxu0 %v11345_v57 }
0x2e5d   :  { %16807 = vmatprep.subr.mxu1 %v17959_v19  ;;  %16813 = vmatprep.mubr.msk.f32.mxu1 %vm17960_vm13, %v17959_v19 }
0x2e5e   :  { %16808 = vmatpush3.msra.mxu1 %v11502_v61  ;;  %16824 = vmatprep.mubr.msk.f32.mxu0 %vm3713_vm15, %v11574_v0 }
0x2e5f   :  { %16809 = vmatprep.subr.mxu1 %v17959_v19 }
0x2e60   :  { %16810 = vmatpush3.msra.mxu1 %v11501_v62 }
0x2e61   :  { %16811 = vmatprep.subr.mxu1 %v17959_v19 }
0x2e62   :  { %16812 = vmatpush3.msra.mxu1 %v11500_v63 }
0x2e63   :  { %16814 = vmatmul.mubr.msk.f32.vlgmr.msra.gmra.mxu1 %vm3713_vm15, %v11348_v60  ;;  %16827 = vmatprep.subr.mxu1 %v17959_v19 }
0x2e64   :  { %16829 = vmatprep.mubr.msk.f32.mxu1 %vm17960_vm13, %v17959_v19 }
0x2f1b   :  { %v11422_v1 = vpop.f32.mrf.mxu1  ;;  %v11496_v2 = vpop.f32.mrf.mxu0 }
0x2f1d   :  { %v16793_v3 = vpop.f32.mrf.mxu1  ;;  %v16804_v4 = vpop.f32.mrf.mxu0 }
0x2f1e   :  { %v12277_v3 = vld [vmem:[%s19602_s8] sm:$0xf]  ;;  %v12361_v4 = vld [vmem:[#allocation41 + $0x18] sm:$0xff] }
0x2f23   :  { %v11570_v5 = vpop.f32.mrf.mxu1 }
0x2f24   :  { %16818 = vmatprep.subr.mxu0 %v11570_v5 }
0x2f25   :  { %v16815_v6 = vpop.f32.mrf.mxu1  ;;  %16819 = vmatpush3.msra.mxu0 %v11570_v5  ;;  %v12512_v5 = vld [vmem:[#allocation41 + $0x58] sm:$0xff] }
0x2f26   :  { %16820 = vmatprep.subr.mxu0 %v11496_v2  ;;  %v12360_v6 = vld [vmem:[#allocation41 + $0x10] sm:$0xff] }
0x2f27   :  { %16821 = vmatpush3.msra.mxu0 %v11496_v2 }
0x2f28   :  { %16822 = vmatprep.subr.mxu0 %v11422_v1 }
0x2f29   :  { %16823 = vmatpush3.msra.mxu0 %v11422_v1 }
0x2f2a   :  { %16825 = vmatmul.mubr.msk.f32.vlgmr.msra.gmra.mxu0 %vm3713_vm15, %v11575_v7  ;;  %16832 = vmatprep.subr.mxu0 %v17959_v19  ;;  %v12511_v7 = vld [vmem:[#allocation41 + $0x50] sm:$0xff] }
0x2f2b   :  { %16840 = vmatprep.mubr.msk.f32.mxu0 %vm17960_vm13, %v17959_v19  ;;  %16833 = vmatpush3.msra.mxu0 %v11759_v15 }
0x2f2c   :  { %16834 = vmatprep.subr.mxu0 %v17959_v19 }
0x2f2d   :  { %16835 = vmatpush3.msra.mxu0 %v11758_v17  ;;  %v12660_v17 = vld [vmem:[#allocation41 + $0x98] sm:$0xff] }
0x2f2e   :  { %16836 = vmatprep.subr.mxu0 %v17959_v19 }
0x2f2f   :  { %16837 = vmatpush3.msra.mxu0 %v11757_v21  ;;  %v12437_v21 = vld [vmem:[#allocation41 + $0x30] sm:$0xff] }
0x2f30   :  { %16838 = vmatprep.subr.mxu0 %v17959_v19 }
0x2f31   :  { %16839 = vmatpush3.msra.mxu0 %v11756_v20  ;;  %v12436_v20 = vld [vmem:[#allocation41 + $0x28] sm:$0xff] }
0x2f32   :  { %16854 = vmatprep.subr.mxu0 %v17959_v19 }
0x2fea   :  { %v16826_v8 = vpop.f32.mrf.mxu0 }
0x2feb   :  { %v11666_v27 = vadd.f32 %v16826_v8, %v11586_v25  ;;  %v12359_v8 = vld [vmem:[#allocation41 + $0x8] sm:$0xff]  ;;  %v12435_v25 = vld [vmem:[#allocation41 + $0x20] sm:$0xff] }
0x2fec   :  { %v11660_v10 = vpop.f32.mrf.mxu0 }
0x2fed   :  { %v11661_v11 = vadd.f32 %v11660_v10, %v11581_v9  ;;  %v12510_v9 = vld [vmem:[#allocation41 + $0x48] sm:$0xff]  ;;  %v12358_v10 = vld [vmem:[#allocation41] sm:$0xff] }
0x2fef   :  { %vm11670_vm5 = vcmp.gt.f32.partialorder %v11661_v11, 0.0  ;;  %v11671_v12 = vmul.f32 0.2, %v11661_v11 }
0x2ff1   :  { %v11672_v14 = vsel %vm11670_vm5, %v11661_v11, %v11671_v12  ;;  %v12509_v11 = vld [vmem:[#allocation41 + $0x40] sm:$0xff]  ;;  %v12282_v12 = vpop.permute.xlu1 %12281 }
0x2ff2   :  { %16828 = vmatpush3.msra.mxu1 %v11672_v14 }
0x2ff3   :  { %16830 = vmatmul.mubr.msk.f32.vlgmr.msra.gmra.mxu1 %vm548_vm0, %v11669_v13  ;;  %16843 = vmatprep.subr.mxu1 %v17959_v19 }
0x2ff4   :  { %16851 = vmatprep.mubr.msk.f32.mxu1 %vm17960_vm13, %v17959_v19  ;;  %16844 = vmatpush3.msra.mxu1 %v14550_v16  ;;  %v12438_v16 = vld [vmem:[#allocation41 + $0x38] sm:$0xff] }
0x2ff5   :  { %16845 = vmatprep.subr.mxu1 %v17959_v19 }
0x2ff6   :  { %16846 = vmatpush3.msra.mxu1 %v14549_v18 }
0x2ff7   :  { %16847 = vmatprep.subr.mxu1 %v17959_v19 }
0x2ff8   :  { %16848 = vmatpush3.msra.mxu1 %v14548_v23  ;;  %v12659_v23 = vld [vmem:[#allocation41 + $0x90] sm:$0xff] }
0x2ff9   :  { %16849 = vmatprep.subr.mxu1 %v17959_v19 }
0x2ffa   :  { %16850 = vmatpush3.msra.mxu1 %v14547_v24  ;;  %v12658_v24 = vld [vmem:[#allocation41 + $0x88] sm:$0xff] }
0x2ffb   :  { %16865 = vmatprep.subr.mxu1 %v17959_v19 }
0x30b3   :  { %v11748_v28 = vpop.f32.mrf.mxu1 }
0x30b4   :  { %v11749_v22 = vadd.f32 %v11748_v28, %v11677_v26  ;;  %v12657_v26 = vld [vmem:[#allocation41 + $0x80] sm:$0xff]  ;;  %v12586_v28 = vld [vmem:[#allocation41 + $0x78] sm:$0xff] }
0x30b5   :  { %v16831_v29 = vpop.f32.mrf.mxu1 }
0x30b6   :  { %v11752_v30 = vadd.f32 %v11749_v22, %v11666_v27  ;;  %v12808_v27 = vld [vmem:[#allocation41 + $0xd8] sm:$0xff]  ;;  %v12585_v22 = vld [vmem:[#allocation41 + $0x70] sm:$0xff] }
0x30b7   :  { %v12807_v29 = vld [vmem:[#allocation41 + $0xd0] sm:$0xff] }
0x30b8   :  { %vm11753_vm0 = vcmp.gt.f32.partialorder %v11752_v30, 0.0  ;;  %v11754_v31 = vmul.f32 0.2, %v11752_v30 }
0x30ba   :  { %v19174_v34 = vsel %vm11753_vm0, %v11752_v30, %v11754_v31  ;;  %v12584_v30 = vld [vmem:[#allocation41 + $0x68] sm:$0xff] }
0x30bb   :  { %16841 = vmatmul.mubr.msk.f32.vlgmr.msra.gmra.mxu0 %vm3713_vm15, %v19174_v34  ;;  %16852 = vmatmul.mubr.msk.f32.vlgmr.msra.gmra.mxu1 %vm3713_vm15, %v19174_v34  ;;  %v12806_v31 = vld [vmem:[#allocation41 + $0xc8] sm:$0xff] }
0x30bc   :  { %16855 = vmatpush3.msra.mxu0 %v14555_v32  ;;  %16866 = vmatpush3.msra.mxu1 %v14560_v33  ;;  %v12583_v32 = vld [vmem:[#allocation41 + $0x60] sm:$0xff] }
0x30bd   :  { %16856 = vmatprep.subr.mxu0 %v17959_v19  ;;  %16867 = vmatprep.subr.mxu1 %v17959_v19  ;;  %v12805_v33 = vld [vmem:[#allocation41 + $0xc0] sm:$0xff] }
0x30be   :  { %16857 = vmatpush3.msra.mxu0 %v14554_v35  ;;  %16868 = vmatpush3.msra.mxu1 %v14559_v36  ;;  %v12956_v35 = vld [vmem:[#allocation41 + $0x118] sm:$0xff]  ;;  %v12733_v36 = vld [vmem:[#allocation41 + $0xb0] sm:$0xff] }
0x30bf   :  { %16858 = vmatprep.subr.mxu0 %v17959_v19  ;;  %16869 = vmatprep.subr.mxu1 %v17959_v19 }
0x30c0   :  { %16859 = vmatpush3.msra.mxu0 %v14553_v37  ;;  %16870 = vmatpush3.msra.mxu1 %v14558_v38  ;;  %v12955_v37 = vld [vmem:[#allocation41 + $0x110] sm:$0xff]  ;;  %v12732_v38 = vld [vmem:[#allocation41 + $0xa8] sm:$0xff] }
0x30c1   :  { %16860 = vmatprep.subr.mxu0 %v17959_v19  ;;  %16871 = vmatprep.subr.mxu1 %v17959_v19 }
0x30c2   :  { %16861 = vmatpush3.msra.mxu0 %v14552_v39  ;;  %16862 = vmatprep.mubr.msk.f32.mxu0 %vm17960_vm13, %v17959_v19  ;;  %v12954_v39 = vld [vmem:[#allocation41 + $0x108] sm:$0xff] }
0x30c3   :  { %16872 = vmatpush3.msra.mxu1 %v14557_v40  ;;  %16873 = vmatprep.mubr.msk.f32.mxu1 %vm17960_vm13, %v17959_v19  ;;  %v12731_v40 = vld [vmem:[#allocation41 + $0xa0] sm:$0xff] }
0x30c4   :  { %16863 = vmatmul.mubr.msk.f32.vlgmr.msra.gmra.mxu0 %vm3713_vm15, %v19174_v34  ;;  %16874 = vmatmul.mubr.msk.f32.vlgmr.msra.gmra.mxu1 %vm3713_vm15, %v19174_v34 }
0x30c5   :  { %16876 = vmatprep.subr.mxu0 %v17959_v19  ;;  %16887 = vmatprep.subr.mxu1 %v17959_v19 }
0x30c6   :  { %16877 = vmatpush3.msra.mxu0 %v14565_v41  ;;  %16888 = vmatpush3.msra.mxu1 %v14570_v42  ;;  %v12953_v41 = vld [vmem:[#allocation41 + $0x100] sm:$0xff]  ;;  %v12882_v42 = vld [vmem:[#allocation41 + $0xf8] sm:$0xff] }
0x30c7   :  { %16878 = vmatprep.subr.mxu0 %v17959_v19  ;;  %16889 = vmatprep.subr.mxu1 %v17959_v19 }
0x30c8   :  { %16879 = vmatpush3.msra.mxu0 %v14564_v43  ;;  %16890 = vmatpush3.msra.mxu1 %v14569_v44  ;;  %v13104_v43 = vld [vmem:[#allocation41 + $0x158] sm:$0xff]  ;;  %v12881_v44 = vld [vmem:[#allocation41 + $0xf0] sm:$0xff] }
0x30c9   :  { %16880 = vmatprep.subr.mxu0 %v17959_v19  ;;  %16891 = vmatprep.subr.mxu1 %v17959_v19 }
0x30ca   :  { %16881 = vmatpush3.msra.mxu0 %v14563_v45  ;;  %16892 = vmatpush3.msra.mxu1 %v14568_v46  ;;  %v13103_v45 = vld [vmem:[#allocation41 + $0x150] sm:$0xff]  ;;  %v12880_v46 = vld [vmem:[#allocation41 + $0xe8] sm:$0xff] }
0x30cb   :  { %16882 = vmatprep.subr.mxu0 %v17959_v19  ;;  %16893 = vmatprep.subr.mxu1 %v17959_v19 }
0x30cc   :  { %16883 = vmatpush3.msra.mxu0 %v14562_v47  ;;  %16884 = vmatprep.mubr.msk.f32.mxu0 %vm17960_vm13, %v17959_v19  ;;  %v13102_v47 = vld [vmem:[#allocation41 + $0x148] sm:$0xff] }
0x30cd   :  { %16894 = vmatpush3.msra.mxu1 %v14567_v48  ;;  %16895 = vmatprep.mubr.msk.f32.mxu1 %vm17960_vm13, %v17959_v19  ;;  %v12879_v48 = vld [vmem:[#allocation41 + $0xe0] sm:$0xff] }
0x30ce   :  { %16885 = vmatmul.mubr.msk.f32.vlgmr.msra.gmra.mxu0 %vm3713_vm15, %v19174_v34  ;;  %16896 = vmatmul.mubr.msk.f32.vlgmr.msra.gmra.mxu1 %vm3713_vm15, %v19174_v34 }
0x30cf   :  { %16898 = vmatprep.subr.mxu0 %v17959_v19  ;;  %16906 = vmatprep.mubr.msk.f32.mxu0 %vm17960_vm13, %v17959_v19 }
0x30d0   :  { %16899 = vmatpush3.msra.mxu0 %v14575_v49  ;;  %16909 = vmatprep.subr.mxu1 %v17959_v19  ;;  %v13101_v49 = vld [vmem:[#allocation41 + $0x140] sm:$0xff] }
0x30d1   :  { %16900 = vmatprep.subr.mxu0 %v17959_v19  ;;  %16923 = vmatprep.mubr.msk.f32.mxu1 %vm17960_vm13, %v17959_v19 }
0x30d2   :  { %16901 = vmatpush3.msra.mxu0 %v14574_v50  ;;  %v13030_v50 = vld [vmem:[#allocation41 + $0x138] sm:$0xff] }
0x30d3   :  { %16902 = vmatprep.subr.mxu0 %v17959_v19 }
0x30d4   :  { %16903 = vmatpush3.msra.mxu0 %v14573_v51  ;;  %v13252_v51 = vld [vmem:[#allocation41 + $0x198] sm:$0xff] }
0x30d5   :  { %16904 = vmatprep.subr.mxu0 %v17959_v19 }
0x30d6   :  { %16905 = vmatpush3.msra.mxu0 %v14572_v52  ;;  %v13029_v52 = vld [vmem:[#allocation41 + $0x130] sm:$0xff] }
0x30d7   :  { %16907 = vmatmul.mubr.msk.f32.vlgmr.msra.gmra.mxu0 %vm3713_vm15, %v19174_v34  ;;  %16926 = vmatprep.subr.mxu0 %v17959_v19  ;;  %v12734_v34 = vld [vmem:[#allocation41 + $0xb8] sm:$0xff] }
0x30d8   :  { %16934 = vmatprep.mubr.msk.f32.mxu0 %vm17960_vm13, %v17959_v19  ;;  %16927 = vmatpush3.msra.mxu0 %v12361_v4  ;;  %v13324_v4 = vld [vmem:[#allocation41 + $0x1a8] sm:$0xff] }
0x30d9   :  { %16928 = vmatprep.subr.mxu0 %v17959_v19 }
0x30da   :  { %16929 = vmatpush3.msra.mxu0 %v12360_v6  ;;  %v13474_v6 = vld [vmem:[#allocation41 + $0x1f8] sm:$0xff] }
0x30db   :  { %16930 = vmatprep.subr.mxu0 %v17959_v19 }
0x30dc   :  { %16931 = vmatpush3.msra.mxu0 %v12359_v8  ;;  %v13472_v8 = vld [vmem:[#allocation41 + $0x1e8] sm:$0xff] }
0x30dd   :  { %16932 = vmatprep.subr.mxu0 %v17959_v19 }
0x30de   :  { %16933 = vmatpush3.msra.mxu0 %v12358_v10 }
0x30df   :  { %16937 = vmatprep.subr.mxu0 %v17959_v19 }
0x317b   :  { %v11829_v53 = vpop.f32.mrf.mxu0  ;;  %v11903_v54 = vpop.f32.mrf.mxu1 }
0x317d   :  { %v16842_v55 = vpop.f32.mrf.mxu0  ;;  %v16853_v56 = vpop.f32.mrf.mxu1 }
0x317e   :  { %v13250_v55 = vld [vmem:[#allocation41 + $0x188] sm:$0xff]  ;;  %v13027_v56 = vld [vmem:[#allocation41 + $0x120] sm:$0xff] }
0x3184   :  { %v11977_v57 = vpop.f32.mrf.mxu0  ;;  %v12051_v58 = vpop.f32.mrf.mxu1 }
0x3186   :  { %v16864_v59 = vpop.f32.mrf.mxu0  ;;  %v16875_v60 = vpop.f32.mrf.mxu1 }
0x3187   :  { %v13400_v59 = vld [vmem:[#allocation41 + $0x1d8] sm:$0xff]  ;;  %v13177_v60 = vld [vmem:[#allocation41 + $0x170] sm:$0xff] }
0x318e   :  { %v12125_v61 = vpop.f32.mrf.mxu0  ;;  %v12199_v62 = vpop.f32.mrf.mxu1 }
0x3190   :  { %v16886_v63 = vpop.f32.mrf.mxu0  ;;  %v16897_v0 = vpop.f32.mrf.mxu1 }
0x3191   :  { %v13398_v63 = vld [vmem:[#allocation41 + $0x1c8] sm:$0xff]  ;;  %v13175_v0 = vld [vmem:[#allocation41 + $0x160] sm:$0xff] }
0x3197   :  { %v12273_v1 = vpop.f32.mrf.mxu0 }
0x3198   :  { %16910 = vmatpush3.msra.mxu1 %v12273_v1  ;;  %v13397_v1 = vld [vmem:[#allocation41 + $0x1c0] sm:$0xff] }
0x3199   :  { %v16908_v2 = vpop.f32.mrf.mxu0  ;;  %16911 = vmatprep.subr.mxu1 %v17959_v19 }
0x319a   :  { %16912 = vmatpush3.msra.mxu1 %v12199_v62  ;;  %v13176_v62 = vld [vmem:[#allocation41 + $0x168] sm:$0xff]  ;;  %v13326_v2 = vld [vmem:[#allocation41 + $0x1b8] sm:$0xff] }
0x319b   :  { %16913 = vmatprep.subr.mxu1 %v17959_v19 }
0x319c   :  { %16914 = vmatpush3.msra.mxu1 %v12125_v61  ;;  %v13399_v61 = vld [vmem:[#allocation41 + $0x1d0] sm:$0xff] }
0x319d   :  { %16915 = vmatprep.subr.mxu1 %v17959_v19 }
0x319e   :  { %16916 = vmatpush3.msra.mxu1 %v12051_v58  ;;  %v13178_v58 = vld [vmem:[#allocation41 + $0x178] sm:$0xff] }
0x319f   :  { %16917 = vmatprep.subr.mxu1 %v17959_v19 }
0x31a0   :  { %16918 = vmatpush3.msra.mxu1 %v11977_v57  ;;  %v13249_v57 = vld [vmem:[#allocation41 + $0x180] sm:$0xff] }
0x31a1   :  { %16919 = vmatprep.subr.mxu1 %v17959_v19 }
0x31a2   :  { %16920 = vmatpush3.msra.mxu1 %v11903_v54  ;;  %v13028_v54 = vld [vmem:[#allocation41 + $0x128] sm:$0xff] }
0x31a3   :  { %16921 = vmatprep.subr.mxu1 %v17959_v19 }
0x31a4   :  { %16922 = vmatpush3.msra.mxu1 %v11829_v53  ;;  %v13251_v53 = vld [vmem:[#allocation41 + $0x190] sm:$0xff] }
0x31a5   :  { %16924 = vmatmul.mubr.msk.f32.vlgmr.msra.gmra.mxu1 %vm5471_vm11, %v12277_v3  ;;  %16948 = vmatprep.subr.mxu1 %v17959_v19  ;;  %v13325_v3 = vld [vmem:[#allocation41 + $0x1b0] sm:$0xff] }
0x31a6   :  { %16956 = vmatprep.mubr.msk.f32.mxu1 %vm17960_vm13, %v17959_v19  ;;  %16949 = vmatpush3.msra.mxu1 %v12512_v5  ;;  %v13323_v5 = vld [vmem:[#allocation41 + $0x1a0] sm:$0xff] }
0x31a7   :  { %16950 = vmatprep.subr.mxu1 %v17959_v19 }
0x31a8   :  { %16951 = vmatpush3.msra.mxu1 %v12511_v7  ;;  %v13473_v7 = vld [vmem:[#allocation41 + $0x1f0] sm:$0xff] }
0x31a9   :  { %16952 = vmatprep.subr.mxu1 %v17959_v19 }
0x31aa   :  { %16953 = vmatpush3.msra.mxu1 %v12510_v9  ;;  %v13471_v9 = vld [vmem:[#allocation41 + $0x1e0] sm:$0xff] }
0x31ab   :  { %16954 = vmatprep.subr.mxu1 %v17959_v19 }
0x31ac   :  { %16955 = vmatpush3.msra.mxu1 %v12509_v11 }
0x31ad   :  { %16970 = vmatprep.subr.mxu1 %v17959_v19 }
0x3265   :  { %v12353_v13 = vpop.f32.mrf.mxu1 }
0x3266   :  { %v12354_v14 = vadd.f32 %v12353_v13, %v12282_v12 }
0x3267   :  { %v16925_v15 = vpop.f32.mrf.mxu1 }
0x3268   :  { %17308 = vtanh.f32 %v12354_v14 }
0x3275   :  { %v19261_v18 = vpop.eup %17308 }
0x3276   :  { %16935 = vmatmul.mubr.msk.f32.vlgmr.msra.gmra.mxu0 %vm3713_vm15, %v19261_v18  ;;  %16957 = vmatmul.mubr.msk.f32.vlgmr.msra.gmra.mxu1 %vm3713_vm15, %v19261_v18 }
0x3277   :  { %16938 = vmatpush3.msra.mxu0 %v12438_v16  ;;  %16971 = vmatpush3.msra.mxu1 %v12660_v17 }
0x3278   :  { %16939 = vmatprep.subr.mxu0 %v17959_v19  ;;  %16972 = vmatprep.subr.mxu1 %v17959_v19 }
0x3279   :  { %16940 = vmatpush3.msra.mxu0 %v12437_v21  ;;  %16973 = vmatpush3.msra.mxu1 %v12659_v23 }
0x327a   :  { %16941 = vmatprep.subr.mxu0 %v17959_v19  ;;  %16974 = vmatprep.subr.mxu1 %v17959_v19 }
0x327b   :  { %16942 = vmatpush3.msra.mxu0 %v12436_v20  ;;  %16975 = vmatpush3.msra.mxu1 %v12658_v24 }
0x327c   :  { %16943 = vmatprep.subr.mxu0 %v17959_v19  ;;  %16976 = vmatprep.subr.mxu1 %v17959_v19 }
0x327d   :  { %16944 = vmatpush3.msra.mxu0 %v12435_v25  ;;  %16945 = vmatprep.mubr.msk.f32.mxu0 %vm17960_vm13, %v17959_v19 }
0x327e   :  { %16977 = vmatpush3.msra.mxu1 %v12657_v26  ;;  %16978 = vmatprep.mubr.msk.f32.mxu1 %vm17960_vm13, %v17959_v19 }
0x327f   :  { %16946 = vmatmul.mubr.msk.f32.vlgmr.msra.gmra.mxu0 %vm3713_vm15, %v19261_v18  ;;  %16959 = vmatprep.subr.mxu0 %v17959_v19 }
0x3280   :  { %16979 = vmatmul.mubr.msk.f32.vlgmr.msra.gmra.mxu1 %vm3713_vm15, %v19261_v18  ;;  %16992 = vmatprep.subr.mxu1 %v17959_v19 }
0x3281   :  { %16960 = vmatpush3.msra.mxu0 %v12586_v28  ;;  %16993 = vmatpush3.msra.mxu1 %v12808_v27 }
0x3282   :  { %16961 = vmatprep.subr.mxu0 %v17959_v19  ;;  %16994 = vmatprep.subr.mxu1 %v17959_v19 }
0x3283   :  { %16962 = vmatpush3.msra.mxu0 %v12585_v22  ;;  %16995 = vmatpush3.msra.mxu1 %v12807_v29 }
0x3284   :  { %16963 = vmatprep.subr.mxu0 %v17959_v19  ;;  %16996 = vmatprep.subr.mxu1 %v17959_v19 }
0x3285   :  { %16964 = vmatpush3.msra.mxu0 %v12584_v30  ;;  %16997 = vmatpush3.msra.mxu1 %v12806_v31 }
0x3286   :  { %16965 = vmatprep.subr.mxu0 %v17959_v19  ;;  %16998 = vmatprep.subr.mxu1 %v17959_v19 }
0x3287   :  { %16966 = vmatpush3.msra.mxu0 %v12583_v32  ;;  %16967 = vmatprep.mubr.msk.f32.mxu0 %vm17960_vm13, %v17959_v19 }
0x3288   :  { %16999 = vmatpush3.msra.mxu1 %v12805_v33  ;;  %17000 = vmatprep.mubr.msk.f32.mxu1 %vm17960_vm13, %v17959_v19 }
0x3289   :  { %16968 = vmatmul.mubr.msk.f32.vlgmr.msra.gmra.mxu0 %vm3713_vm15, %v19261_v18  ;;  %16981 = vmatprep.subr.mxu0 %v17959_v19 }
0x328a   :  { %17001 = vmatmul.mubr.msk.f32.vlgmr.msra.gmra.mxu1 %vm3713_vm15, %v19261_v18  ;;  %17014 = vmatprep.subr.mxu1 %v17959_v19 }
0x328b   :  { %16982 = vmatpush3.msra.mxu0 %v12734_v34  ;;  %17015 = vmatpush3.msra.mxu1 %v12956_v35 }
0x328c   :  { %16983 = vmatprep.subr.mxu0 %v17959_v19  ;;  %17016 = vmatprep.subr.mxu1 %v17959_v19 }
0x328d   :  { %16984 = vmatpush3.msra.mxu0 %v12733_v36  ;;  %17017 = vmatpush3.msra.mxu1 %v12955_v37 }
0x328e   :  { %16985 = vmatprep.subr.mxu0 %v17959_v19  ;;  %17018 = vmatprep.subr.mxu1 %v17959_v19 }
0x328f   :  { %16986 = vmatpush3.msra.mxu0 %v12732_v38  ;;  %17019 = vmatpush3.msra.mxu1 %v12954_v39 }
0x3290   :  { %16987 = vmatprep.subr.mxu0 %v17959_v19  ;;  %17020 = vmatprep.subr.mxu1 %v17959_v19 }
0x3291   :  { %16988 = vmatpush3.msra.mxu0 %v12731_v40  ;;  %16989 = vmatprep.mubr.msk.f32.mxu0 %vm17960_vm13, %v17959_v19 }
0x3292   :  { %17021 = vmatpush3.msra.mxu1 %v12953_v41  ;;  %17022 = vmatprep.mubr.msk.f32.mxu1 %vm17960_vm13, %v17959_v19 }
0x3293   :  { %16990 = vmatmul.mubr.msk.f32.vlgmr.msra.gmra.mxu0 %vm3713_vm15, %v19261_v18  ;;  %17003 = vmatprep.subr.mxu0 %v17959_v19 }
0x3294   :  { %17023 = vmatmul.mubr.msk.f32.vlgmr.msra.gmra.mxu1 %vm3713_vm15, %v19261_v18  ;;  %17036 = vmatprep.subr.mxu1 %v17959_v19 }
0x3295   :  { %17004 = vmatpush3.msra.mxu0 %v12882_v42  ;;  %17037 = vmatpush3.msra.mxu1 %v13104_v43 }
0x3296   :  { %17005 = vmatprep.subr.mxu0 %v17959_v19  ;;  %17038 = vmatprep.subr.mxu1 %v17959_v19 }
0x3297   :  { %17006 = vmatpush3.msra.mxu0 %v12881_v44  ;;  %17039 = vmatpush3.msra.mxu1 %v13103_v45 }
0x3298   :  { %17007 = vmatprep.subr.mxu0 %v17959_v19  ;;  %17040 = vmatprep.subr.mxu1 %v17959_v19 }
0x3299   :  { %17008 = vmatpush3.msra.mxu0 %v12880_v46  ;;  %17041 = vmatpush3.msra.mxu1 %v13102_v47 }
0x329a   :  { %17009 = vmatprep.subr.mxu0 %v17959_v19  ;;  %17042 = vmatprep.subr.mxu1 %v17959_v19 }
0x329b   :  { %17010 = vmatpush3.msra.mxu0 %v12879_v48  ;;  %17011 = vmatprep.mubr.msk.f32.mxu0 %vm17960_vm13, %v17959_v19 }
0x329c   :  { %17043 = vmatpush3.msra.mxu1 %v13101_v49  ;;  %17044 = vmatprep.mubr.msk.f32.mxu1 %vm17960_vm13, %v17959_v19 }
0x329d   :  { %17012 = vmatmul.mubr.msk.f32.vlgmr.msra.gmra.mxu0 %vm3713_vm15, %v19261_v18  ;;  %17025 = vmatprep.subr.mxu0 %v17959_v19 }
0x329e   :  { %17045 = vmatmul.mubr.msk.f32.vlgmr.msra.gmra.mxu1 %vm3713_vm15, %v19261_v18  ;;  %17058 = vmatprep.subr.mxu1 %v17959_v19 }
0x329f   :  { %17026 = vmatpush3.msra.mxu0 %v13030_v50  ;;  %17059 = vmatpush3.msra.mxu1 %v13252_v51 }
0x32a0   :  { %17027 = vmatprep.subr.mxu0 %v17959_v19  ;;  %17060 = vmatprep.subr.mxu1 %v17959_v19 }
0x32a1   :  { %17028 = vmatpush3.msra.mxu0 %v13029_v52  ;;  %17061 = vmatpush3.msra.mxu1 %v13251_v53 }
0x32a2   :  { %17029 = vmatprep.subr.mxu0 %v17959_v19  ;;  %17062 = vmatprep.subr.mxu1 %v17959_v19 }
0x32a3   :  { %17030 = vmatpush3.msra.mxu0 %v13028_v54  ;;  %17063 = vmatpush3.msra.mxu1 %v13250_v55 }
0x32a4   :  { %17031 = vmatprep.subr.mxu0 %v17959_v19  ;;  %17064 = vmatprep.subr.mxu1 %v17959_v19 }
0x32a5   :  { %17032 = vmatpush3.msra.mxu0 %v13027_v56  ;;  %17033 = vmatprep.mubr.msk.f32.mxu0 %vm17960_vm13, %v17959_v19 }
0x32a6   :  { %17065 = vmatpush3.msra.mxu1 %v13249_v57  ;;  %17066 = vmatprep.mubr.msk.f32.mxu1 %vm17960_vm13, %v17959_v19 }
0x32a7   :  { %17034 = vmatmul.mubr.msk.f32.vlgmr.msra.gmra.mxu0 %vm3713_vm15, %v19261_v18  ;;  %17047 = vmatprep.subr.mxu0 %v17959_v19 }
0x32a8   :  { %17067 = vmatmul.mubr.msk.f32.vlgmr.msra.gmra.mxu1 %vm3713_vm15, %v19261_v18  ;;  %17080 = vmatprep.subr.mxu1 %v17959_v19 }
0x32a9   :  { %17048 = vmatpush3.msra.mxu0 %v13178_v58  ;;  %17081 = vmatpush3.msra.mxu1 %v13400_v59  ;;  %v13655_v59 = vld [vmem:[#allocation40 + $0x1] sm:$0x1] }
0x32aa   :  { %17049 = vmatprep.subr.mxu0 %v17959_v19  ;;  %17082 = vmatprep.subr.mxu1 %v17959_v19 }
0x32ab   :  { %17050 = vmatpush3.msra.mxu0 %v13177_v60  ;;  %17083 = vmatpush3.msra.mxu1 %v13399_v61  ;;  %v13577_v60 = vld [vmem:[#allocation40] sm:$0x1]  ;;  %v14599_v61 = vld [vmem:[%s18205_s27 + $0x38] sm:$0xff] }
0x32ac   :  { %17051 = vmatprep.subr.mxu0 %v17959_v19  ;;  %17084 = vmatprep.subr.mxu1 %v17959_v19 }
0x32ad   :  { %17052 = vmatpush3.msra.mxu0 %v13176_v62  ;;  %17085 = vmatpush3.msra.mxu1 %v13398_v63  ;;  %v13654_v62 = vld [vmem:[%s18205_s27 + $0x18] sm:$0xff]  ;;  %v14598_v63 = vld [vmem:[%s18205_s27 + $0x30] sm:$0xff] }
0x32ae   :  { %17053 = vmatprep.subr.mxu0 %v17959_v19  ;;  %17086 = vmatprep.subr.mxu1 %v17959_v19 }
0x32af   :  { %17054 = vmatpush3.msra.mxu0 %v13175_v0  ;;  %17055 = vmatprep.mubr.msk.f32.mxu0 %vm17960_vm13, %v17959_v19  ;;  %v13653_v0 = vld [vmem:[%s18205_s27 + $0x10] sm:$0xff] }
0x32b0   :  { %17087 = vmatpush3.msra.mxu1 %v13397_v1  ;;  %17088 = vmatprep.mubr.msk.f32.mxu1 %vm17960_vm13, %v17959_v19  ;;  %v14597_v1 = vld [vmem:[%s18205_s27 + $0x28] sm:$0xff] }
0x32b1   :  { %17056 = vmatmul.mubr.msk.f32.vlgmr.msra.gmra.mxu0 %vm3713_vm15, %v19261_v18  ;;  %17069 = vmatprep.subr.mxu0 %v17959_v19 }
0x32b2   :  { %17089 = vmatmul.mubr.msk.f32.vlgmr.msra.gmra.mxu1 %vm3713_vm15, %v19261_v18  ;;  %17070 = vmatpush3.msra.mxu0 %v13326_v2  ;;  %v14596_v2 = vld [vmem:[%s18205_s27 + $0x20] sm:$0xff] }
0x32b3   :  { %17071 = vmatprep.subr.mxu0 %v17959_v19  ;;  %17077 = vmatprep.mubr.msk.f32.mxu0 %vm17960_vm13, %v17959_v19 }
0x32b4   :  { %17072 = vmatpush3.msra.mxu0 %v13325_v3  ;;  %17102 = vmatprep.subr.mxu1 %v17959_v19  ;;  %v13652_v3 = vld [vmem:[%s18205_s27 + $0x8] sm:$0xff] }
0x32b5   :  { %17073 = vmatprep.subr.mxu0 %v17959_v19  ;;  %17118 = vmatprep.mubr.msk.f32.mxu1 %vm17960_vm13, %v17959_v19 }
0x32b6   :  { %17074 = vmatpush3.msra.mxu0 %v13324_v4  ;;  %v13651_v4 = vld [vmem:[%s18205_s27] sm:$0xff] }
0x32b7   :  { %17075 = vmatprep.subr.mxu0 %v17959_v19 }
0x32b8   :  { %17076 = vmatpush3.msra.mxu0 %v13323_v5 }
0x32b9   :  { %17078 = vmatmul.mubr.msk.f32.vlgmr.msra.gmra.mxu0 %vm3713_vm15, %v19261_v18  ;;  %17091 = vmatprep.subr.mxu0 %v17959_v19 }
0x32ba   :  { %17092 = vmatpush3.msra.mxu0 %v13474_v6  ;;  %17099 = vmatprep.mubr.msk.f32.mxu0 %vm17960_vm13, %v17959_v19 }
0x32bb   :  { %17093 = vmatprep.subr.mxu0 %v17959_v19 }
0x32bc   :  { %17094 = vmatpush3.msra.mxu0 %v13473_v7 }
0x32bd   :  { %17095 = vmatprep.subr.mxu0 %v17959_v19 }
0x32be   :  { %17096 = vmatpush3.msra.mxu0 %v13472_v8 }
0x32bf   :  { %17097 = vmatprep.subr.mxu0 %v17959_v19 }
0x32c0   :  { %17098 = vmatpush3.msra.mxu0 %v13471_v9  ;;  %v13879_v9 = vld [vmem:[#allocation40 + $0x2] sm:$0x1] }
0x32c1   :  { %17100 = vmatmul.mubr.msk.f32.vlgmr.msra.gmra.mxu0 %vm3713_vm15, %v19261_v18  ;;  %17121 = vmatprep.subr.mxu0 %v17959_v19 }
0x32c2   :  { %17137 = vmatprep.mubr.msk.f32.mxu0 %vm17960_vm13, %v17959_v19 }
0x3336   :  { %v12431_v10 = vpop.f32.mrf.mxu0  ;;  %v12579_v11 = vpop.f32.mrf.mxu1 }
0x3338   :  { %v16936_v12 = vpop.f32.mrf.mxu0  ;;  %v16958_v13 = vpop.f32.mrf.mxu1 }
0x3339   :  { %v14604_v12 = vld [vmem:[%s18205_s27 + $0x48] sm:$0xff]  ;;  %v14603_v13 = vld [vmem:[%s18205_s27 + $0x40] sm:$0xff] }
0x333f   :  { %v12505_v14 = vpop.f32.mrf.mxu0 }
0x3340   :  { %v13546_v15 = vrot.slane %v12505_v14, 4  ;;  %v12727_v16 = vpop.f32.mrf.mxu1 }
0x3341   :  { %v16947_v17 = vpop.f32.mrf.mxu0 }
0x3342   :  { %v16980_v21 = vpop.f32.mrf.mxu1  ;;  %v19384_v23 = vsel %vm6772_vm14, %v12431_v10, %v13546_v15  ;;  %v14606_v10 = vld [vmem:[%s18205_s27 + $0x58] sm:$0xff] }
0x3349   :  { %v12653_v20 = vpop.f32.mrf.mxu0 }
0x334a   :  { %v13549_v24 = vrot.slane %v12653_v20, 4  ;;  %v12875_v18 = vpop.f32.mrf.mxu1 }
0x334b   :  { %v16969_v25 = vpop.f32.mrf.mxu0 }
0x334c   :  { %v17002_v26 = vpop.f32.mrf.mxu1  ;;  %v19387_v28 = vsel %vm6772_vm14, %v12579_v11, %v13549_v24  ;;  %v14605_v11 = vld [vmem:[%s18205_s27 + $0x50] sm:$0xff]  ;;  %v14612_v25 = vld [vmem:[%s18205_s27 + $0x78] sm:$0xff] }
0x334d   :  { %v14611_v26 = vld [vmem:[%s18205_s27 + $0x70] sm:$0xff] }
0x3353   :  { %v12801_v27 = vpop.f32.mrf.mxu0 }
0x3354   :  { %v13023_v22 = vpop.f32.mrf.mxu1  ;;  %v13552_v55 = vrot.slane %v12801_v27, 4  ;;  %v14610_v27 = vld [vmem:[%s18205_s27 + $0x68] sm:$0xff] }
0x3355   :  { %v16991_v29 = vpop.f32.mrf.mxu0 }
0x3356   :  { %v17024_v30 = vpop.f32.mrf.mxu1  ;;  %v19425_v58 = vsel %vm6772_vm14, %v12727_v16, %v13552_v55 }
0x335d   :  { %v12949_v31 = vpop.f32.mrf.mxu0 }
0x335e   :  { %v13171_v32 = vpop.f32.mrf.mxu1  ;;  %v13555_v53 = vrot.slane %v12949_v31, 4 }
0x335f   :  { %v17013_v33 = vpop.f32.mrf.mxu0 }
0x3360   :  { %v17046_v34 = vpop.f32.mrf.mxu1  ;;  %v19418_v57 = vsel %vm6772_vm14, %v12875_v18, %v13555_v53  ;;  %v14031_v18 = vld [vmem:[#allocation40 + $0x3] sm:$0x1] }
0x3367   :  { %v13097_v35 = vpop.f32.mrf.mxu0 }
0x3368   :  { %v13319_v36 = vpop.f32.mrf.mxu1  ;;  %v13558_v51 = vrot.slane %v13097_v35, 4 }
0x3369   :  { %v17035_v37 = vpop.f32.mrf.mxu0 }
0x336a   :  { %v17068_v38 = vpop.f32.mrf.mxu1  ;;  %v19411_v56 = vsel %vm6772_vm14, %v13023_v22, %v13558_v51 }
0x3371   :  { %v13245_v39 = vpop.f32.mrf.mxu0 }
0x3372   :  { %v13467_v40 = vpop.f32.mrf.mxu1  ;;  %v13561_v49 = vrot.slane %v13245_v39, 4 }
0x3373   :  { %v17057_v41 = vpop.f32.mrf.mxu0 }
0x3374   :  { %v17090_v42 = vpop.f32.mrf.mxu1  ;;  %v19404_v54 = vsel %vm6772_vm14, %v13171_v32, %v13561_v49 }
0x3379   :  { %v13393_v43 = vpop.f32.mrf.mxu0 }
0x337a   :  { %v13564_v46 = vrot.slane %v13393_v43, 4 }
0x337b   :  { %v17079_v44 = vpop.f32.mrf.mxu0 }
0x337c   :  { %v19397_v52 = vsel %vm6772_vm14, %v13319_v36, %v13564_v46 }
0x3381   :  { %v13541_v45 = vpop.f32.mrf.mxu0 }
0x3382   :  { %v13567_v47 = vrot.slane %v13541_v45, 4 }
0x3383   :  { %v17101_v48 = vpop.f32.mrf.mxu0 }
0x3384   :  { %v19390_v50 = vsel %vm6772_vm14, %v13467_v40, %v13567_v47 }
0x3385   :  { %17103 = vmatpush3.msra.mxu1 %v19390_v50  ;;  %17122 = vmatpush3.msra.mxu0 %v19390_v50 }
0x3386   :  { %17104 = vmatprep.subr.mxu1 %v17959_v19  ;;  %17123 = vmatprep.subr.mxu0 %v17959_v19 }
0x3387   :  { %17105 = vmatpush3.msra.mxu1 %v19397_v52  ;;  %17124 = vmatpush3.msra.mxu0 %v19397_v52 }
0x3388   :  { %17106 = vmatprep.subr.mxu1 %v17959_v19  ;;  %17125 = vmatprep.subr.mxu0 %v17959_v19 }
0x3389   :  { %17107 = vmatpush3.msra.mxu1 %v19404_v54  ;;  %17126 = vmatpush3.msra.mxu0 %v19404_v54 }
0x338a   :  { %17108 = vmatprep.subr.mxu1 %v17959_v19  ;;  %17127 = vmatprep.subr.mxu0 %v17959_v19 }
0x338b   :  { %17109 = vmatpush3.msra.mxu1 %v19411_v56  ;;  %17128 = vmatpush3.msra.mxu0 %v19411_v56 }
0x338c   :  { %17110 = vmatprep.subr.mxu1 %v17959_v19  ;;  %17129 = vmatprep.subr.mxu0 %v17959_v19 }
0x338d   :  { %17111 = vmatpush3.msra.mxu1 %v19418_v57  ;;  %17130 = vmatpush3.msra.mxu0 %v19418_v57 }
0x338e   :  { %17112 = vmatprep.subr.mxu1 %v17959_v19  ;;  %17131 = vmatprep.subr.mxu0 %v17959_v19 }
0x338f   :  { %17113 = vmatpush3.msra.mxu1 %v19425_v58  ;;  %17132 = vmatpush3.msra.mxu0 %v19425_v58 }
0x3390   :  { %17114 = vmatprep.subr.mxu1 %v17959_v19  ;;  %17133 = vmatprep.subr.mxu0 %v17959_v19 }
0x3391   :  { %17115 = vmatpush3.msra.mxu1 %v19387_v28  ;;  %17134 = vmatpush3.msra.mxu0 %v19387_v28 }
0x3392   :  { %17116 = vmatprep.subr.mxu1 %v17959_v19  ;;  %17135 = vmatprep.subr.mxu0 %v17959_v19 }
0x3393   :  { %17117 = vmatpush3.msra.mxu1 %v19384_v23  ;;  %17136 = vmatpush3.msra.mxu0 %v19384_v23 }
0x3394   :  { %17138 = vmatmul.mubr.msk.f32.vlgmr.msra.gmra.mxu0 %vm2067_vm10, %v13655_v59  ;;  %17119 = vmatmul.mubr.msk.f32.vlgmr.msra.gmra.mxu1 %vm2067_vm10, %v13577_v60 }
0x3395   :  { %17140 = vmatprep.subr.mxu1 %v17959_v19  ;;  %17151 = vmatprep.subr.mxu0 %v17959_v19 }
0x3396   :  { %17141 = vmatpush3.msra.mxu1 %v14599_v61  ;;  %17152 = vmatpush3.msra.mxu0 %v13654_v62 }
0x3397   :  { %17142 = vmatprep.subr.mxu1 %v17959_v19  ;;  %17153 = vmatprep.subr.mxu0 %v17959_v19 }
0x3398   :  { %17143 = vmatpush3.msra.mxu1 %v14598_v63  ;;  %17154 = vmatpush3.msra.mxu0 %v13653_v0 }
0x3399   :  { %17144 = vmatprep.subr.mxu1 %v17959_v19  ;;  %17148 = vmatprep.mubr.msk.f32.mxu1 %vm17960_vm13, %v17959_v19 }
0x339a   :  { %17145 = vmatpush3.msra.mxu1 %v14597_v1  ;;  %17155 = vmatprep.subr.mxu0 %v17959_v19 }
0x339b   :  { %17146 = vmatprep.subr.mxu1 %v17959_v19  ;;  %17159 = vmatprep.mubr.msk.f32.mxu0 %vm17960_vm13, %v17959_v19 }
0x339c   :  { %17147 = vmatpush3.msra.mxu1 %v14596_v2  ;;  %17156 = vmatpush3.msra.mxu0 %v13652_v3 }
0x339d   :  { %17162 = vmatprep.subr.mxu1 %v17959_v19  ;;  %17157 = vmatprep.subr.mxu0 %v17959_v19 }
0x339e   :  { %17158 = vmatpush3.msra.mxu0 %v13651_v4 }
0x339f   :  { %17181 = vmatprep.subr.mxu0 %v17959_v19 }
0x3454   :  { %v13725_v5 = vpop.f32.mrf.mxu0  ;;  %v13647_v6 = vpop.f32.mrf.mxu1 }
0x3455   :  { %17149 = vmatmul.mubr.msk.f32.vlgmr.msra.gmra.mxu1 %vm3713_vm15, %v13725_v5  ;;  %17160 = vmatmul.mubr.msk.f32.vlgmr.msra.gmra.mxu0 %vm3713_vm15, %v13647_v6 }
0x3456   :  { %17163 = vmatpush3.msra.mxu1 %v19390_v50  ;;  %v17139_v7 = vpop.f32.mrf.mxu0  ;;  %17178 = vmatprep.mubr.msk.f32.mxu1 %vm17960_vm13, %v17959_v19  ;;  %v17120_v8 = vpop.f32.mrf.mxu1 }
0x3457   :  { %17164 = vmatprep.subr.mxu1 %v17959_v19  ;;  %17189 = vmatprep.mubr.msk.f32.mxu0 %vm17960_vm13, %v17959_v19 }
0x3458   :  { %17165 = vmatpush3.msra.mxu1 %v19397_v52  ;;  %17182 = vmatpush3.msra.mxu0 %v14606_v10 }
0x3459   :  { %17166 = vmatprep.subr.mxu1 %v17959_v19  ;;  %17183 = vmatprep.subr.mxu0 %v17959_v19 }
0x345a   :  { %17167 = vmatpush3.msra.mxu1 %v19404_v54  ;;  %17184 = vmatpush3.msra.mxu0 %v14605_v11 }
0x345b   :  { %17168 = vmatprep.subr.mxu1 %v17959_v19  ;;  %17185 = vmatprep.subr.mxu0 %v17959_v19 }
0x345c   :  { %17169 = vmatpush3.msra.mxu1 %v19411_v56  ;;  %17186 = vmatpush3.msra.mxu0 %v14604_v12 }
0x345d   :  { %17170 = vmatprep.subr.mxu1 %v17959_v19  ;;  %17187 = vmatprep.subr.mxu0 %v17959_v19 }
0x345e   :  { %17171 = vmatpush3.msra.mxu1 %v19418_v57  ;;  %17188 = vmatpush3.msra.mxu0 %v14603_v13 }
0x345f   :  { %17172 = vmatprep.subr.mxu1 %v17959_v19  ;;  %17192 = vmatprep.subr.mxu0 %v17959_v19 }
0x3460   :  { %17173 = vmatpush3.msra.mxu1 %v19425_v58 }
0x3461   :  { %17174 = vmatprep.subr.mxu1 %v17959_v19 }
0x3462   :  { %17175 = vmatpush3.msra.mxu1 %v19387_v28 }
0x3463   :  { %17176 = vmatprep.subr.mxu1 %v17959_v19 }
0x3464   :  { %17177 = vmatpush3.msra.mxu1 %v19384_v23 }
0x3465   :  { %17179 = vmatmul.mubr.msk.f32.vlgmr.msra.gmra.mxu1 %vm2067_vm10, %v13879_v9  ;;  %17211 = vmatprep.subr.mxu1 %v17959_v19 }
0x3466   :  { %17219 = vmatprep.mubr.msk.f32.mxu1 %vm17960_vm13, %v17959_v19  ;;  %17212 = vmatpush3.msra.mxu1 %v14612_v25 }
0x3467   :  { %17213 = vmatprep.subr.mxu1 %v17959_v19 }
0x3468   :  { %17214 = vmatpush3.msra.mxu1 %v14611_v26 }
0x3469   :  { %17215 = vmatprep.subr.mxu1 %v17959_v19 }
0x346a   :  { %17216 = vmatpush3.msra.mxu1 %v14610_v27 }
0x346b   :  { %17217 = vmatprep.subr.mxu1 %v17959_v19 }
0x3515   :  { %v13802_v14 = vpop.f32.mrf.mxu1  ;;  %v13875_v15 = vpop.f32.mrf.mxu0 }
0x3516   :  { %v13876_v16 = vadd.f32 %v13875_v15, %v13802_v14 }
0x3517   :  { %v17150_v17 = vpop.f32.mrf.mxu1  ;;  %v17161_v21 = vpop.f32.mrf.mxu0 }
0x3525   :  { %v13949_v20 = vpop.f32.mrf.mxu1 }
0x3526   :  { %17190 = vmatmul.mubr.msk.f32.vlgmr.msra.gmra.mxu0 %vm3713_vm15, %v13949_v20 }
0x3527   :  { %17193 = vmatpush3.msra.mxu0 %v19390_v50  ;;  %v17180_v24 = vpop.f32.mrf.mxu1  ;;  %17208 = vmatprep.mubr.msk.f32.mxu0 %vm17960_vm13, %v17959_v19 }
0x3528   :  { %17194 = vmatprep.subr.mxu0 %v17959_v19 }
0x3529   :  { %17195 = vmatpush3.msra.mxu0 %v19397_v52 }
0x352a   :  { %17196 = vmatprep.subr.mxu0 %v17959_v19 }
0x352b   :  { %17197 = vmatpush3.msra.mxu0 %v19404_v54 }
0x352c   :  { %17198 = vmatprep.subr.mxu0 %v17959_v19 }
0x352d   :  { %17199 = vmatpush3.msra.mxu0 %v19411_v56 }
0x352e   :  { %17200 = vmatprep.subr.mxu0 %v17959_v19 }
0x352f   :  { %17201 = vmatpush3.msra.mxu0 %v19418_v57 }
0x3530   :  { %17202 = vmatprep.subr.mxu0 %v17959_v19 }
0x3531   :  { %17203 = vmatpush3.msra.mxu0 %v19425_v58 }
0x3532   :  { %17204 = vmatprep.subr.mxu0 %v17959_v19 }
0x3533   :  { %17205 = vmatpush3.msra.mxu0 %v19387_v28  ;;  %v14609_v28 = vld [vmem:[%s18205_s27 + $0x60] sm:$0xff] }
0x3534   :  { %17206 = vmatprep.subr.mxu0 %v17959_v19  ;;  %17218 = vmatpush3.msra.mxu1 %v14609_v28 }
0x3535   :  { %17207 = vmatpush3.msra.mxu0 %v19384_v23 }
0x3536   :  { %17209 = vmatmul.mubr.msk.f32.vlgmr.msra.gmra.mxu0 %vm2067_vm10, %v14031_v18 }
0x35e6   :  { %v14026_v22 = vpop.f32.mrf.mxu0 }
0x35e7   :  { %v14030_v29 = vadd.f32 %v14026_v22, %v13876_v16 }
0x35e8   :  { %v17191_v30 = vpop.f32.mrf.mxu0 }
0x35f6   :  { %v14101_v23 = vpop.f32.mrf.mxu0 }
0x35f7   :  { %17220 = vmatmul.mubr.msk.f32.vlgmr.msra.gmra.mxu1 %vm3713_vm15, %v14101_v23 }
0x35f8   :  { %v17210_v31 = vpop.f32.mrf.mxu0 }
0x36b7   :  { %v14178_v32 = vpop.f32.mrf.mxu1 }
0x36b8   :  { %v14182_v33 = vadd.f32 %v14178_v32, %v14030_v29 }
0x36b9   :  { %v17221_v34 = vpop.f32.mrf.mxu1 }
0x36ba   :  { %14183 = vst [vmem:[#allocation43 + $0x1] sm:$0x1] %v14182_v33 }
0x36bb   :  { %17841 = shalt.err (!%p17838_p8)
}
0x36bc   :  { %14193 = dma.vmem_to_hbm [thread:$0]  %s14191_s1, 32, %s18210_s25, [#allocation4]  }
0x36bd   :  { %17878 = dma.done.wait [#allocation4], 32  }
0x36be   :  { %17879 = vsyncadd [#allocation4], 4294967264 }
0x36bf   :  { %14197 = vsyncpa [#allocation3], 1 }
0x36c0   :  { %14198 = vsyncpa [#allocation6], 1 }
0x36c1   :  { %14199 = vsyncpa [#allocation9], 1 }
0x36c2   :  { %14200 = vsyncpa [#allocation12], 1 }
0x36c3   :  { %14201 = vsyncpa [#allocation15], 1 }
0x36c4   :  { %14202 = vsyncpa [#allocation18], 1 }
0x36c5   :  { %14203 = vsyncpa [#allocation21], 1 }
0x36c6   :  { %14204 = vsyncpa [#allocation24], 1 }
0x36c7   :  { %14205 = vsyncpa [#allocation27], 1 }
0x36c8   :  { %14206 = vsyncpa [#allocation30], 1 }
0x36c9   :  { %14207 = vsyncpa [#allocation33], 1 }
0x36ca   :  { %14208 = vsyncpa [#allocation36], 1 }
0x36cb   :  { %14209 = vsyncpa [#allocation39], 1 }
0x36cc   :  { %14210 = vsyncpa [#allocation42], 1 }
0x36cd   :  { %14211 = vsyncpa [#allocation4], 1 }

</bundles_post_ra>
